<compile_context>
chip_gen: v7x
topology: tpu7x:2x2x1
jax: 0.10.0
libtpu: 0.0.40
codegen_flags: <defaults>
</compile_context>

<pallas_src>
import functools

import jax
import jax.numpy as jnp
from jax.experimental import pallas as pl
from jax.experimental.pallas import tpu as pltpu

BN_EPS = 1e-5
N_CLASSES = 7


def _round_up(x, m):
    return ((x + m - 1) // m) * m


def _pick_m_tile(mp):
    """Largest sublane-aligned tile <= 256 that divides mp exactly."""
    if mp <= 256:
        return mp
    for t in range(256, 7, -8):
        if mp % t == 0:
            return t
    return 8


def _pick_k_tile(kp):
    """Lane-aligned K tile that divides kp exactly (full K if small)."""
    if kp <= 1024:
        return kp
    for t in (1024, 896, 768, 640, 512, 384, 256, 128):
        if kp % t == 0:
            return t
    return kp  # fall back to a single full-K block


# ----------------------------------------------------------------------------
# Pallas kernel: tiled  (X @ W) + shift  [+ ReLU]   (bf16 in, f32 accumulate)
# ----------------------------------------------------------------------------
def _matmul_shift_kernel(x_ref, w_ref, shift_ref, o_ref, acc_ref, *, relu):
    @pl.when(pl.program_id(2) == 0)
    def _():
        acc_ref[...] = jnp.zeros_like(acc_ref)

    acc_ref[...] += jnp.dot(x_ref[...], w_ref[...],
                            preferred_element_type=jnp.float32)

    @pl.when(pl.program_id(2) == pl.num_programs(2) - 1)
    def _():
        y = acc_ref[...] + shift_ref[...]
        if relu:
            y = jnp.maximum(y, 0.0)
        o_ref[...] = y.astype(o_ref.dtype)


def matmul_shift(x, w, shift, *, relu, out_dtype=jnp.bfloat16):
    """x: (M, K); w: (Kp, Np) bf16 with BN scale pre-folded; shift: (1, Np) f32."""
    M, K = x.shape
    Kp, Np = w.shape

    if Kp > K:                       # zero-pad reduction dim to match weight
        x = jnp.pad(x, ((0, 0), (0, Kp - K)))
    Mp = _round_up(max(M, 8), 8)
    if Mp > M:
        x = jnp.pad(x, ((0, Mp - M), (0, 0)))

    tm = _pick_m_tile(Mp)
    tn = Np if Np <= 256 else (256 if Np % 256 == 0 else 128)
    tk = _pick_k_tile(Kp)
    grid = (Mp // tm, Np // tn, Kp // tk)

    out = pl.pallas_call(
        functools.partial(_matmul_shift_kernel, relu=relu),
        out_shape=jax.ShapeDtypeStruct((Mp, Np), out_dtype),
        grid_spec=pltpu.PrefetchScalarGridSpec(
            num_scalar_prefetch=0,
            grid=grid,
            in_specs=[
                pl.BlockSpec((tm, tk), lambda i, j, k: (i, k)),
                pl.BlockSpec((tk, tn), lambda i, j, k: (k, j)),
                pl.BlockSpec((1, tn), lambda i, j, k: (0, j)),
            ],
            out_specs=pl.BlockSpec((tm, tn), lambda i, j, k: (i, j)),
            scratch_shapes=[pltpu.VMEM((tm, tn), jnp.float32)],
        ),
        compiler_params=pltpu.CompilerParams(
            dimension_semantics=("parallel", "parallel", "arbitrary"),
        ),
    )(x.astype(jnp.bfloat16), w, shift)
    return out[:M]


# ----------------------------------------------------------------------------
# Pallas kernel: fused classifier  fc1+BN+ReLU -> fc2+BN+ReLU -> fc3
# ----------------------------------------------------------------------------
def _fc_stack_kernel(x_ref, w1_ref, s1_ref, w2_ref, s2_ref, w3_ref, b3_ref,
                     o_ref):
    h = jnp.dot(x_ref[...], w1_ref[...], preferred_element_type=jnp.float32)
    h = jnp.maximum(h + s1_ref[...], 0.0).astype(jnp.bfloat16)
    h = jnp.dot(h, w2_ref[...], preferred_element_type=jnp.float32)
    h = jnp.maximum(h + s2_ref[...], 0.0).astype(jnp.bfloat16)
    y = jnp.dot(h, w3_ref[...], preferred_element_type=jnp.float32)
    o_ref[...] = y + b3_ref[...]


def fc_stack(x, fcp, n_classes):
    B, K = x.shape
    Bp = _round_up(max(B, 8), 8)
    xp = jnp.pad(x, ((0, Bp - B), (0, 0))).astype(jnp.bfloat16)
    w1, s1, w2, s2, w3, b3 = (fcp["w1"], fcp["s1"], fcp["w2"], fcp["s2"],
                              fcp["w3"], fcp["b3"])
    n1, n2, n3 = w1.shape[1], w2.shape[1], w3.shape[1]
    out = pl.pallas_call(
        _fc_stack_kernel,
        out_shape=jax.ShapeDtypeStruct((Bp, n3), jnp.float32),
        grid_spec=pltpu.PrefetchScalarGridSpec(
            num_scalar_prefetch=0,
            grid=(1,),
            in_specs=[
                pl.BlockSpec((Bp, K), lambda i: (0, 0)),
                pl.BlockSpec((K, n1), lambda i: (0, 0)),
                pl.BlockSpec((1, n1), lambda i: (0, 0)),
                pl.BlockSpec((n1, n2), lambda i: (0, 0)),
                pl.BlockSpec((1, n2), lambda i: (0, 0)),
                pl.BlockSpec((n2, n3), lambda i: (0, 0)),
                pl.BlockSpec((1, n3), lambda i: (0, 0)),
            ],
            out_specs=pl.BlockSpec((Bp, n3), lambda i: (0, 0)),
        ),
        compiler_params=pltpu.CompilerParams(
            dimension_semantics=("arbitrary",),
        ),
    )(xp, w1, s1, w2, s2, w3, b3)
    return out[:B, :n_classes]


# ----------------------------------------------------------------------------
# JAX glue: im2col, maxpool
# ----------------------------------------------------------------------------
def im2col(x_nhwc, k, pad):
    """(N,H,W,C) -> (N,H,W,k*k*C); patch feature order = (di, dj, cin)."""
    N, H, W, C = x_nhwc.shape
    xp = jnp.pad(x_nhwc, ((0, 0), (pad, pad), (pad, pad), (0, 0)))
    patches = []
    for di in range(k):
        for dj in range(k):
            patches.append(xp[:, di:di + H, dj:dj + W, :])
    return jnp.concatenate(patches, axis=-1)


def maxpool2x2(x_nhwc):
    N, H, W, C = x_nhwc.shape
    x = x_nhwc.reshape(N, H // 2, 2, W // 2, 2, C)
    return jnp.max(x, axis=(2, 4))


def conv_bn_relu_pool(x_nhwc, layer, k, pad):
    """Conv2d(k, stride 1, padding=pad) + BN(eval) + ReLU + MaxPool(2,2).
    BN scale/bias already folded into layer['w']/layer['shift'].
    Dropout(0.25) is identity in eval mode."""
    # TODO(synk): fuse im2col into the matmul kernel (halo reads from the NHWC
    # map) so the k^2-expanded patch matrix is never materialized in HBM.
    N, H, W, C = x_nhwc.shape
    patches = im2col(x_nhwc, k, pad).reshape(N * H * W, k * k * C)
    y = matmul_shift(patches, layer["w"], layer["shift"], relu=True)
    y = y.reshape(N, H, W, layer["w"].shape[1])
    # TODO(synk): fuse ReLU + 2x2 maxpool into the matmul epilogue (needs the
    # M tile to cover whole output-row pairs plus in-kernel sublane pooling).
    return maxpool2x2(y)


# ----------------------------------------------------------------------------
# Parameter prep: fold BN, fold scale into weights, lane/channel padding
# (all done ONCE, outside jit, on torch-layout parameters)
# ----------------------------------------------------------------------------
def _fold_bn(bias, bn):
    gamma, beta, mean, var = bn
    scale = gamma / jnp.sqrt(var + BN_EPS)
    shift = (bias - mean) * scale + beta
    return scale, shift


def _prep_conv(cp, k, cin_pad=None, cout_pad=None):
    w = cp["w"]                                    # (Cout, Cin, kh, kw), torch
    cout, cin = int(w.shape[0]), int(w.shape[1])
    scale, shift = _fold_bn(cp["b"], cp["bn"])
    # (Cout,Cin,kh,kw) -> (kh,kw,Cin,Cout) -> (k*k*Cin, Cout), BN scale folded.
    w2d = jnp.transpose(w, (2, 3, 1, 0)).reshape(k * k * cin, cout)
    w2d = w2d * scale[None, :]
    if cin_pad is not None and cin_pad > cin:      # consume zero-padded chans
        w2d = jnp.pad(w2d.reshape(k * k, cin, cout),
                      ((0, 0), (0, cin_pad - cin), (0, 0)))
        w2d = w2d.reshape(k * k * cin_pad, cout)
    if cout_pad is not None and cout_pad > cout:   # lane-dense output channels
        w2d = jnp.pad(w2d, ((0, 0), (0, cout_pad - cout)))
        shift = jnp.pad(shift, (0, cout_pad - cout))
    Kp = _round_up(w2d.shape[0], 16)               # bf16 sublane packing
    if Kp > w2d.shape[0]:
        w2d = jnp.pad(w2d, ((0, Kp - w2d.shape[0]), (0, 0)))
    return dict(w=w2d.astype(jnp.bfloat16),
                shift=shift.astype(jnp.float32).reshape(1, -1))


def prepare_params(p):
    """Convert torch-layout params into kernel-ready bf16 weights + f32 shifts."""
    q = {}
    q["conv1"] = _prep_conv(p["conv1"], k=3, cout_pad=128)  # 64 -> 128 lanes
    q["conv2"] = _prep_conv(p["conv2"], k=3, cin_pad=128)   # eat padded chans
    q["conv3"] = _prep_conv(p["conv3"], k=5)
    q["conv4"] = _prep_conv(p["conv4"], k=3)

    # fc1: permute input rows from NCHW-flatten (c,h,w) to NHWC-flatten (h,w,c)
    c, hh, ww = 512, 3, 3
    w1 = p["fc1"]["w"].reshape(-1, c, hh, ww).transpose(0, 2, 3, 1)
    w1 = w1.reshape(w1.shape[0], -1)                       # (256, 4608) NHWC
    sc1, sh1 = _fold_bn(p["fc1"]["b"], p["fc1"]["bn"])
    sc2, sh2 = _fold_bn(p["fc2"]["b"], p["fc2"]["bn"])
    w3 = p["fc3"]["w"]                                     # (7, 128)
    n_out = int(w3.shape[0])
    n3 = _round_up(n_out, 128)                             # lane-dense fc3
    q["fc"] = dict(
        w1=(w1.T * sc1[None, :]).astype(jnp.bfloat16),     # (4608, 256)
        s1=sh1.astype(jnp.float32).reshape(1, -1),
        w2=(p["fc2"]["w"].T * sc2[None, :]).astype(jnp.bfloat16),  # (256, 128)
        s2=sh2.astype(jnp.float32).reshape(1, -1),
        w3=jnp.pad(w3.T, ((0, 0), (0, n3 - n_out))).astype(jnp.bfloat16),
        b3=jnp.pad(p["fc3"]["b"],
                   (0, n3 - n_out)).astype(jnp.float32).reshape(1, -1),
    )
    return q


# ----------------------------------------------------------------------------
# Deterministic parameter initialization (torch layout)
# ----------------------------------------------------------------------------
def init_params(key):
    ks = iter(jax.random.split(key, 64))
    p = {}

    def conv_block(cout, cin, k):
        w = jax.random.normal(next(ks), (cout, cin, k, k), jnp.float32) * 0.05
        b = jax.random.normal(next(ks), (cout,), jnp.float32) * 0.05
        gamma = 1.0 + 0.1 * jax.random.normal(next(ks), (cout,), jnp.float32)
        beta = 0.1 * jax.random.normal(next(ks), (cout,), jnp.float32)
        mean = 0.1 * jax.random.normal(next(ks), (cout,), jnp.float32)
        var = jax.random.uniform(next(ks), (cout,), jnp.float32, 0.5, 1.5)
        return dict(w=w, b=b, bn=(gamma, beta, mean, var))

    def fc_block(nout, nin, with_bn=True):
        w = jax.random.normal(next(ks), (nout, nin), jnp.float32) * 0.02
        b = jax.random.normal(next(ks), (nout,), jnp.float32) * 0.02
        d = dict(w=w, b=b)
        if with_bn:
            gamma = 1.0 + 0.1 * jax.random.normal(next(ks), (nout,), jnp.float32)
            beta = 0.1 * jax.random.normal(next(ks), (nout,), jnp.float32)
            mean = 0.1 * jax.random.normal(next(ks), (nout,), jnp.float32)
            var = jax.random.uniform(next(ks), (nout,), jnp.float32, 0.5, 1.5)
            d["bn"] = (gamma, beta, mean, var)
        return d

    p["conv1"] = conv_block(64, 1, 3)
    p["conv2"] = conv_block(128, 64, 3)
    p["conv3"] = conv_block(512, 128, 5)
    p["conv4"] = conv_block(512, 512, 3)
    p["fc1"] = fc_block(256, 512 * 3 * 3)
    p["fc2"] = fc_block(128, 256)
    p["fc3"] = fc_block(7, 128, with_bn=False)
    return p


# ----------------------------------------------------------------------------
# Full forward (eval mode)
# ----------------------------------------------------------------------------
def facenet_forward(params, x_nchw):
    # NHWC bf16 feature maps throughout the conv stack.
    x = jnp.transpose(x_nchw, (0, 2, 3, 1)).astype(jnp.bfloat16)
    x = conv_bn_relu_pool(x, params["conv1"], k=3, pad=1)   # 48 -> 24 (128 ch)
    x = conv_bn_relu_pool(x, params["conv2"], k=3, pad=1)   # 24 -> 12 (128 ch)
    x = conv_bn_relu_pool(x, params["conv3"], k=5, pad=2)   # 12 -> 6  (512 ch)
    x = conv_bn_relu_pool(x, params["conv4"], k=3, pad=1)   # 6  -> 3  (512 ch)
    # NHWC flatten; fc1 weight rows were pre-permuted to NHWC order, so this
    # matches torch.flatten(x, 1) on NCHW without a runtime transpose.
    x = x.reshape(x.shape[0], -1)                           # (N, 3*3*512)
    return fc_stack(x, params["fc"], N_CLASSES)             # (N, 7) f32


if __name__ == "__main__":
    key = jax.random.PRNGKey(0)
    k_params, k_input = jax.random.split(key)

    raw_params = init_params(k_params)        # torch-layout parameters
    params = prepare_params(raw_params)       # kernel-ready (bf16, folded BN)

    x = jax.random.normal(k_input, (2, 1, 48, 48), jnp.float32)  # NCHW input

    fwd = jax.jit(facenet_forward)
    out = jax.block_until_ready(fwd(params, x))

    assert out.shape == (2, N_CLASSES), out.shape
    assert out.dtype == jnp.float32
    assert bool(jnp.all(jnp.isfinite(out)))
    print("KERNEL_OK")
</pallas_src>

<mosaic_0001>
module attributes {stable_mosaic.version = 11 : i64} {
  func.func @_matmul_shift_kernel(%arg0: i32, %arg1: i32, %arg2: i32, %arg3: memref<256x16xbf16, #tpu.memory_space<vmem>>, %arg4: memref<16x128xbf16, #tpu.memory_space<vmem>>, %arg5: memref<1x128xf32, #tpu.memory_space<vmem>>, %arg6: memref<256x128xbf16, #tpu.memory_space<vmem>>, %arg7: memref<256x128xf32, #tpu.memory_space<vmem>>) attributes {dimension_semantics = [#tpu.dimension_semantics<parallel>, #tpu.dimension_semantics<parallel>, #tpu.dimension_semantics<arbitrary>], iteration_bounds = array<i64: 18, 1, 1>, scalar_prefetch = 0 : i64, scratch_operands = 1 : i64, tpu.core_type = #tpu.core_type<tc>, window_params = [{transform_indices = @transform_0, window_bounds = array<i64: 256, 16>}, {transform_indices = @transform_1, window_bounds = array<i64: 16, 128>}, {transform_indices = @transform_2, window_bounds = array<i64: 1, 128>}, {transform_indices = @transform_3, window_bounds = array<i64: 256, 128>}]} {
    %c0_i32 = arith.constant 0 : i32
    %0 = arith.cmpi eq, %arg2, %c0_i32 : i32
    %1 = arith.extui %0 : i1 to i32
    %c0_i32_0 = arith.constant 0 : i32
    %2 = arith.cmpi ne, %1, %c0_i32_0 : i32
    scf.if %2 {
      %cst_10 = arith.constant 0.000000e+00 : f32
      %12 = vector.broadcast %cst_10 : f32 to vector<256x128xf32>
      %c0_11 = arith.constant 0 : index
      %c0_12 = arith.constant 0 : index
      %13 = vector.load %arg7[%c0_11, %c0_12] : memref<256x128xf32, #tpu.memory_space<vmem>>, vector<256x128xf32>
      tpu.vector_store %arg7[%c0_11, %c0_12], %12 {strides = array<i32>} : memref<256x128xf32, #tpu.memory_space<vmem>>, vector<256x128xf32>,
    } else {
    }
    %c0 = arith.constant 0 : index
    %c0_1 = arith.constant 0 : index
    %3 = vector.load %arg7[%c0, %c0_1] : memref<256x128xf32, #tpu.memory_space<vmem>>, vector<256x128xf32>
    %c0_2 = arith.constant 0 : index
    %c0_3 = arith.constant 0 : index
    %4 = vector.load %arg3[%c0_2, %c0_3] : memref<256x16xbf16, #tpu.memory_space<vmem>>, vector<256x16xbf16>
    %c0_4 = arith.constant 0 : index
    %c0_5 = arith.constant 0 : index
    %5 = vector.load %arg4[%c0_4, %c0_5] : memref<16x128xbf16, #tpu.memory_space<vmem>>, vector<16x128xbf16>
    %cst = arith.constant dense<0.000000e+00> : vector<256x128xf32>
    %6 = tpu.matmul %4, %5, %cst {dimension_numbers = #tpu.dot_dimension_numbers<[1], [0], [0], [1], [0, 0, 1, 1], [], []>} : vector<256x16xbf16>, vector<16x128xbf16>, vector<256x128xf32> -> vector<256x128xf32>
    %7 = arith.addf %3, %6 : vector<256x128xf32>
    %c0_6 = arith.constant 0 : index
    %c0_7 = arith.constant 0 : index
    %8 = vector.load %arg7[%c0_6, %c0_7] : memref<256x128xf32, #tpu.memory_space<vmem>>, vector<256x128xf32>
    tpu.vector_store %arg7[%c0_6, %c0_7], %7 {strides = array<i32>} : memref<256x128xf32, #tpu.memory_space<vmem>>, vector<256x128xf32>,
    %c0_i32_8 = arith.constant 0 : i32
    %9 = arith.cmpi eq, %arg2, %c0_i32_8 : i32
    %10 = arith.extui %9 : i1 to i32
    %c0_i32_9 = arith.constant 0 : i32
    %11 = arith.cmpi ne, %10, %c0_i32_9 : i32
    scf.if %11 {
      %c0_10 = arith.constant 0 : index
      %c0_11 = arith.constant 0 : index
      %12 = vector.load %arg7[%c0_10, %c0_11] : memref<256x128xf32, #tpu.memory_space<vmem>>, vector<256x128xf32>
      %c0_12 = arith.constant 0 : index
      %c0_13 = arith.constant 0 : index
      %13 = vector.load %arg5[%c0_12, %c0_13] : memref<1x128xf32, #tpu.memory_space<vmem>>, vector<1x128xf32>
      %14 = vector.broadcast %13 : vector<1x128xf32> to vector<256x128xf32>
      %15 = arith.addf %12, %14 : vector<256x128xf32>
      %cst_14 = arith.constant 0.000000e+00 : f32
      %16 = vector.broadcast %cst_14 : f32 to vector<256x128xf32>
      %17 = arith.maximumf %15, %16 : vector<256x128xf32>
      %18 = arith.truncf %17 : vector<256x128xf32> to vector<256x128xbf16>
      %c0_15 = arith.constant 0 : index
      %c0_16 = arith.constant 0 : index
      %19 = vector.load %arg6[%c0_15, %c0_16] : memref<256x128xbf16, #tpu.memory_space<vmem>>, vector<256x128xbf16>
      tpu.vector_store %arg6[%c0_15, %c0_16], %18 {strides = array<i32>} : memref<256x128xbf16, #tpu.memory_space<vmem>>, vector<256x128xbf16>,
    } else {
    }
    return
  }
  func.func @transform_0(%arg0: i32, %arg1: i32, %arg2: i32) -> (i32, i32) {
    %c0_i32 = arith.constant 0 : i32
    return %arg0, %arg2 : i32, i32
  }
  func.func @transform_1(%arg0: i32, %arg1: i32, %arg2: i32) -> (i32, i32) {
    %c0_i32 = arith.constant 0 : i32
    return %arg2, %arg1 : i32, i32
  }
  func.func @transform_2(%arg0: i32, %arg1: i32, %arg2: i32) -> (i32, i32) {
    %c0_i32 = arith.constant 0 : i32
    %c0_i32_0 = arith.constant 0 : i32
    return %c0_i32, %arg1 : i32, i32
  }
  func.func @transform_3(%arg0: i32, %arg1: i32, %arg2: i32) -> (i32, i32) {
    %c0_i32 = arith.constant 0 : i32
    return %arg0, %arg1 : i32, i32
  }
}

module attributes {stable_mosaic.version = 11 : i64} {
  func.func @_matmul_shift_kernel(%arg0: i32, %arg1: i32, %arg2: i32, %arg3: memref<192x384xbf16, #tpu.memory_space<vmem>>, %arg4: memref<384x128xbf16, #tpu.memory_space<vmem>>, %arg5: memref<1x128xf32, #tpu.memory_space<vmem>>, %arg6: memref<192x128xbf16, #tpu.memory_space<vmem>>, %arg7: memref<192x128xf32, #tpu.memory_space<vmem>>) attributes {dimension_semantics = [#tpu.dimension_semantics<parallel>, #tpu.dimension_semantics<parallel>, #tpu.dimension_semantics<arbitrary>], iteration_bounds = array<i64: 6, 1, 3>, scalar_prefetch = 0 : i64, scratch_operands = 1 : i64, tpu.core_type = #tpu.core_type<tc>, window_params = [{transform_indices = @transform_0, window_bounds = array<i64: 192, 384>}, {transform_indices = @transform_1, window_bounds = array<i64: 384, 128>}, {transform_indices = @transform_2, window_bounds = array<i64: 1, 128>}, {transform_indices = @transform_3, window_bounds = array<i64: 192, 128>}]} {
    %c0_i32 = arith.constant 0 : i32
    %0 = arith.cmpi eq, %arg2, %c0_i32 : i32
    %1 = arith.extui %0 : i1 to i32
    %c0_i32_0 = arith.constant 0 : i32
    %2 = arith.cmpi ne, %1, %c0_i32_0 : i32
    scf.if %2 {
      %cst_9 = arith.constant 0.000000e+00 : f32
      %12 = vector.broadcast %cst_9 : f32 to vector<192x128xf32>
      %c0_10 = arith.constant 0 : index
      %c0_11 = arith.constant 0 : index
      %13 = vector.load %arg7[%c0_10, %c0_11] : memref<192x128xf32, #tpu.memory_space<vmem>>, vector<192x128xf32>
      tpu.vector_store %arg7[%c0_10, %c0_11], %12 {strides = array<i32>} : memref<192x128xf32, #tpu.memory_space<vmem>>, vector<192x128xf32>,
    } else {
    }
    %c0 = arith.constant 0 : index
    %c0_1 = arith.constant 0 : index
    %3 = vector.load %arg7[%c0, %c0_1] : memref<192x128xf32, #tpu.memory_space<vmem>>, vector<192x128xf32>
    %c0_2 = arith.constant 0 : index
    %c0_3 = arith.constant 0 : index
    %4 = vector.load %arg3[%c0_2, %c0_3] : memref<192x384xbf16, #tpu.memory_space<vmem>>, vector<192x384xbf16>
    %c0_4 = arith.constant 0 : index
    %c0_5 = arith.constant 0 : index
    %5 = vector.load %arg4[%c0_4, %c0_5] : memref<384x128xbf16, #tpu.memory_space<vmem>>, vector<384x128xbf16>
    %cst = arith.constant dense<0.000000e+00> : vector<192x128xf32>
    %6 = tpu.matmul %4, %5, %cst {dimension_numbers = #tpu.dot_dimension_numbers<[1], [0], [0], [1], [0, 0, 1, 1], [], []>} : vector<192x384xbf16>, vector<384x128xbf16>, vector<192x128xf32> -> vector<192x128xf32>
    %7 = arith.addf %3, %6 : vector<192x128xf32>
    %c0_6 = arith.constant 0 : index
    %c0_7 = arith.constant 0 : index
    %8 = vector.load %arg7[%c0_6, %c0_7] : memref<192x128xf32, #tpu.memory_space<vmem>>, vector<192x128xf32>
    tpu.vector_store %arg7[%c0_6, %c0_7], %7 {strides = array<i32>} : memref<192x128xf32, #tpu.memory_space<vmem>>, vector<192x128xf32>,
    %c2_i32 = arith.constant 2 : i32
    %9 = arith.cmpi eq, %arg2, %c2_i32 : i32
    %10 = arith.extui %9 : i1 to i32
    %c0_i32_8 = arith.constant 0 : i32
    %11 = arith.cmpi ne, %10, %c0_i32_8 : i32
    scf.if %11 {
      %c0_9 = arith.constant 0 : index
      %c0_10 = arith.constant 0 : index
      %12 = vector.load %arg7[%c0_9, %c0_10] : memref<192x128xf32, #tpu.memory_space<vmem>>, vector<192x128xf32>
      %c0_11 = arith.constant 0 : index
      %c0_12 = arith.constant 0 : index
      %13 = vector.load %arg5[%c0_11, %c0_12] : memref<1x128xf32, #tpu.memory_space<vmem>>, vector<1x128xf32>
      %14 = vector.broadcast %13 : vector<1x128xf32> to vector<192x128xf32>
      %15 = arith.addf %12, %14 : vector<192x128xf32>
      %cst_13 = arith.constant 0.000000e+00 : f32
      %16 = vector.broadcast %cst_13 : f32 to vector<192x128xf32>
      %17 = arith.maximumf %15, %16 : vector<192x128xf32>
      %18 = arith.truncf %17 : vector<192x128xf32> to vector<192x128xbf16>
      %c0_14 = arith.constant 0 : index
      %c0_15 = arith.constant 0 : index
      %19 = vector.load %arg6[%c0_14, %c0_15] : memref<192x128xbf16, #tpu.memory_space<vmem>>, vector<192x128xbf16>
      tpu.vector_store %arg6[%c0_14, %c0_15], %18 {strides = array<i32>} : memref<192x128xbf16, #tpu.memory_space<vmem>>, vector<192x128xbf16>,
    } else {
    }
    return
  }
  func.func @transform_0(%arg0: i32, %arg1: i32, %arg2: i32) -> (i32, i32) {
    %c0_i32 = arith.constant 0 : i32
    return %arg0, %arg2 : i32, i32
  }
  func.func @transform_1(%arg0: i32, %arg1: i32, %arg2: i32) -> (i32, i32) {
    %c0_i32 = arith.constant 0 : i32
    return %arg2, %arg1 : i32, i32
  }
  func.func @transform_2(%arg0: i32, %arg1: i32, %arg2: i32) -> (i32, i32) {
    %c0_i32 = arith.constant 0 : i32
    %c0_i32_0 = arith.constant 0 : i32
    return %c0_i32, %arg1 : i32, i32
  }
  func.func @transform_3(%arg0: i32, %arg1: i32, %arg2: i32) -> (i32, i32) {
    %c0_i32 = arith.constant 0 : i32
    return %arg0, %arg1 : i32, i32
  }
}

module attributes {stable_mosaic.version = 11 : i64} {
  func.func @_matmul_shift_kernel(%arg0: i32, %arg1: i32, %arg2: i32, %arg3: memref<144x640xbf16, #tpu.memory_space<vmem>>, %arg4: memref<640x256xbf16, #tpu.memory_space<vmem>>, %arg5: memref<1x256xf32, #tpu.memory_space<vmem>>, %arg6: memref<144x256xbf16, #tpu.memory_space<vmem>>, %arg7: memref<144x256xf32, #tpu.memory_space<vmem>>) attributes {dimension_semantics = [#tpu.dimension_semantics<parallel>, #tpu.dimension_semantics<parallel>, #tpu.dimension_semantics<arbitrary>], iteration_bounds = array<i64: 2, 2, 5>, scalar_prefetch = 0 : i64, scratch_operands = 1 : i64, tpu.core_type = #tpu.core_type<tc>, window_params = [{transform_indices = @transform_0, window_bounds = array<i64: 144, 640>}, {transform_indices = @transform_1, window_bounds = array<i64: 640, 256>}, {transform_indices = @transform_2, window_bounds = array<i64: 1, 256>}, {transform_indices = @transform_3, window_bounds = array<i64: 144, 256>}]} {
    %c0_i32 = arith.constant 0 : i32
    %0 = arith.cmpi eq, %arg2, %c0_i32 : i32
    %1 = arith.extui %0 : i1 to i32
    %c0_i32_0 = arith.constant 0 : i32
    %2 = arith.cmpi ne, %1, %c0_i32_0 : i32
    scf.if %2 {
      %cst_9 = arith.constant 0.000000e+00 : f32
      %12 = vector.broadcast %cst_9 : f32 to vector<144x256xf32>
      %c0_10 = arith.constant 0 : index
      %c0_11 = arith.constant 0 : index
      %13 = vector.load %arg7[%c0_10, %c0_11] : memref<144x256xf32, #tpu.memory_space<vmem>>, vector<144x256xf32>
      tpu.vector_store %arg7[%c0_10, %c0_11], %12 {strides = array<i32>} : memref<144x256xf32, #tpu.memory_space<vmem>>, vector<144x256xf32>,
    } else {
    }
    %c0 = arith.constant 0 : index
    %c0_1 = arith.constant 0 : index
    %3 = vector.load %arg7[%c0, %c0_1] : memref<144x256xf32, #tpu.memory_space<vmem>>, vector<144x256xf32>
    %c0_2 = arith.constant 0 : index
    %c0_3 = arith.constant 0 : index
    %4 = vector.load %arg3[%c0_2, %c0_3] : memref<144x640xbf16, #tpu.memory_space<vmem>>, vector<144x640xbf16>
    %c0_4 = arith.constant 0 : index
    %c0_5 = arith.constant 0 : index
    %5 = vector.load %arg4[%c0_4, %c0_5] : memref<640x256xbf16, #tpu.memory_space<vmem>>, vector<640x256xbf16>
    %cst = arith.constant dense<0.000000e+00> : vector<144x256xf32>
    %6 = tpu.matmul %4, %5, %cst {dimension_numbers = #tpu.dot_dimension_numbers<[1], [0], [0], [1], [0, 0, 1, 1], [], []>} : vector<144x640xbf16>, vector<640x256xbf16>, vector<144x256xf32> -> vector<144x256xf32>
    %7 = arith.addf %3, %6 : vector<144x256xf32>
    %c0_6 = arith.constant 0 : index
    %c0_7 = arith.constant 0 : index
    %8 = vector.load %arg7[%c0_6, %c0_7] : memref<144x256xf32, #tpu.memory_space<vmem>>, vector<144x256xf32>
    tpu.vector_store %arg7[%c0_6, %c0_7], %7 {strides = array<i32>} : memref<144x256xf32, #tpu.memory_space<vmem>>, vector<144x256xf32>,
    %c4_i32 = arith.constant 4 : i32
    %9 = arith.cmpi eq, %arg2, %c4_i32 : i32
    %10 = arith.extui %9 : i1 to i32
    %c0_i32_8 = arith.constant 0 : i32
    %11 = arith.cmpi ne, %10, %c0_i32_8 : i32
    scf.if %11 {
      %c0_9 = arith.constant 0 : index
      %c0_10 = arith.constant 0 : index
      %12 = vector.load %arg7[%c0_9, %c0_10] : memref<144x256xf32, #tpu.memory_space<vmem>>, vector<144x256xf32>
      %c0_11 = arith.constant 0 : index
      %c0_12 = arith.constant 0 : index
      %13 = vector.load %arg5[%c0_11, %c0_12] : memref<1x256xf32, #tpu.memory_space<vmem>>, vector<1x256xf32>
      %14 = vector.broadcast %13 : vector<1x256xf32> to vector<144x256xf32>
      %15 = arith.addf %12, %14 : vector<144x256xf32>
      %cst_13 = arith.constant 0.000000e+00 : f32
      %16 = vector.broadcast %cst_13 : f32 to vector<144x256xf32>
      %17 = arith.maximumf %15, %16 : vector<144x256xf32>
      %18 = arith.truncf %17 : vector<144x256xf32> to vector<144x256xbf16>
      %c0_14 = arith.constant 0 : index
      %c0_15 = arith.constant 0 : index
      %19 = vector.load %arg6[%c0_14, %c0_15] : memref<144x256xbf16, #tpu.memory_space<vmem>>, vector<144x256xbf16>
      tpu.vector_store %arg6[%c0_14, %c0_15], %18 {strides = array<i32>} : memref<144x256xbf16, #tpu.memory_space<vmem>>, vector<144x256xbf16>,
    } else {
    }
    return
  }
  func.func @transform_0(%arg0: i32, %arg1: i32, %arg2: i32) -> (i32, i32) {
    %c0_i32 = arith.constant 0 : i32
    return %arg0, %arg2 : i32, i32
  }
  func.func @transform_1(%arg0: i32, %arg1: i32, %arg2: i32) -> (i32, i32) {
    %c0_i32 = arith.constant 0 : i32
    return %arg2, %arg1 : i32, i32
  }
  func.func @transform_2(%arg0: i32, %arg1: i32, %arg2: i32) -> (i32, i32) {
    %c0_i32 = arith.constant 0 : i32
    %c0_i32_0 = arith.constant 0 : i32
    return %c0_i32, %arg1 : i32, i32
  }
  func.func @transform_3(%arg0: i32, %arg1: i32, %arg2: i32) -> (i32, i32) {
    %c0_i32 = arith.constant 0 : i32
    return %arg0, %arg1 : i32, i32
  }
}

module attributes {stable_mosaic.version = 11 : i64} {
  func.func @_matmul_shift_kernel(%arg0: i32, %arg1: i32, %arg2: i32, %arg3: memref<72x768xbf16, #tpu.memory_space<vmem>>, %arg4: memref<768x256xbf16, #tpu.memory_space<vmem>>, %arg5: memref<1x256xf32, #tpu.memory_space<vmem>>, %arg6: memref<72x256xbf16, #tpu.memory_space<vmem>>, %arg7: memref<72x256xf32, #tpu.memory_space<vmem>>) attributes {dimension_semantics = [#tpu.dimension_semantics<parallel>, #tpu.dimension_semantics<parallel>, #tpu.dimension_semantics<arbitrary>], iteration_bounds = array<i64: 1, 2, 6>, scalar_prefetch = 0 : i64, scratch_operands = 1 : i64, tpu.core_type = #tpu.core_type<tc>, window_params = [{transform_indices = @transform_0, window_bounds = array<i64: 72, 768>}, {transform_indices = @transform_1, window_bounds = array<i64: 768, 256>}, {transform_indices = @transform_2, window_bounds = array<i64: 1, 256>}, {transform_indices = @transform_3, window_bounds = array<i64: 72, 256>}]} {
    %c0_i32 = arith.constant 0 : i32
    %0 = arith.cmpi eq, %arg2, %c0_i32 : i32
    %1 = arith.extui %0 : i1 to i32
    %c0_i32_0 = arith.constant 0 : i32
    %2 = arith.cmpi ne, %1, %c0_i32_0 : i32
    scf.if %2 {
      %cst_9 = arith.constant 0.000000e+00 : f32
      %12 = vector.broadcast %cst_9 : f32 to vector<72x256xf32>
      %c0_10 = arith.constant 0 : index
      %c0_11 = arith.constant 0 : index
      %13 = vector.load %arg7[%c0_10, %c0_11] : memref<72x256xf32, #tpu.memory_space<vmem>>, vector<72x256xf32>
      tpu.vector_store %arg7[%c0_10, %c0_11], %12 {strides = array<i32>} : memref<72x256xf32, #tpu.memory_space<vmem>>, vector<72x256xf32>,
    } else {
    }
    %c0 = arith.constant 0 : index
    %c0_1 = arith.constant 0 : index
    %3 = vector.load %arg7[%c0, %c0_1] : memref<72x256xf32, #tpu.memory_space<vmem>>, vector<72x256xf32>
    %c0_2 = arith.constant 0 : index
    %c0_3 = arith.constant 0 : index
    %4 = vector.load %arg3[%c0_2, %c0_3] : memref<72x768xbf16, #tpu.memory_space<vmem>>, vector<72x768xbf16>
    %c0_4 = arith.constant 0 : index
    %c0_5 = arith.constant 0 : index
    %5 = vector.load %arg4[%c0_4, %c0_5] : memref<768x256xbf16, #tpu.memory_space<vmem>>, vector<768x256xbf16>
    %cst = arith.constant dense<0.000000e+00> : vector<72x256xf32>
    %6 = tpu.matmul %4, %5, %cst {dimension_numbers = #tpu.dot_dimension_numbers<[1], [0], [0], [1], [0, 0, 1, 1], [], []>} : vector<72x768xbf16>, vector<768x256xbf16>, vector<72x256xf32> -> vector<72x256xf32>
    %7 = arith.addf %3, %6 : vector<72x256xf32>
    %c0_6 = arith.constant 0 : index
    %c0_7 = arith.constant 0 : index
    %8 = vector.load %arg7[%c0_6, %c0_7] : memref<72x256xf32, #tpu.memory_space<vmem>>, vector<72x256xf32>
    tpu.vector_store %arg7[%c0_6, %c0_7], %7 {strides = array<i32>} : memref<72x256xf32, #tpu.memory_space<vmem>>, vector<72x256xf32>,
    %c5_i32 = arith.constant 5 : i32
    %9 = arith.cmpi eq, %arg2, %c5_i32 : i32
    %10 = arith.extui %9 : i1 to i32
    %c0_i32_8 = arith.constant 0 : i32
    %11 = arith.cmpi ne, %10, %c0_i32_8 : i32
    scf.if %11 {
      %c0_9 = arith.constant 0 : index
      %c0_10 = arith.constant 0 : index
      %12 = vector.load %arg7[%c0_9, %c0_10] : memref<72x256xf32, #tpu.memory_space<vmem>>, vector<72x256xf32>
      %c0_11 = arith.constant 0 : index
      %c0_12 = arith.constant 0 : index
      %13 = vector.load %arg5[%c0_11, %c0_12] : memref<1x256xf32, #tpu.memory_space<vmem>>, vector<1x256xf32>
      %14 = vector.broadcast %13 : vector<1x256xf32> to vector<72x256xf32>
      %15 = arith.addf %12, %14 : vector<72x256xf32>
      %cst_13 = arith.constant 0.000000e+00 : f32
      %16 = vector.broadcast %cst_13 : f32 to vector<72x256xf32>
      %17 = arith.maximumf %15, %16 : vector<72x256xf32>
      %18 = arith.truncf %17 : vector<72x256xf32> to vector<72x256xbf16>
      %c0_14 = arith.constant 0 : index
      %c0_15 = arith.constant 0 : index
      %19 = vector.load %arg6[%c0_14, %c0_15] : memref<72x256xbf16, #tpu.memory_space<vmem>>, vector<72x256xbf16>
      tpu.vector_store %arg6[%c0_14, %c0_15], %18 {strides = array<i32>} : memref<72x256xbf16, #tpu.memory_space<vmem>>, vector<72x256xbf16>,
    } else {
    }
    return
  }
  func.func @transform_0(%arg0: i32, %arg1: i32, %arg2: i32) -> (i32, i32) {
    %c0_i32 = arith.constant 0 : i32
    return %arg0, %arg2 : i32, i32
  }
  func.func @transform_1(%arg0: i32, %arg1: i32, %arg2: i32) -> (i32, i32) {
    %c0_i32 = arith.constant 0 : i32
    return %arg2, %arg1 : i32, i32
  }
  func.func @transform_2(%arg0: i32, %arg1: i32, %arg2: i32) -> (i32, i32) {
    %c0_i32 = arith.constant 0 : i32
    %c0_i32_0 = arith.constant 0 : i32
    return %c0_i32, %arg1 : i32, i32
  }
  func.func @transform_3(%arg0: i32, %arg1: i32, %arg2: i32) -> (i32, i32) {
    %c0_i32 = arith.constant 0 : i32
    return %arg0, %arg1 : i32, i32
  }
}

module attributes {stable_mosaic.version = 11 : i64} {
  func.func @_fc_stack_kernel(%arg0: i32, %arg1: memref<8x4608xbf16, #tpu.memory_space<vmem>>, %arg2: memref<4608x256xbf16, #tpu.memory_space<vmem>>, %arg3: memref<1x256xf32, #tpu.memory_space<vmem>>, %arg4: memref<256x128xbf16, #tpu.memory_space<vmem>>, %arg5: memref<1x128xf32, #tpu.memory_space<vmem>>, %arg6: memref<128x128xbf16, #tpu.memory_space<vmem>>, %arg7: memref<1x128xf32, #tpu.memory_space<vmem>>, %arg8: memref<8x128xf32, #tpu.memory_space<vmem>>) attributes {dimension_semantics = [#tpu.dimension_semantics<arbitrary>], iteration_bounds = array<i64: 1>, scalar_prefetch = 0 : i64, scratch_operands = 0 : i64, tpu.core_type = #tpu.core_type<tc>, window_params = [{pipeline_mode = #tpu.pipeline_mode<synchronous>, transform_indices = @transform_0, window_bounds = array<i64: 8, 4608>}, {pipeline_mode = #tpu.pipeline_mode<synchronous>, transform_indices = @transform_1, window_bounds = array<i64: 4608, 256>}, {pipeline_mode = #tpu.pipeline_mode<synchronous>, transform_indices = @transform_2, window_bounds = array<i64: 1, 256>}, {pipeline_mode = #tpu.pipeline_mode<synchronous>, transform_indices = @transform_3, window_bounds = array<i64: 256, 128>}, {pipeline_mode = #tpu.pipeline_mode<synchronous>, transform_indices = @transform_4, window_bounds = array<i64: 1, 128>}, {pipeline_mode = #tpu.pipeline_mode<synchronous>, transform_indices = @transform_5, window_bounds = array<i64: 128, 128>}, {pipeline_mode = #tpu.pipeline_mode<synchronous>, transform_indices = @transform_6, window_bounds = array<i64: 1, 128>}, {pipeline_mode = #tpu.pipeline_mode<synchronous>, transform_indices = @transform_7, window_bounds = array<i64: 8, 128>}]} {
    %c0 = arith.constant 0 : index
    %c0_0 = arith.constant 0 : index
    %0 = vector.load %arg1[%c0, %c0_0] : memref<8x4608xbf16, #tpu.memory_space<vmem>>, vector<8x4608xbf16>
    %c0_1 = arith.constant 0 : index
    %c0_2 = arith.constant 0 : index
    %1 = vector.load %arg2[%c0_1, %c0_2] : memref<4608x256xbf16, #tpu.memory_space<vmem>>, vector<4608x256xbf16>
    %cst = arith.constant dense<0.000000e+00> : vector<8x256xf32>
    %2 = tpu.matmul %0, %1, %cst {dimension_numbers = #tpu.dot_dimension_numbers<[1], [0], [0], [1], [0, 0, 1, 1], [], []>} : vector<8x4608xbf16>, vector<4608x256xbf16>, vector<8x256xf32> -> vector<8x256xf32>
    %c0_3 = arith.constant 0 : index
    %c0_4 = arith.constant 0 : index
    %3 = vector.load %arg3[%c0_3, %c0_4] : memref<1x256xf32, #tpu.memory_space<vmem>>, vector<1x256xf32>
    %4 = vector.broadcast %3 : vector<1x256xf32> to vector<8x256xf32>
    %5 = arith.addf %2, %4 : vector<8x256xf32>
    %cst_5 = arith.constant 0.000000e+00 : f32
    %6 = vector.broadcast %cst_5 : f32 to vector<8x256xf32>
    %7 = arith.maximumf %5, %6 : vector<8x256xf32>
    %8 = arith.truncf %7 : vector<8x256xf32> to vector<8x256xbf16>
    %c0_6 = arith.constant 0 : index
    %c0_7 = arith.constant 0 : index
    %9 = vector.load %arg4[%c0_6, %c0_7] : memref<256x128xbf16, #tpu.memory_space<vmem>>, vector<256x128xbf16>
    %cst_8 = arith.constant dense<0.000000e+00> : vector<8x128xf32>
    %10 = tpu.matmul %8, %9, %cst_8 {dimension_numbers = #tpu.dot_dimension_numbers<[1], [0], [0], [1], [0, 0, 1, 1], [], []>} : vector<8x256xbf16>, vector<256x128xbf16>, vector<8x128xf32> -> vector<8x128xf32>
    %c0_9 = arith.constant 0 : index
    %c0_10 = arith.constant 0 : index
    %11 = vector.load %arg5[%c0_9, %c0_10] : memref<1x128xf32, #tpu.memory_space<vmem>>, vector<1x128xf32>
    %12 = vector.broadcast %11 : vector<1x128xf32> to vector<8x128xf32>
    %13 = arith.addf %10, %12 : vector<8x128xf32>
    %cst_11 = arith.constant 0.000000e+00 : f32
    %14 = vector.broadcast %cst_11 : f32 to vector<8x128xf32>
    %15 = arith.maximumf %13, %14 : vector<8x128xf32>
    %16 = arith.truncf %15 : vector<8x128xf32> to vector<8x128xbf16>
    %c0_12 = arith.constant 0 : index
    %c0_13 = arith.constant 0 : index
    %17 = vector.load %arg6[%c0_12, %c0_13] : memref<128x128xbf16, #tpu.memory_space<vmem>>, vector<128x128xbf16>
    %cst_14 = arith.constant dense<0.000000e+00> : vector<8x128xf32>
    %18 = tpu.matmul %16, %17, %cst_14 {dimension_numbers = #tpu.dot_dimension_numbers<[1], [0], [0], [1], [0, 0, 1, 1], [], []>} : vector<8x128xbf16>, vector<128x128xbf16>, vector<8x128xf32> -> vector<8x128xf32>
    %c0_15 = arith.constant 0 : index
    %c0_16 = arith.constant 0 : index
    %19 = vector.load %arg7[%c0_15, %c0_16] : memref<1x128xf32, #tpu.memory_space<vmem>>, vector<1x128xf32>
    %20 = vector.broadcast %19 : vector<1x128xf32> to vector<8x128xf32>
    %21 = arith.addf %18, %20 : vector<8x128xf32>
    %c0_17 = arith.constant 0 : index
    %c0_18 = arith.constant 0 : index
    %22 = vector.load %arg8[%c0_17, %c0_18] : memref<8x128xf32, #tpu.memory_space<vmem>>, vector<8x128xf32>
    tpu.vector_store %arg8[%c0_17, %c0_18], %21 {strides = array<i32>} : memref<8x128xf32, #tpu.memory_space<vmem>>, vector<8x128xf32>,
    return
  }
  func.func @transform_0(%arg0: i32) -> (i32, i32) {
    %c0_i32 = arith.constant 0 : i32
    %c0_i32_0 = arith.constant 0 : i32
    %c0_i32_1 = arith.constant 0 : i32
    return %c0_i32, %c0_i32_0 : i32, i32
  }
  func.func @transform_1(%arg0: i32) -> (i32, i32) {
    %c0_i32 = arith.constant 0 : i32
    %c0_i32_0 = arith.constant 0 : i32
    %c0_i32_1 = arith.constant 0 : i32
    return %c0_i32, %c0_i32_0 : i32, i32
  }
  func.func @transform_2(%arg0: i32) -> (i32, i32) {
    %c0_i32 = arith.constant 0 : i32
    %c0_i32_0 = arith.constant 0 : i32
    %c0_i32_1 = arith.constant 0 : i32
    return %c0_i32, %c0_i32_0 : i32, i32
  }
  func.func @transform_3(%arg0: i32) -> (i32, i32) {
    %c0_i32 = arith.constant 0 : i32
    %c0_i32_0 = arith.constant 0 : i32
    %c0_i32_1 = arith.constant 0 : i32
    return %c0_i32, %c0_i32_0 : i32, i32
  }
  func.func @transform_4(%arg0: i32) -> (i32, i32) {
    %c0_i32 = arith.constant 0 : i32
    %c0_i32_0 = arith.constant 0 : i32
    %c0_i32_1 = arith.constant 0 : i32
    return %c0_i32, %c0_i32_0 : i32, i32
  }
  func.func @transform_5(%arg0: i32) -> (i32, i32) {
    %c0_i32 = arith.constant 0 : i32
    %c0_i32_0 = arith.constant 0 : i32
    %c0_i32_1 = arith.constant 0 : i32
    return %c0_i32, %c0_i32_0 : i32, i32
  }
  func.func @transform_6(%arg0: i32) -> (i32, i32) {
    %c0_i32 = arith.constant 0 : i32
    %c0_i32_0 = arith.constant 0 : i32
    %c0_i32_1 = arith.constant 0 : i32
    return %c0_i32, %c0_i32_0 : i32, i32
  }
  func.func @transform_7(%arg0: i32) -> (i32, i32) {
    %c0_i32 = arith.constant 0 : i32
    %c0_i32_0 = arith.constant 0 : i32
    %c0_i32_1 = arith.constant 0 : i32
    return %c0_i32, %c0_i32_0 : i32, i32
  }
}

</mosaic_0001>

<bundles_post_ra>
// kernel: facenet_forward.5
= control target key start
LH: loop header
LB: loop body
LE: loop exit
PB: predicated region body
PF: predicated region fallthrough
CT: control target
= control target key end

     0   :  { %s1443_s12 = smov 0   ;;  %s1445_s13 = smov 0   ;;  %s1575_s0 = inlined_call_operand.vmem [shape: bf16[4608,16], index: 0, kind: input, shape index: {}]   ;;  %s1576_s1 = inlined_call_operand.vmem [shape: bf16[16,128], index: 1, kind: input, shape index: {}]   ;;  %s1577_s2 = inlined_call_operand.vmem [shape: f32[1,128], index: 2, kind: input, shape index: {}]   ;;  %s1578_s3 = inlined_call_operand.vmem [shape: bf16[4608,128], index: 3, kind: output, shape index: {}]  }
   0x1   :  { %s1447_s14 = smov 0  }
   0x2 LB: > { %s32_s15 = sadd.s32 1, %s1417_s13  ;;  %p1105_p0 = scmp.ge.s32.totalorder %s1421_s14, 1  ;;  %s1421_s14 = sphi %s1447_s14, %s13_s14   ;;  %s1417_s13 = sphi %s1445_s13, %s1580_s13   ;;  %s1413_s12 = sphi %s1443_s12, %s1579_s12  }
   0x3   : > { %p34_p1 = scmp.ge.s32.totalorder %s32_s15, 18  ;;  %p188_p2 = scmp.lt.s32.totalorder %s1421_s14, 19 }
   0x5   : > { %s1582_s15 = smov (%p34_p1, %s32_s15), 0  ;;  %p189_p3 = pnand %p1105_p0, %p188_p2 }
   0x6   : > { %v1382_v0 = vld [vmem:[%s1576_s1] sm:$0xff] (!%p189_p3)   ;;  %s1106_s18 = sshll.u32 (!%p189_p3), %s1413_s12, 5  ;;  %vm448_vm0 = vcmask (!%p189_p3), 130048  }
   0x7   : > { %192 = sbr.rel (%p189_p3) target bundleno = 266 (0x10a), region = 32  ;;  %p230_p4 = scmp.lt.s32.totalorder (!%p189_p3), %s1106_s18, 575  ;;  %1322 = vmatprep.subr.bf16.mxu0 (!%p189_p3), %v1382_v0  ;;  %1356 = vmatprep.subr.bf16.mxu1 (!%p189_p3), %v1382_v0  ;;  %v1509_v17 = vld [vmem:[%s1577_s2] ss:$0 sm:$0xff] (!%p189_p3) }
   0x8   : > { %1323 = vmatpush3.bf16.msra.mxu0 (!%p189_p3), %v1382_v0  ;;  %1357 = vmatpush3.bf16.msra.mxu1 (!%p189_p3), %v1382_v0 }
   0xe   : > { %s1584_s18 = smov (!%p230_p4, %s1106_s18), 575 }
   0xf   : > { %s1107_s19 = sshll.u32 %s1584_s18, 2 }
  0x10   : > { %s1472_s22 = scalar_lea.vmem %s1575_s0, %s1107_s19  ;;  %s1524_s27 = scalar_lea.vmem %s1578_s3, %s1107_s19 }
  0x11   : > { %v1383_v1 = vld [vmem:[%s1472_s22] sm:$0xff]   ;;  %v1385_v3 = vld [vmem:[%s1472_s22 + $0x8] sm:$0xff]   ;;  %v1387_v5 = vld [vmem:[%s1472_s22 + $0x10] sm:$0xff]  }
  0x12   : > { %v1384_v2 = vld [vmem:[%s1472_s22 + $0x40] sm:$0xff]   ;;  %1324 = vmatprep.mubr.msk.bf16.mxu0 %vm448_vm0, %v1383_v1  ;;  %v1386_v4 = vld [vmem:[%s1472_s22 + $0x48] sm:$0xff]   ;;  %v1388_v6 = vld [vmem:[%s1472_s22 + $0x50] sm:$0xff]  }
  0x13   : > { %1340 = vmatprep.mubr.msk.bf16.mxu1 %vm448_vm0, %v1384_v2  ;;  %1325 = vmatmul.mubr.msk.bf16.vlgmr.msra.gmra.mrb[0].mxu0 %vm448_vm0, %v1385_v3  ;;  %v1389_v7 = vld [vmem:[%s1472_s22 + $0x18] sm:$0xff]   ;;  %v1391_v9 = vld [vmem:[%s1472_s22 + $0x20] sm:$0xff]   ;;  %v1393_v11 = vld [vmem:[%s1472_s22 + $0x28] sm:$0xff]  }
  0x14   : > { %1341 = vmatmul.mubr.msk.bf16.vlgmr.msra.gmra.mrb[0].mxu1 %vm448_vm0, %v1386_v4  ;;  %1328 = vmatprep.mubr.msk.bf16.mxu0 %vm448_vm0, %v1387_v5  ;;  %v1390_v8 = vld [vmem:[%s1472_s22 + $0x58] sm:$0xff]   ;;  %v1392_v10 = vld [vmem:[%s1472_s22 + $0x60] sm:$0xff]   ;;  %v1394_v12 = vld [vmem:[%s1472_s22 + $0x68] sm:$0xff]  }
  0x15   : > { %1344 = vmatprep.mubr.msk.bf16.mxu1 %vm448_vm0, %v1388_v6  ;;  %v1395_v13 = vld [vmem:[%s1472_s22 + $0x30] sm:$0xff]   ;;  %v1397_v15 = vld [vmem:[%s1472_s22 + $0x38] sm:$0xff]  }
  0x16   : > { %v1396_v14 = vld [vmem:[%s1472_s22 + $0x70] sm:$0xff]   ;;  %v1398_v16 = vld [vmem:[%s1472_s22 + $0x78] sm:$0xff]  }
  0x1b   : > { %1329 = vmatmul.mubr.msk.bf16.gmra.mrb[4].mxu0 %vm448_vm0, %v1389_v7 }
  0x1c   : > { %1345 = vmatmul.mubr.msk.bf16.gmra.mrb[4].mxu1 %vm448_vm0, %v1390_v8  ;;  %1332 = vmatprep.mubr.msk.bf16.mxu0 %vm448_vm0, %v1391_v9 }
  0x1d   : > { %1348 = vmatprep.mubr.msk.bf16.mxu1 %vm448_vm0, %v1392_v10 }
  0x23   : > { %1333 = vmatmul.mubr.msk.bf16.gmra.mrb[8].mxu0 %vm448_vm0, %v1393_v11 }
  0x24   : > { %1349 = vmatmul.mubr.msk.bf16.gmra.mrb[8].mxu1 %vm448_vm0, %v1394_v12  ;;  %1336 = vmatprep.mubr.msk.bf16.mxu0 %vm448_vm0, %v1395_v13 }
  0x25   : > { %1352 = vmatprep.mubr.msk.bf16.mxu1 %vm448_vm0, %v1396_v14 }
  0x2b   : > { %1337 = vmatmul.mubr.msk.bf16.gmra.mrb[12].mxu0 %vm448_vm0, %v1397_v15 }
  0x2c   : > { %1353 = vmatmul.mubr.msk.bf16.gmra.mrb[12].mxu1 %vm448_vm0, %v1398_v16 }
  0xe6   : > { %v1326_v18 = vpop.f32.mrb[0].mxu0 }
  0xe7   : > { %v766_v19 = vadd.f32 %v1326_v18, %v1509_v17  ;;  %v1342_v20 = vpop.f32.mrb[0].mxu1  ;;  %v531_v21 = vpop.f32.mrb[1].mxu0 }
  0xe8   : > { %v782_v22 = vadd.f32 %v1342_v20, %v1509_v17  ;;  %v764_v23 = vadd.f32 %v1509_v17, %v531_v21  ;;  %v595_v24 = vpop.f32.mrb[1].mxu1  ;;  %v1327_v25 = vpop.f32.mrb[2].mxu0 }
  0xe9   : > { %v780_v26 = vadd.f32 %v1509_v17, %v595_v24  ;;  %v767_v27 = vadd.f32 %v1327_v25, %v1509_v17  ;;  %v1343_v28 = vpop.f32.mrb[2].mxu1  ;;  %v534_v29 = vpop.f32.mrb[3].mxu0  ;;  %v798_v33 = vmax.f32 %v766_v19, 0.0 }
  0xea   : > { %v783_v30 = vadd.f32 %v1343_v28, %v1509_v17  ;;  %v765_v31 = vadd.f32 %v1509_v17, %v534_v29  ;;  %v598_v32 = vpop.f32.mrb[3].mxu1  ;;  %v814_v36 = vmax.f32 %v782_v22, 0.0  ;;  %v796_v37 = vmax.f32 %v764_v23, 0.0 }
  0xeb   : > { %v799_v34 = vmax.f32 %v767_v27, 0.0  ;;  %v781_v35 = vadd.f32 %v1509_v17, %v598_v32  ;;  %v812_v40 = vmax.f32 %v780_v26, 0.0 }
  0xec   : > { %v815_v38 = vmax.f32 %v783_v30, 0.0  ;;  %v797_v39 = vmax.f32 %v765_v31, 0.0 }
  0xed   : > { %v1218_v41 = vpack.c.bf16 %v799_v34, %v798_v33  ;;  %v813_v42 = vmax.f32 %v781_v35, 0.0 }
  0xee   : > { %v1258_v43 = vpack.c.bf16 %v815_v38, %v814_v36  ;;  %v1213_v44 = vpack.c.bf16 %v797_v39, %v796_v37  ;;  %v1330_v45 = vpop.f32.mrb[4].mxu0 }
  0xef   : > { %1290 = vst [vmem:[%s1524_s27 + $0x8] sm:$0xff] %v1218_v41   ;;  %v1253_v46 = vpack.c.bf16 %v813_v42, %v812_v40  ;;  %v770_v47 = vadd.f32 %v1330_v45, %v1509_v17  ;;  %v1346_v48 = vpop.f32.mrb[4].mxu1  ;;  %v547_v49 = vpop.f32.mrb[5].mxu0 }
  0xf0   : > { %1298 = vst [vmem:[%s1524_s27 + $0x48] sm:$0xff] %v1258_v43   ;;  %1214 = vst [vmem:[%s1524_s27] sm:$0xff] %v1213_v44   ;;  %v786_v50 = vadd.f32 %v1346_v48, %v1509_v17  ;;  %v768_v51 = vadd.f32 %v1509_v17, %v547_v49  ;;  %v611_v52 = vpop.f32.mrb[5].mxu1  ;;  %v1331_v53 = vpop.f32.mrb[6].mxu0 }
  0xf1   : > { %1297 = vst [vmem:[%s1524_s27 + $0x40] sm:$0xff] %v1253_v46   ;;  %v784_v54 = vadd.f32 %v1509_v17, %v611_v52  ;;  %v771_v55 = vadd.f32 %v1331_v53, %v1509_v17  ;;  %v1347_v56 = vpop.f32.mrb[6].mxu1  ;;  %v550_v57 = vpop.f32.mrb[7].mxu0  ;;  %v802_v61 = vmax.f32 %v770_v47, 0.0 }
  0xf2   : > { %v787_v58 = vadd.f32 %v1347_v56, %v1509_v17  ;;  %v769_v59 = vadd.f32 %v1509_v17, %v550_v57  ;;  %v614_v60 = vpop.f32.mrb[7].mxu1  ;;  %v818_v0 = vmax.f32 %v786_v50, 0.0  ;;  %v800_v1 = vmax.f32 %v768_v51, 0.0 }
  0xf3   : > { %v803_v62 = vmax.f32 %v771_v55, 0.0  ;;  %v785_v63 = vadd.f32 %v1509_v17, %v614_v60  ;;  %v816_v4 = vmax.f32 %v784_v54, 0.0 }
  0xf4   : > { %v819_v2 = vmax.f32 %v787_v58, 0.0  ;;  %v801_v3 = vmax.f32 %v769_v59, 0.0 }
  0xf5   : > { %v1228_v5 = vpack.c.bf16 %v803_v62, %v802_v61  ;;  %v817_v6 = vmax.f32 %v785_v63, 0.0 }
  0xf6   : > { %v1268_v7 = vpack.c.bf16 %v819_v2, %v818_v0  ;;  %v1223_v8 = vpack.c.bf16 %v801_v3, %v800_v1  ;;  %v1334_v9 = vpop.f32.mrb[8].mxu0 }
  0xf7   : > { %1292 = vst [vmem:[%s1524_s27 + $0x18] sm:$0xff] %v1228_v5   ;;  %v1263_v10 = vpack.c.bf16 %v817_v6, %v816_v4  ;;  %v774_v11 = vadd.f32 %v1334_v9, %v1509_v17  ;;  %v1350_v12 = vpop.f32.mrb[8].mxu1  ;;  %v563_v13 = vpop.f32.mrb[9].mxu0 }
  0xf8   : > { %1300 = vst [vmem:[%s1524_s27 + $0x58] sm:$0xff] %v1268_v7   ;;  %1291 = vst [vmem:[%s1524_s27 + $0x10] sm:$0xff] %v1223_v8   ;;  %v790_v14 = vadd.f32 %v1350_v12, %v1509_v17  ;;  %v772_v15 = vadd.f32 %v1509_v17, %v563_v13  ;;  %v627_v16 = vpop.f32.mrb[9].mxu1  ;;  %v1335_v18 = vpop.f32.mrb[10].mxu0 }
  0xf9   : > { %1299 = vst [vmem:[%s1524_s27 + $0x50] sm:$0xff] %v1263_v10   ;;  %v788_v19 = vadd.f32 %v1509_v17, %v627_v16  ;;  %v775_v20 = vadd.f32 %v1335_v18, %v1509_v17  ;;  %v1351_v21 = vpop.f32.mrb[10].mxu1  ;;  %v566_v22 = vpop.f32.mrb[11].mxu0  ;;  %v806_v26 = vmax.f32 %v774_v11, 0.0 }
  0xfa   : > { %v791_v23 = vadd.f32 %v1351_v21, %v1509_v17  ;;  %v773_v24 = vadd.f32 %v1509_v17, %v566_v22  ;;  %v630_v25 = vpop.f32.mrb[11].mxu1  ;;  %v822_v29 = vmax.f32 %v790_v14, 0.0  ;;  %v804_v30 = vmax.f32 %v772_v15, 0.0 }
  0xfb   : > { %v807_v27 = vmax.f32 %v775_v20, 0.0  ;;  %v789_v28 = vadd.f32 %v1509_v17, %v630_v25  ;;  %v820_v33 = vmax.f32 %v788_v19, 0.0 }
  0xfc   : > { %v823_v31 = vmax.f32 %v791_v23, 0.0  ;;  %v805_v32 = vmax.f32 %v773_v24, 0.0 }
  0xfd   : > { %v1238_v34 = vpack.c.bf16 %v807_v27, %v806_v26  ;;  %v821_v35 = vmax.f32 %v789_v28, 0.0 }
  0xfe   : > { %v1278_v36 = vpack.c.bf16 %v823_v31, %v822_v29  ;;  %v1233_v37 = vpack.c.bf16 %v805_v32, %v804_v30  ;;  %v1338_v38 = vpop.f32.mrb[12].mxu0 }
  0xff   : > { %1294 = vst [vmem:[%s1524_s27 + $0x28] sm:$0xff] %v1238_v34   ;;  %v1273_v39 = vpack.c.bf16 %v821_v35, %v820_v33  ;;  %v778_v40 = vadd.f32 %v1338_v38, %v1509_v17  ;;  %v1354_v41 = vpop.f32.mrb[12].mxu1  ;;  %v579_v42 = vpop.f32.mrb[13].mxu0 }
 0x100   : > { %1302 = vst [vmem:[%s1524_s27 + $0x68] sm:$0xff] %v1278_v36   ;;  %1293 = vst [vmem:[%s1524_s27 + $0x20] sm:$0xff] %v1233_v37   ;;  %v794_v43 = vadd.f32 %v1354_v41, %v1509_v17  ;;  %v776_v44 = vadd.f32 %v1509_v17, %v579_v42  ;;  %v643_v45 = vpop.f32.mrb[13].mxu1  ;;  %v1339_v46 = vpop.f32.mrb[14].mxu0 }
 0x101   : > { %1301 = vst [vmem:[%s1524_s27 + $0x60] sm:$0xff] %v1273_v39   ;;  %v792_v47 = vadd.f32 %v1509_v17, %v643_v45  ;;  %v779_v48 = vadd.f32 %v1339_v46, %v1509_v17  ;;  %v1355_v49 = vpop.f32.mrb[14].mxu1  ;;  %v582_v50 = vpop.f32.mrb[15].mxu0  ;;  %v810_v54 = vmax.f32 %v778_v40, 0.0 }
 0x102   : > { %v795_v51 = vadd.f32 %v1355_v49, %v1509_v17  ;;  %v777_v52 = vadd.f32 %v1509_v17, %v582_v50  ;;  %v646_v53 = vpop.f32.mrb[15].mxu1  ;;  %v826_v57 = vmax.f32 %v794_v43, 0.0  ;;  %v808_v58 = vmax.f32 %v776_v44, 0.0 }
 0x103   : > { %v811_v55 = vmax.f32 %v779_v48, 0.0  ;;  %v793_v56 = vadd.f32 %v1509_v17, %v646_v53  ;;  %v824_v61 = vmax.f32 %v792_v47, 0.0 }
 0x104   : > { %v827_v59 = vmax.f32 %v795_v51, 0.0  ;;  %v809_v60 = vmax.f32 %v777_v52, 0.0 }
 0x105   : > { %v1248_v62 = vpack.c.bf16 %v811_v55, %v810_v54  ;;  %v825_v63 = vmax.f32 %v793_v56, 0.0 }
 0x106   : > { %v1288_v0 = vpack.c.bf16 %v827_v59, %v826_v57  ;;  %v1243_v1 = vpack.c.bf16 %v809_v60, %v808_v58 }
 0x107   : > { %1296 = vst [vmem:[%s1524_s27 + $0x38] sm:$0xff] %v1248_v62   ;;  %v1283_v2 = vpack.c.bf16 %v825_v63, %v824_v61 }
 0x108   : > { %1304 = vst [vmem:[%s1524_s27 + $0x78] sm:$0xff] %v1288_v0   ;;  %1295 = vst [vmem:[%s1524_s27 + $0x30] sm:$0xff] %v1243_v1  }
 0x109   : > { %1303 = vst [vmem:[%s1524_s27 + $0x70] sm:$0xff] %v1283_v2  }
 0x10a PF: > { %s13_s14 = sadd.s32 1, %s1421_s14   ;;  %s1579_s12 = smov %s1417_s13 }
 0x10b   : > { %p10_p5 = scmp.ge.s32.totalorder %s13_s14, 20   ;;  %s1580_s13 = smov %s1582_s15 }
 0x10d   :  { %12 = sbr.rel (!%p10_p5) target bundleno = 2 (0x2), region = 76 }

// kernel: facenet_forward.6
= control target key start
LH: loop header
LB: loop body
LE: loop exit
PB: predicated region body
PF: predicated region fallthrough
CT: control target
= control target key end

     0   :  { %s2090_s12 = smov 0   ;;  %s2092_s13 = smov 0   ;;  %s2418_s0 = inlined_call_operand.vmem [shape: bf16[1152,1152], index: 0, kind: input, shape index: {}]   ;;  %s2419_s1 = inlined_call_operand.vmem [shape: bf16[1152,128], index: 1, kind: input, shape index: {}]   ;;  %s2420_s2 = inlined_call_operand.vmem [shape: f32[1,128], index: 2, kind: input, shape index: {}]   ;;  %s2421_s3 = inlined_call_operand.vmem [shape: bf16[1152,128], index: 3, kind: output, shape index: {}]  }
   0x1   :  { %s2094_s14 = smov 0   ;;  %s2096_s15 = smov 0  }
   0x2   :  { %s2098_s16 = smov 0   ;;  %s2100_s17 = smov 0  }
   0x3   :  { %s2102_s18 = smov 0  }
   0x4 LB: > { %s25_s19 = sadd.s32 1, %s2059_s16  ;;  %s32_s20 = sadd.s32 1, %s2063_s17  ;;  %s2067_s18 = sphi %s2102_s18, %s13_s18   ;;  %s2063_s17 = sphi %s2100_s17, %s2427_s17   ;;  %s2059_s16 = sphi %s2098_s16, %s2426_s16   ;;  %s2055_s15 = sphi %s2096_s15, %s2425_s15   ;;  %s2051_s14 = sphi %s2094_s14, %s2424_s14   ;;  %s2047_s13 = sphi %s2092_s13, %s2423_s13   ;;  %s2043_s12 = sphi %s2090_s12, %s2422_s12  }
   0x5   : > { %p26_p0 = scmp.ge.s32.totalorder %s25_s19, 3  ;;  %p48_p1 = scmp.ne.s32.totalorder %s2047_s13, %s2043_s12 }
   0x6   : > { %p49_p2 = scmp.eq.s32.totalorder %s2067_s18, 0  ;;  %s41_s24 = sadd.s32 1, %s2047_s13 }
   0x7   : > { %s2429_s19 = smov (%p26_p0, %s25_s19), 0  ;;  %s2431_s20 = smov (!%p26_p0, %s32_s20), %s2063_s17 }
   0x8   : > { %p50_p3 = por %p49_p2, %p48_p1  ;;  %p34_p4 = scmp.ge.s32.totalorder %s2431_s20, 6 }
   0x9   : > { %s37_s21 = ssub.s32 %s2059_s16, %s2429_s19  ;;  %p1495_p6 = scmp.ge.s32.totalorder %s2067_s18, 18 }
   0xa   : > { %s2433_s20 = smov (%p34_p4, %s2431_s20), 0 }
   0xb   : > { %s36_s22 = ssub.s32 %s2063_s17, %s2433_s20  ;;  %162 = sbr.rel (%p1495_p6) target bundleno = 55 (0x37), region = 20 }
   0xc   : > { %s38_s23 = sor.u32 %s37_s21, %s36_s22 }
   0xd   : > { %p39_p5 = scmp.eq.s32.totalorder %s38_s23, 0 }
   0xf   : > { %s2141_s25 = scalar_select %p39_p5, %s2047_s13, %s41_s24  }
  0x12   : > { %165 = sbr.rel (!%p50_p3) target bundleno = 55 (0x37), region = 24  ;;  %s167_s26 = sand.u32 (%p50_p3), 1, %s2047_s13  }
  0x13   : > { %s1880_s27 = smul.u32 (%p50_p3), 288, %s167_s26 }
  0x14   : > { %s171_s28 = smul.u32 (%p50_p3), 3, %s2059_s16 }
  0x15   : > { %s1883_s29 = smul.u32 (%p50_p3), 216, %s2063_s17  ;;  %s2155_s8 = scalar_lea.vmem (%p50_p3), [#allocation3], %s1880_s27 }
  0x17   : > { %s173_s30 = sadd.s32 (%p50_p3), %s1883_s29, %s171_s28 }
  0x18   : > { %s1496_s4 = sshll.u32 (%p50_p3), %s173_s30, 2 }
  0x19   : > { %s2150_s7 = scalar_lea.vmem %s2418_s0, %s1496_s4 }
  0x1a   : > { %v190_v0 = vld [vmem:[%s2150_s7] sm:$0xff]  ;;  %v194_v2 = vld [vmem:[%s2150_s7 + $0x48] sm:$0xff]  ;;  %v198_v4 = vld [vmem:[%s2150_s7 + $0x90] sm:$0xff] }
  0x1b   : > { %v192_v1 = vld [vmem:[%s2150_s7 + $0x24] sm:$0xff]  ;;  %191 = vst [vmem:[%s2155_s8] sm:$0xff] %v190_v0  ;;  %195 = vst [vmem:[%s2155_s8 + $0x18] sm:$0xff] %v194_v2  ;;  %v196_v3 = vld [vmem:[%s2150_s7 + $0x6c] sm:$0xff] }
  0x1c   : > { %193 = vst [vmem:[%s2155_s8 + $0xc] sm:$0xff] %v192_v1  ;;  %v200_v5 = vld [vmem:[%s2150_s7 + $0xb4] sm:$0xff]  ;;  %197 = vst [vmem:[%s2155_s8 + $0x24] sm:$0xff] %v196_v3  ;;  %v204_v7 = vld [vmem:[%s2150_s7 + $0xfc] sm:$0xff] }
  0x1d   : > { %199 = vst [vmem:[%s2155_s8 + $0x30] sm:$0xff] %v198_v4  ;;  %201 = vst [vmem:[%s2155_s8 + $0x3c] sm:$0xff] %v200_v5  ;;  %v202_v6 = vld [vmem:[%s2150_s7 + $0xd8] sm:$0xff]  ;;  %v206_v8 = vld [vmem:[%s2150_s7 + $0x120] sm:$0xff] }
  0x1e   : > { %203 = vst [vmem:[%s2155_s8 + $0x48] sm:$0xff] %v202_v6  ;;  %205 = vst [vmem:[%s2155_s8 + $0x54] sm:$0xff] %v204_v7  ;;  %v208_v9 = vld [vmem:[%s2150_s7 + $0x144] sm:$0xff]  ;;  %v212_v11 = vld [vmem:[%s2150_s7 + $0x18c] sm:$0xff] }
  0x1f   : > { %207 = vst [vmem:[%s2155_s8 + $0x60] sm:$0xff] %v206_v8  ;;  %v210_v10 = vld [vmem:[%s2150_s7 + $0x168] sm:$0xff]  ;;  %209 = vst [vmem:[%s2155_s8 + $0x6c] sm:$0xff] %v208_v9  ;;  %v214_v12 = vld [vmem:[%s2150_s7 + $0x1b0] sm:$0xff] }
  0x20   : > { %211 = vst [vmem:[%s2155_s8 + $0x78] sm:$0xff] %v210_v10  ;;  %213 = vst [vmem:[%s2155_s8 + $0x84] sm:$0xff] %v212_v11  ;;  %v216_v13 = vld [vmem:[%s2150_s7 + $0x1d4] sm:$0xff]  ;;  %v220_v15 = vld [vmem:[%s2150_s7 + $0x21c] sm:$0xff] }
  0x21   : > { %v218_v14 = vld [vmem:[%s2150_s7 + $0x1f8] sm:$0xff]  ;;  %215 = vst [vmem:[%s2155_s8 + $0x90] sm:$0xff] %v214_v12  ;;  %217 = vst [vmem:[%s2155_s8 + $0x9c] sm:$0xff] %v216_v13  ;;  %v222_v16 = vld [vmem:[%s2150_s7 + $0x240] sm:$0xff] }
  0x22   : > { %219 = vst [vmem:[%s2155_s8 + $0xa8] sm:$0xff] %v218_v14  ;;  %v224_v17 = vld [vmem:[%s2150_s7 + $0x264] sm:$0xff]  ;;  %221 = vst [vmem:[%s2155_s8 + $0xb4] sm:$0xff] %v220_v15  ;;  %v228_v19 = vld [vmem:[%s2150_s7 + $0x2ac] sm:$0xff] }
  0x23   : > { %223 = vst [vmem:[%s2155_s8 + $0xc0] sm:$0xff] %v222_v16  ;;  %225 = vst [vmem:[%s2155_s8 + $0xcc] sm:$0xff] %v224_v17  ;;  %v226_v18 = vld [vmem:[%s2150_s7 + $0x288] sm:$0xff]  ;;  %v230_v20 = vld [vmem:[%s2150_s7 + $0x2d0] sm:$0xff] }
  0x24   : > { %227 = vst [vmem:[%s2155_s8 + $0xd8] sm:$0xff] %v226_v18  ;;  %229 = vst [vmem:[%s2155_s8 + $0xe4] sm:$0xff] %v228_v19  ;;  %v232_v21 = vld [vmem:[%s2150_s7 + $0x2f4] sm:$0xff]  ;;  %v236_v23 = vld [vmem:[%s2150_s7 + $0x33c] sm:$0xff] }
  0x25   : > { %231 = vst [vmem:[%s2155_s8 + $0xf0] sm:$0xff] %v230_v20  ;;  %v234_v22 = vld [vmem:[%s2150_s7 + $0x318] sm:$0xff]  ;;  %233 = vst [vmem:[%s2155_s8 + $0xfc] sm:$0xff] %v232_v21  ;;  %v1497_v24 = vld [vmem:[%s2150_s7 + $0x8] sm:$0xf] }
  0x26   : > { %235 = vst [vmem:[%s2155_s8 + $0x108] sm:$0xff] %v234_v22  ;;  %237 = vst [vmem:[%s2155_s8 + $0x114] sm:$0xff] %v236_v23  ;;  %v1499_v25 = vld [vmem:[%s2150_s7 + $0x2c] sm:$0xf]  ;;  %v1501_v26 = vld [vmem:[%s2150_s7 + $0x50] sm:$0xf] }
  0x27   : > { %1498 = vst [vmem:[%s2155_s8 + $0x8] sm:$0xf] %v1497_v24  ;;  %1500 = vst [vmem:[%s2155_s8 + $0x14] sm:$0xf] %v1499_v25  ;;  %v1503_v27 = vld [vmem:[%s2150_s7 + $0x74] sm:$0xf] }
  0x28   : > { %1502 = vst [vmem:[%s2155_s8 + $0x20] sm:$0xf] %v1501_v26  ;;  %v1505_v28 = vld [vmem:[%s2150_s7 + $0x98] sm:$0xf]  ;;  %v1507_v29 = vld [vmem:[%s2150_s7 + $0xbc] sm:$0xf] }
  0x29   : > { %1504 = vst [vmem:[%s2155_s8 + $0x2c] sm:$0xf] %v1503_v27  ;;  %1506 = vst [vmem:[%s2155_s8 + $0x38] sm:$0xf] %v1505_v28  ;;  %v1509_v30 = vld [vmem:[%s2150_s7 + $0xe0] sm:$0xf] }
  0x2a   : > { %1508 = vst [vmem:[%s2155_s8 + $0x44] sm:$0xf] %v1507_v29  ;;  %v1511_v31 = vld [vmem:[%s2150_s7 + $0x104] sm:$0xf]  ;;  %v1513_v32 = vld [vmem:[%s2150_s7 + $0x128] sm:$0xf] }
  0x2b   : > { %1510 = vst [vmem:[%s2155_s8 + $0x50] sm:$0xf] %v1509_v30  ;;  %1512 = vst [vmem:[%s2155_s8 + $0x5c] sm:$0xf] %v1511_v31  ;;  %v1515_v33 = vld [vmem:[%s2150_s7 + $0x14c] sm:$0xf] }
  0x2c   : > { %1514 = vst [vmem:[%s2155_s8 + $0x68] sm:$0xf] %v1513_v32  ;;  %v1517_v34 = vld [vmem:[%s2150_s7 + $0x170] sm:$0xf]  ;;  %v1519_v35 = vld [vmem:[%s2150_s7 + $0x194] sm:$0xf] }
  0x2d   : > { %1516 = vst [vmem:[%s2155_s8 + $0x74] sm:$0xf] %v1515_v33  ;;  %1518 = vst [vmem:[%s2155_s8 + $0x80] sm:$0xf] %v1517_v34  ;;  %v1521_v36 = vld [vmem:[%s2150_s7 + $0x1b8] sm:$0xf] }
  0x2e   : > { %1520 = vst [vmem:[%s2155_s8 + $0x8c] sm:$0xf] %v1519_v35  ;;  %v1523_v37 = vld [vmem:[%s2150_s7 + $0x1dc] sm:$0xf]  ;;  %v1525_v38 = vld [vmem:[%s2150_s7 + $0x200] sm:$0xf] }
  0x2f   : > { %1522 = vst [vmem:[%s2155_s8 + $0x98] sm:$0xf] %v1521_v36  ;;  %1524 = vst [vmem:[%s2155_s8 + $0xa4] sm:$0xf] %v1523_v37  ;;  %v1527_v39 = vld [vmem:[%s2150_s7 + $0x224] sm:$0xf] }
  0x30   : > { %1526 = vst [vmem:[%s2155_s8 + $0xb0] sm:$0xf] %v1525_v38  ;;  %v1529_v40 = vld [vmem:[%s2150_s7 + $0x248] sm:$0xf]  ;;  %v1531_v41 = vld [vmem:[%s2150_s7 + $0x26c] sm:$0xf] }
  0x31   : > { %1528 = vst [vmem:[%s2155_s8 + $0xbc] sm:$0xf] %v1527_v39  ;;  %1530 = vst [vmem:[%s2155_s8 + $0xc8] sm:$0xf] %v1529_v40  ;;  %v1533_v42 = vld [vmem:[%s2150_s7 + $0x290] sm:$0xf] }
  0x32   : > { %1532 = vst [vmem:[%s2155_s8 + $0xd4] sm:$0xf] %v1531_v41  ;;  %v1535_v43 = vld [vmem:[%s2150_s7 + $0x2b4] sm:$0xf]  ;;  %v1537_v44 = vld [vmem:[%s2150_s7 + $0x2d8] sm:$0xf] }
  0x33   : > { %1534 = vst [vmem:[%s2155_s8 + $0xe0] sm:$0xf] %v1533_v42  ;;  %1536 = vst [vmem:[%s2155_s8 + $0xec] sm:$0xf] %v1535_v43  ;;  %v1539_v45 = vld [vmem:[%s2150_s7 + $0x2fc] sm:$0xf] }
  0x34   : > { %1538 = vst [vmem:[%s2155_s8 + $0xf8] sm:$0xf] %v1537_v44  ;;  %v1541_v46 = vld [vmem:[%s2150_s7 + $0x320] sm:$0xf]  ;;  %v1543_v47 = vld [vmem:[%s2150_s7 + $0x344] sm:$0xf] }
  0x35   : > { %1540 = vst [vmem:[%s2155_s8 + $0x104] sm:$0xf] %v1539_v45  ;;  %1542 = vst [vmem:[%s2155_s8 + $0x110] sm:$0xf] %v1541_v46 }
  0x36   : > { %1544 = vst [vmem:[%s2155_s8 + $0x11c] sm:$0xf] %v1543_v47 }
  0x37 PF: > { %p1545_p7 = scmp.ge.s32.totalorder %s2067_s18, 1  ;;  %p309_p8 = scmp.lt.s32.totalorder %s2067_s18, 19 }
  0x39   : > { %p310_p9 = pnand %p1545_p7, %p309_p8 }
  0x3a   : > { %s316_s9 = sand.u32 (!%p310_p9), 1, %s2043_s12   ;;  %s355_s10 = smul.u32 (!%p310_p9), 48, %s2051_s14 }
  0x3b   : > { %313 = sbr.rel (%p310_p9) target bundleno = 437 (0x1b5), region = 54  ;;  %p1548_p12 = scmp.ne.s32.totalorder (!%p310_p9), %s2051_s14, 0 }
  0x3c   : > { %s1882_s11 = smul.u32 (!%p310_p9), 288, %s316_s9  ;;  %p356_p10 = scmp.lt.s32.totalorder (!%p310_p9), %s355_s10, 143 }
  0x3d   : > { %s367_s21 = smul.u32 (!%p310_p9), 24, %s2055_s15 }
  0x3e   : > { %s2265_s12 = scalar_lea.vmem (!%p310_p9), [#allocation3], %s1882_s11 }
  0x3f   : > { %p368_p11 = scmp.lt.s32.totalorder (!%p310_p9), %s367_s21, 143 }
  0x42   : > { %s2435_s10 = smov (!%p356_p10, %s355_s10), 143  ;;  %s2437_s21 = smov (!%p368_p11, %s367_s21), 143 }
  0x43   : > { %s1546_s22 = sshll.u32 %s2435_s10, 2  ;;  %s1547_s27 = sshll.u32 %s2437_s21, 2  ;;  %v2069_v48 = vmov (!%p1548_p12), 0.0  }
  0x44   : > { %s2258_s26 = scalar_lea.vmem %s2419_s1, %s1546_s22  ;;  %s2263_s30 = scalar_lea.vmem %s2421_s3, %s1547_s27  ;;  %381 = vst [vmem:[#allocation2] sm:$0xff] (!%p1548_p12), %v2069_v48  ;;  %382 = vst [vmem:[#allocation2 + $0x8] sm:$0xff] (!%p1548_p12), %v2069_v48 }
  0x45   : > { %380 = sbr.rel (%p1548_p12) target bundleno = 80 (0x50), region = 62  ;;  %383 = vst [vmem:[#allocation2 + $0x10] sm:$0xff] (!%p1548_p12), %v2069_v48  ;;  %384 = vst [vmem:[#allocation2 + $0x18] sm:$0xff] (!%p1548_p12), %v2069_v48 }
  0x46   : > { %385 = vst [vmem:[#allocation2 + $0x20] sm:$0xff] (!%p1548_p12), %v2069_v48  ;;  %386 = vst [vmem:[#allocation2 + $0x28] sm:$0xff] (!%p1548_p12), %v2069_v48 }
  0x47   : > { %387 = vst [vmem:[#allocation2 + $0x30] sm:$0xff] (!%p1548_p12), %v2069_v48  ;;  %388 = vst [vmem:[#allocation2 + $0x38] sm:$0xff] (!%p1548_p12), %v2069_v48 }
  0x48   : > { %389 = vst [vmem:[#allocation2 + $0x40] sm:$0xff] (!%p1548_p12), %v2069_v48  ;;  %390 = vst [vmem:[#allocation2 + $0x48] sm:$0xff] (!%p1548_p12), %v2069_v48 }
  0x49   : > { %391 = vst [vmem:[#allocation2 + $0x50] sm:$0xff] (!%p1548_p12), %v2069_v48  ;;  %392 = vst [vmem:[#allocation2 + $0x58] sm:$0xff] (!%p1548_p12), %v2069_v48 }
  0x4a   : > { %393 = vst [vmem:[#allocation2 + $0x60] sm:$0xff] (!%p1548_p12), %v2069_v48  ;;  %394 = vst [vmem:[#allocation2 + $0x68] sm:$0xff] (!%p1548_p12), %v2069_v48 }
  0x4b   : > { %395 = vst [vmem:[#allocation2 + $0x70] sm:$0xff] (!%p1548_p12), %v2069_v48  ;;  %396 = vst [vmem:[#allocation2 + $0x78] sm:$0xff] (!%p1548_p12), %v2069_v48 }
  0x4c   : > { %397 = vst [vmem:[#allocation2 + $0x80] sm:$0xff] %v2069_v48  ;;  %398 = vst [vmem:[#allocation2 + $0x88] sm:$0xff] %v2069_v48 }
  0x4d   : > { %399 = vst [vmem:[#allocation2 + $0x90] sm:$0xff] %v2069_v48  ;;  %400 = vst [vmem:[#allocation2 + $0x98] sm:$0xff] %v2069_v48 }
  0x4e   : > { %401 = vst [vmem:[#allocation2 + $0xa0] sm:$0xff] %v2069_v48  ;;  %402 = vst [vmem:[#allocation2 + $0xa8] sm:$0xff] %v2069_v48 }
  0x4f   : > { %403 = vst [vmem:[#allocation2 + $0xb0] sm:$0xff] %v2069_v48  ;;  %404 = vst [vmem:[#allocation2 + $0xb8] sm:$0xff] %v2069_v48 }
  0x50 PF: > { %v1941_v49 = vld [vmem:[%s2258_s26 + $0x40] sm:$0xff]   ;;  %v1944_v52 = vld [vmem:[%s2258_s26 + $0x48] sm:$0xff]   ;;  %v1947_v55 = vld [vmem:[%s2258_s26 + $0x50] sm:$0xff]   ;;  %p1609_p13 = scmp.ne.s32.totalorder %s2051_s14, 2 }
  0x51   : > { %v1942_v50 = vld [vmem:[%s2258_s26] sm:$0xff]   ;;  %1732 = vmatprep.subr.bf16.mxu0 %v1941_v49  ;;  %v1945_v53 = vld [vmem:[%s2258_s26 + $0x8] sm:$0xff]   ;;  %v1948_v56 = vld [vmem:[%s2258_s26 + $0x10] sm:$0xff]  }
  0x52   : > { %v1943_v51 = vld [vmem:[%s2258_s26 + $0x80] sm:$0xff]   ;;  %1733 = vmatpush3.bf16.msra.mxu0 %v1942_v50  ;;  %v1946_v54 = vld [vmem:[%s2258_s26 + $0x88] sm:$0xff]   ;;  %v1949_v57 = vld [vmem:[%s2258_s26 + $0x90] sm:$0xff]  }
  0x53   : > { %1840 = vmatprep.subr.bf16.mxu1 %v1943_v51  ;;  %1734 = vmatprep.subr.bf16.mxu0 %v1944_v52  ;;  %v1950_v58 = vld [vmem:[%s2258_s26 + $0x58] sm:$0xff]   ;;  %v1953_v61 = vld [vmem:[%s2258_s26 + $0x60] sm:$0xff]   ;;  %v1956_v0 = vld [vmem:[%s2258_s26 + $0x68] sm:$0xff]  }
  0x54   : > { %1841 = vmatpush3.bf16.msra.mxu1 %v1943_v51  ;;  %v1951_v59 = vld [vmem:[%s2258_s26 + $0x18] sm:$0xff]   ;;  %v1955_v62 = vld [vmem:[%s2258_s26 + $0xa0] sm:$0xff]   ;;  %v1958_v1 = vld [vmem:[%s2258_s26 + $0xa8] sm:$0xff]  }
  0x55   : > { %1842 = vmatprep.subr.bf16.mxu1 %v1946_v54  ;;  %v1952_v60 = vld [vmem:[%s2258_s26 + $0x98] sm:$0xff]   ;;  %v1954_v63 = vld [vmem:[%s2258_s26 + $0x20] sm:$0xff]   ;;  %v1957_v2 = vld [vmem:[%s2258_s26 + $0x28] sm:$0xff]  }
  0x56   : > { %1735 = vmatpush3.bf16.msra.mxu0 %v1945_v53  ;;  %v1959_v3 = vld [vmem:[%s2258_s26 + $0x70] sm:$0xff]   ;;  %v1962_v6 = vld [vmem:[%s2258_s26 + $0x78] sm:$0xff]   ;;  %v1965_v11 = vld [vmem:[%s2265_s12] ss:$12 sps:$4 sm:$0xff]  }
  0x57   : > { %1736 = vmatprep.subr.bf16.mxu0 %v1947_v55  ;;  %v1960_v4 = vld [vmem:[%s2258_s26 + $0x30] sm:$0xff]   ;;  %v1964_v7 = vld [vmem:[%s2258_s26 + $0xb8] sm:$0xff]   ;;  %v1969_v13 = vld [vmem:[%s2265_s12 + $0x20] ss:$12 sps:$4 sm:$0xff]  }
  0x58   : > { %1843 = vmatpush3.bf16.msra.mxu1 %v1946_v54  ;;  %v1961_v5 = vld [vmem:[%s2258_s26 + $0xb0] sm:$0xff]   ;;  %v1963_v10 = vld [vmem:[%s2258_s26 + $0x38] sm:$0xff]   ;;  %v1985_v21 = vld [vmem:[%s2265_s12 + $0x80] ss:$12 sps:$4 sm:$0xff]  }
  0x59   : > { %1844 = vmatprep.subr.bf16.mxu1 %v1949_v57  ;;  %v1967_v8 = vld [vmem:[%s2265_s12 + $0x4] ss:$12 sps:$4 sm:$0xff]   ;;  %v1968_v9 = vld [vmem:[%s2265_s12 + $0x8] ss:$12 sps:$4 sm:$0xff]   ;;  %v1978_v20 = vld [vmem:[%s2265_s12 + $0x4c] ss:$12 sps:$4 sm:$0xff]  }
  0x5a   : > { %1737 = vmatpush3.bf16.msra.mxu0 %v1948_v56  ;;  %893 = vmatprep.mubr.bf16.mxu0 %v1967_v8  ;;  %v1970_v12 = vld [vmem:[%s2265_s12 + $0x1c] ss:$12 sps:$4 sm:$0xff]   ;;  %v1976_v14 = vld [vmem:[%s2265_s12 + $0x38] ss:$12 sps:$4 sm:$0xff]   ;;  %v1973_v16 = vld [vmem:[%s2265_s12 + $0x34] ss:$12 sps:$4 sm:$0xff]  }
  0x5b   : > { %1738 = vmatprep.subr.bf16.mxu0 %v1950_v58  ;;  %1856 = vmatprep.mubr.bf16.mxu1 %v1968_v9  ;;  %v1972_v15 = vld [vmem:[%s2265_s12 + $0x18] ss:$12 sps:$4 sm:$0xff]   ;;  %v1977_v17 = vld [vmem:[%s2265_s12 + $0x50] ss:$12 sps:$4 sm:$0xff]   ;;  %v1984_v18 = vld [vmem:[%s2265_s12 + $0x68] ss:$12 sps:$4 sm:$0xff]  }
  0x5c   : > { %1845 = vmatpush3.bf16.msra.mxu1 %v1949_v57  ;;  %v1975_v19 = vld [vmem:[%s2265_s12 + $0x30] ss:$12 sps:$4 sm:$0xff]   ;;  %v1992_v22 = vld [vmem:[%s2265_s12 + $0x98] ss:$12 sps:$4 sm:$0xff]   ;;  %v1980_v23 = vld [vmem:[%s2265_s12 + $0x48] ss:$12 sps:$4 sm:$0xff]  }
  0x5d   : > { %1846 = vmatprep.subr.bf16.mxu1 %v1952_v60  ;;  %v1981_v24 = vld [vmem:[%s2265_s12 + $0x64] ss:$12 sps:$4 sm:$0xff]   ;;  %v2000_v26 = vld [vmem:[%s2265_s12 + $0xc8] ss:$12 sps:$4 sm:$0xff]   ;;  %v1983_v27 = vld [vmem:[%s2265_s12 + $0x60] ss:$12 sps:$4 sm:$0xff]  }
  0x5e   : > { %1739 = vmatpush3.bf16.msra.mxu0 %v1951_v59  ;;  %v1993_v25 = vld [vmem:[%s2265_s12 + $0xb0] ss:$12 sps:$4 sm:$0xff]   ;;  %v2001_v29 = vld [vmem:[%s2265_s12 + $0xe0] ss:$12 sps:$4 sm:$0xff]   ;;  %v2008_v30 = vld [vmem:[%s2265_s12 + $0xf8] ss:$12 sps:$4 sm:$0xff]  }
  0x5f   : > { %1740 = vmatprep.subr.bf16.mxu0 %v1953_v61  ;;  %v1986_v28 = vld [vmem:[%s2265_s12 + $0x7c] ss:$12 sps:$4 sm:$0xff]   ;;  %v1988_v31 = vld [vmem:[%s2265_s12 + $0x78] ss:$12 sps:$4 sm:$0xff]   ;;  %v1989_v32 = vld [vmem:[%s2265_s12 + $0x94] ss:$12 sps:$4 sm:$0xff]  }
  0x60   : > { %1847 = vmatpush3.bf16.msra.mxu1 %v1952_v60  ;;  %v2009_v33 = vld [vmem:[%s2265_s12 + $0x110] ss:$12 sps:$4 sm:$0xff]   ;;  %v1994_v35 = vld [vmem:[%s2265_s12 + $0xac] ss:$12 sps:$4 sm:$0xff]   ;;  %v1996_v36 = vld [vmem:[%s2265_s12 + $0xa8] ss:$12 sps:$4 sm:$0xff]  }
  0x61   : > { %1848 = vmatprep.subr.bf16.mxu1 %v1955_v62  ;;  %v1991_v34 = vld [vmem:[%s2265_s12 + $0x90] ss:$12 sps:$4 sm:$0xff]   ;;  %v1999_v38 = vld [vmem:[%s2265_s12 + $0xc0] ss:$12 sps:$4 sm:$0xff]   ;;  %v2004_v40 = vld [vmem:[%s2265_s12 + $0xd8] ss:$12 sps:$4 sm:$0xff]  }
  0x62   : > { %1741 = vmatpush3.bf16.msra.mxu0 %v1954_v63  ;;  %v1997_v37 = vld [vmem:[%s2265_s12 + $0xc4] ss:$12 sps:$4 sm:$0xff]   ;;  %v2002_v39 = vld [vmem:[%s2265_s12 + $0xdc] ss:$12 sps:$4 sm:$0xff]   ;;  %v2005_v41 = vld [vmem:[%s2265_s12 + $0xf4] ss:$12 sps:$4 sm:$0xff]  }
  0x63   : > { %1742 = vmatprep.subr.bf16.mxu0 %v1956_v0  ;;  %v2007_v42 = vld [vmem:[%s2265_s12 + $0xf0] ss:$12 sps:$4 sm:$0xff]   ;;  %v2010_v43 = vld [vmem:[%s2265_s12 + $0x10c] ss:$12 sps:$4 sm:$0xff]   ;;  %v2012_v44 = vld [vmem:[%s2265_s12 + $0x108] ss:$12 sps:$4 sm:$0xff]  }
  0x64   : > { %1849 = vmatpush3.bf16.msra.mxu1 %v1955_v62  ;;  %v405_v51 = vld [vmem:[#allocation2] sm:$0xff]  ;;  %v406_v56 = vld [vmem:[#allocation2 + $0x8] sm:$0xff]  ;;  %v408_v8 = vld [vmem:[#allocation2 + $0x18] sm:$0xff] }
  0x65   : > { %1850 = vmatprep.subr.bf16.mxu1 %v1958_v1 }
  0x66   : > { %1743 = vmatpush3.bf16.msra.mxu0 %v1957_v2  ;;  %v407_v2 = vld [vmem:[#allocation2 + $0x10] sm:$0xff] }
  0x67   : > { %1744 = vmatprep.subr.bf16.mxu0 %v1959_v3 }
  0x68   : > { %1851 = vmatpush3.bf16.msra.mxu1 %v1958_v1 }
  0x69   : > { %1852 = vmatprep.subr.bf16.mxu1 %v1961_v5 }
  0x6a   : > { %1745 = vmatpush3.bf16.msra.mxu0 %v1960_v4 }
  0x6b   : > { %1746 = vmatprep.subr.bf16.mxu0 %v1962_v6 }
  0x6c   : > { %1853 = vmatpush3.bf16.msra.mxu1 %v1961_v5 }
  0x6d   : > { %1854 = vmatprep.subr.bf16.mxu1 %v1964_v7 }
  0x6e   : > { %1747 = vmatpush3.bf16.msra.mxu0 %v1963_v10 }
  0x70   : > { %1855 = vmatpush3.bf16.msra.mxu1 %v1964_v7 }
  0x71   : > { %894 = vmatmul.mubr.bf16.vlgmr.msra.gmra.mrb[0].mxu0 %v1965_v11 }
  0x72   : > { %901 = vmatprep.mubr.bf16.mxu0 %v1970_v12 }
  0x73   : > { %1857 = vmatmul.mubr.bf16.vlgmr.msra.gmra.mrb[0].mxu1 %v1969_v13 }
  0x74   : > { %1860 = vmatprep.mubr.bf16.mxu1 %v1976_v14 }
  0x79   : > { %902 = vmatmul.mubr.bf16.gmra.mrb[4].mxu0 %v1972_v15 }
  0x7a   : > { %909 = vmatprep.mubr.bf16.mxu0 %v1973_v16 }
  0x7b   : > { %1861 = vmatmul.mubr.bf16.gmra.mrb[4].mxu1 %v1977_v17 }
  0x7c   : > { %1864 = vmatprep.mubr.bf16.mxu1 %v1984_v18 }
  0x81   : > { %910 = vmatmul.mubr.bf16.gmra.mrb[8].mxu0 %v1975_v19  ;;  %v409_v19 = vld [vmem:[#allocation2 + $0x20] sm:$0xff] }
  0x82   : > { %917 = vmatprep.mubr.bf16.mxu0 %v1978_v20 }
  0x83   : > { %1865 = vmatmul.mubr.bf16.gmra.mrb[8].mxu1 %v1985_v21 }
  0x84   : > { %1868 = vmatprep.mubr.bf16.mxu1 %v1992_v22 }
  0x89   : > { %918 = vmatmul.mubr.bf16.gmra.mrb[12].mxu0 %v1980_v23 }
  0x8a   : > { %925 = vmatprep.mubr.bf16.mxu0 %v1981_v24  ;;  %v410_v24 = vld [vmem:[#allocation2 + $0x28] sm:$0xff] }
  0x8b   : > { %1869 = vmatmul.mubr.bf16.gmra.mrb[12].mxu1 %v1993_v25 }
  0x8c   : > { %1872 = vmatprep.mubr.bf16.mxu1 %v2000_v26 }
  0x91   : > { %926 = vmatmul.mubr.bf16.gmra.mrb[16].mxu0 %v1983_v27 }
  0x92   : > { %933 = vmatprep.mubr.bf16.mxu0 %v1986_v28 }
  0x93   : > { %1873 = vmatmul.mubr.bf16.gmra.mrb[16].mxu1 %v2001_v29 }
  0x94   : > { %1876 = vmatprep.mubr.bf16.mxu1 %v2008_v30 }
  0x99   : > { %934 = vmatmul.mubr.bf16.gmra.mrb[20].mxu0 %v1988_v31 }
  0x9a   : > { %941 = vmatprep.mubr.bf16.mxu0 %v1989_v32 }
  0x9b   : > { %1877 = vmatmul.mubr.bf16.gmra.mrb[20].mxu1 %v2009_v33 }
  0xa1   : > { %942 = vmatmul.mubr.bf16.gmra.mrb[24].mxu0 %v1991_v34  ;;  %v411_v34 = vld [vmem:[#allocation2 + $0x30] sm:$0xff] }
  0xa2   : > { %949 = vmatprep.mubr.bf16.mxu0 %v1994_v35 }
  0xa9   : > { %950 = vmatmul.mubr.bf16.gmra.mrb[28].mxu0 %v1996_v36 }
  0xaa   : > { %957 = vmatprep.mubr.bf16.mxu0 %v1997_v37 }
  0xb1   : > { %958 = vmatmul.mubr.bf16.gmra.mrb[32].mxu0 %v1999_v38 }
  0xb2   : > { %965 = vmatprep.mubr.bf16.mxu0 %v2002_v39 }
  0xb9   : > { %966 = vmatmul.mubr.bf16.gmra.mrb[36].mxu0 %v2004_v40  ;;  %v412_v40 = vld [vmem:[#allocation2 + $0x38] sm:$0xff] }
  0xba   : > { %973 = vmatprep.mubr.bf16.mxu0 %v2005_v41 }
  0xc1   : > { %974 = vmatmul.mubr.bf16.gmra.mrb[40].mxu0 %v2007_v42 }
  0xc2   : > { %981 = vmatprep.mubr.bf16.mxu0 %v2010_v43 }
  0xc9   : > { %982 = vmatmul.mubr.bf16.gmra.mrb[44].mxu0 %v2012_v44 }
 0x144   : > { %v1748_v45 = vpop.f32.mrb[0].mxu0 }
 0x145   : > { %v1749_v46 = vpop.f32.mrb[1].mxu0 }
 0x146   : > { %v1750_v47 = vadd.f32 %v1749_v46, %v1748_v45  ;;  %v1751_v48 = vpop.f32.mrb[2].mxu0  ;;  %v1858_v49 = vpop.f32.mrb[0].mxu1 }
 0x147   : > { %v1752_v50 = vpop.f32.mrb[3].mxu0  ;;  %v1024_v52 = vpop.f32.mrb[1].mxu1 }
 0x148   : > { %v1753_v53 = vadd.f32 %v1752_v50, %v1751_v48  ;;  %v1025_v54 = vadd.f32 %v1750_v47, %v1024_v52  ;;  %v1859_v55 = vpop.f32.mrb[2].mxu1 }
 0x149   : > { %v1027_v57 = vpop.f32.mrb[3].mxu1 }
 0x14a   : > { %v1119_v58 = vadd.f32 %v1025_v54, %v405_v51  ;;  %v1028_v59 = vadd.f32 %v1753_v53, %v1027_v57  ;;  %v413_v51 = vld [vmem:[#allocation2 + $0x40] sm:$0xff] }
 0x14c   : > { %1143 = vst [vmem:[#allocation2] sm:$0xff] %v1119_v58  ;;  %v1120_v60 = vadd.f32 %v1028_v59, %v406_v56  ;;  %v1754_v61 = vpop.f32.mrb[4].mxu0  ;;  %v414_v56 = vld [vmem:[#allocation2 + $0x48] sm:$0xff] }
 0x14d   : > { %v1755_v62 = vpop.f32.mrb[5].mxu0 }
 0x14e   : > { %1144 = vst [vmem:[#allocation2 + $0x8] sm:$0xff] %v1120_v60  ;;  %v1756_v63 = vadd.f32 %v1755_v62, %v1754_v61  ;;  %v1757_v0 = vpop.f32.mrb[6].mxu0  ;;  %v1862_v1 = vpop.f32.mrb[4].mxu1 }
 0x14f   : > { %v1758_v3 = vpop.f32.mrb[7].mxu0  ;;  %v1040_v4 = vpop.f32.mrb[5].mxu1 }
 0x150   : > { %v1033_v5 = vadd.f32 %v1858_v49, %v1756_v63  ;;  %v1759_v6 = vadd.f32 %v1758_v3, %v1757_v0  ;;  %v1863_v7 = vpop.f32.mrb[6].mxu1 }
 0x151   : > { %v1043_v9 = vpop.f32.mrb[7].mxu1 }
 0x152   : > { %v1121_v10 = vadd.f32 %v1033_v5, %v407_v2  ;;  %v1036_v11 = vadd.f32 %v1859_v55, %v1759_v6  ;;  %v415_v2 = vld [vmem:[#allocation2 + $0x50] sm:$0xff] }
 0x154   : > { %1145 = vst [vmem:[#allocation2 + $0x10] sm:$0xff] %v1121_v10  ;;  %v1122_v12 = vadd.f32 %v1036_v11, %v408_v8  ;;  %v1760_v13 = vpop.f32.mrb[8].mxu0  ;;  %v416_v8 = vld [vmem:[#allocation2 + $0x58] sm:$0xff] }
 0x155   : > { %v1761_v14 = vpop.f32.mrb[9].mxu0 }
 0x156   : > { %1146 = vst [vmem:[#allocation2 + $0x18] sm:$0xff] %v1122_v12  ;;  %v1762_v15 = vadd.f32 %v1761_v14, %v1760_v13  ;;  %v1763_v16 = vpop.f32.mrb[10].mxu0  ;;  %v1866_v17 = vpop.f32.mrb[8].mxu1 }
 0x157   : > { %v1764_v18 = vpop.f32.mrb[11].mxu0  ;;  %v1056_v20 = vpop.f32.mrb[9].mxu1 }
 0x158   : > { %v1765_v21 = vadd.f32 %v1764_v18, %v1763_v16  ;;  %v1041_v22 = vadd.f32 %v1762_v15, %v1040_v4  ;;  %v1867_v23 = vpop.f32.mrb[10].mxu1 }
 0x159   : > { %v1059_v25 = vpop.f32.mrb[11].mxu1 }
 0x15a   : > { %v1123_v26 = vadd.f32 %v1041_v22, %v409_v19  ;;  %v1044_v27 = vadd.f32 %v1765_v21, %v1043_v9  ;;  %v417_v19 = vld [vmem:[#allocation2 + $0x60] sm:$0xff] }
 0x15c   : > { %1147 = vst [vmem:[#allocation2 + $0x20] sm:$0xff] %v1123_v26  ;;  %v1124_v28 = vadd.f32 %v1044_v27, %v410_v24  ;;  %v1766_v29 = vpop.f32.mrb[12].mxu0 }
 0x15d   : > { %v1767_v30 = vpop.f32.mrb[13].mxu0 }
 0x15e   : > { %1148 = vst [vmem:[#allocation2 + $0x28] sm:$0xff] %v1124_v28  ;;  %v1768_v31 = vadd.f32 %v1767_v30, %v1766_v29  ;;  %v1769_v32 = vpop.f32.mrb[14].mxu0  ;;  %v2328_v33 = vpop.f32.mrb[12].mxu1  ;;  %v419_v29 = vld [vmem:[#allocation2 + $0x70] sm:$0xff] }
 0x15f   : > { %v1770_v35 = vpop.f32.mrb[15].mxu0  ;;  %v1072_v36 = vpop.f32.mrb[13].mxu1 }
 0x160   : > { %v1049_v37 = vadd.f32 %v1862_v1, %v1768_v31  ;;  %v1771_v38 = vadd.f32 %v1770_v35, %v1769_v32  ;;  %v2330_v39 = vpop.f32.mrb[14].mxu1 }
 0x161   : > { %v1075_v41 = vpop.f32.mrb[15].mxu1 }
 0x162   : > { %v1125_v42 = vadd.f32 %v1049_v37, %v411_v34  ;;  %v1052_v43 = vadd.f32 %v1863_v7, %v1771_v38  ;;  %v420_v34 = vld [vmem:[#allocation2 + $0x78] sm:$0xff] }
 0x164   : > { %1149 = vst [vmem:[#allocation2 + $0x30] sm:$0xff] %v1125_v42  ;;  %v1126_v44 = vadd.f32 %v1052_v43, %v412_v40  ;;  %v1772_v45 = vpop.f32.mrb[16].mxu0 }
 0x165   : > { %v1773_v46 = vpop.f32.mrb[17].mxu0 }
 0x166   : > { %1150 = vst [vmem:[#allocation2 + $0x38] sm:$0xff] %v1126_v44  ;;  %v1774_v47 = vadd.f32 %v1773_v46, %v1772_v45  ;;  %v1775_v48 = vpop.f32.mrb[18].mxu0  ;;  %v2332_v49 = vpop.f32.mrb[16].mxu1  ;;  %v421_v44 = vld [vmem:[#allocation2 + $0x80] sm:$0xff] }
 0x167   : > { %v1776_v50 = vpop.f32.mrb[19].mxu0  ;;  %v2334_v52 = vpop.f32.mrb[17].mxu1 }
 0x168   : > { %v1777_v53 = vadd.f32 %v1776_v50, %v1775_v48  ;;  %v1057_v54 = vadd.f32 %v1774_v47, %v1056_v20  ;;  %v2336_v55 = vpop.f32.mrb[18].mxu1  ;;  %v422_v47 = vld [vmem:[#allocation2 + $0x88] sm:$0xff] }
 0x169   : > { %v1091_v57 = vpop.f32.mrb[19].mxu1 }
 0x16a   : > { %v1127_v58 = vadd.f32 %v1057_v54, %v413_v51  ;;  %v1060_v59 = vadd.f32 %v1777_v53, %v1059_v25 }
 0x16c   : > { %1151 = vst [vmem:[#allocation2 + $0x40] sm:$0xff] %v1127_v58  ;;  %v1128_v60 = vadd.f32 %v1060_v59, %v414_v56  ;;  %v1778_v61 = vpop.f32.mrb[20].mxu0  ;;  %v423_v56 = vld [vmem:[#allocation2 + $0x90] sm:$0xff] }
 0x16d   : > { %v1779_v62 = vpop.f32.mrb[21].mxu0 }
 0x16e   : > { %1152 = vst [vmem:[#allocation2 + $0x48] sm:$0xff] %v1128_v60  ;;  %v1780_v63 = vadd.f32 %v1779_v62, %v1778_v61  ;;  %v1781_v0 = vpop.f32.mrb[22].mxu0  ;;  %v2338_v1 = vpop.f32.mrb[20].mxu1  ;;  %v424_v61 = vld [vmem:[#allocation2 + $0x98] sm:$0xff] }
 0x16f   : > { %v1782_v3 = vpop.f32.mrb[23].mxu0  ;;  %v2340_v4 = vpop.f32.mrb[21].mxu1 }
 0x170   : > { %v1065_v5 = vadd.f32 %v1866_v17, %v1780_v63  ;;  %v1783_v6 = vadd.f32 %v1782_v3, %v1781_v0  ;;  %v2342_v7 = vpop.f32.mrb[22].mxu1  ;;  %v418_v17 = vld [vmem:[#allocation2 + $0x68] sm:$0xff] }
 0x171   : > { %v2344_v9 = vpop.f32.mrb[23].mxu1 }
 0x172   : > { %v1129_v10 = vadd.f32 %v1065_v5, %v415_v2  ;;  %v1068_v11 = vadd.f32 %v1867_v23, %v1783_v6  ;;  %v425_v6 = vld [vmem:[#allocation2 + $0xa0] sm:$0xff] }
 0x174   : > { %1153 = vst [vmem:[#allocation2 + $0x50] sm:$0xff] %v1129_v10  ;;  %v1130_v12 = vadd.f32 %v1068_v11, %v416_v8  ;;  %v1784_v13 = vpop.f32.mrb[24].mxu0  ;;  %v426_v11 = vld [vmem:[#allocation2 + $0xa8] sm:$0xff] }
 0x175   : > { %v1785_v14 = vpop.f32.mrb[25].mxu0 }
 0x176   : > { %1154 = vst [vmem:[#allocation2 + $0x58] sm:$0xff] %v1130_v12  ;;  %v1786_v15 = vadd.f32 %v1785_v14, %v1784_v13  ;;  %v1787_v16 = vpop.f32.mrb[26].mxu0 }
 0x177   : > { %v1788_v18 = vpop.f32.mrb[27].mxu0 }
 0x178   : > { %v1789_v20 = vadd.f32 %v1788_v18, %v1787_v16  ;;  %v1073_v21 = vadd.f32 %v1786_v15, %v1072_v36  ;;  %v427_v18 = vld [vmem:[#allocation2 + $0xb0] sm:$0xff] }
 0x17a   : > { %v1131_v22 = vadd.f32 %v1073_v21, %v417_v19  ;;  %v1076_v24 = vadd.f32 %v1789_v20, %v1075_v41 }
 0x17c   : > { %1155 = vst [vmem:[#allocation2 + $0x60] sm:$0xff] %v1131_v22  ;;  %v1132_v25 = vadd.f32 %v1076_v24, %v418_v17  ;;  %v1790_v26 = vpop.f32.mrb[28].mxu0  ;;  %v428_v17 = vld [vmem:[#allocation2 + $0xb8] sm:$0xff] }
 0x17d   : > { %v1791_v27 = vpop.f32.mrb[29].mxu0 }
 0x17e   : > { %1156 = vst [vmem:[#allocation2 + $0x68] sm:$0xff] %v1132_v25  ;;  %v1792_v23 = vadd.f32 %v1791_v27, %v1790_v26  ;;  %v1793_v28 = vpop.f32.mrb[30].mxu0  ;;  %v1172_v25 = vld [vmem:[#allocation2 + $0x8] sm:$0xff] (!%p1609_p13)  ;;  %v2359_v26 = vld [vmem:[%s2420_s2] ss:$0 sm:$0xff] (!%p1609_p13) }
 0x17f   : > { %v1794_v30 = vpop.f32.mrb[31].mxu0  ;;  %v1203_v27 = vadd.f32 (!%p1609_p13), %v2359_v26, %v1172_v25 }
 0x180   : > { %v1081_v31 = vadd.f32 %v2328_v33, %v1792_v23  ;;  %v1795_v32 = vadd.f32 %v1794_v30, %v1793_v28  ;;  %v1173_v23 = vld [vmem:[#allocation2 + $0x10] sm:$0xff] (!%p1609_p13)  ;;  %v1174_v28 = vld [vmem:[#allocation2 + $0x18] sm:$0xff] (!%p1609_p13) }
 0x181   : > { %v1205_v30 = vadd.f32 (!%p1609_p13), %v2359_v26, %v1174_v28 }
 0x182   : > { %v1133_v35 = vadd.f32 %v1081_v31, %v419_v29  ;;  %v1084_v37 = vadd.f32 %v2330_v39, %v1795_v32  ;;  %v1204_v29 = vadd.f32 (!%p1609_p13), %v2359_v26, %v1173_v23  ;;  %v1176_v31 = vld [vmem:[#allocation2 + $0x28] sm:$0xff] (!%p1609_p13) }
 0x184   : > { %1157 = vst [vmem:[#allocation2 + $0x70] sm:$0xff] %v1133_v35  ;;  %v1134_v36 = vadd.f32 %v1084_v37, %v420_v34  ;;  %v1796_v38 = vpop.f32.mrb[32].mxu0  ;;  %v1177_v34 = vld [vmem:[#allocation2 + $0x30] sm:$0xff] (!%p1609_p13)  ;;  %v1178_v35 = vld [vmem:[#allocation2 + $0x38] sm:$0xff] (!%p1609_p13) }
 0x185   : > { %v1797_v40 = vpop.f32.mrb[33].mxu0 }
 0x186   : > { %1158 = vst [vmem:[#allocation2 + $0x78] sm:$0xff] %v1134_v36  ;;  %v1798_v41 = vadd.f32 %v1797_v40, %v1796_v38  ;;  %v1799_v42 = vpop.f32.mrb[34].mxu0  ;;  %v1227_v36 = vmax.f32 (!%p1609_p13), %v1203_v27, 0.0  ;;  %v1207_v38 = vadd.f32 (!%p1609_p13), %v2359_v26, %v1176_v31  ;;  %v1208_v40 = vadd.f32 (!%p1609_p13), %v2359_v26, %v1177_v34 }
 0x187   : > { %v1800_v43 = vpop.f32.mrb[35].mxu0 }
 0x188   : > { %v1801_v45 = vadd.f32 %v1800_v43, %v1799_v42  ;;  %v1089_v46 = vadd.f32 %v1798_v41, %v2334_v52  ;;  %v1179_v41 = vld [vmem:[#allocation2 + $0x40] sm:$0xff] (!%p1609_p13)  ;;  %v1180_v42 = vld [vmem:[#allocation2 + $0x48] sm:$0xff] (!%p1609_p13)  ;;  %v1181_v43 = vld [vmem:[#allocation2 + $0x50] sm:$0xff] (!%p1609_p13) }
 0x18a   : > { %v1135_v48 = vadd.f32 %v1089_v46, %v421_v44  ;;  %v1092_v33 = vadd.f32 %v1801_v45, %v1091_v57  ;;  %v1228_v44 = vmax.f32 (!%p1609_p13), %v1204_v29, 0.0  ;;  %v1229_v45 = vmax.f32 (!%p1609_p13), %v1205_v30, 0.0 }
 0x18c   : > { %1159 = vst [vmem:[#allocation2 + $0x80] sm:$0xff] %v1135_v48  ;;  %v1136_v50 = vadd.f32 %v1092_v33, %v422_v47  ;;  %v1802_v51 = vpop.f32.mrb[36].mxu0  ;;  %v1209_v47 = vadd.f32 (!%p1609_p13), %v2359_v26, %v1178_v35  ;;  %v1182_v48 = vld [vmem:[#allocation2 + $0x58] sm:$0xff] (!%p1609_p13)  ;;  %v1183_v33 = vld [vmem:[#allocation2 + $0x60] sm:$0xff] (!%p1609_p13) }
 0x18d   : > { %v1803_v53 = vpop.f32.mrb[37].mxu0 }
 0x18e   : > { %1160 = vst [vmem:[#allocation2 + $0x88] sm:$0xff] %v1136_v50  ;;  %v1804_v39 = vadd.f32 %v1803_v53, %v1802_v51  ;;  %v1805_v54 = vpop.f32.mrb[38].mxu0  ;;  %v1231_v51 = vmax.f32 (!%p1609_p13), %v1207_v38, 0.0  ;;  %v1232_v53 = vmax.f32 (!%p1609_p13), %v1208_v40, 0.0 }
 0x18f   : > { %v1806_v58 = vpop.f32.mrb[39].mxu0 }
 0x190   : > { %v1097_v59 = vadd.f32 %v2332_v49, %v1804_v39  ;;  %v1807_v60 = vadd.f32 %v1806_v58, %v1805_v54  ;;  %v1210_v39 = vadd.f32 (!%p1609_p13), %v2359_v26, %v1179_v41  ;;  %v1184_v54 = vld [vmem:[#allocation2 + $0x68] sm:$0xff] (!%p1609_p13)  ;;  %v1233_v58 = vmax.f32 (!%p1609_p13), %v1209_v47, 0.0 }
 0x192   : > { %v1137_v62 = vadd.f32 %v1097_v59, %v423_v56  ;;  %v1100_v63 = vadd.f32 %v2336_v55, %v1807_v60  ;;  %v1669_v56 = vpack.c.bf16 (!%p1609_p13), %v1229_v45, %v1228_v44  ;;  %v1211_v59 = vadd.f32 (!%p1609_p13), %v2359_v26, %v1180_v42 }
 0x193   : > { %v1212_v60 = vadd.f32 (!%p1609_p13), %v2359_v26, %v1181_v43 }
 0x194   : > { %1161 = vst [vmem:[#allocation2 + $0x90] sm:$0xff] %v1137_v62  ;;  %v1138_v52 = vadd.f32 %v1100_v63, %v424_v61  ;;  %v1808_v0 = vpop.f32.mrb[40].mxu0  ;;  %v1185_v61 = vld [vmem:[#allocation2 + $0x70] sm:$0xff] (!%p1609_p13)  ;;  %v1186_v62 = vld [vmem:[#allocation2 + $0x78] sm:$0xff] (!%p1609_p13)  ;;  %1721 = vst [vmem:[%s2263_s30 + $0x8] sm:$0xff] (!%p1609_p13), %v1669_v56  }
 0x195   : > { %v1809_v57 = vpop.f32.mrb[41].mxu0 }
 0x196   : > { %1162 = vst [vmem:[#allocation2 + $0x98] sm:$0xff] %v1138_v52  ;;  %v1810_v2 = vadd.f32 %v1809_v57, %v1808_v0  ;;  %v1811_v3 = vpop.f32.mrb[42].mxu0  ;;  %v1234_v52 = vmax.f32 (!%p1609_p13), %v1210_v39, 0.0  ;;  %v1213_v0 = vadd.f32 (!%p1609_p13), %v2359_v26, %v1182_v48  ;;  %v1214_v57 = vadd.f32 (!%p1609_p13), %v2359_v26, %v1183_v33 }
 0x197   : > { %v1812_v5 = vpop.f32.mrb[43].mxu0 }
 0x198   : > { %v1813_v8 = vadd.f32 %v1812_v5, %v1811_v3  ;;  %v1105_v10 = vadd.f32 %v1810_v2, %v2340_v4  ;;  %v1187_v2 = vld [vmem:[#allocation2 + $0x80] sm:$0xff] (!%p1609_p13)  ;;  %v1188_v3 = vld [vmem:[#allocation2 + $0x88] sm:$0xff] (!%p1609_p13)  ;;  %v1679_v5 = vpack.c.bf16 (!%p1609_p13), %v1233_v58, %v1232_v53 }
 0x19a   : > { %v1139_v12 = vadd.f32 %v1105_v10, %v425_v6  ;;  %v1108_v49 = vadd.f32 %v1813_v8, %v2344_v9  ;;  %v1171_v9 = vld [vmem:[#allocation2] sm:$0xff] (!%p1609_p13)  ;;  %v1235_v6 = vmax.f32 (!%p1609_p13), %v1211_v59, 0.0  ;;  %v1236_v8 = vmax.f32 (!%p1609_p13), %v1212_v60, 0.0  ;;  %1723 = vst [vmem:[%s2263_s30 + $0x18] sm:$0xff] (!%p1609_p13), %v1679_v5  }
 0x19b   : > { %v1215_v10 = vadd.f32 (!%p1609_p13), %v2359_v26, %v1184_v54 }
 0x19c   : > { %1163 = vst [vmem:[#allocation2 + $0xa0] sm:$0xff] %v1139_v12  ;;  %v1140_v13 = vadd.f32 %v1108_v49, %v426_v11  ;;  %v1814_v14 = vpop.f32.mrb[44].mxu0  ;;  %v1189_v11 = vld [vmem:[#allocation2 + $0x90] sm:$0xff] (!%p1609_p13)  ;;  %v1237_v12 = vmax.f32 (!%p1609_p13), %v1213_v0, 0.0  ;;  %v1238_v49 = vmax.f32 (!%p1609_p13), %v1214_v57, 0.0 }
 0x19d   : > { %v1815_v55 = vpop.f32.mrb[45].mxu0 }
 0x19e   : > { %1164 = vst [vmem:[#allocation2 + $0xa8] sm:$0xff] %v1140_v13  ;;  %v1816_v15 = vadd.f32 %v1815_v55, %v1814_v14  ;;  %v1817_v16 = vpop.f32.mrb[46].mxu0  ;;  %v1216_v13 = vadd.f32 (!%p1609_p13), %v2359_v26, %v1185_v61  ;;  %v1217_v14 = vadd.f32 (!%p1609_p13), %v2359_v26, %v1186_v62  ;;  %v1190_v55 = vld [vmem:[#allocation2 + $0x98] sm:$0xff] (!%p1609_p13) }
 0x19f   : > { %v1818_v19 = vpop.f32.mrb[47].mxu0  ;;  %v1221_v28 = vadd.f32 (!%p1609_p13), %v2359_v26, %v1190_v55 }
 0x1a0   : > { %v1113_v20 = vadd.f32 %v2338_v1, %v1816_v15  ;;  %v1819_v21 = vadd.f32 %v1818_v19, %v1817_v16  ;;  %1170 = sbr.rel (%p1609_p13) target bundleno = 437 (0x1b5), region = 66  ;;  %v1202_v1 = vadd.f32 (!%p1609_p13), %v2359_v26, %v1171_v9  ;;  %v1684_v15 = vpack.c.bf16 (!%p1609_p13), %v1235_v6, %v1234_v52 }
 0x1a1   : > { %v1239_v16 = vmax.f32 (!%p1609_p13), %v1215_v10, 0.0  ;;  %v1219_v19 = vadd.f32 (!%p1609_p13), %v2359_v26, %v1188_v3  ;;  %v1245_v34 = vmax.f32 (!%p1609_p13), %v1221_v28, 0.0 }
 0x1a2   : > { %v1141_v22 = vadd.f32 %v1113_v20, %v427_v18  ;;  %v1116_v4 = vadd.f32 %v2342_v7, %v1819_v21  ;;  %v1175_v7 = vld [vmem:[#allocation2 + $0x20] sm:$0xff] (!%p1609_p13)  ;;  %v1226_v37 = vmax.f32 (!%p1609_p13), %v1202_v1, 0.0  ;;  %v1218_v18 = vadd.f32 (!%p1609_p13), %v2359_v26, %v1187_v2  ;;  %1724 = vst [vmem:[%s2263_s30 + $0x20] sm:$0xff] (!%p1609_p13), %v1684_v15  }
 0x1a3   : > { %v1206_v32 = vadd.f32 (!%p1609_p13), %v2359_v26, %v1175_v7  ;;  %v1191_v20 = vld [vmem:[#allocation2 + $0xa0] sm:$0xff] (!%p1609_p13)  ;;  %v1694_v1 = vpack.c.bf16 (!%p1609_p13), %v1239_v16, %v1238_v49  ;;  %v1243_v23 = vmax.f32 (!%p1609_p13), %v1219_v19, 0.0 }
 0x1a4   : > { %1165 = vst [vmem:[#allocation2 + $0xb0] sm:$0xff] %v1141_v22  ;;  %v1142_v24 = vadd.f32 %v1116_v4, %v428_v17  ;;  %v1664_v50 = vpack.c.bf16 (!%p1609_p13), %v1227_v36, %v1226_v37  ;;  %v1689_v17 = vpack.c.bf16 (!%p1609_p13), %v1237_v12, %v1236_v8  ;;  %v1240_v22 = vmax.f32 (!%p1609_p13), %v1216_v13, 0.0 }
 0x1a5   : > { %v1230_v46 = vmax.f32 (!%p1609_p13), %v1206_v32, 0.0  ;;  %v1192_v21 = vld [vmem:[#allocation2 + $0xa8] sm:$0xff] (!%p1609_p13)  ;;  %v1241_v4 = vmax.f32 (!%p1609_p13), %v1217_v14, 0.0  ;;  %v1242_v27 = vmax.f32 (!%p1609_p13), %v1218_v18, 0.0  ;;  %v1222_v30 = vadd.f32 (!%p1609_p13), %v2359_v26, %v1191_v20  ;;  %1726 = vst [vmem:[%s2263_s30 + $0x30] sm:$0xff] (!%p1609_p13), %v1694_v1  }
 0x1a6   : > { %1166 = vst [vmem:[#allocation2 + $0xb8] sm:$0xff] %v1142_v24  ;;  %1665 = vst [vmem:[%s2263_s30] sm:$0xff] (!%p1609_p13), %v1664_v50   ;;  %v1220_v24 = vadd.f32 (!%p1609_p13), %v2359_v26, %v1189_v11  ;;  %v1223_v31 = vadd.f32 (!%p1609_p13), %v2359_v26, %v1192_v21 }
 0x1a7   : > { %v1674_v63 = vpack.c.bf16 %v1231_v51, %v1230_v46  ;;  %1725 = vst [vmem:[%s2263_s30 + $0x28] sm:$0xff] %v1689_v17   ;;  %v1699_v7 = vpack.c.bf16 %v1241_v4, %v1240_v22  ;;  %v1704_v32 = vpack.c.bf16 %v1243_v23, %v1242_v27  ;;  %v1246_v36 = vmax.f32 %v1222_v30, 0.0 }
 0x1a8   : > { %v1244_v29 = vmax.f32 %v1220_v24, 0.0  ;;  %v1247_v38 = vmax.f32 %v1223_v31, 0.0 }
 0x1a9   : > { %1722 = vst [vmem:[%s2263_s30 + $0x10] sm:$0xff] %v1674_v63   ;;  %1727 = vst [vmem:[%s2263_s30 + $0x38] sm:$0xff] %v1699_v7  }
 0x1aa   : > { %1728 = vst [vmem:[%s2263_s30 + $0x40] sm:$0xff] %v1704_v32   ;;  %v1709_v40 = vpack.c.bf16 %v1245_v34, %v1244_v29  ;;  %v1714_v43 = vpack.c.bf16 %v1247_v38, %v1246_v36 }
 0x1ab   : > { %v1193_v9 = vld [vmem:[#allocation2 + $0xb0] sm:$0xff] }
 0x1ac   : > { %v1224_v35 = vadd.f32 %v2359_v26, %v1193_v9  ;;  %1729 = vst [vmem:[%s2263_s30 + $0x48] sm:$0xff] %v1709_v40   ;;  %1730 = vst [vmem:[%s2263_s30 + $0x50] sm:$0xff] %v1714_v43  }
 0x1ad   : > { %v1194_v25 = vld [vmem:[#allocation2 + $0xb8] sm:$0xff] }
 0x1ae   : > { %v1225_v37 = vadd.f32 %v2359_v26, %v1194_v25  ;;  %v1248_v41 = vmax.f32 %v1224_v35, 0.0 }
 0x1b0   : > { %v1249_v42 = vmax.f32 %v1225_v37, 0.0 }
 0x1b2   : > { %v1719_v44 = vpack.c.bf16 %v1249_v42, %v1248_v41 }
 0x1b4   : > { %1731 = vst [vmem:[%s2263_s30 + $0x58] sm:$0xff] %v1719_v44  }
 0x1b5 PF: > { %s13_s18 = sadd.s32 1, %s2067_s18   ;;  %s2422_s12 = smov %s2047_s13 }
 0x1b6   : > { %p10_p0 = scmp.ge.s32.totalorder %s13_s18, 20   ;;  %s2423_s13 = smov %s2141_s25 }
 0x1b7   : > { %s2424_s14 = smov %s2059_s16  ;;  %s2425_s15 = smov %s2063_s17 }
 0x1b8   : > { %s2426_s16 = smov %s2429_s19  ;;  %s2427_s17 = smov %s2433_s20 }
 0x1b9   :  { %12 = sbr.rel (!%p10_p0) target bundleno = 4 (0x4), region = 113 }

// kernel: facenet_forward.7
= control target key start
LH: loop header
LB: loop body
LE: loop exit
PB: predicated region body
PF: predicated region fallthrough
CT: control target
= control target key end

     0   :  { %s4072_s0 = inlined_call_operand.vmem [shape: bf16[288,3200], index: 0, kind: input, shape index: {}]   ;;  %s4073_s1 = inlined_call_operand.vmem [shape: bf16[3200,512], index: 1, kind: input, shape index: {}]   ;;  %s4074_s2 = inlined_call_operand.vmem [shape: f32[1,512], index: 2, kind: input, shape index: {}]   ;;  %s4075_s3 = inlined_call_operand.vmem [shape: bf16[288,512], index: 3, kind: output, shape index: {}]  }
   0x1   :  { %4078 = sst [smem:[#allocation9_spill]] %s4072_s0 }
   0x2   :  { %4079 = sst [smem:[#allocation10_spill]] %s4075_s3 }
   0x3   :  { %s3232_s12 = smov 0   ;;  %s3234_s13 = smov 0  }
   0x4   :  { %s3236_s14 = smov 0   ;;  %s3238_s15 = smov 0  }
   0x5   :  { %s3240_s16 = smov 0   ;;  %s3242_s17 = smov 0  }
   0x6   :  { %s3244_s18 = smov 0   ;;  %s3246_s19 = smov 0  }
   0x7   :  { %s3248_s20 = smov 0   ;;  %s3250_s21 = smov 0  }
   0x8   :  { %s3252_s22 = smov 0   ;;  %s3254_s23 = smov 0  }
   0x9   :  { %s3256_s24 = smov 0  }
   0xa LB: > { %4080 = sst [smem:[#allocation6_spill]] %s3192_s20  ;;  %s25_s26 = sadd.s32 1, %s3196_s21  ;;  %s3208_s24 = sphi %s3256_s24, %s13_s24   ;;  %s3204_s23 = sphi %s3254_s23, %s4104_s23   ;;  %s3200_s22 = sphi %s3252_s22, %s4103_s22   ;;  %s3196_s21 = sphi %s3250_s21, %s4102_s21   ;;  %s3192_s20 = sphi %s3248_s20, %s4101_s20   ;;  %s3188_s19 = sphi %s3246_s19, %s4100_s19   ;;  %s3184_s18 = sphi %s3244_s18, %s4099_s18   ;;  %s3180_s17 = sphi %s3242_s17, %s4098_s17   ;;  %s3176_s16 = sphi %s3240_s16, %s4097_s16   ;;  %s3172_s15 = sphi %s3238_s15, %s4096_s15   ;;  %s3168_s14 = sphi %s3236_s14, %s4095_s14   ;;  %s3164_s13 = sphi %s3234_s13, %s4094_s13   ;;  %s3160_s12 = sphi %s3232_s12, %s4093_s12  }
   0xb   : > { %p26_p0 = scmp.ge.s32.totalorder %s25_s26, 5  ;;  %s28_s27 = sadd.s32 1, %s3200_s22 }
   0xc   : > { %s32_s28 = sadd.s32 1, %s3204_s23  ;;  %s41_s29 = sadd.s32 1, %s3180_s17 }
   0xd   : > { %s4106_s26 = smov (%p26_p0, %s25_s26), 0  ;;  %s4108_s27 = smov (!%p26_p0, %s28_s27), %s3200_s22 }
   0xe   : > { %4081 = sst [smem:[#allocation7_spill]] %s4106_s26  ;;  %s37_s30 = ssub.s32 %s3196_s21, %s4106_s26 }
   0xf   : > { %p48_p1 = scmp.ne.s32.totalorder %s3180_s17, %s3176_s16  ;;  %p30_p2 = scmp.ge.s32.totalorder %s4108_s27, 2 }
  0x10   : > { %p49_p3 = scmp.eq.s32.totalorder %s3208_s24, 0  ;;  %s69_s4 = sadd.s32 1, %s3172_s15 }
  0x11   : > { %p76_p4 = scmp.ne.s32.totalorder %s3172_s15, %s3168_s14  ;;  %s4110_s27 = smov (%p30_p2, %s4108_s27), 0 }
  0x12   : > { %4082 = sst [smem:[#allocation8_spill]] %s4110_s27  ;;  %s4112_s28 = smov (!%p30_p2, %s32_s28), %s3204_s23 }
  0x13   : > { %p3316_p5 = por %p49_p3, %p48_p1  ;;  %s65_s6 = ssub.s32 %s3200_s22, %s4110_s27 }
  0x14   : > { %p34_p6 = scmp.ge.s32.totalorder %s4112_s28, 2  ;;  %s66_s7 = sor.u32 %s65_s6, %s37_s30 }
  0x15   : > { %p67_p7 = scmp.eq.s32.totalorder %s66_s7, 0  ;;  %p3322_p8 = por %p76_p4, %p49_p3 }
  0x16   : > { %s4114_s28 = smov (%p34_p6, %s4112_s28), 0  ;;  %s123_s11 = sadd.s32 1, %s3164_s13 }
  0x17   : > { %s3329_s9 = scalar_select %p67_p7, %s3172_s15, %s69_s4  }
  0x18   : > { %s36_s10 = ssub.s32 %s3204_s23, %s4114_s28  ;;  %p133_p11 = scmp.ne.s32.totalorder %s3164_s13, %s3160_s12 }
  0x19   : > { %s38_s25 = sor.u32 %s37_s30, %s36_s10  ;;  %s120_s26 = sor.u32 %s65_s6, %s36_s10 }
  0x1a   : > { %p39_p9 = scmp.eq.s32.totalorder %s38_s25, 0  ;;  %p121_p10 = scmp.eq.s32.totalorder %s120_s26, 0 }
  0x1b   : > { %s4085_s27 = sadd.s32 4294967295, %s3208_s24   ;;  %p2493_p0 = scmp.ge.s32.totalorder %s3208_s24, 20 }
  0x1c   : > { %p134_p12 = scmp.eq.s32.totalorder %s4085_s27, 19 }
  0x1d   : > { %s3339_s3 = scalar_select %p39_p9, %s3180_s17, %s41_s29  }
  0x1e   : > { %s3342_s7 = scalar_select %p121_p10, %s3164_s13, %s123_s11  }
  0x1f   : > { %p3344_p13 = por %p134_p12, %p133_p11  ;;  %156 = sbr.rel (%p2493_p0) target bundleno = 125 (0x7d), region = 16 }
  0x26   : > { %159 = sbr.rel (!%p3316_p5) target bundleno = 77 (0x4d), region = 20  ;;  %s161_s25 = sand.u32 (%p3316_p5), 1, %s3180_s17  }
  0x27   : > { %s2810_s26 = smul.u32 (%p3316_p5), 360, %s161_s25  ;;  %s4087_s0 = sld [smem:[#allocation9_spill]] (%p3316_p5) }
  0x28   : > { %s165_s27 = smul.u32 (%p3316_p5), 5, %s3196_s21 }
  0x29   : > { %s2816_s29 = smul.u32 (%p3316_p5), 450, %s3204_s23  ;;  %s3362_s5 = scalar_lea.vmem (%p3316_p5), [#allocation3], %s2810_s26 }
  0x2b   : > { %s167_s30 = sadd.s32 (%p3316_p5), %s2816_s29, %s165_s27 }
  0x2c   : > { %s2494_s4 = sshll.u32 (%p3316_p5), %s167_s30, 2 }
  0x2d   : > { %s3357_s11 = scalar_lea.vmem %s4087_s0, %s2494_s4 }
  0x2e   : > { %v184_v0 = vld [vmem:[%s3357_s11] sm:$0xff]  ;;  %v186_v1 = vld [vmem:[%s3357_s11 + $0x8] sm:$0xff]  ;;  %v194_v5 = vld [vmem:[%s3357_s11 + $0xd0] sm:$0xff] }
  0x2f   : > { %v188_v2 = vld [vmem:[%s3357_s11 + $0x64] sm:$0xff]  ;;  %185 = vst [vmem:[%s3362_s5] sm:$0xff] %v184_v0  ;;  %187 = vst [vmem:[%s3362_s5 + $0x8] sm:$0xff] %v186_v1  ;;  %v190_v3 = vld [vmem:[%s3357_s11 + $0x6c] sm:$0xff] }
  0x30   : > { %189 = vst [vmem:[%s3362_s5 + $0x14] sm:$0xff] %v188_v2  ;;  %v192_v4 = vld [vmem:[%s3357_s11 + $0xc8] sm:$0xff]  ;;  %191 = vst [vmem:[%s3362_s5 + $0x1c] sm:$0xff] %v190_v3  ;;  %v198_v7 = vld [vmem:[%s3357_s11 + $0x134] sm:$0xff] }
  0x31   : > { %193 = vst [vmem:[%s3362_s5 + $0x28] sm:$0xff] %v192_v4  ;;  %195 = vst [vmem:[%s3362_s5 + $0x30] sm:$0xff] %v194_v5  ;;  %v196_v6 = vld [vmem:[%s3357_s11 + $0x12c] sm:$0xff]  ;;  %v202_v9 = vld [vmem:[%s3357_s11 + $0x198] sm:$0xff] }
  0x32   : > { %v200_v8 = vld [vmem:[%s3357_s11 + $0x190] sm:$0xff]  ;;  %197 = vst [vmem:[%s3362_s5 + $0x3c] sm:$0xff] %v196_v6  ;;  %199 = vst [vmem:[%s3362_s5 + $0x44] sm:$0xff] %v198_v7  ;;  %v206_v11 = vld [vmem:[%s3357_s11 + $0x1fc] sm:$0xff] }
  0x33   : > { %201 = vst [vmem:[%s3362_s5 + $0x50] sm:$0xff] %v200_v8  ;;  %v204_v10 = vld [vmem:[%s3357_s11 + $0x1f4] sm:$0xff]  ;;  %203 = vst [vmem:[%s3362_s5 + $0x58] sm:$0xff] %v202_v9  ;;  %v210_v13 = vld [vmem:[%s3357_s11 + $0x260] sm:$0xff] }
  0x34   : > { %205 = vst [vmem:[%s3362_s5 + $0x64] sm:$0xff] %v204_v10  ;;  %207 = vst [vmem:[%s3362_s5 + $0x6c] sm:$0xff] %v206_v11  ;;  %v208_v12 = vld [vmem:[%s3357_s11 + $0x258] sm:$0xff]  ;;  %v214_v15 = vld [vmem:[%s3357_s11 + $0x2c4] sm:$0xff] }
  0x35   : > { %v212_v14 = vld [vmem:[%s3357_s11 + $0x2bc] sm:$0xff]  ;;  %209 = vst [vmem:[%s3362_s5 + $0x78] sm:$0xff] %v208_v12  ;;  %211 = vst [vmem:[%s3362_s5 + $0x80] sm:$0xff] %v210_v13  ;;  %v218_v17 = vld [vmem:[%s3357_s11 + $0x328] sm:$0xff] }
  0x36   : > { %213 = vst [vmem:[%s3362_s5 + $0x8c] sm:$0xff] %v212_v14  ;;  %v216_v16 = vld [vmem:[%s3357_s11 + $0x320] sm:$0xff]  ;;  %215 = vst [vmem:[%s3362_s5 + $0x94] sm:$0xff] %v214_v15  ;;  %v222_v19 = vld [vmem:[%s3357_s11 + $0x38c] sm:$0xff] }
  0x37   : > { %217 = vst [vmem:[%s3362_s5 + $0xa0] sm:$0xff] %v216_v16  ;;  %219 = vst [vmem:[%s3362_s5 + $0xa8] sm:$0xff] %v218_v17  ;;  %v220_v18 = vld [vmem:[%s3357_s11 + $0x384] sm:$0xff]  ;;  %v226_v21 = vld [vmem:[%s3357_s11 + $0x3f0] sm:$0xff] }
  0x38   : > { %v224_v20 = vld [vmem:[%s3357_s11 + $0x3e8] sm:$0xff]  ;;  %221 = vst [vmem:[%s3362_s5 + $0xb4] sm:$0xff] %v220_v18  ;;  %223 = vst [vmem:[%s3362_s5 + $0xbc] sm:$0xff] %v222_v19  ;;  %v230_v23 = vld [vmem:[%s3357_s11 + $0x454] sm:$0xff] }
  0x39   : > { %225 = vst [vmem:[%s3362_s5 + $0xc8] sm:$0xff] %v224_v20  ;;  %v228_v22 = vld [vmem:[%s3357_s11 + $0x44c] sm:$0xff]  ;;  %227 = vst [vmem:[%s3362_s5 + $0xd0] sm:$0xff] %v226_v21  ;;  %v234_v25 = vld [vmem:[%s3357_s11 + $0x4b8] sm:$0xff] }
  0x3a   : > { %229 = vst [vmem:[%s3362_s5 + $0xdc] sm:$0xff] %v228_v22  ;;  %231 = vst [vmem:[%s3362_s5 + $0xe4] sm:$0xff] %v230_v23  ;;  %v232_v24 = vld [vmem:[%s3357_s11 + $0x4b0] sm:$0xff]  ;;  %v238_v27 = vld [vmem:[%s3357_s11 + $0x51c] sm:$0xff] }
  0x3b   : > { %v236_v26 = vld [vmem:[%s3357_s11 + $0x514] sm:$0xff]  ;;  %233 = vst [vmem:[%s3362_s5 + $0xf0] sm:$0xff] %v232_v24  ;;  %235 = vst [vmem:[%s3362_s5 + $0xf8] sm:$0xff] %v234_v25  ;;  %v242_v29 = vld [vmem:[%s3357_s11 + $0x580] sm:$0xff] }
  0x3c   : > { %237 = vst [vmem:[%s3362_s5 + $0x104] sm:$0xff] %v236_v26  ;;  %v240_v28 = vld [vmem:[%s3357_s11 + $0x578] sm:$0xff]  ;;  %239 = vst [vmem:[%s3362_s5 + $0x10c] sm:$0xff] %v238_v27  ;;  %v246_v31 = vld [vmem:[%s3357_s11 + $0x5e4] sm:$0xff] }
  0x3d   : > { %241 = vst [vmem:[%s3362_s5 + $0x118] sm:$0xff] %v240_v28  ;;  %243 = vst [vmem:[%s3362_s5 + $0x120] sm:$0xff] %v242_v29  ;;  %v244_v30 = vld [vmem:[%s3357_s11 + $0x5dc] sm:$0xff]  ;;  %v250_v33 = vld [vmem:[%s3357_s11 + $0x648] sm:$0xff] }
  0x3e   : > { %v248_v32 = vld [vmem:[%s3357_s11 + $0x640] sm:$0xff]  ;;  %245 = vst [vmem:[%s3362_s5 + $0x12c] sm:$0xff] %v244_v30  ;;  %247 = vst [vmem:[%s3362_s5 + $0x134] sm:$0xff] %v246_v31  ;;  %v254_v35 = vld [vmem:[%s3357_s11 + $0x6ac] sm:$0xff] }
  0x3f   : > { %249 = vst [vmem:[%s3362_s5 + $0x140] sm:$0xff] %v248_v32  ;;  %v252_v34 = vld [vmem:[%s3357_s11 + $0x6a4] sm:$0xff]  ;;  %251 = vst [vmem:[%s3362_s5 + $0x148] sm:$0xff] %v250_v33  ;;  %v2495_v36 = vld [vmem:[%s3357_s11 + $0x10] sm:$0xf] }
  0x40   : > { %253 = vst [vmem:[%s3362_s5 + $0x154] sm:$0xff] %v252_v34  ;;  %255 = vst [vmem:[%s3362_s5 + $0x15c] sm:$0xff] %v254_v35  ;;  %v2497_v37 = vld [vmem:[%s3357_s11 + $0x74] sm:$0xf]  ;;  %v2499_v38 = vld [vmem:[%s3357_s11 + $0xd8] sm:$0xf] }
  0x41   : > { %2496 = vst [vmem:[%s3362_s5 + $0x10] sm:$0xf] %v2495_v36  ;;  %2498 = vst [vmem:[%s3362_s5 + $0x24] sm:$0xf] %v2497_v37  ;;  %v2501_v39 = vld [vmem:[%s3357_s11 + $0x13c] sm:$0xf] }
  0x42   : > { %2500 = vst [vmem:[%s3362_s5 + $0x38] sm:$0xf] %v2499_v38  ;;  %v2503_v40 = vld [vmem:[%s3357_s11 + $0x1a0] sm:$0xf]  ;;  %v2505_v41 = vld [vmem:[%s3357_s11 + $0x204] sm:$0xf] }
  0x43   : > { %2502 = vst [vmem:[%s3362_s5 + $0x4c] sm:$0xf] %v2501_v39  ;;  %2504 = vst [vmem:[%s3362_s5 + $0x60] sm:$0xf] %v2503_v40  ;;  %v2507_v42 = vld [vmem:[%s3357_s11 + $0x268] sm:$0xf] }
  0x44   : > { %2506 = vst [vmem:[%s3362_s5 + $0x74] sm:$0xf] %v2505_v41  ;;  %v2509_v43 = vld [vmem:[%s3357_s11 + $0x2cc] sm:$0xf]  ;;  %v2511_v44 = vld [vmem:[%s3357_s11 + $0x330] sm:$0xf] }
  0x45   : > { %2508 = vst [vmem:[%s3362_s5 + $0x88] sm:$0xf] %v2507_v42  ;;  %2510 = vst [vmem:[%s3362_s5 + $0x9c] sm:$0xf] %v2509_v43  ;;  %v2513_v45 = vld [vmem:[%s3357_s11 + $0x394] sm:$0xf] }
  0x46   : > { %2512 = vst [vmem:[%s3362_s5 + $0xb0] sm:$0xf] %v2511_v44  ;;  %v2515_v46 = vld [vmem:[%s3357_s11 + $0x3f8] sm:$0xf]  ;;  %v2517_v47 = vld [vmem:[%s3357_s11 + $0x45c] sm:$0xf] }
  0x47   : > { %2514 = vst [vmem:[%s3362_s5 + $0xc4] sm:$0xf] %v2513_v45  ;;  %2516 = vst [vmem:[%s3362_s5 + $0xd8] sm:$0xf] %v2515_v46  ;;  %v2519_v48 = vld [vmem:[%s3357_s11 + $0x4c0] sm:$0xf] }
  0x48   : > { %2518 = vst [vmem:[%s3362_s5 + $0xec] sm:$0xf] %v2517_v47  ;;  %v2521_v49 = vld [vmem:[%s3357_s11 + $0x524] sm:$0xf]  ;;  %v2523_v50 = vld [vmem:[%s3357_s11 + $0x588] sm:$0xf] }
  0x49   : > { %2520 = vst [vmem:[%s3362_s5 + $0x100] sm:$0xf] %v2519_v48  ;;  %2522 = vst [vmem:[%s3362_s5 + $0x114] sm:$0xf] %v2521_v49  ;;  %v2525_v51 = vld [vmem:[%s3357_s11 + $0x5ec] sm:$0xf] }
  0x4a   : > { %2524 = vst [vmem:[%s3362_s5 + $0x128] sm:$0xf] %v2523_v50  ;;  %v2527_v52 = vld [vmem:[%s3357_s11 + $0x650] sm:$0xf]  ;;  %v2529_v53 = vld [vmem:[%s3357_s11 + $0x6b4] sm:$0xf] }
  0x4b   : > { %2526 = vst [vmem:[%s3362_s5 + $0x13c] sm:$0xf] %v2525_v51  ;;  %2528 = vst [vmem:[%s3362_s5 + $0x150] sm:$0xf] %v2527_v52 }
  0x4c   : > { %2530 = vst [vmem:[%s3362_s5 + $0x164] sm:$0xf] %v2529_v53 }
  0x4d PF: > { %304 = sbr.rel (!%p3322_p8) target bundleno = 125 (0x7d), region = 46  ;;  %s306_s25 = sand.u32 (%p3322_p8), 1, %s3172_s15  }
  0x4e   : > { %s2812_s26 = smul.u32 (%p3322_p8), 640, %s306_s25  ;;  %s2531_s27 = sshll.u32 (%p3322_p8), %s3200_s22, 1 }
  0x4f   : > { %s2686_s29 = smul.u32 (%p3322_p8), 320, %s3196_s21 }
  0x50   : > { %s3482_s8 = scalar_lea.vmem (%p3322_p8), [#allocation4], %s2812_s26 }
  0x51   : > { %s312_s30 = sadd.s32 (%p3322_p8), %s2686_s29, %s2531_s27 }
  0x52   : > { %s2533_s4 = sshll.u32 (%p3322_p8), %s312_s30, 2 }
  0x53   : > { %s3477_s11 = scalar_lea.vmem (%p3322_p8), %s4073_s1, %s2533_s4 }
  0x54   : > { %v500_v54 = vld [vmem:[%s3477_s11] sm:$0xff]  ;;  %v502_v55 = vld [vmem:[%s3477_s11 + $0x10] sm:$0xff] }
  0x55   : > { %v504_v56 = vld [vmem:[%s3477_s11 + $0x20] sm:$0xff]  ;;  %501 = vst [vmem:[%s3482_s8] sm:$0xff] %v500_v54  ;;  %503 = vst [vmem:[%s3482_s8 + $0x8] sm:$0xff] %v502_v55  ;;  %v506_v57 = vld [vmem:[%s3477_s11 + $0x30] sm:$0xff] }
  0x56   : > { %505 = vst [vmem:[%s3482_s8 + $0x10] sm:$0xff] %v504_v56  ;;  %v508_v58 = vld [vmem:[%s3477_s11 + $0x40] sm:$0xff]  ;;  %v510_v59 = vld [vmem:[%s3477_s11 + $0x50] sm:$0xff]  ;;  %507 = vst [vmem:[%s3482_s8 + $0x18] sm:$0xff] %v506_v57 }
  0x57   : > { %509 = vst [vmem:[%s3482_s8 + $0x20] sm:$0xff] %v508_v58  ;;  %511 = vst [vmem:[%s3482_s8 + $0x28] sm:$0xff] %v510_v59  ;;  %v512_v60 = vld [vmem:[%s3477_s11 + $0x60] sm:$0xff]  ;;  %v514_v61 = vld [vmem:[%s3477_s11 + $0x70] sm:$0xff] }
  0x58   : > { %v516_v62 = vld [vmem:[%s3477_s11 + $0x80] sm:$0xff]  ;;  %513 = vst [vmem:[%s3482_s8 + $0x30] sm:$0xff] %v512_v60  ;;  %515 = vst [vmem:[%s3482_s8 + $0x38] sm:$0xff] %v514_v61  ;;  %v518_v63 = vld [vmem:[%s3477_s11 + $0x90] sm:$0xff] }
  0x59   : > { %517 = vst [vmem:[%s3482_s8 + $0x40] sm:$0xff] %v516_v62  ;;  %v520_v0 = vld [vmem:[%s3477_s11 + $0xa0] sm:$0xff]  ;;  %v522_v1 = vld [vmem:[%s3477_s11 + $0xb0] sm:$0xff]  ;;  %519 = vst [vmem:[%s3482_s8 + $0x48] sm:$0xff] %v518_v63 }
  0x5a   : > { %521 = vst [vmem:[%s3482_s8 + $0x50] sm:$0xff] %v520_v0  ;;  %523 = vst [vmem:[%s3482_s8 + $0x58] sm:$0xff] %v522_v1  ;;  %v524_v2 = vld [vmem:[%s3477_s11 + $0xc0] sm:$0xff]  ;;  %v526_v3 = vld [vmem:[%s3477_s11 + $0xd0] sm:$0xff] }
  0x5b   : > { %v528_v4 = vld [vmem:[%s3477_s11 + $0xe0] sm:$0xff]  ;;  %525 = vst [vmem:[%s3482_s8 + $0x60] sm:$0xff] %v524_v2  ;;  %527 = vst [vmem:[%s3482_s8 + $0x68] sm:$0xff] %v526_v3  ;;  %v530_v5 = vld [vmem:[%s3477_s11 + $0xf0] sm:$0xff] }
  0x5c   : > { %529 = vst [vmem:[%s3482_s8 + $0x70] sm:$0xff] %v528_v4  ;;  %v532_v6 = vld [vmem:[%s3477_s11 + $0x100] sm:$0xff]  ;;  %v534_v7 = vld [vmem:[%s3477_s11 + $0x110] sm:$0xff]  ;;  %531 = vst [vmem:[%s3482_s8 + $0x78] sm:$0xff] %v530_v5 }
  0x5d   : > { %533 = vst [vmem:[%s3482_s8 + $0x80] sm:$0xff] %v532_v6  ;;  %535 = vst [vmem:[%s3482_s8 + $0x88] sm:$0xff] %v534_v7  ;;  %v536_v8 = vld [vmem:[%s3477_s11 + $0x120] sm:$0xff]  ;;  %v538_v9 = vld [vmem:[%s3477_s11 + $0x130] sm:$0xff] }
  0x5e   : > { %v540_v10 = vld [vmem:[%s3477_s11 + $0x140] sm:$0xff]  ;;  %537 = vst [vmem:[%s3482_s8 + $0x90] sm:$0xff] %v536_v8  ;;  %539 = vst [vmem:[%s3482_s8 + $0x98] sm:$0xff] %v538_v9  ;;  %v542_v11 = vld [vmem:[%s3477_s11 + $0x150] sm:$0xff] }
  0x5f   : > { %541 = vst [vmem:[%s3482_s8 + $0xa0] sm:$0xff] %v540_v10  ;;  %v544_v12 = vld [vmem:[%s3477_s11 + $0x160] sm:$0xff]  ;;  %v546_v13 = vld [vmem:[%s3477_s11 + $0x170] sm:$0xff]  ;;  %543 = vst [vmem:[%s3482_s8 + $0xa8] sm:$0xff] %v542_v11 }
  0x60   : > { %545 = vst [vmem:[%s3482_s8 + $0xb0] sm:$0xff] %v544_v12  ;;  %547 = vst [vmem:[%s3482_s8 + $0xb8] sm:$0xff] %v546_v13  ;;  %v548_v14 = vld [vmem:[%s3477_s11 + $0x180] sm:$0xff]  ;;  %v550_v15 = vld [vmem:[%s3477_s11 + $0x190] sm:$0xff] }
  0x61   : > { %v552_v16 = vld [vmem:[%s3477_s11 + $0x1a0] sm:$0xff]  ;;  %549 = vst [vmem:[%s3482_s8 + $0xc0] sm:$0xff] %v548_v14  ;;  %551 = vst [vmem:[%s3482_s8 + $0xc8] sm:$0xff] %v550_v15  ;;  %v554_v17 = vld [vmem:[%s3477_s11 + $0x1b0] sm:$0xff] }
  0x62   : > { %553 = vst [vmem:[%s3482_s8 + $0xd0] sm:$0xff] %v552_v16  ;;  %v556_v18 = vld [vmem:[%s3477_s11 + $0x1c0] sm:$0xff]  ;;  %v558_v19 = vld [vmem:[%s3477_s11 + $0x1d0] sm:$0xff]  ;;  %555 = vst [vmem:[%s3482_s8 + $0xd8] sm:$0xff] %v554_v17 }
  0x63   : > { %557 = vst [vmem:[%s3482_s8 + $0xe0] sm:$0xff] %v556_v18  ;;  %559 = vst [vmem:[%s3482_s8 + $0xe8] sm:$0xff] %v558_v19  ;;  %v560_v20 = vld [vmem:[%s3477_s11 + $0x1e0] sm:$0xff]  ;;  %v562_v21 = vld [vmem:[%s3477_s11 + $0x1f0] sm:$0xff] }
  0x64   : > { %v564_v22 = vld [vmem:[%s3477_s11 + $0x200] sm:$0xff]  ;;  %561 = vst [vmem:[%s3482_s8 + $0xf0] sm:$0xff] %v560_v20  ;;  %563 = vst [vmem:[%s3482_s8 + $0xf8] sm:$0xff] %v562_v21  ;;  %v566_v23 = vld [vmem:[%s3477_s11 + $0x210] sm:$0xff] }
  0x65   : > { %565 = vst [vmem:[%s3482_s8 + $0x100] sm:$0xff] %v564_v22  ;;  %v568_v24 = vld [vmem:[%s3477_s11 + $0x220] sm:$0xff]  ;;  %v570_v25 = vld [vmem:[%s3477_s11 + $0x230] sm:$0xff]  ;;  %567 = vst [vmem:[%s3482_s8 + $0x108] sm:$0xff] %v566_v23 }
  0x66   : > { %569 = vst [vmem:[%s3482_s8 + $0x110] sm:$0xff] %v568_v24  ;;  %571 = vst [vmem:[%s3482_s8 + $0x118] sm:$0xff] %v570_v25  ;;  %v572_v26 = vld [vmem:[%s3477_s11 + $0x240] sm:$0xff]  ;;  %v574_v27 = vld [vmem:[%s3477_s11 + $0x250] sm:$0xff] }
  0x67   : > { %v576_v28 = vld [vmem:[%s3477_s11 + $0x260] sm:$0xff]  ;;  %573 = vst [vmem:[%s3482_s8 + $0x120] sm:$0xff] %v572_v26  ;;  %575 = vst [vmem:[%s3482_s8 + $0x128] sm:$0xff] %v574_v27  ;;  %v578_v29 = vld [vmem:[%s3477_s11 + $0x270] sm:$0xff] }
  0x68   : > { %577 = vst [vmem:[%s3482_s8 + $0x130] sm:$0xff] %v576_v28  ;;  %v580_v30 = vld [vmem:[%s3477_s11 + $0x280] sm:$0xff]  ;;  %v582_v31 = vld [vmem:[%s3477_s11 + $0x290] sm:$0xff]  ;;  %579 = vst [vmem:[%s3482_s8 + $0x138] sm:$0xff] %v578_v29 }
  0x69   : > { %581 = vst [vmem:[%s3482_s8 + $0x140] sm:$0xff] %v580_v30  ;;  %583 = vst [vmem:[%s3482_s8 + $0x148] sm:$0xff] %v582_v31  ;;  %v584_v32 = vld [vmem:[%s3477_s11 + $0x2a0] sm:$0xff]  ;;  %v586_v33 = vld [vmem:[%s3477_s11 + $0x2b0] sm:$0xff] }
  0x6a   : > { %v588_v34 = vld [vmem:[%s3477_s11 + $0x2c0] sm:$0xff]  ;;  %585 = vst [vmem:[%s3482_s8 + $0x150] sm:$0xff] %v584_v32  ;;  %587 = vst [vmem:[%s3482_s8 + $0x158] sm:$0xff] %v586_v33  ;;  %v590_v35 = vld [vmem:[%s3477_s11 + $0x2d0] sm:$0xff] }
  0x6b   : > { %589 = vst [vmem:[%s3482_s8 + $0x160] sm:$0xff] %v588_v34  ;;  %v592_v36 = vld [vmem:[%s3477_s11 + $0x2e0] sm:$0xff]  ;;  %v594_v37 = vld [vmem:[%s3477_s11 + $0x2f0] sm:$0xff]  ;;  %591 = vst [vmem:[%s3482_s8 + $0x168] sm:$0xff] %v590_v35 }
  0x6c   : > { %593 = vst [vmem:[%s3482_s8 + $0x170] sm:$0xff] %v592_v36  ;;  %595 = vst [vmem:[%s3482_s8 + $0x178] sm:$0xff] %v594_v37  ;;  %v596_v38 = vld [vmem:[%s3477_s11 + $0x300] sm:$0xff]  ;;  %v598_v39 = vld [vmem:[%s3477_s11 + $0x310] sm:$0xff] }
  0x6d   : > { %v600_v40 = vld [vmem:[%s3477_s11 + $0x320] sm:$0xff]  ;;  %597 = vst [vmem:[%s3482_s8 + $0x180] sm:$0xff] %v596_v38  ;;  %599 = vst [vmem:[%s3482_s8 + $0x188] sm:$0xff] %v598_v39  ;;  %v602_v41 = vld [vmem:[%s3477_s11 + $0x330] sm:$0xff] }
  0x6e   : > { %601 = vst [vmem:[%s3482_s8 + $0x190] sm:$0xff] %v600_v40  ;;  %v604_v42 = vld [vmem:[%s3477_s11 + $0x340] sm:$0xff]  ;;  %v606_v43 = vld [vmem:[%s3477_s11 + $0x350] sm:$0xff]  ;;  %603 = vst [vmem:[%s3482_s8 + $0x198] sm:$0xff] %v602_v41 }
  0x6f   : > { %605 = vst [vmem:[%s3482_s8 + $0x1a0] sm:$0xff] %v604_v42  ;;  %607 = vst [vmem:[%s3482_s8 + $0x1a8] sm:$0xff] %v606_v43  ;;  %v608_v44 = vld [vmem:[%s3477_s11 + $0x360] sm:$0xff]  ;;  %v610_v45 = vld [vmem:[%s3477_s11 + $0x370] sm:$0xff] }
  0x70   : > { %v612_v46 = vld [vmem:[%s3477_s11 + $0x380] sm:$0xff]  ;;  %609 = vst [vmem:[%s3482_s8 + $0x1b0] sm:$0xff] %v608_v44  ;;  %611 = vst [vmem:[%s3482_s8 + $0x1b8] sm:$0xff] %v610_v45  ;;  %v614_v47 = vld [vmem:[%s3477_s11 + $0x390] sm:$0xff] }
  0x71   : > { %613 = vst [vmem:[%s3482_s8 + $0x1c0] sm:$0xff] %v612_v46  ;;  %v616_v48 = vld [vmem:[%s3477_s11 + $0x3a0] sm:$0xff]  ;;  %v618_v49 = vld [vmem:[%s3477_s11 + $0x3b0] sm:$0xff]  ;;  %615 = vst [vmem:[%s3482_s8 + $0x1c8] sm:$0xff] %v614_v47 }
  0x72   : > { %617 = vst [vmem:[%s3482_s8 + $0x1d0] sm:$0xff] %v616_v48  ;;  %619 = vst [vmem:[%s3482_s8 + $0x1d8] sm:$0xff] %v618_v49  ;;  %v620_v50 = vld [vmem:[%s3477_s11 + $0x3c0] sm:$0xff]  ;;  %v622_v51 = vld [vmem:[%s3477_s11 + $0x3d0] sm:$0xff] }
  0x73   : > { %v624_v52 = vld [vmem:[%s3477_s11 + $0x3e0] sm:$0xff]  ;;  %621 = vst [vmem:[%s3482_s8 + $0x1e0] sm:$0xff] %v620_v50  ;;  %623 = vst [vmem:[%s3482_s8 + $0x1e8] sm:$0xff] %v622_v51  ;;  %v626_v53 = vld [vmem:[%s3477_s11 + $0x3f0] sm:$0xff] }
  0x74   : > { %625 = vst [vmem:[%s3482_s8 + $0x1f0] sm:$0xff] %v624_v52  ;;  %v628_v54 = vld [vmem:[%s3477_s11 + $0x400] sm:$0xff]  ;;  %v630_v55 = vld [vmem:[%s3477_s11 + $0x410] sm:$0xff]  ;;  %627 = vst [vmem:[%s3482_s8 + $0x1f8] sm:$0xff] %v626_v53 }
  0x75   : > { %629 = vst [vmem:[%s3482_s8 + $0x200] sm:$0xff] %v628_v54  ;;  %631 = vst [vmem:[%s3482_s8 + $0x208] sm:$0xff] %v630_v55  ;;  %v632_v56 = vld [vmem:[%s3477_s11 + $0x420] sm:$0xff]  ;;  %v634_v57 = vld [vmem:[%s3477_s11 + $0x430] sm:$0xff] }
  0x76   : > { %v636_v58 = vld [vmem:[%s3477_s11 + $0x440] sm:$0xff]  ;;  %633 = vst [vmem:[%s3482_s8 + $0x210] sm:$0xff] %v632_v56  ;;  %635 = vst [vmem:[%s3482_s8 + $0x218] sm:$0xff] %v634_v57  ;;  %v638_v59 = vld [vmem:[%s3477_s11 + $0x450] sm:$0xff] }
  0x77   : > { %637 = vst [vmem:[%s3482_s8 + $0x220] sm:$0xff] %v636_v58  ;;  %v640_v60 = vld [vmem:[%s3477_s11 + $0x460] sm:$0xff]  ;;  %v642_v61 = vld [vmem:[%s3477_s11 + $0x470] sm:$0xff]  ;;  %639 = vst [vmem:[%s3482_s8 + $0x228] sm:$0xff] %v638_v59 }
  0x78   : > { %641 = vst [vmem:[%s3482_s8 + $0x230] sm:$0xff] %v640_v60  ;;  %643 = vst [vmem:[%s3482_s8 + $0x238] sm:$0xff] %v642_v61  ;;  %v644_v62 = vld [vmem:[%s3477_s11 + $0x480] sm:$0xff]  ;;  %v646_v63 = vld [vmem:[%s3477_s11 + $0x490] sm:$0xff] }
  0x79   : > { %v648_v0 = vld [vmem:[%s3477_s11 + $0x4a0] sm:$0xff]  ;;  %645 = vst [vmem:[%s3482_s8 + $0x240] sm:$0xff] %v644_v62  ;;  %647 = vst [vmem:[%s3482_s8 + $0x248] sm:$0xff] %v646_v63  ;;  %v650_v1 = vld [vmem:[%s3477_s11 + $0x4b0] sm:$0xff] }
  0x7a   : > { %649 = vst [vmem:[%s3482_s8 + $0x250] sm:$0xff] %v648_v0  ;;  %v652_v2 = vld [vmem:[%s3477_s11 + $0x4c0] sm:$0xff]  ;;  %v654_v3 = vld [vmem:[%s3477_s11 + $0x4d0] sm:$0xff]  ;;  %651 = vst [vmem:[%s3482_s8 + $0x258] sm:$0xff] %v650_v1 }
  0x7b   : > { %653 = vst [vmem:[%s3482_s8 + $0x260] sm:$0xff] %v652_v2  ;;  %655 = vst [vmem:[%s3482_s8 + $0x268] sm:$0xff] %v654_v3  ;;  %v656_v4 = vld [vmem:[%s3477_s11 + $0x4e0] sm:$0xff]  ;;  %v658_v5 = vld [vmem:[%s3477_s11 + $0x4f0] sm:$0xff] }
  0x7c   : > { %657 = vst [vmem:[%s3482_s8 + $0x270] sm:$0xff] %v656_v4  ;;  %659 = vst [vmem:[%s3482_s8 + $0x278] sm:$0xff] %v658_v5 }
  0x7d PF: > { %p2534_p1 = scmp.ge.s32.totalorder %s3208_s24, 1  ;;  %p672_p2 = scmp.lt.s32.totalorder %s3208_s24, 21 }
  0x7f   : > { %p673_p3 = pnand %p2534_p1, %p672_p2 }
  0x80   : > { %s679_s5 = sand.u32 (!%p673_p3), 1, %s3176_s16   ;;  %s686_s25 = sand.u32 (!%p673_p3), 1, %s3168_s14  }
  0x81   : > { %676 = sbr.rel (%p673_p3) target bundleno = 582 (0x246), region = 88  ;;  %s713_s27 = sand.u32 (!%p673_p3), 1, %s3160_s12  }
  0x82   : > { %s2813_s26 = smul.u32 (!%p673_p3), 360, %s679_s5  ;;  %s3647_s30 = sshll.u32 (!%p673_p3), %s3188_s19, 1 }
  0x83   : > { %s2814_s29 = smul.u32 (!%p673_p3), 640, %s686_s25  ;;  %p721_p4 = scmp.lt.s32.totalorder (!%p673_p3), %s3647_s30, 3 }
  0x84   : > { %s2815_s4 = smul.u32 (!%p673_p3), 144, %s713_s27  ;;  %s3657_s0 = scalar_lea.vmem (!%p673_p3), [#allocation3], %s2813_s26 }
  0x85   : > { %s3659_s16 = scalar_lea.vmem (!%p673_p3), [#allocation4], %s2814_s29  ;;  %p2536_p5 = scmp.ne.s32.totalorder (!%p673_p3), %s3184_s18, 0 }
  0x86   : > { %s3661_s14 = scalar_lea.vmem (!%p673_p3), [#allocation5], %s2815_s4 }
  0x88   : > { %s3651_s6 = scalar_select %p721_p4, %s3647_s30, 3 }
  0x89   : > { %731 = sbr.rel (%p2536_p5) target bundleno = 156 (0x9c), region = 100  ;;  %v3210_v6 = vmov (!%p2536_p5), 0.0  }
  0x8a   : > { %s723_s8 = scalar_lea.vmem %s4074_s2, %s3651_s6  ;;  %732 = vst [vmem:[#allocation2] sm:$0xff] (!%p2536_p5), %v3210_v6  ;;  %733 = vst [vmem:[#allocation2 + $0x8] sm:$0xff] (!%p2536_p5), %v3210_v6 }
  0x8b   : > { %734 = vst [vmem:[#allocation2 + $0x10] sm:$0xff] (!%p2536_p5), %v3210_v6  ;;  %735 = vst [vmem:[#allocation2 + $0x18] sm:$0xff] (!%p2536_p5), %v3210_v6 }
  0x8c   : > { %736 = vst [vmem:[#allocation2 + $0x20] sm:$0xff] (!%p2536_p5), %v3210_v6  ;;  %737 = vst [vmem:[#allocation2 + $0x28] sm:$0xff] (!%p2536_p5), %v3210_v6 }
  0x8d   : > { %738 = vst [vmem:[#allocation2 + $0x30] sm:$0xff] (!%p2536_p5), %v3210_v6  ;;  %739 = vst [vmem:[#allocation2 + $0x38] sm:$0xff] (!%p2536_p5), %v3210_v6 }
  0x8e   : > { %740 = vst [vmem:[#allocation2 + $0x40] sm:$0xff] (!%p2536_p5), %v3210_v6  ;;  %741 = vst [vmem:[#allocation2 + $0x48] sm:$0xff] (!%p2536_p5), %v3210_v6 }
  0x8f   : > { %742 = vst [vmem:[#allocation2 + $0x50] sm:$0xff] (!%p2536_p5), %v3210_v6  ;;  %743 = vst [vmem:[#allocation2 + $0x58] sm:$0xff] (!%p2536_p5), %v3210_v6 }
  0x90   : > { %744 = vst [vmem:[#allocation2 + $0x60] sm:$0xff] %v3210_v6  ;;  %745 = vst [vmem:[#allocation2 + $0x68] sm:$0xff] %v3210_v6 }
  0x91   : > { %746 = vst [vmem:[#allocation2 + $0x70] sm:$0xff] %v3210_v6  ;;  %747 = vst [vmem:[#allocation2 + $0x78] sm:$0xff] %v3210_v6 }
  0x92   : > { %748 = vst [vmem:[#allocation2 + $0x80] sm:$0xff] %v3210_v6  ;;  %749 = vst [vmem:[#allocation2 + $0x88] sm:$0xff] %v3210_v6 }
  0x93   : > { %750 = vst [vmem:[#allocation2 + $0x90] sm:$0xff] %v3210_v6  ;;  %751 = vst [vmem:[#allocation2 + $0x98] sm:$0xff] %v3210_v6 }
  0x94   : > { %752 = vst [vmem:[#allocation2 + $0xa0] sm:$0xff] %v3210_v6  ;;  %753 = vst [vmem:[#allocation2 + $0xa8] sm:$0xff] %v3210_v6 }
  0x95   : > { %754 = vst [vmem:[#allocation2 + $0xb0] sm:$0xff] %v3210_v6  ;;  %755 = vst [vmem:[#allocation2 + $0xb8] sm:$0xff] %v3210_v6 }
  0x96   : > { %756 = vst [vmem:[#allocation2 + $0xc0] sm:$0xff] %v3210_v6  ;;  %757 = vst [vmem:[#allocation2 + $0xc8] sm:$0xff] %v3210_v6 }
  0x97   : > { %758 = vst [vmem:[#allocation2 + $0xd0] sm:$0xff] %v3210_v6  ;;  %759 = vst [vmem:[#allocation2 + $0xd8] sm:$0xff] %v3210_v6 }
  0x98   : > { %760 = vst [vmem:[#allocation2 + $0xe0] sm:$0xff] %v3210_v6  ;;  %761 = vst [vmem:[#allocation2 + $0xe8] sm:$0xff] %v3210_v6 }
  0x99   : > { %762 = vst [vmem:[#allocation2 + $0xf0] sm:$0xff] %v3210_v6  ;;  %763 = vst [vmem:[#allocation2 + $0xf8] sm:$0xff] %v3210_v6 }
  0x9a   : > { %764 = vst [vmem:[#allocation2 + $0x100] sm:$0xff] %v3210_v6  ;;  %765 = vst [vmem:[#allocation2 + $0x108] sm:$0xff] %v3210_v6 }
  0x9b   : > { %766 = vst [vmem:[#allocation2 + $0x110] sm:$0xff] %v3210_v6  ;;  %767 = vst [vmem:[#allocation2 + $0x118] sm:$0xff] %v3210_v6 }
  0x9c PF: > { %v2923_v7 = vld [vmem:[%s3659_s16 + $0x4] ss:$8 sps:$4 sm:$0xff]   ;;  %v2927_v9 = vld [vmem:[%s3659_s16] ss:$8 sps:$4 sm:$0xff]   ;;  %v2929_v11 = vld [vmem:[%s3659_s16 + $0x14] ss:$8 sps:$4 sm:$0xff]  }
  0x9d   : > { %v3666_v8 = vld [vmem:[%s3659_s16 + $0x104] ss:$8 sps:$4 sm:$0xff]   ;;  %1572 = vmatprep.subr.bf16.mxu1 %v2923_v7  ;;  %v3670_v10 = vld [vmem:[%s3659_s16 + $0x100] ss:$8 sps:$4 sm:$0xff]   ;;  %v3676_v12 = vld [vmem:[%s3659_s16 + $0x114] ss:$8 sps:$4 sm:$0xff]  }
  0x9e   : > { %1695 = vmatprep.subr.bf16.mxu0 %v3666_v8  ;;  %1573 = vmatpush1.bf16.msra.mxu1 %v2927_v9  ;;  %v2933_v13 = vld [vmem:[%s3659_s16 + $0x10] ss:$8 sps:$4 sm:$0xff]   ;;  %v2935_v15 = vld [vmem:[%s3659_s16 + $0x24] ss:$8 sps:$4 sm:$0xff]   ;;  %v2939_v17 = vld [vmem:[%s3659_s16 + $0x20] ss:$8 sps:$4 sm:$0xff]  }
  0x9f   : > { %1696 = vmatpush1.bf16.msra.mxu0 %v3670_v10  ;;  %1574 = vmatprep.subr.bf16.mxu1 %v2929_v11  ;;  %v3680_v14 = vld [vmem:[%s3659_s16 + $0x110] ss:$8 sps:$4 sm:$0xff]   ;;  %v3685_v16 = vld [vmem:[%s3659_s16 + $0x124] ss:$8 sps:$4 sm:$0xff]   ;;  %v3689_v18 = vld [vmem:[%s3659_s16 + $0x120] ss:$8 sps:$4 sm:$0xff]  }
  0xa0   : > { %1697 = vmatprep.subr.bf16.mxu0 %v3676_v12  ;;  %v2941_v19 = vld [vmem:[%s3659_s16 + $0x34] ss:$8 sps:$4 sm:$0xff]   ;;  %v2945_v21 = vld [vmem:[%s3659_s16 + $0x30] ss:$8 sps:$4 sm:$0xff]   ;;  %v2947_v23 = vld [vmem:[%s3659_s16 + $0x44] ss:$8 sps:$4 sm:$0xff]  }
  0xa1   : > { %v3695_v20 = vld [vmem:[%s3659_s16 + $0x134] ss:$8 sps:$4 sm:$0xff]   ;;  %v3700_v22 = vld [vmem:[%s3659_s16 + $0x130] ss:$8 sps:$4 sm:$0xff]   ;;  %v3705_v24 = vld [vmem:[%s3659_s16 + $0x144] ss:$8 sps:$4 sm:$0xff]  }
  0xa2   : > { %1575 = vmatpush1.bf16.msra.mxu1 %v2933_v13  ;;  %v2951_v25 = vld [vmem:[%s3659_s16 + $0x40] ss:$8 sps:$4 sm:$0xff]   ;;  %v2953_v27 = vld [vmem:[%s3659_s16 + $0x54] ss:$8 sps:$4 sm:$0xff]   ;;  %v2957_v29 = vld [vmem:[%s3659_s16 + $0x50] ss:$8 sps:$4 sm:$0xff]  }
  0xa3   : > { %1698 = vmatpush1.bf16.msra.mxu0 %v3680_v14  ;;  %1576 = vmatprep.subr.bf16.mxu1 %v2935_v15  ;;  %v3709_v26 = vld [vmem:[%s3659_s16 + $0x140] ss:$8 sps:$4 sm:$0xff]   ;;  %v3715_v28 = vld [vmem:[%s3659_s16 + $0x154] ss:$8 sps:$4 sm:$0xff]   ;;  %v3720_v30 = vld [vmem:[%s3659_s16 + $0x150] ss:$8 sps:$4 sm:$0xff]  }
  0xa4   : > { %1699 = vmatprep.subr.bf16.mxu0 %v3685_v16  ;;  %v2959_v31 = vld [vmem:[%s3659_s16 + $0x64] ss:$8 sps:$4 sm:$0xff]   ;;  %v2963_v33 = vld [vmem:[%s3659_s16 + $0x60] ss:$8 sps:$4 sm:$0xff]   ;;  %v2965_v35 = vld [vmem:[%s3659_s16 + $0x74] ss:$8 sps:$4 sm:$0xff]  }
  0xa5   : > { %v3725_v32 = vld [vmem:[%s3659_s16 + $0x164] ss:$8 sps:$4 sm:$0xff]   ;;  %v3729_v34 = vld [vmem:[%s3659_s16 + $0x160] ss:$8 sps:$4 sm:$0xff]   ;;  %v3735_v36 = vld [vmem:[%s3659_s16 + $0x174] ss:$8 sps:$4 sm:$0xff]  }
  0xa6   : > { %1577 = vmatpush1.bf16.msra.mxu1 %v2939_v17  ;;  %v2969_v37 = vld [vmem:[%s3659_s16 + $0x70] ss:$8 sps:$4 sm:$0xff]   ;;  %v2971_v39 = vld [vmem:[%s3659_s16 + $0x84] ss:$8 sps:$4 sm:$0xff]   ;;  %v2975_v41 = vld [vmem:[%s3659_s16 + $0x80] ss:$8 sps:$4 sm:$0xff]  }
  0xa7   : > { %1700 = vmatpush1.bf16.msra.mxu0 %v3689_v18  ;;  %1578 = vmatprep.subr.bf16.mxu1 %v2941_v19  ;;  %v3740_v38 = vld [vmem:[%s3659_s16 + $0x170] ss:$8 sps:$4 sm:$0xff]   ;;  %v3745_v40 = vld [vmem:[%s3659_s16 + $0x184] ss:$8 sps:$4 sm:$0xff]   ;;  %v3749_v42 = vld [vmem:[%s3659_s16 + $0x180] ss:$8 sps:$4 sm:$0xff]  }
  0xa8   : > { %1701 = vmatprep.subr.bf16.mxu0 %v3695_v20  ;;  %v2977_v43 = vld [vmem:[%s3659_s16 + $0x94] ss:$8 sps:$4 sm:$0xff]   ;;  %v2981_v45 = vld [vmem:[%s3659_s16 + $0x90] ss:$8 sps:$4 sm:$0xff]   ;;  %v2983_v47 = vld [vmem:[%s3659_s16 + $0xa4] ss:$8 sps:$4 sm:$0xff]  }
  0xa9   : > { %v3755_v44 = vld [vmem:[%s3659_s16 + $0x194] ss:$8 sps:$4 sm:$0xff]   ;;  %v3760_v46 = vld [vmem:[%s3659_s16 + $0x190] ss:$8 sps:$4 sm:$0xff]   ;;  %v3765_v48 = vld [vmem:[%s3659_s16 + $0x1a4] ss:$8 sps:$4 sm:$0xff]  }
  0xaa   : > { %1579 = vmatpush1.bf16.msra.mxu1 %v2945_v21  ;;  %v2987_v49 = vld [vmem:[%s3659_s16 + $0xa0] ss:$8 sps:$4 sm:$0xff]   ;;  %v2989_v51 = vld [vmem:[%s3659_s16 + $0xb4] ss:$8 sps:$4 sm:$0xff]   ;;  %v2993_v53 = vld [vmem:[%s3659_s16 + $0xb0] ss:$8 sps:$4 sm:$0xff]  }
  0xab   : > { %1702 = vmatpush1.bf16.msra.mxu0 %v3700_v22  ;;  %1580 = vmatprep.subr.bf16.mxu1 %v2947_v23  ;;  %v3769_v50 = vld [vmem:[%s3659_s16 + $0x1a0] ss:$8 sps:$4 sm:$0xff]   ;;  %v3775_v52 = vld [vmem:[%s3659_s16 + $0x1b4] ss:$8 sps:$4 sm:$0xff]   ;;  %v3779_v54 = vld [vmem:[%s3659_s16 + $0x1b0] ss:$8 sps:$4 sm:$0xff]  }
  0xac   : > { %1703 = vmatprep.subr.bf16.mxu0 %v3705_v24  ;;  %v2995_v55 = vld [vmem:[%s3659_s16 + $0xc4] ss:$8 sps:$4 sm:$0xff]   ;;  %v3021_v56 = vld [vmem:[%s3657_s0 + $0x4] ss:$20 sps:$4 sm:$0xff]   ;;  %p2662_p6 = scmp.ne.s32.totalorder %s3184_s18, 4 }
  0xad   : > { %v3785_v57 = vld [vmem:[%s3659_s16 + $0x1c4] ss:$8 sps:$4 sm:$0xff]   ;;  %1604 = vmatprep.mubr.bf16.mxu1 %v3021_v56  ;;  %v2999_v59 = vld [vmem:[%s3659_s16 + $0xc0] ss:$8 sps:$4 sm:$0xff]   ;;  %v3001_v61 = vld [vmem:[%s3659_s16 + $0xd4] ss:$8 sps:$4 sm:$0xff]  }
  0xae   : > { %1581 = vmatpush1.bf16.msra.mxu1 %v2951_v25  ;;  %v3024_v58 = vld [vmem:[%s3657_s0 + $0xc] ss:$20 sps:$4 sm:$0xff]   ;;  %v3791_v60 = vld [vmem:[%s3659_s16 + $0x1c0] ss:$8 sps:$4 sm:$0xff]  }
  0xaf   : > { %1704 = vmatpush1.bf16.msra.mxu0 %v3709_v26  ;;  %1582 = vmatprep.subr.bf16.mxu1 %v2953_v27  ;;  %v3797_v62 = vld [vmem:[%s3659_s16 + $0x1d4] ss:$8 sps:$4 sm:$0xff]   ;;  %v3005_v63 = vld [vmem:[%s3659_s16 + $0xd0] ss:$8 sps:$4 sm:$0xff]   ;;  %v3007_v1 = vld [vmem:[%s3659_s16 + $0xe4] ss:$8 sps:$4 sm:$0xff]  }
  0xb0   : > { %1705 = vmatprep.subr.bf16.mxu0 %v3715_v28  ;;  %1727 = vmatprep.mubr.bf16.mxu0 %v3024_v58  ;;  %v3801_v0 = vld [vmem:[%s3659_s16 + $0x1d0] ss:$8 sps:$4 sm:$0xff]   ;;  %v3807_v2 = vld [vmem:[%s3659_s16 + $0x1e4] ss:$8 sps:$4 sm:$0xff]   ;;  %v3011_v3 = vld [vmem:[%s3659_s16 + $0xe0] ss:$8 sps:$4 sm:$0xff]  }
  0xb1   : > { %v3811_v4 = vld [vmem:[%s3659_s16 + $0x1e0] ss:$8 sps:$4 sm:$0xff]   ;;  %v3013_v5 = vld [vmem:[%s3659_s16 + $0xf4] ss:$8 sps:$4 sm:$0xff]   ;;  %v3017_v7 = vld [vmem:[%s3659_s16 + $0xf0] ss:$8 sps:$4 sm:$0xff]  }
  0xb2   : > { %1583 = vmatpush1.bf16.msra.mxu1 %v2957_v29  ;;  %v3817_v6 = vld [vmem:[%s3659_s16 + $0x1f4] ss:$8 sps:$4 sm:$0xff]   ;;  %v3822_v9 = vld [vmem:[%s3659_s16 + $0x1f0] ss:$8 sps:$4 sm:$0xff]   ;;  %v3027_v11 = vld [vmem:[%s3659_s16 + $0x204] ss:$8 sps:$4 sm:$0xff]  }
  0xb3   : > { %1706 = vmatpush1.bf16.msra.mxu0 %v3720_v30  ;;  %1584 = vmatprep.subr.bf16.mxu1 %v2959_v31  ;;  %v3019_v13 = vld [vmem:[%s3657_s0] ss:$20 sps:$4 sm:$0xff]   ;;  %v3022_v15 = vld [vmem:[%s3657_s0 + $0x8] ss:$20 sps:$4 sm:$0xff]   ;;  %v3036_v29 = vld [vmem:[%s3657_s0 + $0x30] ss:$20 sps:$4 sm:$0xff]  }
  0xb4   : > { %1707 = vmatprep.subr.bf16.mxu0 %v3725_v32  ;;  %v3025_v17 = vld [vmem:[%s3659_s16 + $0x200] ss:$8 sps:$4 sm:$0xff]   ;;  %v3030_v19 = vld [vmem:[%s3659_s16 + $0x214] ss:$8 sps:$4 sm:$0xff]   ;;  %v3028_v25 = vld [vmem:[%s3659_s16 + $0x210] ss:$8 sps:$4 sm:$0xff]  }
  0xb5   : > { %v3031_v21 = vld [vmem:[%s3657_s0 + $0x2c] ss:$20 sps:$4 sm:$0xff]   ;;  %v3033_v23 = vld [vmem:[%s3657_s0 + $0x34] ss:$20 sps:$4 sm:$0xff]  }
  0xb6   : > { %1585 = vmatpush1.bf16.msra.mxu1 %v2963_v33  ;;  %v3039_v27 = vld [vmem:[%s3659_s16 + $0x224] ss:$8 sps:$4 sm:$0xff]   ;;  %v3037_v31 = vld [vmem:[%s3659_s16 + $0x220] ss:$8 sps:$4 sm:$0xff]  }
  0xb7   : > { %1708 = vmatpush1.bf16.msra.mxu0 %v3729_v34  ;;  %1586 = vmatprep.subr.bf16.mxu1 %v2965_v35  ;;  %v3043_v33 = vld [vmem:[%s3657_s0 + $0x54] ss:$20 sps:$4 sm:$0xff]  }
  0xb8   : > { %1709 = vmatprep.subr.bf16.mxu0 %v3735_v36  ;;  %v3040_v35 = vld [vmem:[%s3659_s16 + $0x230] ss:$8 sps:$4 sm:$0xff]  }
  0xb9   : > { %v3087_v56 = vld [vmem:[%s3657_s0 + $0xa8] ss:$20 sps:$4 sm:$0xff]  }
  0xba   : > { %1587 = vmatpush1.bf16.msra.mxu1 %v2969_v37  ;;  %v3048_v37 = vld [vmem:[%s3657_s0 + $0x58] ss:$20 sps:$4 sm:$0xff]   ;;  %v3091_v58 = vld [vmem:[%s3657_s0 + $0xd4] ss:$20 sps:$4 sm:$0xff]  }
  0xbb   : > { %1710 = vmatpush1.bf16.msra.mxu0 %v3740_v38  ;;  %1588 = vmatprep.subr.bf16.mxu1 %v2971_v39  ;;  %v3049_v39 = vld [vmem:[%s3659_s16 + $0x240] ss:$8 sps:$4 sm:$0xff]  }
  0xbc   : > { %1711 = vmatprep.subr.bf16.mxu0 %v3745_v40 }
  0xbe   : > { %1589 = vmatpush1.bf16.msra.mxu1 %v2975_v41  ;;  %v3055_v41 = vld [vmem:[%s3657_s0 + $0x7c] ss:$20 sps:$4 sm:$0xff]  }
  0xbf   : > { %1712 = vmatpush1.bf16.msra.mxu0 %v3749_v42  ;;  %1590 = vmatprep.subr.bf16.mxu1 %v2977_v43  ;;  %v3052_v43 = vld [vmem:[%s3659_s16 + $0x250] ss:$8 sps:$4 sm:$0xff]  }
  0xc0   : > { %1713 = vmatprep.subr.bf16.mxu0 %v3755_v44 }
  0xc2   : > { %1591 = vmatpush1.bf16.msra.mxu1 %v2981_v45  ;;  %v3060_v45 = vld [vmem:[%s3657_s0 + $0x80] ss:$20 sps:$4 sm:$0xff]  }
  0xc3   : > { %1714 = vmatpush1.bf16.msra.mxu0 %v3760_v46  ;;  %1592 = vmatprep.subr.bf16.mxu1 %v2983_v47  ;;  %v3061_v47 = vld [vmem:[%s3659_s16 + $0x260] ss:$8 sps:$4 sm:$0xff]  }
  0xc4   : > { %1715 = vmatprep.subr.bf16.mxu0 %v3765_v48 }
  0xc6   : > { %1593 = vmatpush1.bf16.msra.mxu1 %v2987_v49  ;;  %v3067_v49 = vld [vmem:[%s3657_s0 + $0xa4] ss:$20 sps:$4 sm:$0xff]  }
  0xc7   : > { %1716 = vmatpush1.bf16.msra.mxu0 %v3769_v50  ;;  %1594 = vmatprep.subr.bf16.mxu1 %v2989_v51  ;;  %v3211_v51 = vmov 0  }
  0xc8   : > { %1717 = vmatprep.subr.bf16.mxu0 %v3775_v52 }
  0xca   : > { %1595 = vmatpush1.bf16.msra.mxu1 %v2993_v53  ;;  %v3071_v53 = vld [vmem:[%s3657_s0 + $0xcc] ss:$20 sps:$4 sm:$0xff]  }
  0xcb   : > { %1718 = vmatpush1.bf16.msra.mxu0 %v3779_v54  ;;  %1596 = vmatprep.subr.bf16.mxu1 %v2995_v55  ;;  %v3089_v55 = vld [vmem:[%s3657_s0 + $0xac] ss:$20 sps:$4 sm:$0xff]  }
  0xcc   : > { %1719 = vmatprep.subr.bf16.mxu0 %v3785_v57 }
  0xce   : > { %1597 = vmatpush1.bf16.msra.mxu1 %v2999_v59  ;;  %v3093_v59 = vld [vmem:[%s3657_s0 + $0xd0] ss:$20 sps:$4 sm:$0xff]  }
  0xcf   : > { %1720 = vmatpush1.bf16.msra.mxu0 %v3791_v60  ;;  %1598 = vmatprep.subr.bf16.mxu1 %v3001_v61  ;;  %v3095_v61 = vld [vmem:[%s3657_s0 + $0xfc] ss:$20 sps:$4 sm:$0xff]  }
  0xd0   : > { %1721 = vmatprep.subr.bf16.mxu0 %v3797_v62 }
  0xd2   : > { %1599 = vmatpush1.bf16.msra.mxu1 %v3005_v63  ;;  %v3098_v63 = vld [vmem:[%s3657_s0 + $0x128] ss:$20 sps:$4 sm:$0xff]  }
  0xd3   : > { %1722 = vmatpush1.bf16.msra.mxu0 %v3801_v0  ;;  %1600 = vmatprep.subr.bf16.mxu1 %v3007_v1  ;;  %v3101_v1 = vld [vmem:[%s3657_s0 + $0x120] ss:$20 sps:$4 sm:$0xff]  }
  0xd4   : > { %1723 = vmatprep.subr.bf16.mxu0 %v3807_v2 }
  0xd6   : > { %1601 = vmatpush1.bf16.msra.mxu1 %v3011_v3  ;;  %v3103_v3 = vld [vmem:[%s3657_s0 + $0x14c] ss:$20 sps:$4 sm:$0xff]  }
  0xd7   : > { %1724 = vmatpush1.bf16.msra.mxu0 %v3811_v4  ;;  %1602 = vmatprep.subr.bf16.mxu1 %v3013_v5 }
  0xd8   : > { %1725 = vmatprep.subr.bf16.mxu0 %v3817_v6 }
  0xda   : > { %1603 = vmatpush1.bf16.msra.mxu1 %v3017_v7 }
  0xdb   : > { %1726 = vmatpush1.bf16.msra.mxu0 %v3822_v9  ;;  %2706 = vmatprep.subr.bf16.mxu1 %v3666_v8  ;;  %v3035_v8 = vld [vmem:[%s3657_s0 + $0x28] ss:$20 sps:$4 sm:$0xff]  }
  0xdc   : > { %1818 = vmatprep.subr.bf16.mxu0 %v3027_v11 }
  0xdd   : > { %1605 = vmatmul.mubr.bf16.vlgmr.msra.gmra.mrb[0].mxu1 %v3019_v13 }
  0xde   : > { %1728 = vmatmul.mubr.bf16.vlgmr.msra.gmra.mrb[0].mxu0 %v3022_v15  ;;  %2722 = vmatpush1.bf16.msra.mxu1 %v3670_v10  ;;  %v3042_v10 = vld [vmem:[%s3659_s16 + $0x234] ss:$8 sps:$4 sm:$0xff]  }
  0xdf   : > { %1819 = vmatpush1.bf16.msra.mxu0 %v3025_v17  ;;  %2707 = vmatprep.subr.bf16.mxu1 %v3676_v12  ;;  %v3045_v12 = vld [vmem:[%s3657_s0 + $0x5c] ss:$20 sps:$4 sm:$0xff]  }
  0xe0   : > { %1820 = vmatprep.subr.bf16.mxu0 %v3030_v19  ;;  %1614 = vmatprep.mubr.bf16.mxu1 %v3031_v21 }
  0xe1   : > { %1737 = vmatprep.mubr.bf16.mxu0 %v3033_v23 }
  0xe2   : > { %2723 = vmatpush1.bf16.msra.mxu1 %v3680_v14  ;;  %v3051_v14 = vld [vmem:[%s3659_s16 + $0x244] ss:$8 sps:$4 sm:$0xff]  }
  0xe3   : > { %1821 = vmatpush1.bf16.msra.mxu0 %v3028_v25  ;;  %2708 = vmatprep.subr.bf16.mxu1 %v3685_v16  ;;  %v3047_v16 = vld [vmem:[%s3657_s0 + $0x50] ss:$20 sps:$4 sm:$0xff]  }
  0xe4   : > { %1822 = vmatprep.subr.bf16.mxu0 %v3039_v27 }
  0xe5   : > { %1615 = vmatmul.mubr.bf16.gmra.mrb[4].mxu1 %v3035_v8 }
  0xe6   : > { %1738 = vmatmul.mubr.bf16.gmra.mrb[4].mxu0 %v3036_v29  ;;  %2724 = vmatpush1.bf16.msra.mxu1 %v3689_v18  ;;  %v3054_v18 = vld [vmem:[%s3659_s16 + $0x254] ss:$8 sps:$4 sm:$0xff]  }
  0xe7   : > { %1823 = vmatpush1.bf16.msra.mxu0 %v3037_v31  ;;  %2709 = vmatprep.subr.bf16.mxu1 %v3695_v20  ;;  %v3057_v20 = vld [vmem:[%s3657_s0 + $0x84] ss:$20 sps:$4 sm:$0xff]  }
  0xe8   : > { %1824 = vmatprep.subr.bf16.mxu0 %v3042_v10  ;;  %1624 = vmatprep.mubr.bf16.mxu1 %v3043_v33  ;;  %v768_v10 = vld [vmem:[#allocation2] sm:$0xff] }
  0xe9   : > { %1747 = vmatprep.mubr.bf16.mxu0 %v3045_v12 }
  0xea   : > { %2725 = vmatpush1.bf16.msra.mxu1 %v3700_v22  ;;  %v3063_v22 = vld [vmem:[%s3659_s16 + $0x264] ss:$8 sps:$4 sm:$0xff]  }
  0xeb   : > { %1825 = vmatpush1.bf16.msra.mxu0 %v3040_v35  ;;  %2710 = vmatprep.subr.bf16.mxu1 %v3705_v24  ;;  %v3059_v24 = vld [vmem:[%s3657_s0 + $0x78] ss:$20 sps:$4 sm:$0xff]  }
  0xec   : > { %1826 = vmatprep.subr.bf16.mxu0 %v3051_v14  ;;  %v769_v35 = vld [vmem:[#allocation2 + $0x8] sm:$0xff] }
  0xed   : > { %1625 = vmatmul.mubr.bf16.gmra.mrb[8].mxu1 %v3047_v16 }
  0xee   : > { %1748 = vmatmul.mubr.bf16.gmra.mrb[8].mxu0 %v3048_v37  ;;  %2726 = vmatpush1.bf16.msra.mxu1 %v3709_v26  ;;  %v3066_v26 = vld [vmem:[%s3659_s16 + $0x274] ss:$8 sps:$4 sm:$0xff]   ;;  %v770_v37 = vld [vmem:[#allocation2 + $0x10] sm:$0xff] }
  0xef   : > { %1827 = vmatpush1.bf16.msra.mxu0 %v3049_v39  ;;  %1634 = vmatprep.mubr.bf16.mxu1 %v3055_v41 }
  0xf0   : > { %1828 = vmatprep.subr.bf16.mxu0 %v3054_v18  ;;  %2711 = vmatprep.subr.bf16.mxu1 %v3715_v28  ;;  %v3064_v28 = vld [vmem:[%s3659_s16 + $0x270] ss:$8 sps:$4 sm:$0xff]  }
  0xf1   : > { %1757 = vmatprep.mubr.bf16.mxu0 %v3057_v20  ;;  %v771_v20 = vld [vmem:[#allocation2 + $0x18] sm:$0xff] }
  0xf2   : > { %2727 = vmatpush1.bf16.msra.mxu1 %v3720_v30  ;;  %v3069_v30 = vld [vmem:[%s3657_s0 + $0xa0] ss:$20 sps:$4 sm:$0xff]  }
  0xf3   : > { %1829 = vmatpush1.bf16.msra.mxu0 %v3052_v43  ;;  %2712 = vmatprep.subr.bf16.mxu1 %v3725_v32  ;;  %v3070_v32 = vld [vmem:[%s3657_s0 + $0x10] ss:$20 sps:$4 sm:$0xff]  }
  0xf4   : > { %1830 = vmatprep.subr.bf16.mxu0 %v3063_v22 }
  0xf5   : > { %1635 = vmatmul.mubr.bf16.gmra.mrb[12].mxu1 %v3059_v24 }
  0xf6   : > { %1758 = vmatmul.mubr.bf16.gmra.mrb[12].mxu0 %v3060_v45  ;;  %2728 = vmatpush1.bf16.msra.mxu1 %v3729_v34  ;;  %v3073_v34 = vld [vmem:[%s3657_s0 + $0xc8] ss:$20 sps:$4 sm:$0xff]  }
  0xf7   : > { %1831 = vmatpush1.bf16.msra.mxu0 %v3061_v47  ;;  %1644 = vmatprep.mubr.bf16.mxu1 %v3067_v49 }
  0xf8   : > { %1832 = vmatprep.subr.bf16.mxu0 %v3066_v26  ;;  %1850 = vmatprep.mubr.bf16.mxu0 %v3211_v51  ;;  %v772_v26 = vld [vmem:[#allocation2 + $0x20] sm:$0xff] }
  0xf9   : > { %2713 = vmatprep.subr.bf16.mxu1 %v3735_v36  ;;  %v3074_v36 = vld [vmem:[%s3657_s0 + $0x38] ss:$20 sps:$4 sm:$0xff]  }
  0xfa   : > { %2729 = vmatpush1.bf16.msra.mxu1 %v3740_v38  ;;  %v3075_v38 = vld [vmem:[%s3657_s0 + $0xf4] ss:$20 sps:$4 sm:$0xff]  }
  0xfb   : > { %1833 = vmatpush1.bf16.msra.mxu0 %v3064_v28  ;;  %2714 = vmatprep.subr.bf16.mxu1 %v3745_v40  ;;  %v3077_v40 = vld [vmem:[%s3657_s0 + $0xf0] ss:$20 sps:$4 sm:$0xff]  }
  0xfd   : > { %1645 = vmatmul.mubr.bf16.gmra.mrb[16].mxu1 %v3069_v30 }
  0xfe   : > { %1851 = vmatmul.mubr.bf16.vlgmr.msra.gmra.mrb[0].mxu0 %v3070_v32  ;;  %2730 = vmatpush1.bf16.msra.mxu1 %v3749_v42  ;;  %v3078_v42 = vld [vmem:[%s3657_s0 + $0x60] ss:$20 sps:$4 sm:$0xff]  }
  0xff   : > { %1654 = vmatprep.mubr.bf16.mxu1 %v3071_v53  ;;  %1860 = vmatprep.mubr.bf16.mxu0 %v3211_v51  ;;  %v774_v53 = vld [vmem:[#allocation2 + $0x30] sm:$0xff] }
 0x100   : > { %2715 = vmatprep.subr.bf16.mxu1 %v3755_v44  ;;  %v3079_v44 = vld [vmem:[%s3657_s0 + $0x11c] ss:$20 sps:$4 sm:$0xff]  }
 0x102   : > { %2731 = vmatpush1.bf16.msra.mxu1 %v3760_v46  ;;  %v3081_v46 = vld [vmem:[%s3657_s0 + $0x118] ss:$20 sps:$4 sm:$0xff]  }
 0x103   : > { %2716 = vmatprep.subr.bf16.mxu1 %v3765_v48  ;;  %v3082_v48 = vld [vmem:[%s3657_s0 + $0x88] ss:$20 sps:$4 sm:$0xff]  }
 0x105   : > { %1655 = vmatmul.mubr.bf16.gmra.mrb[20].mxu1 %v3073_v34 }
 0x106   : > { %1861 = vmatmul.mubr.bf16.gmra.mrb[4].mxu0 %v3074_v36  ;;  %2732 = vmatpush1.bf16.msra.mxu1 %v3769_v50  ;;  %v3083_v50 = vld [vmem:[%s3657_s0 + $0x144] ss:$20 sps:$4 sm:$0xff]  }
 0x107   : > { %1664 = vmatprep.mubr.bf16.mxu1 %v3075_v38  ;;  %1870 = vmatprep.mubr.bf16.mxu0 %v3211_v51 }
 0x108   : > { %2717 = vmatprep.subr.bf16.mxu1 %v3775_v52  ;;  %v3085_v52 = vld [vmem:[%s3657_s0 + $0x140] ss:$20 sps:$4 sm:$0xff]  }
 0x10a   : > { %2733 = vmatpush1.bf16.msra.mxu1 %v3779_v54  ;;  %v3086_v54 = vld [vmem:[%s3657_s0 + $0xb0] ss:$20 sps:$4 sm:$0xff]  }
 0x10b   : > { %2718 = vmatprep.subr.bf16.mxu1 %v3785_v57  ;;  %v3090_v57 = vld [vmem:[%s3657_s0 + $0xd8] ss:$20 sps:$4 sm:$0xff]  }
 0x10d   : > { %1665 = vmatmul.mubr.bf16.gmra.mrb[24].mxu1 %v3077_v40  ;;  %v775_v40 = vld [vmem:[#allocation2 + $0x38] sm:$0xff] }
 0x10e   : > { %1871 = vmatmul.mubr.bf16.gmra.mrb[8].mxu0 %v3078_v42  ;;  %1674 = vmatprep.mubr.bf16.mxu1 %v3079_v44 }
 0x10f   : > { %2734 = vmatpush1.bf16.msra.mxu1 %v3791_v60  ;;  %1880 = vmatprep.mubr.bf16.mxu0 %v3211_v51  ;;  %v3094_v60 = vld [vmem:[%s3657_s0 + $0x100] ss:$20 sps:$4 sm:$0xff]  }
 0x110   : > { %2719 = vmatprep.subr.bf16.mxu1 %v3797_v62  ;;  %v3097_v62 = vld [vmem:[%s3657_s0 + $0xf8] ss:$20 sps:$4 sm:$0xff]  }
 0x113   : > { %2735 = vmatpush1.bf16.msra.mxu1 %v3801_v0  ;;  %v3099_v0 = vld [vmem:[%s3657_s0 + $0x124] ss:$20 sps:$4 sm:$0xff]  }
 0x114   : > { %2720 = vmatprep.subr.bf16.mxu1 %v3807_v2  ;;  %v3102_v2 = vld [vmem:[%s3657_s0 + $0x150] ss:$20 sps:$4 sm:$0xff]  }
 0x115   : > { %1675 = vmatmul.mubr.bf16.gmra.mrb[28].mxu1 %v3081_v46 }
 0x116   : > { %1881 = vmatmul.mubr.bf16.gmra.mrb[12].mxu0 %v3082_v48  ;;  %1684 = vmatprep.mubr.bf16.mxu1 %v3083_v50 }
 0x117   : > { %2736 = vmatpush1.bf16.msra.mxu1 %v3811_v4  ;;  %1890 = vmatprep.mubr.bf16.mxu0 %v3211_v51  ;;  %v3105_v4 = vld [vmem:[%s3657_s0 + $0x148] ss:$20 sps:$4 sm:$0xff]  }
 0x118   : > { %2721 = vmatprep.subr.bf16.mxu1 %v3817_v6 }
 0x11b   : > { %2737 = vmatpush1.bf16.msra.mxu1 %v3822_v9 }
 0x11d   : > { %1685 = vmatmul.mubr.bf16.gmra.mrb[32].mxu1 %v3085_v52  ;;  %v776_v52 = vld [vmem:[#allocation2 + $0x40] sm:$0xff] }
 0x11e   : > { %1891 = vmatmul.mubr.bf16.gmra.mrb[16].mxu0 %v3086_v54  ;;  %1767 = vmatprep.mubr.bf16.mxu1 %v3089_v55 }
 0x11f   : > { %1900 = vmatprep.mubr.bf16.mxu0 %v3211_v51 }
 0x125   : > { %1768 = vmatmul.mubr.bf16.vlgmr.msra.gmra.mrb[16].mxu1 %v3087_v56  ;;  %v777_v56 = vld [vmem:[#allocation2 + $0x48] sm:$0xff] }
 0x126   : > { %1901 = vmatmul.mubr.bf16.gmra.mrb[20].mxu0 %v3090_v57  ;;  %1777 = vmatprep.mubr.bf16.mxu1 %v3091_v58 }
 0x127   : > { %1910 = vmatprep.mubr.bf16.mxu0 %v3211_v51 }
 0x12d   : > { %1778 = vmatmul.mubr.bf16.gmra.mrb[20].mxu1 %v3093_v59  ;;  %v778_v59 = vld [vmem:[#allocation2 + $0x50] sm:$0xff] }
 0x12e   : > { %1911 = vmatmul.mubr.bf16.gmra.mrb[24].mxu0 %v3094_v60  ;;  %1787 = vmatprep.mubr.bf16.mxu1 %v3095_v61 }
 0x12f   : > { %1920 = vmatprep.mubr.bf16.mxu0 %v3211_v51 }
 0x135   : > { %1788 = vmatmul.mubr.bf16.gmra.mrb[24].mxu1 %v3097_v62 }
 0x136   : > { %1921 = vmatmul.mubr.bf16.gmra.mrb[28].mxu0 %v3098_v63  ;;  %1797 = vmatprep.mubr.bf16.mxu1 %v3099_v0  ;;  %v779_v63 = vld [vmem:[#allocation2 + $0x58] sm:$0xff] }
 0x137   : > { %1930 = vmatprep.mubr.bf16.mxu0 %v3211_v51  ;;  %v773_v51 = vld [vmem:[#allocation2 + $0x28] sm:$0xff] }
 0x13d   : > { %1798 = vmatmul.mubr.bf16.gmra.mrb[28].mxu1 %v3101_v1 }
 0x13e   : > { %1931 = vmatmul.mubr.bf16.gmra.mrb[32].mxu0 %v3102_v2  ;;  %1807 = vmatprep.mubr.bf16.mxu1 %v3103_v3 }
 0x145   : > { %1808 = vmatmul.mubr.bf16.gmra.mrb[32].mxu1 %v3105_v4 }
 0x1b0   : > { %v1606_v5 = vpop.f32.mrb[0].mxu1 }
 0x1b1   : > { %v1608_v6 = vpop.f32.mrb[1].mxu1 }
 0x1b2   : > { %v1610_v7 = vpop.f32.mrb[2].mxu1 }
 0x1b3   : > { %v1612_v9 = vpop.f32.mrb[3].mxu1 }
 0x1b8   : > { %v1616_v11 = vpop.f32.mrb[4].mxu1 }
 0x1b9   : > { %v1618_v13 = vpop.f32.mrb[5].mxu1 }
 0x1ba   : > { %v1620_v15 = vpop.f32.mrb[6].mxu1 }
 0x1bb   : > { %v1622_v17 = vpop.f32.mrb[7].mxu1 }
 0x1c0   : > { %v1626_v19 = vpop.f32.mrb[8].mxu1 }
 0x1c1   : > { %v1628_v21 = vpop.f32.mrb[9].mxu1 }
 0x1c2   : > { %v1630_v23 = vpop.f32.mrb[10].mxu1 }
 0x1c3   : > { %v1632_v25 = vpop.f32.mrb[11].mxu1 }
 0x1c8   : > { %v3926_v27 = vpop.f32.mrb[12].mxu1 }
 0x1c9   : > { %v3928_v8 = vpop.f32.mrb[13].mxu1 }
 0x1ca   : > { %v3930_v29 = vpop.f32.mrb[14].mxu1 }
 0x1cb   : > { %v3932_v31 = vpop.f32.mrb[15].mxu1 }
 0x1d1   : > { %v1852_v33 = vpop.f32.mrb[0].mxu0 }
 0x1d2   : > { %v2738_v12 = vadd.f32 %v1852_v33, %v1606_v5  ;;  %v1854_v14 = vpop.f32.mrb[1].mxu0  ;;  %v780_v5 = vld [vmem:[#allocation2 + $0x60] sm:$0xff] }
 0x1d3   : > { %v2739_v16 = vadd.f32 %v1854_v14, %v1608_v6  ;;  %v1856_v39 = vpop.f32.mrb[2].mxu0 }
 0x1d4   : > { %v1941_v18 = vadd.f32 %v2738_v12, %v768_v10  ;;  %v2740_v41 = vadd.f32 %v1856_v39, %v1610_v7  ;;  %v1858_v43 = vpop.f32.mrb[3].mxu0 }
 0x1d5   : > { %v1942_v22 = vadd.f32 %v2739_v16, %v769_v35  ;;  %v2741_v24 = vadd.f32 %v1858_v43, %v1612_v9  ;;  %v781_v9 = vld [vmem:[#allocation2 + $0x68] sm:$0xff] }
 0x1d6   : > { %1977 = vst [vmem:[#allocation2] sm:$0xff] %v1941_v18  ;;  %v1943_v45 = vadd.f32 %v2740_v41, %v770_v37  ;;  %v784_v37 = vld [vmem:[#allocation2 + $0x80] sm:$0xff] }
 0x1d7   : > { %1978 = vst [vmem:[#allocation2 + $0x8] sm:$0xff] %v1942_v22  ;;  %v1944_v47 = vadd.f32 %v2741_v24, %v771_v20  ;;  %v786_v24 = vld [vmem:[#allocation2 + $0x90] sm:$0xff] }
 0x1d8   : > { %1979 = vst [vmem:[#allocation2 + $0x10] sm:$0xff] %v1943_v45 }
 0x1d9   : > { %1980 = vst [vmem:[#allocation2 + $0x18] sm:$0xff] %v1944_v47  ;;  %v1862_v49 = vpop.f32.mrb[4].mxu0 }
 0x1da   : > { %v2742_v28 = vadd.f32 %v1862_v49, %v1616_v11  ;;  %v1864_v30 = vpop.f32.mrb[5].mxu0  ;;  %v787_v49 = vld [vmem:[#allocation2 + $0x98] sm:$0xff] }
 0x1db   : > { %v2743_v32 = vadd.f32 %v1864_v30, %v1618_v13  ;;  %v1866_v34 = vpop.f32.mrb[6].mxu0 }
 0x1dc   : > { %v1945_v36 = vadd.f32 %v2742_v28, %v772_v26  ;;  %v2744_v38 = vadd.f32 %v1866_v34, %v1620_v15  ;;  %v1868_v42 = vpop.f32.mrb[7].mxu0  ;;  %v782_v15 = vld [vmem:[#allocation2 + $0x70] sm:$0xff] }
 0x1dd   : > { %v1946_v44 = vadd.f32 %v2743_v32, %v773_v51  ;;  %v2745_v46 = vadd.f32 %v1868_v42, %v1622_v17 }
 0x1de   : > { %1981 = vst [vmem:[#allocation2 + $0x20] sm:$0xff] %v1945_v36  ;;  %v1947_v48 = vadd.f32 %v2744_v38, %v774_v53  ;;  %v788_v36 = vld [vmem:[#allocation2 + $0xa0] sm:$0xff] }
 0x1df   : > { %1982 = vst [vmem:[#allocation2 + $0x28] sm:$0xff] %v1946_v44  ;;  %v1948_v50 = vadd.f32 %v2745_v46, %v775_v40  ;;  %v789_v44 = vld [vmem:[#allocation2 + $0xa8] sm:$0xff] }
 0x1e0   : > { %1983 = vst [vmem:[#allocation2 + $0x30] sm:$0xff] %v1947_v48 }
 0x1e1   : > { %1984 = vst [vmem:[#allocation2 + $0x38] sm:$0xff] %v1948_v50  ;;  %v1872_v54 = vpop.f32.mrb[8].mxu0 }
 0x1e2   : > { %v2746_v55 = vadd.f32 %v1872_v54, %v1626_v19  ;;  %v1874_v57 = vpop.f32.mrb[9].mxu0 }
 0x1e3   : > { %v2747_v58 = vadd.f32 %v1874_v57, %v1628_v21  ;;  %v1876_v60 = vpop.f32.mrb[10].mxu0 }
 0x1e4   : > { %v1949_v61 = vadd.f32 %v2746_v55, %v776_v52  ;;  %v2748_v62 = vadd.f32 %v1876_v60, %v1630_v23  ;;  %v1878_v0 = vpop.f32.mrb[11].mxu0  ;;  %v783_v23 = vld [vmem:[#allocation2 + $0x78] sm:$0xff]  ;;  %v790_v52 = vld [vmem:[#allocation2 + $0xb0] sm:$0xff] }
 0x1e5   : > { %v1950_v1 = vadd.f32 %v2747_v58, %v777_v56  ;;  %v2749_v2 = vadd.f32 %v1878_v0, %v1632_v25  ;;  %v791_v58 = vld [vmem:[#allocation2 + $0xb8] sm:$0xff] }
 0x1e6   : > { %1985 = vst [vmem:[#allocation2 + $0x40] sm:$0xff] %v1949_v61  ;;  %v1951_v3 = vadd.f32 %v2748_v62, %v778_v59 }
 0x1e7   : > { %1986 = vst [vmem:[#allocation2 + $0x48] sm:$0xff] %v1950_v1  ;;  %v1952_v4 = vadd.f32 %v2749_v2, %v779_v63  ;;  %v792_v1 = vld [vmem:[#allocation2 + $0xc0] sm:$0xff] }
 0x1e8   : > { %1987 = vst [vmem:[#allocation2 + $0x50] sm:$0xff] %v1951_v3 }
 0x1e9   : > { %1988 = vst [vmem:[#allocation2 + $0x58] sm:$0xff] %v1952_v4  ;;  %v1882_v6 = vpop.f32.mrb[12].mxu0 }
 0x1ea   : > { %v2750_v7 = vadd.f32 %v1882_v6, %v3926_v27  ;;  %v1884_v11 = vpop.f32.mrb[13].mxu0 }
 0x1eb   : > { %v2751_v13 = vadd.f32 %v1884_v11, %v3928_v8  ;;  %v1886_v17 = vpop.f32.mrb[14].mxu0  ;;  %v794_v11 = vld [vmem:[#allocation2 + $0xd0] sm:$0xff] }
 0x1ec   : > { %v1953_v19 = vadd.f32 %v2750_v7, %v780_v5  ;;  %v2752_v21 = vadd.f32 %v1886_v17, %v3930_v29  ;;  %v1888_v25 = vpop.f32.mrb[15].mxu0  ;;  %v785_v29 = vld [vmem:[#allocation2 + $0x88] sm:$0xff] }
 0x1ed   : > { %v1954_v10 = vadd.f32 %v2751_v13, %v781_v9  ;;  %v2753_v33 = vadd.f32 %v1888_v25, %v3932_v31  ;;  %v793_v5 = vld [vmem:[#allocation2 + $0xc8] sm:$0xff] }
 0x1ee   : > { %1989 = vst [vmem:[#allocation2 + $0x60] sm:$0xff] %v1953_v19  ;;  %v1955_v12 = vadd.f32 %v2752_v21, %v782_v15  ;;  %v795_v21 = vld [vmem:[#allocation2 + $0xd8] sm:$0xff] }
 0x1ef   : > { %1990 = vst [vmem:[#allocation2 + $0x68] sm:$0xff] %v1954_v10  ;;  %v1956_v35 = vadd.f32 %v2753_v33, %v783_v23 }
 0x1f0   : > { %1991 = vst [vmem:[#allocation2 + $0x70] sm:$0xff] %v1955_v12 }
 0x1f1   : > { %1992 = vst [vmem:[#allocation2 + $0x78] sm:$0xff] %v1956_v35  ;;  %v1892_v27 = vpop.f32.mrb[16].mxu0 }
 0x1f2   : > { %v1894_v14 = vpop.f32.mrb[17].mxu0 }
 0x1f3   : > { %v1896_v16 = vpop.f32.mrb[18].mxu0 }
 0x1f4   : > { %v1898_v8 = vpop.f32.mrb[19].mxu0 }
 0x1f8   : > { %v1769_v39 = vpop.f32.mrb[16].mxu1 }
 0x1f9   : > { %v1902_v18 = vpop.f32.mrb[20].mxu0  ;;  %v2754_v41 = vadd.f32 %v1892_v27, %v1769_v39  ;;  %v1771_v20 = vpop.f32.mrb[17].mxu1  ;;  %v796_v27 = vld [vmem:[#allocation2 + $0xe0] sm:$0xff] }
 0x1fa   : > { %v1904_v43 = vpop.f32.mrb[21].mxu0  ;;  %v2755_v22 = vadd.f32 %v1894_v14, %v1771_v20  ;;  %v1773_v31 = vpop.f32.mrb[18].mxu1 }
 0x1fb   : > { %v1906_v45 = vpop.f32.mrb[22].mxu0  ;;  %v1957_v47 = vadd.f32 %v2754_v41, %v784_v37  ;;  %v2756_v26 = vadd.f32 %v1896_v16, %v1773_v31  ;;  %v1775_v28 = vpop.f32.mrb[19].mxu1  ;;  %v797_v37 = vld [vmem:[#allocation2 + $0xe8] sm:$0xff]  ;;  %v799_v31 = vld [vmem:[#allocation2 + $0xf8] sm:$0xff] }
 0x1fc   : > { %v1908_v51 = vpop.f32.mrb[23].mxu0  ;;  %v1958_v30 = vadd.f32 %v2755_v22, %v785_v29  ;;  %v2757_v32 = vadd.f32 %v1898_v8, %v1775_v28  ;;  %v798_v29 = vld [vmem:[#allocation2 + $0xf0] sm:$0xff] }
 0x1fd   : > { %1993 = vst [vmem:[#allocation2 + $0x80] sm:$0xff] %v1957_v47  ;;  %v1959_v53 = vadd.f32 %v2756_v26, %v786_v24 }
 0x1fe   : > { %1994 = vst [vmem:[#allocation2 + $0x88] sm:$0xff] %v1958_v30  ;;  %v1960_v34 = vadd.f32 %v2757_v32, %v787_v49  ;;  %v800_v30 = vld [vmem:[#allocation2 + $0x100] sm:$0xff] }
 0x1ff   : > { %1995 = vst [vmem:[#allocation2 + $0x90] sm:$0xff] %v1959_v53 }
 0x200   : > { %1996 = vst [vmem:[#allocation2 + $0x98] sm:$0xff] %v1960_v34  ;;  %v1779_v38 = vpop.f32.mrb[20].mxu1  ;;  %v801_v34 = vld [vmem:[#allocation2 + $0x108] sm:$0xff] }
 0x201   : > { %v1912_v40 = vpop.f32.mrb[24].mxu0  ;;  %v2758_v42 = vadd.f32 %v1902_v18, %v1779_v38  ;;  %v1781_v46 = vpop.f32.mrb[21].mxu1 }
 0x202   : > { %v1914_v48 = vpop.f32.mrb[25].mxu0  ;;  %v2759_v50 = vadd.f32 %v1904_v43, %v1781_v46  ;;  %v1783_v54 = vpop.f32.mrb[22].mxu1 }
 0x203   : > { %v1916_v55 = vpop.f32.mrb[26].mxu0  ;;  %v1961_v56 = vadd.f32 %v2758_v42, %v788_v36  ;;  %v2760_v57 = vadd.f32 %v1906_v45, %v1783_v54  ;;  %v1785_v59 = vpop.f32.mrb[23].mxu1 }
 0x204   : > { %v1918_v60 = vpop.f32.mrb[27].mxu0  ;;  %v1962_v61 = vadd.f32 %v2759_v50, %v789_v44  ;;  %v2761_v62 = vadd.f32 %v1908_v51, %v1785_v59  ;;  %v2053_v59 = vld [vmem:[%s723_s8] sm:$0x3] (!%p2662_p6) }
 0x205   : > { %1997 = vst [vmem:[#allocation2 + $0xa0] sm:$0xff] %v1961_v56  ;;  %v1963_v63 = vadd.f32 %v2760_v57, %v790_v52  ;;  %v2055_v57 = vlaneseq (!%p2662_p6) }
 0x206   : > { %1998 = vst [vmem:[#allocation2 + $0xa8] sm:$0xff] %v1962_v61  ;;  %v1964_v0 = vadd.f32 %v2761_v62, %v791_v58  ;;  %v2018_v61 = vld [vmem:[#allocation2 + $0x8] sm:$0xff] (!%p2662_p6) }
 0x207   : > { %1999 = vst [vmem:[#allocation2 + $0xb0] sm:$0xff] %v1963_v63  ;;  %v2056_v58 = vshrl.u32 (!%p2662_p6), %v2055_v57, 7 }
 0x208   : > { %2000 = vst [vmem:[#allocation2 + $0xb8] sm:$0xff] %v1964_v0  ;;  %v1789_v2 = vpop.f32.mrb[24].mxu1  ;;  %v2019_v0 = vld [vmem:[#allocation2 + $0x10] sm:$0xff] (!%p2662_p6) }
 0x209   : > { %v1922_v3 = vpop.f32.mrb[28].mxu0  ;;  %v2762_v4 = vadd.f32 %v1912_v40, %v1789_v2  ;;  %v1791_v6 = vpop.f32.mrb[25].mxu1  ;;  %v802_v40 = vld [vmem:[#allocation2 + $0x110] sm:$0xff]  ;;  %v2057_v62 = vsub.s32 (!%p2662_p6), 0, %v2056_v58  ;;  %v2061_v63 = vsub.s32 (!%p2662_p6), 1, %v2056_v58  ;;  %v2021_v2 = vld [vmem:[#allocation2 + $0x20] sm:$0xff] (!%p2662_p6) }
 0x20a   : > { %v1924_v7 = vpop.f32.mrb[29].mxu0  ;;  %v2763_v9 = vadd.f32 %v1914_v48, %v1791_v6  ;;  %v1793_v13 = vpop.f32.mrb[26].mxu1  ;;  %v803_v48 = vld [vmem:[#allocation2 + $0x118] sm:$0xff]  ;;  %v2023_v6 = vld [vmem:[#allocation2 + $0x30] sm:$0xff] (!%p2662_p6) }
 0x20b   : > { %v1926_v15 = vpop.f32.mrb[30].mxu0  ;;  %v1965_v17 = vadd.f32 %v2762_v4, %v792_v1  ;;  %v2764_v19 = vadd.f32 %v1916_v55, %v1793_v13  ;;  %v1795_v23 = vpop.f32.mrb[27].mxu1  ;;  %v2020_v1 = vld [vmem:[#allocation2 + $0x18] sm:$0xff] (!%p2662_p6)  ;;  %v3946_v4 = vrot.slane (!%p2662_p6), %v2053_v59, %v2061_v63 }
 0x20c   : > { %v1928_v25 = vpop.f32.mrb[31].mxu0  ;;  %v1966_v10 = vadd.f32 %v2763_v9, %v793_v5  ;;  %v2765_v33 = vadd.f32 %v1918_v60, %v1795_v23  ;;  %v2017_v60 = vld [vmem:[#allocation2] sm:$0xff] (!%p2662_p6)  ;;  %v2022_v5 = vld [vmem:[#allocation2 + $0x28] sm:$0xff] (!%p2662_p6) }
 0x20d   : > { %2001 = vst [vmem:[#allocation2 + $0xc0] sm:$0xff] %v1965_v17  ;;  %v1967_v12 = vadd.f32 %v2764_v19, %v794_v11  ;;  %v2066_v11 = vadd.f32 (!%p2662_p6), %v3946_v4, %v2018_v61  ;;  %v2070_v19 = vadd.f32 (!%p2662_p6), %v3946_v4, %v2022_v5  ;;  %v2038_v57 = vld [vmem:[#allocation2 + $0xa8] sm:$0xff] (!%p2662_p6) }
 0x20e   : > { %2002 = vst [vmem:[#allocation2 + $0xc8] sm:$0xff] %v1966_v10  ;;  %v1968_v35 = vadd.f32 %v2765_v33, %v795_v21  ;;  %v2026_v10 = vld [vmem:[#allocation2 + $0x48] sm:$0xff] (!%p2662_p6) }
 0x20f   : > { %2003 = vst [vmem:[#allocation2 + $0xd0] sm:$0xff] %v1967_v12  ;;  %v2102_v12 = vmax.f32 (!%p2662_p6), %v2066_v11, 0.0  ;;  %v2040_v63 = vld [vmem:[#allocation2 + $0xb8] sm:$0xff] (!%p2662_p6) }
 0x210   : > { %2004 = vst [vmem:[#allocation2 + $0xd8] sm:$0xff] %v1968_v35  ;;  %v1799_v14 = vpop.f32.mrb[28].mxu1 }
 0x211   : > { %v1932_v16 = vpop.f32.mrb[32].mxu0  ;;  %v2766_v8 = vadd.f32 %v1922_v3, %v1799_v14  ;;  %v1801_v39 = vpop.f32.mrb[29].mxu1  ;;  %v3944_v3 = vrot.slane (!%p2662_p6), %v2053_v59, %v2057_v62  ;;  %v2027_v14 = vld [vmem:[#allocation2 + $0x50] sm:$0xff] (!%p2662_p6) }
 0x212   : > { %v1934_v18 = vpop.f32.mrb[33].mxu0  ;;  %v2767_v41 = vadd.f32 %v1924_v7, %v1801_v39  ;;  %v1803_v20 = vpop.f32.mrb[30].mxu1  ;;  %v2024_v7 = vld [vmem:[#allocation2 + $0x38] sm:$0xff] (!%p2662_p6)  ;;  %v2039_v62 = vld [vmem:[#allocation2 + $0xb0] sm:$0xff] (!%p2662_p6) }
 0x213   : > { %v1936_v43 = vpop.f32.mrb[34].mxu0  ;;  %v1969_v22 = vadd.f32 %v2766_v8, %v796_v27  ;;  %v2768_v24 = vadd.f32 %v1926_v15, %v1803_v20  ;;  %v1805_v45 = vpop.f32.mrb[31].mxu1  ;;  %v2065_v9 = vadd.f32 (!%p2662_p6), %v3944_v3, %v2017_v60  ;;  %v2067_v13 = vadd.f32 (!%p2662_p6), %v3944_v3, %v2019_v0 }
 0x214   : > { %v1938_v47 = vpop.f32.mrb[35].mxu0  ;;  %v1970_v26 = vadd.f32 %v2767_v41, %v797_v37  ;;  %v2769_v49 = vadd.f32 %v1928_v25, %v1805_v45  ;;  %v2068_v15 = vadd.f32 (!%p2662_p6), %v3946_v4, %v2020_v1  ;;  %v2069_v17 = vadd.f32 (!%p2662_p6), %v3944_v3, %v2021_v2  ;;  %v2025_v25 = vld [vmem:[#allocation2 + $0x40] sm:$0xff] (!%p2662_p6)  ;;  %v2032_v45 = vld [vmem:[#allocation2 + $0x78] sm:$0xff] (!%p2662_p6) }
 0x215   : > { %2005 = vst [vmem:[#allocation2 + $0xe0] sm:$0xff] %v1969_v22  ;;  %v1971_v28 = vadd.f32 %v2768_v24, %v798_v29  ;;  %v2071_v21 = vadd.f32 (!%p2662_p6), %v3944_v3, %v2023_v6  ;;  %v2072_v23 = vadd.f32 (!%p2662_p6), %v3946_v4, %v2024_v7  ;;  %v2101_v33 = vmax.f32 (!%p2662_p6), %v2065_v9, 0.0  ;;  %v2029_v41 = vld [vmem:[#allocation2 + $0x60] sm:$0xff] (!%p2662_p6)  ;;  %v2030_v29 = vld [vmem:[#allocation2 + $0x68] sm:$0xff] (!%p2662_p6) }
 0x216   : > { %2006 = vst [vmem:[#allocation2 + $0xe8] sm:$0xff] %v1970_v26  ;;  %v1972_v51 = vadd.f32 %v2769_v49, %v799_v31  ;;  %v2103_v35 = vmax.f32 (!%p2662_p6), %v2067_v13, 0.0  ;;  %v2104_v27 = vmax.f32 (!%p2662_p6), %v2068_v15, 0.0  ;;  %v2105_v8 = vmax.f32 (!%p2662_p6), %v2069_v17, 0.0  ;;  %v2031_v31 = vld [vmem:[#allocation2 + $0x70] sm:$0xff] (!%p2662_p6)  ;;  %v2041_v6 = vld [vmem:[#allocation2 + $0xc0] sm:$0xff] (!%p2662_p6) }
 0x217   : > { %2007 = vst [vmem:[#allocation2 + $0xf0] sm:$0xff] %v1971_v28  ;;  %v2106_v37 = vmax.f32 (!%p2662_p6), %v2070_v19, 0.0  ;;  %v2107_v39 = vmax.f32 (!%p2662_p6), %v2071_v21, 0.0  ;;  %v2687_v20 = vpack.c.bf16 (!%p2662_p6), %v2102_v12, %v2101_v33  ;;  %v2073_v22 = vadd.f32 (!%p2662_p6), %v3944_v3, %v2025_v25  ;;  %v2042_v15 = vld [vmem:[#allocation2 + $0xc8] sm:$0xff] (!%p2662_p6)  ;;  %v2043_v25 = vld [vmem:[#allocation2 + $0xd0] sm:$0xff] (!%p2662_p6) }
 0x218   : > { %2008 = vst [vmem:[#allocation2 + $0xf8] sm:$0xff] %v1972_v51  ;;  %v1809_v32 = vpop.f32.mrb[32].mxu1  ;;  %v2074_v24 = vadd.f32 (!%p2662_p6), %v3946_v4, %v2026_v10  ;;  %v2075_v49 = vadd.f32 (!%p2662_p6), %v3944_v3, %v2027_v14  ;;  %v2033_v51 = vld [vmem:[#allocation2 + $0x80] sm:$0xff] (!%p2662_p6)  ;;  %v2086_v13 = vadd.f32 (!%p2662_p6), %v3946_v4, %v2038_v57  ;;  %v2087_v21 = vadd.f32 (!%p2662_p6), %v3944_v3, %v2039_v62  ;;  %v2044_v10 = vld [vmem:[#allocation2 + $0xd8] sm:$0xff] (!%p2662_p6) }
 0x219   : > { %v2770_v53 = vadd.f32 %v1932_v16, %v1809_v32  ;;  %v1811_v36 = vpop.f32.mrb[33].mxu1  ;;  %v2028_v16 = vld [vmem:[#allocation2 + $0x58] sm:$0xff] (!%p2662_p6)  ;;  %2245 = vst [vmem:[%s3661_s14] sm:$0xff] (!%p2662_p6), %v2687_v20 }
 0x21a   : > { %v2771_v38 = vadd.f32 %v1934_v18, %v1811_v36  ;;  %v1813_v42 = vpop.f32.mrb[34].mxu1  ;;  %2016 = sbr.rel (%p2662_p6) target bundleno = 562 (0x232), region = 104  ;;  %v2108_v18 = vmax.f32 (!%p2662_p6), %v2072_v23, 0.0  ;;  %v2076_v28 = vadd.f32 (!%p2662_p6), %v3946_v4, %v2028_v16  ;;  %v2110_v32 = vmax.f32 (!%p2662_p6), %v2074_v24, 0.0  ;;  %v2034_v36 = vld [vmem:[#allocation2 + $0x88] sm:$0xff] (!%p2662_p6) }
 0x21b   : > { %v1973_v44 = vadd.f32 %v2770_v53, %v800_v30  ;;  %v2772_v46 = vadd.f32 %v1936_v43, %v1813_v42  ;;  %v1815_v50 = vpop.f32.mrb[35].mxu1  ;;  %v2688_v43 = vpack.c.bf16 (!%p2662_p6), %v2104_v27, %v2103_v35  ;;  %v2109_v30 = vmax.f32 (!%p2662_p6), %v2073_v22, 0.0 }
 0x21c   : > { %v1974_v52 = vadd.f32 %v2771_v38, %v801_v34  ;;  %v2773_v54 = vadd.f32 %v1938_v47, %v1815_v50  ;;  %v2689_v47 = vpack.c.bf16 (!%p2662_p6), %v2106_v37, %v2105_v8  ;;  %v2690_v26 = vpack.c.bf16 (!%p2662_p6), %v2108_v18, %v2107_v39  ;;  %v2045_v14 = vld [vmem:[#allocation2 + $0xe0] sm:$0xff] (!%p2662_p6) }
 0x21d   : > { %2009 = vst [vmem:[#allocation2 + $0x100] sm:$0xff] %v1973_v44  ;;  %v1975_v55 = vadd.f32 %v2772_v46, %v802_v40  ;;  %2246 = vst [vmem:[%s3661_s14 + $0x8] sm:$0xff] (!%p2662_p6), %v2688_v43  ;;  %v2077_v53 = vadd.f32 (!%p2662_p6), %v3944_v3, %v2029_v41  ;;  %v2078_v34 = vadd.f32 (!%p2662_p6), %v3946_v4, %v2030_v29  ;;  %v2111_v38 = vmax.f32 (!%p2662_p6), %v2075_v49, 0.0  ;;  %v2035_v46 = vld [vmem:[#allocation2 + $0x90] sm:$0xff] (!%p2662_p6)  ;;  %v2046_v16 = vld [vmem:[#allocation2 + $0xe8] sm:$0xff] (!%p2662_p6) }
 0x21e   : > { %2010 = vst [vmem:[#allocation2 + $0x108] sm:$0xff] %v1974_v52  ;;  %v1976_v56 = vadd.f32 %v2773_v54, %v803_v48  ;;  %2247 = vst [vmem:[%s3661_s14 + $0x10] sm:$0xff] (!%p2662_p6), %v2689_v47  ;;  %v2112_v40 = vmax.f32 (!%p2662_p6), %v2076_v28, 0.0  ;;  %v2079_v42 = vadd.f32 (!%p2662_p6), %v3944_v3, %v2031_v31  ;;  %v2080_v44 = vadd.f32 (!%p2662_p6), %v3946_v4, %v2032_v45  ;;  %v2036_v48 = vld [vmem:[#allocation2 + $0x98] sm:$0xff] (!%p2662_p6)  ;;  %v2047_v41 = vld [vmem:[#allocation2 + $0xf0] sm:$0xff] (!%p2662_p6) }
 0x21f   : > { %2011 = vst [vmem:[#allocation2 + $0x110] sm:$0xff] %v1975_v55  ;;  %2248 = vst [vmem:[%s3661_s14 + $0x18] sm:$0xff] (!%p2662_p6), %v2690_v26  ;;  %v2691_v50 = vpack.c.bf16 (!%p2662_p6), %v2110_v32, %v2109_v30  ;;  %v2113_v52 = vmax.f32 (!%p2662_p6), %v2077_v53, 0.0  ;;  %v2114_v54 = vmax.f32 (!%p2662_p6), %v2078_v34, 0.0  ;;  %v2081_v55 = vadd.f32 (!%p2662_p6), %v3944_v3, %v2033_v51  ;;  %v2048_v29 = vld [vmem:[#allocation2 + $0xf8] sm:$0xff] (!%p2662_p6) }
 0x220   : > { %2012 = vst [vmem:[#allocation2 + $0x118] sm:$0xff] %v1976_v56  ;;  %v2037_v56 = vld [vmem:[#allocation2 + $0xa0] sm:$0xff] (!%p2662_p6)  ;;  %v2692_v58 = vpack.c.bf16 (!%p2662_p6), %v2112_v40, %v2111_v38  ;;  %v2115_v59 = vmax.f32 (!%p2662_p6), %v2079_v42, 0.0  ;;  %v2116_v60 = vmax.f32 (!%p2662_p6), %v2080_v44, 0.0  ;;  %v2082_v61 = vadd.f32 (!%p2662_p6), %v3946_v4, %v2034_v36 }
 0x221   : > { %2249 = vst [vmem:[%s3661_s14 + $0x20] sm:$0xff] %v2691_v50  ;;  %v2693_v0 = vpack.c.bf16 %v2114_v54, %v2113_v52  ;;  %v2117_v1 = vmax.f32 %v2081_v55, 0.0  ;;  %v2083_v2 = vadd.f32 %v3944_v3, %v2035_v46  ;;  %v2084_v5 = vadd.f32 %v3946_v4, %v2036_v48 }
 0x222   : > { %2250 = vst [vmem:[%s3661_s14 + $0x28] sm:$0xff] %v2692_v58  ;;  %v2694_v7 = vpack.c.bf16 %v2116_v60, %v2115_v59  ;;  %v2118_v9 = vmax.f32 %v2082_v61, 0.0  ;;  %v2085_v11 = vadd.f32 %v3944_v3, %v2037_v56  ;;  %v2088_v23 = vadd.f32 %v3946_v4, %v2040_v63 }
 0x223   : > { %2251 = vst [vmem:[%s3661_s14 + $0x30] sm:$0xff] %v2693_v0  ;;  %v2119_v17 = vmax.f32 %v2083_v2, 0.0  ;;  %v2120_v19 = vmax.f32 %v2084_v5, 0.0  ;;  %v2122_v35 = vmax.f32 %v2086_v13, 0.0  ;;  %v2089_v27 = vadd.f32 %v3944_v3, %v2041_v6 }
 0x224   : > { %2252 = vst [vmem:[%s3661_s14 + $0x38] sm:$0xff] %v2694_v7  ;;  %v2695_v33 = vpack.c.bf16 %v2118_v9, %v2117_v1  ;;  %v2121_v12 = vmax.f32 %v2085_v11, 0.0  ;;  %v2123_v37 = vmax.f32 %v2087_v21, 0.0  ;;  %v2124_v39 = vmax.f32 %v2088_v23, 0.0  ;;  %v2049_v31 = vld [vmem:[#allocation2 + $0x100] sm:$0xff] }
 0x225   : > { %v2696_v8 = vpack.c.bf16 %v2120_v19, %v2119_v17  ;;  %v2090_v18 = vadd.f32 %v3946_v4, %v2042_v15  ;;  %v2125_v43 = vmax.f32 %v2089_v27, 0.0  ;;  %v2091_v22 = vadd.f32 %v3944_v3, %v2043_v25  ;;  %v2050_v28 = vld [vmem:[#allocation2 + $0x108] sm:$0xff] }
 0x226   : > { %2253 = vst [vmem:[%s3661_s14 + $0x40] sm:$0xff] %v2695_v33  ;;  %v2697_v20 = vpack.c.bf16 %v2122_v35, %v2121_v12  ;;  %v2092_v24 = vadd.f32 %v3946_v4, %v2044_v10  ;;  %v2698_v45 = vpack.c.bf16 %v2124_v39, %v2123_v37  ;;  %v2093_v26 = vadd.f32 %v3944_v3, %v2045_v14  ;;  %v2051_v34 = vld [vmem:[#allocation2 + $0x110] sm:$0xff] }
 0x227   : > { %2254 = vst [vmem:[%s3661_s14 + $0x48] sm:$0xff] %v2696_v8  ;;  %v2126_v47 = vmax.f32 %v2090_v18, 0.0  ;;  %v2094_v49 = vadd.f32 %v3946_v4, %v2046_v16  ;;  %v2127_v51 = vmax.f32 %v2091_v22, 0.0  ;;  %v2095_v32 = vadd.f32 %v3944_v3, %v2047_v41  ;;  %v2052_v36 = vld [vmem:[#allocation2 + $0x118] sm:$0xff] }
 0x228   : > { %2255 = vst [vmem:[%s3661_s14 + $0x50] sm:$0xff] %v2697_v20  ;;  %v2128_v30 = vmax.f32 %v2092_v24, 0.0  ;;  %v2096_v53 = vadd.f32 %v3946_v4, %v2048_v29  ;;  %2256 = vst [vmem:[%s3661_s14 + $0x58] sm:$0xff] %v2698_v45  ;;  %v2129_v40 = vmax.f32 %v2093_v26, 0.0  ;;  %v2097_v44 = vadd.f32 %v3944_v3, %v2049_v31 }
 0x229   : > { %v2699_v38 = vpack.c.bf16 %v2126_v47, %v2125_v43  ;;  %v2130_v42 = vmax.f32 %v2094_v49, 0.0  ;;  %v2131_v48 = vmax.f32 %v2095_v32, 0.0  ;;  %v2098_v52 = vadd.f32 %v3946_v4, %v2050_v28 }
 0x22a   : > { %v2700_v46 = vpack.c.bf16 %v2128_v30, %v2127_v51  ;;  %v2132_v50 = vmax.f32 %v2096_v53, 0.0  ;;  %v2133_v55 = vmax.f32 %v2097_v44, 0.0  ;;  %v2099_v56 = vadd.f32 %v3944_v3, %v2051_v34 }
 0x22b   : > { %2257 = vst [vmem:[%s3661_s14 + $0x60] sm:$0xff] %v2699_v38  ;;  %v2701_v54 = vpack.c.bf16 %v2130_v42, %v2129_v40  ;;  %v2100_v57 = vadd.f32 %v3946_v4, %v2052_v36  ;;  %v2134_v59 = vmax.f32 %v2098_v52, 0.0 }
 0x22c   : > { %2258 = vst [vmem:[%s3661_s14 + $0x68] sm:$0xff] %v2700_v46  ;;  %v2702_v58 = vpack.c.bf16 %v2132_v50, %v2131_v48  ;;  %v2135_v60 = vmax.f32 %v2099_v56, 0.0 }
 0x22d   : > { %2259 = vst [vmem:[%s3661_s14 + $0x70] sm:$0xff] %v2701_v54  ;;  %v2136_v61 = vmax.f32 %v2100_v57, 0.0  ;;  %v2703_v62 = vpack.c.bf16 %v2134_v59, %v2133_v55 }
 0x22e   : > { %2260 = vst [vmem:[%s3661_s14 + $0x78] sm:$0xff] %v2702_v58 }
 0x22f   : > { %v2704_v63 = vpack.c.bf16 %v2136_v61, %v2135_v60  ;;  %2261 = vst [vmem:[%s3661_s14 + $0x80] sm:$0xff] %v2703_v62 }
 0x231   : > { %2262 = vst [vmem:[%s3661_s14 + $0x88] sm:$0xff] %v2704_v63 }
 0x232 PF: > { %2269 = sbr.rel (!%p3344_p13) target bundleno = 582 (0x246), region = 108  ;;  %s4088_s18 = sld [smem:[#allocation6_spill]] (%p3344_p13)  ;;  %v2337_v3 = vld [vmem:[%s3661_s14] sm:$0xff] (%p3344_p13)  ;;  %v2347_v5 = vld [vmem:[%s3661_s14 + $0x28] sm:$0xff] (%p3344_p13)  ;;  %v2349_v6 = vld [vmem:[%s3661_s14 + $0x30] sm:$0xff] (%p3344_p13) }
 0x233   : > { %v2351_v7 = vld [vmem:[%s3661_s14 + $0x38] sm:$0xff] (%p3344_p13)  ;;  %v2353_v9 = vld [vmem:[%s3661_s14 + $0x40] sm:$0xff] (%p3344_p13)  ;;  %v2355_v11 = vld [vmem:[%s3661_s14 + $0x48] sm:$0xff] (%p3344_p13)  ;;  %s4089_s27 = sld [smem:[#allocation10_spill]] (%p3344_p13) }
 0x234   : > { %v2357_v13 = vld [vmem:[%s3661_s14 + $0x50] sm:$0xff] (%p3344_p13)  ;;  %v2359_v15 = vld [vmem:[%s3661_s14 + $0x58] sm:$0xff] (%p3344_p13)  ;;  %v2361_v17 = vld [vmem:[%s3661_s14 + $0x60] sm:$0xff] (%p3344_p13) }
 0x235   : > { %v2339_v4 = vld [vmem:[%s3661_s14 + $0x8] sm:$0xff] (%p3344_p13)  ;;  %v2365_v21 = vld [vmem:[%s3661_s14 + $0x70] sm:$0xff] (%p3344_p13)  ;;  %v2367_v23 = vld [vmem:[%s3661_s14 + $0x78] sm:$0xff] (%p3344_p13) }
 0x236   : > { %v2341_v0 = vld [vmem:[%s3661_s14 + $0x10] sm:$0xff] (%p3344_p13)  ;;  %v2363_v19 = vld [vmem:[%s3661_s14 + $0x68] sm:$0xff] (%p3344_p13)  ;;  %v2369_v25 = vld [vmem:[%s3661_s14 + $0x80] sm:$0xff] (%p3344_p13) }
 0x237   : > { %v2343_v1 = vld [vmem:[%s3661_s14 + $0x18] sm:$0xff] (%p3344_p13) }
 0x238   : > { %s2705_s19 = smul.u32 (%p3344_p13), 72, %s4088_s18  ;;  %v2371_v10 = vld [vmem:[%s3661_s14 + $0x88] sm:$0xff] (%p3344_p13) }
 0x239   : > { %v2345_v2 = vld [vmem:[%s3661_s14 + $0x20] sm:$0xff] }
 0x23a   : > { %s2273_s20 = sadd.s32 %s2705_s19, %s3647_s30 }
 0x23b   : > { %s2683_s5 = sshll.u32 %s2273_s20, 2 }
 0x23c   : > { %s2275_s29 = scalar_lea.vmem %s4089_s27, %s2683_s5 }
 0x23d   : > { %2338 = vst [vmem:[%s2275_s29] sm:$0xff] %v2337_v3  ;;  %2340 = vst [vmem:[%s2275_s29 + $0x10] sm:$0xff] %v2339_v4 }
 0x23e   : > { %2342 = vst [vmem:[%s2275_s29 + $0x20] sm:$0xff] %v2341_v0  ;;  %2344 = vst [vmem:[%s2275_s29 + $0x30] sm:$0xff] %v2343_v1 }
 0x23f   : > { %2346 = vst [vmem:[%s2275_s29 + $0x40] sm:$0xff] %v2345_v2  ;;  %2348 = vst [vmem:[%s2275_s29 + $0x50] sm:$0xff] %v2347_v5 }
 0x240   : > { %2350 = vst [vmem:[%s2275_s29 + $0x60] sm:$0xff] %v2349_v6  ;;  %2352 = vst [vmem:[%s2275_s29 + $0x70] sm:$0xff] %v2351_v7 }
 0x241   : > { %2354 = vst [vmem:[%s2275_s29 + $0x80] sm:$0xff] %v2353_v9  ;;  %2356 = vst [vmem:[%s2275_s29 + $0x90] sm:$0xff] %v2355_v11 }
 0x242   : > { %2358 = vst [vmem:[%s2275_s29 + $0xa0] sm:$0xff] %v2357_v13  ;;  %2360 = vst [vmem:[%s2275_s29 + $0xb0] sm:$0xff] %v2359_v15 }
 0x243   : > { %2362 = vst [vmem:[%s2275_s29 + $0xc0] sm:$0xff] %v2361_v17  ;;  %2364 = vst [vmem:[%s2275_s29 + $0xd0] sm:$0xff] %v2363_v19 }
 0x244   : > { %2366 = vst [vmem:[%s2275_s29 + $0xe0] sm:$0xff] %v2365_v21  ;;  %2368 = vst [vmem:[%s2275_s29 + $0xf0] sm:$0xff] %v2367_v23 }
 0x245   : > { %2370 = vst [vmem:[%s2275_s29 + $0x100] sm:$0xff] %v2369_v25  ;;  %2372 = vst [vmem:[%s2275_s29 + $0x110] sm:$0xff] %v2371_v10 }
 0x246 PF: > { %s13_s24 = sadd.s32 1, %s3208_s24   ;;  %s4091_s4 = sld [smem:[#allocation7_spill]] }
 0x247   : > { %p4028_p7 = scmp.ge.s32.totalorder %s13_s24, 22   ;;  %s4092_s6 = sld [smem:[#allocation8_spill]] }
 0x248   : > { %s4093_s12 = smov %s3164_s13  ;;  %s4094_s13 = smov %s3342_s7 }
 0x249   : > { %s4095_s14 = smov %s3172_s15  ;;  %s4096_s15 = smov %s3329_s9 }
 0x24a   : > { %s4097_s16 = smov %s3180_s17  ;;  %s4098_s17 = smov %s3339_s3 }
 0x24b   : > { %s4099_s18 = smov %s3196_s21  ;;  %s4100_s19 = smov %s3200_s22 }
 0x24c   : > { %s4101_s20 = smov %s3204_s23  ;;  %s4102_s21 = smov %s4091_s4 }
 0x24d   : > { %s4103_s22 = smov %s4092_s6  ;;  %s4104_s23 = smov %s4114_s28 }
 0x24e   :  { %12 = sbr.rel (!%p4028_p7) target bundleno = 10 (0xa), region = 194 }

// kernel: facenet_forward.8
= control target key start
LH: loop header
LB: loop body
LE: loop exit
PB: predicated region body
PF: predicated region fallthrough
CT: control target
= control target key end

     0   :  { %s3323_s0 = inlined_call_operand.vmem [shape: bf16[72,4608], index: 0, kind: input, shape index: {}]   ;;  %s3324_s1 = inlined_call_operand.vmem [shape: bf16[4608,512], index: 1, kind: input, shape index: {}]   ;;  %s3325_s2 = inlined_call_operand.vmem [shape: f32[1,512], index: 2, kind: input, shape index: {}]   ;;  %s3326_s3 = inlined_call_operand.vmem [shape: bf16[72,512], index: 3, kind: output, shape index: {}]  }
   0x1   :  { %3328 = sst [smem:[#allocation7_spill]] %s3323_s0 }
   0x2   :  { %3329 = sst [smem:[#allocation8_spill]] %s3324_s1 }
   0x3   :  { %s2726_s12 = smov 0   ;;  %s2728_s13 = smov 0  }
   0x4   :  { %s2730_s14 = smov 0   ;;  %s2732_s15 = smov 0  }
   0x5   :  { %s2734_s16 = smov 0   ;;  %s2736_s17 = smov 0  }
   0x6   :  { %s2738_s18 = smov 0   ;;  %s2740_s19 = smov 0  }
   0x7   :  { %s2742_s20 = smov 0   ;;  %s2744_s21 = smov 0  }
   0x8   :  { %s2746_s22 = smov 0  }
   0x9 LB: > { %s2110_s23 = sadd.s32 4294967295, %s2703_s22   ;;  %s25_s24 = sadd.s32 1, %s2695_s20  ;;  %s2703_s22 = sphi %s2746_s22, %s13_s22   ;;  %s2699_s21 = sphi %s2744_s21, %s3346_s21   ;;  %s2695_s20 = sphi %s2742_s20, %s3345_s20   ;;  %s2691_s19 = sphi %s2740_s19, %s3344_s19   ;;  %s2687_s18 = sphi %s2738_s18, %s3343_s18   ;;  %s2683_s17 = sphi %s2736_s17, %s3342_s17   ;;  %s2679_s16 = sphi %s2734_s16, %s3341_s16   ;;  %s2675_s15 = sphi %s2732_s15, %s3340_s15   ;;  %s2671_s14 = sphi %s2730_s14, %s3339_s14   ;;  %s2667_s13 = sphi %s2728_s13, %s3338_s13   ;;  %s2663_s12 = sphi %s2726_s12, %s3337_s12  }
   0xa   : > { %p26_p0 = scmp.ge.s32.totalorder %s25_s24, 6  ;;  %s28_s25 = sadd.s32 1, %s2699_s21 }
   0xb   : > { %s41_s26 = sadd.s32 1, %s2683_s17  ;;  %p48_p1 = scmp.ne.s32.totalorder %s2683_s17, %s2679_s16 }
   0xc   : > { %s3348_s24 = smov (%p26_p0, %s25_s24), 0  ;;  %s3350_s25 = smov (!%p26_p0, %s28_s25), %s2699_s21 }
   0xd   : > { %s37_s27 = ssub.s32 %s2695_s20, %s3348_s24  ;;  %p49_p2 = scmp.eq.s32.totalorder %s2703_s22, 0 }
   0xe   : > { %p30_p3 = scmp.ge.s32.totalorder %s3350_s25, 2  ;;  %p39_p4 = scmp.eq.s32.totalorder %s37_s27, 0 }
   0xf   : > { %p2793_p5 = por %p49_p2, %p48_p1  ;;  %s69_s29 = sadd.s32 1, %s2675_s15 }
  0x10   : > { %s3352_s25 = smov (%p30_p3, %s3350_s25), 0  ;;  %p76_p6 = scmp.ne.s32.totalorder %s2675_s15, %s2671_s14 }
  0x11   : > { %3331 = sst [smem:[#allocation6_spill]] %s3352_s25  ;;  %s65_s4 = ssub.s32 %s2699_s21, %s3352_s25 }
  0x12   : > { %s2801_s30 = scalar_select %p39_p4, %s2683_s17, %s41_s26  }
  0x13   : > { %s66_s5 = sor.u32 %s65_s4, %s37_s27  ;;  %p121_p7 = scmp.eq.s32.totalorder %s65_s4, 0 }
  0x14   : > { %p67_p8 = scmp.eq.s32.totalorder %s66_s5, 0  ;;  %p2807_p9 = por %p76_p6, %p49_p2 }
  0x15   : > { %s123_s7 = sadd.s32 1, %s2667_s13  ;;  %p133_p10 = scmp.ne.s32.totalorder %s2667_s13, %s2663_s12 }
  0x16   : > { %s2815_s8 = scalar_select %p67_p8, %s2675_s15, %s69_s29  }
  0x17   : > { %s2818_s9 = scalar_select %p121_p7, %s2667_s13, %s123_s7  }
  0x18   : > { %p134_p11 = scmp.eq.s32.totalorder %s2110_s23, 11  ;;  %p2113_p13 = scmp.ge.s32.totalorder %s2703_s22, 12 }
  0x1a   : > { %p2820_p12 = por %p134_p11, %p133_p10  ;;  %156 = sbr.rel (%p2113_p13) target bundleno = 114 (0x72), region = 16 }
  0x21   : > { %159 = sbr.rel (!%p2793_p5) target bundleno = 56 (0x38), region = 20  ;;  %s161_s11 = sand.u32 (%p2793_p5), 1, %s2683_s17  }
  0x22   : > { %s2261_s26 = smul.u32 (%p2793_p5), 24, %s2695_s20  ;;  %s3334_s0 = sld [smem:[#allocation7_spill]] (%p2793_p5) }
  0x23   : > { %s2337_s27 = smul.u32 (%p2793_p5), 216, %s161_s11 }
  0x25   : > { %s2837_s23 = scalar_lea.vmem (%p2793_p5), [#allocation3], %s2337_s27 }
  0x28   : > { %s2832_s5 = scalar_lea.vmem %s3334_s0, %s2261_s26 }
  0x29   : > { %v182_v0 = vld [vmem:[%s2832_s5] sm:$0xff]  ;;  %v184_v1 = vld [vmem:[%s2832_s5 + $0x8] sm:$0xff]  ;;  %v186_v2 = vld [vmem:[%s2832_s5 + $0x10] sm:$0xff] }
  0x2a   : > { %183 = vst [vmem:[%s2837_s23] sm:$0xff] %v182_v0  ;;  %185 = vst [vmem:[%s2837_s23 + $0x8] sm:$0xff] %v184_v1  ;;  %v188_v3 = vld [vmem:[%s2832_s5 + $0x90] sm:$0xff]  ;;  %v190_v4 = vld [vmem:[%s2832_s5 + $0x98] sm:$0xff] }
  0x2b   : > { %187 = vst [vmem:[%s2837_s23 + $0x10] sm:$0xff] %v186_v2  ;;  %v192_v5 = vld [vmem:[%s2832_s5 + $0xa0] sm:$0xff]  ;;  %189 = vst [vmem:[%s2837_s23 + $0x18] sm:$0xff] %v188_v3  ;;  %v196_v7 = vld [vmem:[%s2832_s5 + $0x128] sm:$0xff] }
  0x2c   : > { %191 = vst [vmem:[%s2837_s23 + $0x20] sm:$0xff] %v190_v4  ;;  %193 = vst [vmem:[%s2837_s23 + $0x28] sm:$0xff] %v192_v5  ;;  %v194_v6 = vld [vmem:[%s2832_s5 + $0x120] sm:$0xff]  ;;  %v198_v8 = vld [vmem:[%s2832_s5 + $0x130] sm:$0xff] }
  0x2d   : > { %195 = vst [vmem:[%s2837_s23 + $0x30] sm:$0xff] %v194_v6  ;;  %197 = vst [vmem:[%s2837_s23 + $0x38] sm:$0xff] %v196_v7  ;;  %v200_v9 = vld [vmem:[%s2832_s5 + $0x1b0] sm:$0xff]  ;;  %v202_v10 = vld [vmem:[%s2832_s5 + $0x1b8] sm:$0xff] }
  0x2e   : > { %199 = vst [vmem:[%s2837_s23 + $0x40] sm:$0xff] %v198_v8  ;;  %v204_v11 = vld [vmem:[%s2832_s5 + $0x1c0] sm:$0xff]  ;;  %201 = vst [vmem:[%s2837_s23 + $0x48] sm:$0xff] %v200_v9  ;;  %v208_v13 = vld [vmem:[%s2832_s5 + $0x248] sm:$0xff] }
  0x2f   : > { %203 = vst [vmem:[%s2837_s23 + $0x50] sm:$0xff] %v202_v10  ;;  %205 = vst [vmem:[%s2837_s23 + $0x58] sm:$0xff] %v204_v11  ;;  %v206_v12 = vld [vmem:[%s2832_s5 + $0x240] sm:$0xff]  ;;  %v210_v14 = vld [vmem:[%s2832_s5 + $0x250] sm:$0xff] }
  0x30   : > { %207 = vst [vmem:[%s2837_s23 + $0x60] sm:$0xff] %v206_v12  ;;  %209 = vst [vmem:[%s2837_s23 + $0x68] sm:$0xff] %v208_v13  ;;  %v212_v15 = vld [vmem:[%s2832_s5 + $0x2d0] sm:$0xff]  ;;  %v214_v16 = vld [vmem:[%s2832_s5 + $0x2d8] sm:$0xff] }
  0x31   : > { %211 = vst [vmem:[%s2837_s23 + $0x70] sm:$0xff] %v210_v14  ;;  %v216_v17 = vld [vmem:[%s2832_s5 + $0x2e0] sm:$0xff]  ;;  %213 = vst [vmem:[%s2837_s23 + $0x78] sm:$0xff] %v212_v15  ;;  %v220_v19 = vld [vmem:[%s2832_s5 + $0x368] sm:$0xff] }
  0x32   : > { %215 = vst [vmem:[%s2837_s23 + $0x80] sm:$0xff] %v214_v16  ;;  %217 = vst [vmem:[%s2837_s23 + $0x88] sm:$0xff] %v216_v17  ;;  %v218_v18 = vld [vmem:[%s2832_s5 + $0x360] sm:$0xff]  ;;  %v222_v20 = vld [vmem:[%s2832_s5 + $0x370] sm:$0xff] }
  0x33   : > { %219 = vst [vmem:[%s2837_s23 + $0x90] sm:$0xff] %v218_v18  ;;  %221 = vst [vmem:[%s2837_s23 + $0x98] sm:$0xff] %v220_v19  ;;  %v224_v21 = vld [vmem:[%s2832_s5 + $0x3f0] sm:$0xff]  ;;  %v226_v22 = vld [vmem:[%s2832_s5 + $0x3f8] sm:$0xff] }
  0x34   : > { %223 = vst [vmem:[%s2837_s23 + $0xa0] sm:$0xff] %v222_v20  ;;  %v228_v23 = vld [vmem:[%s2832_s5 + $0x400] sm:$0xff]  ;;  %225 = vst [vmem:[%s2837_s23 + $0xa8] sm:$0xff] %v224_v21  ;;  %v232_v25 = vld [vmem:[%s2832_s5 + $0x488] sm:$0xff] }
  0x35   : > { %227 = vst [vmem:[%s2837_s23 + $0xb0] sm:$0xff] %v226_v22  ;;  %229 = vst [vmem:[%s2837_s23 + $0xb8] sm:$0xff] %v228_v23  ;;  %v230_v24 = vld [vmem:[%s2832_s5 + $0x480] sm:$0xff]  ;;  %v234_v26 = vld [vmem:[%s2832_s5 + $0x490] sm:$0xff] }
  0x36   : > { %231 = vst [vmem:[%s2837_s23 + $0xc0] sm:$0xff] %v230_v24  ;;  %233 = vst [vmem:[%s2837_s23 + $0xc8] sm:$0xff] %v232_v25 }
  0x37   : > { %235 = vst [vmem:[%s2837_s23 + $0xd0] sm:$0xff] %v234_v26 }
  0x38 PF: > { %241 = sbr.rel (!%p2807_p9) target bundleno = 114 (0x72), region = 43  ;;  %s243_s28 = sand.u32 (%p2807_p9), 1, %s2675_s15  }
  0x39   : > { %s2338_s7 = smul.u32 (%p2807_p9), 768, %s243_s28  ;;  %s2115_s11 = sshll.u32 (%p2807_p9), %s2699_s21, 1 }
  0x3a   : > { %s2262_s26 = smul.u32 (%p2807_p9), 384, %s2695_s20  ;;  %s3335_s1 = sld [smem:[#allocation8_spill]] (%p2807_p9) }
  0x3b   : > { %s2903_s6 = scalar_lea.vmem (%p2807_p9), [#allocation4], %s2338_s7 }
  0x3c   : > { %s249_s27 = sadd.s32 (%p2807_p9), %s2262_s26, %s2115_s11 }
  0x3d   : > { %s2117_s29 = sshll.u32 (%p2807_p9), %s249_s27, 2 }
  0x40   : > { %s2898_s5 = scalar_lea.vmem %s3335_s1, %s2117_s29 }
  0x41   : > { %v469_v27 = vld [vmem:[%s2898_s5] sm:$0xff]  ;;  %v471_v28 = vld [vmem:[%s2898_s5 + $0x10] sm:$0xff] }
  0x42   : > { %v473_v29 = vld [vmem:[%s2898_s5 + $0x20] sm:$0xff]  ;;  %470 = vst [vmem:[%s2903_s6] sm:$0xff] %v469_v27  ;;  %472 = vst [vmem:[%s2903_s6 + $0x8] sm:$0xff] %v471_v28  ;;  %v475_v30 = vld [vmem:[%s2898_s5 + $0x30] sm:$0xff] }
  0x43   : > { %474 = vst [vmem:[%s2903_s6 + $0x10] sm:$0xff] %v473_v29  ;;  %v477_v31 = vld [vmem:[%s2898_s5 + $0x40] sm:$0xff]  ;;  %v479_v32 = vld [vmem:[%s2898_s5 + $0x50] sm:$0xff]  ;;  %476 = vst [vmem:[%s2903_s6 + $0x18] sm:$0xff] %v475_v30 }
  0x44   : > { %478 = vst [vmem:[%s2903_s6 + $0x20] sm:$0xff] %v477_v31  ;;  %480 = vst [vmem:[%s2903_s6 + $0x28] sm:$0xff] %v479_v32  ;;  %v481_v33 = vld [vmem:[%s2898_s5 + $0x60] sm:$0xff]  ;;  %v483_v34 = vld [vmem:[%s2898_s5 + $0x70] sm:$0xff] }
  0x45   : > { %v485_v35 = vld [vmem:[%s2898_s5 + $0x80] sm:$0xff]  ;;  %482 = vst [vmem:[%s2903_s6 + $0x30] sm:$0xff] %v481_v33  ;;  %484 = vst [vmem:[%s2903_s6 + $0x38] sm:$0xff] %v483_v34  ;;  %v487_v36 = vld [vmem:[%s2898_s5 + $0x90] sm:$0xff] }
  0x46   : > { %486 = vst [vmem:[%s2903_s6 + $0x40] sm:$0xff] %v485_v35  ;;  %v489_v37 = vld [vmem:[%s2898_s5 + $0xa0] sm:$0xff]  ;;  %v491_v38 = vld [vmem:[%s2898_s5 + $0xb0] sm:$0xff]  ;;  %488 = vst [vmem:[%s2903_s6 + $0x48] sm:$0xff] %v487_v36 }
  0x47   : > { %490 = vst [vmem:[%s2903_s6 + $0x50] sm:$0xff] %v489_v37  ;;  %492 = vst [vmem:[%s2903_s6 + $0x58] sm:$0xff] %v491_v38  ;;  %v493_v39 = vld [vmem:[%s2898_s5 + $0xc0] sm:$0xff]  ;;  %v495_v40 = vld [vmem:[%s2898_s5 + $0xd0] sm:$0xff] }
  0x48   : > { %v497_v41 = vld [vmem:[%s2898_s5 + $0xe0] sm:$0xff]  ;;  %494 = vst [vmem:[%s2903_s6 + $0x60] sm:$0xff] %v493_v39  ;;  %496 = vst [vmem:[%s2903_s6 + $0x68] sm:$0xff] %v495_v40  ;;  %v499_v42 = vld [vmem:[%s2898_s5 + $0xf0] sm:$0xff] }
  0x49   : > { %498 = vst [vmem:[%s2903_s6 + $0x70] sm:$0xff] %v497_v41  ;;  %v501_v43 = vld [vmem:[%s2898_s5 + $0x100] sm:$0xff]  ;;  %v503_v44 = vld [vmem:[%s2898_s5 + $0x110] sm:$0xff]  ;;  %500 = vst [vmem:[%s2903_s6 + $0x78] sm:$0xff] %v499_v42 }
  0x4a   : > { %502 = vst [vmem:[%s2903_s6 + $0x80] sm:$0xff] %v501_v43  ;;  %504 = vst [vmem:[%s2903_s6 + $0x88] sm:$0xff] %v503_v44  ;;  %v505_v45 = vld [vmem:[%s2898_s5 + $0x120] sm:$0xff]  ;;  %v507_v46 = vld [vmem:[%s2898_s5 + $0x130] sm:$0xff] }
  0x4b   : > { %v509_v47 = vld [vmem:[%s2898_s5 + $0x140] sm:$0xff]  ;;  %506 = vst [vmem:[%s2903_s6 + $0x90] sm:$0xff] %v505_v45  ;;  %508 = vst [vmem:[%s2903_s6 + $0x98] sm:$0xff] %v507_v46  ;;  %v511_v48 = vld [vmem:[%s2898_s5 + $0x150] sm:$0xff] }
  0x4c   : > { %510 = vst [vmem:[%s2903_s6 + $0xa0] sm:$0xff] %v509_v47  ;;  %v513_v49 = vld [vmem:[%s2898_s5 + $0x160] sm:$0xff]  ;;  %v515_v50 = vld [vmem:[%s2898_s5 + $0x170] sm:$0xff]  ;;  %512 = vst [vmem:[%s2903_s6 + $0xa8] sm:$0xff] %v511_v48 }
  0x4d   : > { %514 = vst [vmem:[%s2903_s6 + $0xb0] sm:$0xff] %v513_v49  ;;  %516 = vst [vmem:[%s2903_s6 + $0xb8] sm:$0xff] %v515_v50  ;;  %v517_v51 = vld [vmem:[%s2898_s5 + $0x180] sm:$0xff]  ;;  %v519_v52 = vld [vmem:[%s2898_s5 + $0x190] sm:$0xff] }
  0x4e   : > { %v521_v53 = vld [vmem:[%s2898_s5 + $0x1a0] sm:$0xff]  ;;  %518 = vst [vmem:[%s2903_s6 + $0xc0] sm:$0xff] %v517_v51  ;;  %520 = vst [vmem:[%s2903_s6 + $0xc8] sm:$0xff] %v519_v52  ;;  %v523_v54 = vld [vmem:[%s2898_s5 + $0x1b0] sm:$0xff] }
  0x4f   : > { %522 = vst [vmem:[%s2903_s6 + $0xd0] sm:$0xff] %v521_v53  ;;  %v525_v55 = vld [vmem:[%s2898_s5 + $0x1c0] sm:$0xff]  ;;  %v527_v56 = vld [vmem:[%s2898_s5 + $0x1d0] sm:$0xff]  ;;  %524 = vst [vmem:[%s2903_s6 + $0xd8] sm:$0xff] %v523_v54 }
  0x50   : > { %526 = vst [vmem:[%s2903_s6 + $0xe0] sm:$0xff] %v525_v55  ;;  %528 = vst [vmem:[%s2903_s6 + $0xe8] sm:$0xff] %v527_v56  ;;  %v529_v57 = vld [vmem:[%s2898_s5 + $0x1e0] sm:$0xff]  ;;  %v531_v58 = vld [vmem:[%s2898_s5 + $0x1f0] sm:$0xff] }
  0x51   : > { %v533_v59 = vld [vmem:[%s2898_s5 + $0x200] sm:$0xff]  ;;  %530 = vst [vmem:[%s2903_s6 + $0xf0] sm:$0xff] %v529_v57  ;;  %532 = vst [vmem:[%s2903_s6 + $0xf8] sm:$0xff] %v531_v58  ;;  %v535_v60 = vld [vmem:[%s2898_s5 + $0x210] sm:$0xff] }
  0x52   : > { %534 = vst [vmem:[%s2903_s6 + $0x100] sm:$0xff] %v533_v59  ;;  %v537_v61 = vld [vmem:[%s2898_s5 + $0x220] sm:$0xff]  ;;  %v539_v62 = vld [vmem:[%s2898_s5 + $0x230] sm:$0xff]  ;;  %536 = vst [vmem:[%s2903_s6 + $0x108] sm:$0xff] %v535_v60 }
  0x53   : > { %538 = vst [vmem:[%s2903_s6 + $0x110] sm:$0xff] %v537_v61  ;;  %540 = vst [vmem:[%s2903_s6 + $0x118] sm:$0xff] %v539_v62  ;;  %v541_v63 = vld [vmem:[%s2898_s5 + $0x240] sm:$0xff]  ;;  %v543_v0 = vld [vmem:[%s2898_s5 + $0x250] sm:$0xff] }
  0x54   : > { %v545_v1 = vld [vmem:[%s2898_s5 + $0x260] sm:$0xff]  ;;  %542 = vst [vmem:[%s2903_s6 + $0x120] sm:$0xff] %v541_v63  ;;  %544 = vst [vmem:[%s2903_s6 + $0x128] sm:$0xff] %v543_v0  ;;  %v547_v2 = vld [vmem:[%s2898_s5 + $0x270] sm:$0xff] }
  0x55   : > { %546 = vst [vmem:[%s2903_s6 + $0x130] sm:$0xff] %v545_v1  ;;  %v549_v3 = vld [vmem:[%s2898_s5 + $0x280] sm:$0xff]  ;;  %v551_v4 = vld [vmem:[%s2898_s5 + $0x290] sm:$0xff]  ;;  %548 = vst [vmem:[%s2903_s6 + $0x138] sm:$0xff] %v547_v2 }
  0x56   : > { %550 = vst [vmem:[%s2903_s6 + $0x140] sm:$0xff] %v549_v3  ;;  %552 = vst [vmem:[%s2903_s6 + $0x148] sm:$0xff] %v551_v4  ;;  %v553_v5 = vld [vmem:[%s2898_s5 + $0x2a0] sm:$0xff]  ;;  %v555_v6 = vld [vmem:[%s2898_s5 + $0x2b0] sm:$0xff] }
  0x57   : > { %v557_v7 = vld [vmem:[%s2898_s5 + $0x2c0] sm:$0xff]  ;;  %554 = vst [vmem:[%s2903_s6 + $0x150] sm:$0xff] %v553_v5  ;;  %556 = vst [vmem:[%s2903_s6 + $0x158] sm:$0xff] %v555_v6  ;;  %v559_v8 = vld [vmem:[%s2898_s5 + $0x2d0] sm:$0xff] }
  0x58   : > { %558 = vst [vmem:[%s2903_s6 + $0x160] sm:$0xff] %v557_v7  ;;  %v561_v9 = vld [vmem:[%s2898_s5 + $0x2e0] sm:$0xff]  ;;  %v563_v10 = vld [vmem:[%s2898_s5 + $0x2f0] sm:$0xff]  ;;  %560 = vst [vmem:[%s2903_s6 + $0x168] sm:$0xff] %v559_v8 }
  0x59   : > { %562 = vst [vmem:[%s2903_s6 + $0x170] sm:$0xff] %v561_v9  ;;  %564 = vst [vmem:[%s2903_s6 + $0x178] sm:$0xff] %v563_v10  ;;  %v565_v11 = vld [vmem:[%s2898_s5 + $0x300] sm:$0xff]  ;;  %v567_v12 = vld [vmem:[%s2898_s5 + $0x310] sm:$0xff] }
  0x5a   : > { %v569_v13 = vld [vmem:[%s2898_s5 + $0x320] sm:$0xff]  ;;  %566 = vst [vmem:[%s2903_s6 + $0x180] sm:$0xff] %v565_v11  ;;  %568 = vst [vmem:[%s2903_s6 + $0x188] sm:$0xff] %v567_v12  ;;  %v571_v14 = vld [vmem:[%s2898_s5 + $0x330] sm:$0xff] }
  0x5b   : > { %570 = vst [vmem:[%s2903_s6 + $0x190] sm:$0xff] %v569_v13  ;;  %v573_v15 = vld [vmem:[%s2898_s5 + $0x340] sm:$0xff]  ;;  %v575_v16 = vld [vmem:[%s2898_s5 + $0x350] sm:$0xff]  ;;  %572 = vst [vmem:[%s2903_s6 + $0x198] sm:$0xff] %v571_v14 }
  0x5c   : > { %574 = vst [vmem:[%s2903_s6 + $0x1a0] sm:$0xff] %v573_v15  ;;  %576 = vst [vmem:[%s2903_s6 + $0x1a8] sm:$0xff] %v575_v16  ;;  %v577_v17 = vld [vmem:[%s2898_s5 + $0x360] sm:$0xff]  ;;  %v579_v18 = vld [vmem:[%s2898_s5 + $0x370] sm:$0xff] }
  0x5d   : > { %v581_v19 = vld [vmem:[%s2898_s5 + $0x380] sm:$0xff]  ;;  %578 = vst [vmem:[%s2903_s6 + $0x1b0] sm:$0xff] %v577_v17  ;;  %580 = vst [vmem:[%s2903_s6 + $0x1b8] sm:$0xff] %v579_v18  ;;  %v583_v20 = vld [vmem:[%s2898_s5 + $0x390] sm:$0xff] }
  0x5e   : > { %582 = vst [vmem:[%s2903_s6 + $0x1c0] sm:$0xff] %v581_v19  ;;  %v585_v21 = vld [vmem:[%s2898_s5 + $0x3a0] sm:$0xff]  ;;  %v587_v22 = vld [vmem:[%s2898_s5 + $0x3b0] sm:$0xff]  ;;  %584 = vst [vmem:[%s2903_s6 + $0x1c8] sm:$0xff] %v583_v20 }
  0x5f   : > { %586 = vst [vmem:[%s2903_s6 + $0x1d0] sm:$0xff] %v585_v21  ;;  %588 = vst [vmem:[%s2903_s6 + $0x1d8] sm:$0xff] %v587_v22  ;;  %v589_v23 = vld [vmem:[%s2898_s5 + $0x3c0] sm:$0xff]  ;;  %v591_v24 = vld [vmem:[%s2898_s5 + $0x3d0] sm:$0xff] }
  0x60   : > { %v593_v25 = vld [vmem:[%s2898_s5 + $0x3e0] sm:$0xff]  ;;  %590 = vst [vmem:[%s2903_s6 + $0x1e0] sm:$0xff] %v589_v23  ;;  %592 = vst [vmem:[%s2903_s6 + $0x1e8] sm:$0xff] %v591_v24  ;;  %v595_v26 = vld [vmem:[%s2898_s5 + $0x3f0] sm:$0xff] }
  0x61   : > { %594 = vst [vmem:[%s2903_s6 + $0x1f0] sm:$0xff] %v593_v25  ;;  %v597_v27 = vld [vmem:[%s2898_s5 + $0x400] sm:$0xff]  ;;  %v599_v28 = vld [vmem:[%s2898_s5 + $0x410] sm:$0xff]  ;;  %596 = vst [vmem:[%s2903_s6 + $0x1f8] sm:$0xff] %v595_v26 }
  0x62   : > { %598 = vst [vmem:[%s2903_s6 + $0x200] sm:$0xff] %v597_v27  ;;  %600 = vst [vmem:[%s2903_s6 + $0x208] sm:$0xff] %v599_v28  ;;  %v601_v29 = vld [vmem:[%s2898_s5 + $0x420] sm:$0xff]  ;;  %v603_v30 = vld [vmem:[%s2898_s5 + $0x430] sm:$0xff] }
  0x63   : > { %v605_v31 = vld [vmem:[%s2898_s5 + $0x440] sm:$0xff]  ;;  %602 = vst [vmem:[%s2903_s6 + $0x210] sm:$0xff] %v601_v29  ;;  %604 = vst [vmem:[%s2903_s6 + $0x218] sm:$0xff] %v603_v30  ;;  %v607_v32 = vld [vmem:[%s2898_s5 + $0x450] sm:$0xff] }
  0x64   : > { %606 = vst [vmem:[%s2903_s6 + $0x220] sm:$0xff] %v605_v31  ;;  %v609_v33 = vld [vmem:[%s2898_s5 + $0x460] sm:$0xff]  ;;  %v611_v34 = vld [vmem:[%s2898_s5 + $0x470] sm:$0xff]  ;;  %608 = vst [vmem:[%s2903_s6 + $0x228] sm:$0xff] %v607_v32 }
  0x65   : > { %610 = vst [vmem:[%s2903_s6 + $0x230] sm:$0xff] %v609_v33  ;;  %612 = vst [vmem:[%s2903_s6 + $0x238] sm:$0xff] %v611_v34  ;;  %v613_v35 = vld [vmem:[%s2898_s5 + $0x480] sm:$0xff]  ;;  %v615_v36 = vld [vmem:[%s2898_s5 + $0x490] sm:$0xff] }
  0x66   : > { %v617_v37 = vld [vmem:[%s2898_s5 + $0x4a0] sm:$0xff]  ;;  %614 = vst [vmem:[%s2903_s6 + $0x240] sm:$0xff] %v613_v35  ;;  %616 = vst [vmem:[%s2903_s6 + $0x248] sm:$0xff] %v615_v36  ;;  %v619_v38 = vld [vmem:[%s2898_s5 + $0x4b0] sm:$0xff] }
  0x67   : > { %618 = vst [vmem:[%s2903_s6 + $0x250] sm:$0xff] %v617_v37  ;;  %v621_v39 = vld [vmem:[%s2898_s5 + $0x4c0] sm:$0xff]  ;;  %v623_v40 = vld [vmem:[%s2898_s5 + $0x4d0] sm:$0xff]  ;;  %620 = vst [vmem:[%s2903_s6 + $0x258] sm:$0xff] %v619_v38 }
  0x68   : > { %622 = vst [vmem:[%s2903_s6 + $0x260] sm:$0xff] %v621_v39  ;;  %624 = vst [vmem:[%s2903_s6 + $0x268] sm:$0xff] %v623_v40  ;;  %v625_v41 = vld [vmem:[%s2898_s5 + $0x4e0] sm:$0xff]  ;;  %v627_v42 = vld [vmem:[%s2898_s5 + $0x4f0] sm:$0xff] }
  0x69   : > { %v629_v43 = vld [vmem:[%s2898_s5 + $0x500] sm:$0xff]  ;;  %626 = vst [vmem:[%s2903_s6 + $0x270] sm:$0xff] %v625_v41  ;;  %628 = vst [vmem:[%s2903_s6 + $0x278] sm:$0xff] %v627_v42  ;;  %v631_v44 = vld [vmem:[%s2898_s5 + $0x510] sm:$0xff] }
  0x6a   : > { %630 = vst [vmem:[%s2903_s6 + $0x280] sm:$0xff] %v629_v43  ;;  %v633_v45 = vld [vmem:[%s2898_s5 + $0x520] sm:$0xff]  ;;  %v635_v46 = vld [vmem:[%s2898_s5 + $0x530] sm:$0xff]  ;;  %632 = vst [vmem:[%s2903_s6 + $0x288] sm:$0xff] %v631_v44 }
  0x6b   : > { %634 = vst [vmem:[%s2903_s6 + $0x290] sm:$0xff] %v633_v45  ;;  %636 = vst [vmem:[%s2903_s6 + $0x298] sm:$0xff] %v635_v46  ;;  %v637_v47 = vld [vmem:[%s2898_s5 + $0x540] sm:$0xff]  ;;  %v639_v48 = vld [vmem:[%s2898_s5 + $0x550] sm:$0xff] }
  0x6c   : > { %v641_v49 = vld [vmem:[%s2898_s5 + $0x560] sm:$0xff]  ;;  %638 = vst [vmem:[%s2903_s6 + $0x2a0] sm:$0xff] %v637_v47  ;;  %640 = vst [vmem:[%s2903_s6 + $0x2a8] sm:$0xff] %v639_v48  ;;  %v643_v50 = vld [vmem:[%s2898_s5 + $0x570] sm:$0xff] }
  0x6d   : > { %642 = vst [vmem:[%s2903_s6 + $0x2b0] sm:$0xff] %v641_v49  ;;  %v645_v51 = vld [vmem:[%s2898_s5 + $0x580] sm:$0xff]  ;;  %v647_v52 = vld [vmem:[%s2898_s5 + $0x590] sm:$0xff]  ;;  %644 = vst [vmem:[%s2903_s6 + $0x2b8] sm:$0xff] %v643_v50 }
  0x6e   : > { %646 = vst [vmem:[%s2903_s6 + $0x2c0] sm:$0xff] %v645_v51  ;;  %648 = vst [vmem:[%s2903_s6 + $0x2c8] sm:$0xff] %v647_v52  ;;  %v649_v53 = vld [vmem:[%s2898_s5 + $0x5a0] sm:$0xff]  ;;  %v651_v54 = vld [vmem:[%s2898_s5 + $0x5b0] sm:$0xff] }
  0x6f   : > { %v653_v55 = vld [vmem:[%s2898_s5 + $0x5c0] sm:$0xff]  ;;  %650 = vst [vmem:[%s2903_s6 + $0x2d0] sm:$0xff] %v649_v53  ;;  %652 = vst [vmem:[%s2903_s6 + $0x2d8] sm:$0xff] %v651_v54  ;;  %v655_v56 = vld [vmem:[%s2898_s5 + $0x5d0] sm:$0xff] }
  0x70   : > { %654 = vst [vmem:[%s2903_s6 + $0x2e0] sm:$0xff] %v653_v55  ;;  %v657_v57 = vld [vmem:[%s2898_s5 + $0x5e0] sm:$0xff]  ;;  %v659_v58 = vld [vmem:[%s2898_s5 + $0x5f0] sm:$0xff]  ;;  %656 = vst [vmem:[%s2903_s6 + $0x2e8] sm:$0xff] %v655_v56 }
  0x71   : > { %658 = vst [vmem:[%s2903_s6 + $0x2f0] sm:$0xff] %v657_v57  ;;  %660 = vst [vmem:[%s2903_s6 + $0x2f8] sm:$0xff] %v659_v58 }
  0x72 PF: > { %p2118_p0 = scmp.ge.s32.totalorder %s2703_s22, 1  ;;  %p673_p1 = scmp.lt.s32.totalorder %s2703_s22, 13 }
  0x74   : > { %p674_p2 = pnand %p2118_p0, %p673_p1 }
  0x75   : > { %s680_s0 = sand.u32 (!%p674_p2), 1, %s2679_s16   ;;  %s687_s23 = sand.u32 (!%p674_p2), 1, %s2671_s14  }
  0x76   : > { %677 = sbr.rel (%p674_p2) target bundleno = 526 (0x20e), region = 85  ;;  %s714_s7 = sand.u32 (!%p674_p2), 1, %s2663_s12  }
  0x77   : > { %s2339_s28 = smul.u32 (!%p674_p2), 216, %s680_s0  ;;  %s2119_s26 = sshll.u32 (!%p674_p2), %s2691_s19, 1 }
  0x78   : > { %s2340_s11 = smul.u32 (!%p674_p2), 768, %s687_s23  ;;  %p722_p3 = scmp.lt.s32.totalorder (!%p674_p2), %s2119_s26, 3 }
  0x79   : > { %s2341_s27 = smul.u32 (!%p674_p2), 72, %s714_s7  ;;  %s3106_s6 = scalar_lea.vmem (!%p674_p2), [#allocation3], %s2339_s28 }
  0x7a   : > { %s3108_s1 = scalar_lea.vmem (!%p674_p2), [#allocation4], %s2340_s11  ;;  %p2120_p4 = scmp.ne.s32.totalorder (!%p674_p2), %s2687_s18, 0 }
  0x7b   : > { %s3110_s25 = scalar_lea.vmem (!%p674_p2), [#allocation5], %s2341_s27 }
  0x7d   : > { %s3354_s26 = smov (!%p722_p3, %s2119_s26), 3  ;;  %731 = sbr.rel (%p2120_p4) target bundleno = 136 (0x88), region = 97 }
  0x7e   : > { %s724_s5 = scalar_lea.vmem %s3325_s2, %s3354_s26  ;;  %v2705_v59 = vmov (!%p2120_p4), 0.0  }
  0x7f   : > { %732 = vst [vmem:[#allocation2] sm:$0xff] (!%p2120_p4), %v2705_v59  ;;  %733 = vst [vmem:[#allocation2 + $0x8] sm:$0xff] (!%p2120_p4), %v2705_v59 }
  0x80   : > { %734 = vst [vmem:[#allocation2 + $0x10] sm:$0xff] (!%p2120_p4), %v2705_v59  ;;  %735 = vst [vmem:[#allocation2 + $0x18] sm:$0xff] (!%p2120_p4), %v2705_v59 }
  0x81   : > { %736 = vst [vmem:[#allocation2 + $0x20] sm:$0xff] (!%p2120_p4), %v2705_v59  ;;  %737 = vst [vmem:[#allocation2 + $0x28] sm:$0xff] (!%p2120_p4), %v2705_v59 }
  0x82   : > { %738 = vst [vmem:[#allocation2 + $0x30] sm:$0xff] (!%p2120_p4), %v2705_v59  ;;  %739 = vst [vmem:[#allocation2 + $0x38] sm:$0xff] (!%p2120_p4), %v2705_v59 }
  0x83   : > { %740 = vst [vmem:[#allocation2 + $0x40] sm:$0xff] (!%p2120_p4), %v2705_v59  ;;  %741 = vst [vmem:[#allocation2 + $0x48] sm:$0xff] (!%p2120_p4), %v2705_v59 }
  0x84   : > { %742 = vst [vmem:[#allocation2 + $0x50] sm:$0xff] %v2705_v59  ;;  %743 = vst [vmem:[#allocation2 + $0x58] sm:$0xff] %v2705_v59 }
  0x85   : > { %744 = vst [vmem:[#allocation2 + $0x60] sm:$0xff] %v2705_v59  ;;  %745 = vst [vmem:[#allocation2 + $0x68] sm:$0xff] %v2705_v59 }
  0x86   : > { %746 = vst [vmem:[#allocation2 + $0x70] sm:$0xff] %v2705_v59  ;;  %747 = vst [vmem:[#allocation2 + $0x78] sm:$0xff] %v2705_v59 }
  0x87   : > { %748 = vst [vmem:[#allocation2 + $0x80] sm:$0xff] %v2705_v59  ;;  %749 = vst [vmem:[#allocation2 + $0x88] sm:$0xff] %v2705_v59 }
  0x88 PF: > { %v2431_v60 = vld [vmem:[%s3108_s1 + $0x4] ss:$8 sps:$4 sm:$0xff]   ;;  %v2435_v62 = vld [vmem:[%s3108_s1] ss:$8 sps:$4 sm:$0xff]   ;;  %v2437_v0 = vld [vmem:[%s3108_s1 + $0x14] ss:$8 sps:$4 sm:$0xff]  }
  0x89   : > { %v2433_v61 = vld [vmem:[%s3108_s1 + $0x104] ss:$8 sps:$4 sm:$0xff]   ;;  %1512 = vmatprep.subr.bf16.mxu1 %v2431_v60  ;;  %v2436_v63 = vld [vmem:[%s3108_s1 + $0x100] ss:$8 sps:$4 sm:$0xff]   ;;  %v2439_v1 = vld [vmem:[%s3108_s1 + $0x114] ss:$8 sps:$4 sm:$0xff]  }
  0x8a   : > { %1593 = vmatprep.subr.bf16.mxu0 %v2433_v61  ;;  %1513 = vmatpush1.bf16.msra.mxu1 %v2435_v62  ;;  %v2441_v2 = vld [vmem:[%s3108_s1 + $0x10] ss:$8 sps:$4 sm:$0xff]   ;;  %v2443_v4 = vld [vmem:[%s3108_s1 + $0x24] ss:$8 sps:$4 sm:$0xff]   ;;  %v2447_v6 = vld [vmem:[%s3108_s1 + $0x20] ss:$8 sps:$4 sm:$0xff]  }
  0x8b   : > { %1594 = vmatpush1.bf16.msra.mxu0 %v2436_v63  ;;  %1514 = vmatprep.subr.bf16.mxu1 %v2437_v0  ;;  %v2442_v3 = vld [vmem:[%s3108_s1 + $0x110] ss:$8 sps:$4 sm:$0xff]   ;;  %v2445_v5 = vld [vmem:[%s3108_s1 + $0x124] ss:$8 sps:$4 sm:$0xff]   ;;  %v2448_v7 = vld [vmem:[%s3108_s1 + $0x120] ss:$8 sps:$4 sm:$0xff]  }
  0x8c   : > { %1595 = vmatprep.subr.bf16.mxu0 %v2439_v1  ;;  %v2449_v8 = vld [vmem:[%s3108_s1 + $0x34] ss:$8 sps:$4 sm:$0xff]   ;;  %v2453_v10 = vld [vmem:[%s3108_s1 + $0x30] ss:$8 sps:$4 sm:$0xff]   ;;  %v2455_v12 = vld [vmem:[%s3108_s1 + $0x44] ss:$8 sps:$4 sm:$0xff]  }
  0x8d   : > { %v2451_v9 = vld [vmem:[%s3108_s1 + $0x134] ss:$8 sps:$4 sm:$0xff]   ;;  %v2454_v11 = vld [vmem:[%s3108_s1 + $0x130] ss:$8 sps:$4 sm:$0xff]   ;;  %v2457_v13 = vld [vmem:[%s3108_s1 + $0x144] ss:$8 sps:$4 sm:$0xff]  }
  0x8e   : > { %1515 = vmatpush1.bf16.msra.mxu1 %v2441_v2  ;;  %v2459_v14 = vld [vmem:[%s3108_s1 + $0x40] ss:$8 sps:$4 sm:$0xff]   ;;  %v2461_v16 = vld [vmem:[%s3108_s1 + $0x54] ss:$8 sps:$4 sm:$0xff]   ;;  %v2465_v18 = vld [vmem:[%s3108_s1 + $0x50] ss:$8 sps:$4 sm:$0xff]  }
  0x8f   : > { %1596 = vmatpush1.bf16.msra.mxu0 %v2442_v3  ;;  %1516 = vmatprep.subr.bf16.mxu1 %v2443_v4  ;;  %v2460_v15 = vld [vmem:[%s3108_s1 + $0x140] ss:$8 sps:$4 sm:$0xff]   ;;  %v2463_v17 = vld [vmem:[%s3108_s1 + $0x154] ss:$8 sps:$4 sm:$0xff]   ;;  %v2466_v19 = vld [vmem:[%s3108_s1 + $0x150] ss:$8 sps:$4 sm:$0xff]  }
  0x90   : > { %1597 = vmatprep.subr.bf16.mxu0 %v2445_v5  ;;  %v2467_v20 = vld [vmem:[%s3108_s1 + $0x64] ss:$8 sps:$4 sm:$0xff]   ;;  %v2471_v22 = vld [vmem:[%s3108_s1 + $0x60] ss:$8 sps:$4 sm:$0xff]   ;;  %v2473_v24 = vld [vmem:[%s3108_s1 + $0x74] ss:$8 sps:$4 sm:$0xff]  }
  0x91   : > { %v2469_v21 = vld [vmem:[%s3108_s1 + $0x164] ss:$8 sps:$4 sm:$0xff]   ;;  %v2472_v23 = vld [vmem:[%s3108_s1 + $0x160] ss:$8 sps:$4 sm:$0xff]   ;;  %v2475_v25 = vld [vmem:[%s3108_s1 + $0x174] ss:$8 sps:$4 sm:$0xff]  }
  0x92   : > { %1517 = vmatpush1.bf16.msra.mxu1 %v2447_v6  ;;  %v2477_v26 = vld [vmem:[%s3108_s1 + $0x70] ss:$8 sps:$4 sm:$0xff]   ;;  %v2479_v28 = vld [vmem:[%s3108_s1 + $0x84] ss:$8 sps:$4 sm:$0xff]   ;;  %v2483_v30 = vld [vmem:[%s3108_s1 + $0x80] ss:$8 sps:$4 sm:$0xff]  }
  0x93   : > { %1598 = vmatpush1.bf16.msra.mxu0 %v2448_v7  ;;  %1518 = vmatprep.subr.bf16.mxu1 %v2449_v8  ;;  %v2478_v27 = vld [vmem:[%s3108_s1 + $0x170] ss:$8 sps:$4 sm:$0xff]   ;;  %v2481_v29 = vld [vmem:[%s3108_s1 + $0x184] ss:$8 sps:$4 sm:$0xff]   ;;  %v2484_v31 = vld [vmem:[%s3108_s1 + $0x180] ss:$8 sps:$4 sm:$0xff]  }
  0x94   : > { %1599 = vmatprep.subr.bf16.mxu0 %v2451_v9  ;;  %v2485_v32 = vld [vmem:[%s3108_s1 + $0x94] ss:$8 sps:$4 sm:$0xff]   ;;  %v2489_v34 = vld [vmem:[%s3108_s1 + $0x90] ss:$8 sps:$4 sm:$0xff]   ;;  %v2491_v36 = vld [vmem:[%s3108_s1 + $0xa4] ss:$8 sps:$4 sm:$0xff]  }
  0x95   : > { %v2487_v33 = vld [vmem:[%s3108_s1 + $0x194] ss:$8 sps:$4 sm:$0xff]   ;;  %v2490_v35 = vld [vmem:[%s3108_s1 + $0x190] ss:$8 sps:$4 sm:$0xff]   ;;  %v2493_v37 = vld [vmem:[%s3108_s1 + $0x1a4] ss:$8 sps:$4 sm:$0xff]  }
  0x96   : > { %1519 = vmatpush1.bf16.msra.mxu1 %v2453_v10  ;;  %v2495_v38 = vld [vmem:[%s3108_s1 + $0xa0] ss:$8 sps:$4 sm:$0xff]   ;;  %v2497_v40 = vld [vmem:[%s3108_s1 + $0xb4] ss:$8 sps:$4 sm:$0xff]   ;;  %v2501_v42 = vld [vmem:[%s3108_s1 + $0xb0] ss:$8 sps:$4 sm:$0xff]  }
  0x97   : > { %1600 = vmatpush1.bf16.msra.mxu0 %v2454_v11  ;;  %1520 = vmatprep.subr.bf16.mxu1 %v2455_v12  ;;  %v2496_v39 = vld [vmem:[%s3108_s1 + $0x1a0] ss:$8 sps:$4 sm:$0xff]   ;;  %v2499_v41 = vld [vmem:[%s3108_s1 + $0x1b4] ss:$8 sps:$4 sm:$0xff]   ;;  %v2502_v43 = vld [vmem:[%s3108_s1 + $0x1b0] ss:$8 sps:$4 sm:$0xff]  }
  0x98   : > { %1601 = vmatprep.subr.bf16.mxu0 %v2457_v13  ;;  %v2503_v44 = vld [vmem:[%s3108_s1 + $0xc4] ss:$8 sps:$4 sm:$0xff]   ;;  %v2507_v48 = vld [vmem:[%s3108_s1 + $0xc0] ss:$8 sps:$4 sm:$0xff]   ;;  %v2509_v50 = vld [vmem:[%s3108_s1 + $0xd4] ss:$8 sps:$4 sm:$0xff]  }
  0x99   : > { %v2529_v45 = vld [vmem:[%s3106_s6 + $0x4] ss:$24 sps:$4 sm:$0xff]   ;;  %v2508_v49 = vld [vmem:[%s3108_s1 + $0x1c0] ss:$8 sps:$4 sm:$0xff]   ;;  %v2513_v52 = vld [vmem:[%s3108_s1 + $0xd0] ss:$8 sps:$4 sm:$0xff]  }
  0x9a   : > { %1521 = vmatpush1.bf16.msra.mxu1 %v2459_v14  ;;  %v2505_v46 = vld [vmem:[%s3108_s1 + $0x1c4] ss:$8 sps:$4 sm:$0xff]   ;;  %1544 = vmatprep.mubr.bf16.mxu1 %v2529_v45  ;;  %v2511_v51 = vld [vmem:[%s3108_s1 + $0x1d4] ss:$8 sps:$4 sm:$0xff]   ;;  %v2514_v53 = vld [vmem:[%s3108_s1 + $0x1d0] ss:$8 sps:$4 sm:$0xff]  }
  0x9b   : > { %1602 = vmatpush1.bf16.msra.mxu0 %v2460_v15  ;;  %1522 = vmatprep.subr.bf16.mxu1 %v2461_v16  ;;  %v2532_v47 = vld [vmem:[%s3106_s6 + $0xc] ss:$24 sps:$4 sm:$0xff]   ;;  %v2519_v56 = vld [vmem:[%s3108_s1 + $0xe0] ss:$8 sps:$4 sm:$0xff]   ;;  %v2525_v60 = vld [vmem:[%s3108_s1 + $0xf0] ss:$8 sps:$4 sm:$0xff]  }
  0x9c   : > { %1603 = vmatprep.subr.bf16.mxu0 %v2463_v17  ;;  %1625 = vmatprep.mubr.bf16.mxu0 %v2532_v47  ;;  %v2515_v54 = vld [vmem:[%s3108_s1 + $0xe4] ss:$8 sps:$4 sm:$0xff]   ;;  %v2520_v57 = vld [vmem:[%s3108_s1 + $0x1e0] ss:$8 sps:$4 sm:$0xff]   ;;  %v2521_v58 = vld [vmem:[%s3108_s1 + $0xf4] ss:$8 sps:$4 sm:$0xff]  }
  0x9d   : > { %v2517_v55 = vld [vmem:[%s3108_s1 + $0x1e4] ss:$8 sps:$4 sm:$0xff]   ;;  %v2523_v59 = vld [vmem:[%s3108_s1 + $0x1f4] ss:$8 sps:$4 sm:$0xff]   ;;  %v2526_v61 = vld [vmem:[%s3108_s1 + $0x1f0] ss:$8 sps:$4 sm:$0xff]  }
  0x9e   : > { %1523 = vmatpush1.bf16.msra.mxu1 %v2465_v18  ;;  %v2535_v62 = vld [vmem:[%s3108_s1 + $0x204] ss:$8 sps:$4 sm:$0xff]   ;;  %v2527_v63 = vld [vmem:[%s3106_s6] ss:$24 sps:$4 sm:$0xff]   ;;  %v2538_v2 = vld [vmem:[%s3108_s1 + $0x214] ss:$8 sps:$4 sm:$0xff]  }
  0x9f   : > { %1604 = vmatpush1.bf16.msra.mxu0 %v2466_v19  ;;  %1524 = vmatprep.subr.bf16.mxu1 %v2467_v20  ;;  %v2530_v0 = vld [vmem:[%s3106_s6 + $0x8] ss:$24 sps:$4 sm:$0xff]   ;;  %v2554_v3 = vld [vmem:[%s3106_s6 + $0x34] ss:$24 sps:$4 sm:$0xff]   ;;  %v2562_v8 = vld [vmem:[%s3106_s6 + $0x38] ss:$24 sps:$4 sm:$0xff]  }
  0xa0   : > { %1605 = vmatprep.subr.bf16.mxu0 %v2469_v21  ;;  %v2533_v1 = vld [vmem:[%s3108_s1 + $0x200] ss:$8 sps:$4 sm:$0xff]   ;;  %v2556_v4 = vld [vmem:[%s3106_s6 + $0x3c] ss:$24 sps:$4 sm:$0xff]   ;;  %v2536_v5 = vld [vmem:[%s3108_s1 + $0x210] ss:$8 sps:$4 sm:$0xff]  }
  0xa1   : > { %v2541_v6 = vld [vmem:[%s3108_s1 + $0x224] ss:$8 sps:$4 sm:$0xff]   ;;  %v2561_v7 = vld [vmem:[%s3106_s6 + $0x30] ss:$24 sps:$4 sm:$0xff]   ;;  %v2544_v10 = vld [vmem:[%s3108_s1 + $0x234] ss:$8 sps:$4 sm:$0xff]  }
  0xa2   : > { %1525 = vmatpush1.bf16.msra.mxu1 %v2471_v22  ;;  %v2539_v9 = vld [vmem:[%s3108_s1 + $0x220] ss:$8 sps:$4 sm:$0xff]   ;;  %v2566_v11 = vld [vmem:[%s3106_s6 + $0x64] ss:$24 sps:$4 sm:$0xff]   ;;  %v2542_v13 = vld [vmem:[%s3108_s1 + $0x230] ss:$8 sps:$4 sm:$0xff]  }
  0xa3   : > { %1606 = vmatpush1.bf16.msra.mxu0 %v2472_v23  ;;  %1526 = vmatprep.subr.bf16.mxu1 %v2473_v24  ;;  %v2568_v12 = vld [vmem:[%s3106_s6 + $0x6c] ss:$24 sps:$4 sm:$0xff]   ;;  %v2573_v15 = vld [vmem:[%s3106_s6 + $0x60] ss:$24 sps:$4 sm:$0xff]   ;;  %v2580_v20 = vld [vmem:[%s3106_s6 + $0x9c] ss:$24 sps:$4 sm:$0xff]  }
  0xa4   : > { %1607 = vmatprep.subr.bf16.mxu0 %v2475_v25  ;;  %v2547_v14 = vld [vmem:[%s3108_s1 + $0x244] ss:$8 sps:$4 sm:$0xff]   ;;  %v2574_v16 = vld [vmem:[%s3106_s6 + $0x68] ss:$24 sps:$4 sm:$0xff]   ;;  %v2550_v18 = vld [vmem:[%s3108_s1 + $0x254] ss:$8 sps:$4 sm:$0xff]  }
  0xa5   : > { %v2545_v17 = vld [vmem:[%s3108_s1 + $0x240] ss:$8 sps:$4 sm:$0xff]   ;;  %v2578_v19 = vld [vmem:[%s3106_s6 + $0x94] ss:$24 sps:$4 sm:$0xff]   ;;  %v2548_v21 = vld [vmem:[%s3108_s1 + $0x250] ss:$8 sps:$4 sm:$0xff]  }
  0xa6   : > { %1527 = vmatpush1.bf16.msra.mxu1 %v2477_v26  ;;  %v2553_v22 = vld [vmem:[%s3108_s1 + $0x264] ss:$8 sps:$4 sm:$0xff]   ;;  %v2585_v23 = vld [vmem:[%s3106_s6 + $0x90] ss:$24 sps:$4 sm:$0xff]   ;;  %p2247_p5 = scmp.ne.s32.totalorder %s2687_s18, 5 }
  0xa7   : > { %1608 = vmatpush1.bf16.msra.mxu0 %v2478_v27  ;;  %1528 = vmatprep.subr.bf16.mxu1 %v2479_v28  ;;  %v2586_v24 = vld [vmem:[%s3106_s6 + $0x98] ss:$24 sps:$4 sm:$0xff]   ;;  %v793_v25 = vld [vmem:[%s3106_s6 + $0xc8] sm:$0xff]  ;;  %v792_v26 = vld [vmem:[%s3106_s6 + $0xc0] sm:$0xff] }
  0xa8   : > { %1609 = vmatprep.subr.bf16.mxu0 %v2481_v29  ;;  %v2551_v27 = vld [vmem:[%s3108_s1 + $0x260] ss:$8 sps:$4 sm:$0xff]   ;;  %v2560_v28 = vld [vmem:[%s3108_s1 + $0x274] ss:$8 sps:$4 sm:$0xff]   ;;  %v2148_v29 = vcombine.high %v793_v25, %v793_v25  ;;  %v2591_v47 = vld [vmem:[%s3108_s1 + $0x2d0] ss:$8 sps:$4 sm:$0xff]  }
  0xa9   : > { %v2587_v45 = vld [vmem:[%s3108_s1 + $0x2c0] ss:$8 sps:$4 sm:$0xff]  }
  0xaa   : > { %1529 = vmatpush1.bf16.msra.mxu1 %v2483_v30  ;;  %v2146_v30 = vcombine.high %v792_v26, %v792_v26 }
  0xab   : > { %1610 = vmatpush1.bf16.msra.mxu0 %v2484_v31  ;;  %1530 = vmatprep.subr.bf16.mxu1 %v2485_v32  ;;  %v2558_v31 = vld [vmem:[%s3108_s1 + $0x270] ss:$8 sps:$4 sm:$0xff]   ;;  %v2565_v32 = vld [vmem:[%s3108_s1 + $0x284] ss:$8 sps:$4 sm:$0xff]  }
  0xac   : > { %1611 = vmatprep.subr.bf16.mxu0 %v2487_v33  ;;  %v2147_v33 = vcombine.low %v793_v25, %v793_v25 }
  0xae   : > { %1531 = vmatpush1.bf16.msra.mxu1 %v2489_v34  ;;  %v2145_v34 = vcombine.low %v792_v26, %v792_v26 }
  0xaf   : > { %1612 = vmatpush1.bf16.msra.mxu0 %v2490_v35  ;;  %1532 = vmatprep.subr.bf16.mxu1 %v2491_v36  ;;  %v2563_v35 = vld [vmem:[%s3108_s1 + $0x280] ss:$8 sps:$4 sm:$0xff]   ;;  %v2572_v36 = vld [vmem:[%s3108_s1 + $0x294] ss:$8 sps:$4 sm:$0xff]  }
  0xb0   : > { %1613 = vmatprep.subr.bf16.mxu0 %v2493_v37  ;;  %v2605_v37 = vld [vmem:[%s3106_s6 + $0x14] ss:$24 sps:$4 sm:$0xff]  }
  0xb2   : > { %1533 = vmatpush1.bf16.msra.mxu1 %v2495_v38  ;;  %v2608_v38 = vld [vmem:[%s3106_s6 + $0xa4] ss:$24 sps:$4 sm:$0xff]  }
  0xb3   : > { %1614 = vmatpush1.bf16.msra.mxu0 %v2496_v39  ;;  %1534 = vmatprep.subr.bf16.mxu1 %v2497_v40  ;;  %v2570_v39 = vld [vmem:[%s3108_s1 + $0x290] ss:$8 sps:$4 sm:$0xff]   ;;  %v2577_v40 = vld [vmem:[%s3108_s1 + $0x2a4] ss:$8 sps:$4 sm:$0xff]  }
  0xb4   : > { %1615 = vmatprep.subr.bf16.mxu0 %v2499_v41  ;;  %v2575_v41 = vld [vmem:[%s3108_s1 + $0x2a0] ss:$8 sps:$4 sm:$0xff]  }
  0xb6   : > { %1535 = vmatpush1.bf16.msra.mxu1 %v2501_v42  ;;  %v2584_v42 = vld [vmem:[%s3108_s1 + $0x2b4] ss:$8 sps:$4 sm:$0xff]  }
  0xb7   : > { %1616 = vmatpush1.bf16.msra.mxu0 %v2502_v43  ;;  %1536 = vmatprep.subr.bf16.mxu1 %v2503_v44  ;;  %v2582_v43 = vld [vmem:[%s3108_s1 + $0x2b0] ss:$8 sps:$4 sm:$0xff]   ;;  %v2589_v44 = vld [vmem:[%s3108_s1 + $0x2c4] ss:$8 sps:$4 sm:$0xff]  }
  0xb8   : > { %1617 = vmatprep.subr.bf16.mxu0 %v2505_v46  ;;  %v2593_v46 = vld [vmem:[%s3108_s1 + $0x2d4] ss:$8 sps:$4 sm:$0xff]  }
  0xba   : > { %1537 = vmatpush1.bf16.msra.mxu1 %v2507_v48  ;;  %v2599_v48 = vld [vmem:[%s3108_s1 + $0x2e4] ss:$8 sps:$4 sm:$0xff]  }
  0xbb   : > { %1618 = vmatpush1.bf16.msra.mxu0 %v2508_v49  ;;  %1538 = vmatprep.subr.bf16.mxu1 %v2509_v50  ;;  %v2597_v49 = vld [vmem:[%s3108_s1 + $0x2e0] ss:$8 sps:$4 sm:$0xff]   ;;  %v2602_v50 = vld [vmem:[%s3108_s1 + $0x2f4] ss:$8 sps:$4 sm:$0xff]  }
  0xbc   : > { %1619 = vmatprep.subr.bf16.mxu0 %v2511_v51  ;;  %v2600_v51 = vld [vmem:[%s3108_s1 + $0x2f0] ss:$8 sps:$4 sm:$0xff]  }
  0xbe   : > { %1539 = vmatpush1.bf16.msra.mxu1 %v2513_v52  ;;  %v794_v52 = vld [vmem:[%s3106_s6 + $0xd0] sm:$0xff] }
  0xbf   : > { %1620 = vmatpush1.bf16.msra.mxu0 %v2514_v53  ;;  %1540 = vmatprep.subr.bf16.mxu1 %v2515_v54  ;;  %v2603_v53 = vld [vmem:[%s3106_s6 + $0x10] ss:$24 sps:$4 sm:$0xff]   ;;  %v2606_v54 = vld [vmem:[%s3106_s6 + $0xa0] ss:$24 sps:$4 sm:$0xff]  }
  0xc0   : > { %1621 = vmatprep.subr.bf16.mxu0 %v2517_v55  ;;  %v2609_v55 = vld [vmem:[%s3106_s6 + $0x44] ss:$24 sps:$4 sm:$0xff]  }
  0xc2   : > { %1541 = vmatpush1.bf16.msra.mxu1 %v2519_v56  ;;  %v2150_v56 = vcombine.high %v794_v52, %v794_v52 }
  0xc3   : > { %1622 = vmatpush1.bf16.msra.mxu0 %v2520_v57  ;;  %1542 = vmatprep.subr.bf16.mxu1 %v2521_v58  ;;  %v2612_v57 = vld [vmem:[%s3106_s6 + $0x40] ss:$24 sps:$4 sm:$0xff]   ;;  %v2149_v58 = vcombine.low %v794_v52, %v794_v52 }
  0xc4   : > { %1623 = vmatprep.subr.bf16.mxu0 %v2523_v59  ;;  %v2614_v59 = vld [vmem:[%s3106_s6 + $0x74] ss:$24 sps:$4 sm:$0xff]  }
  0xc6   : > { %1543 = vmatpush1.bf16.msra.mxu1 %v2525_v60  ;;  %v2616_v60 = vld [vmem:[%s3106_s6 + $0x70] ss:$24 sps:$4 sm:$0xff]  }
  0xc7   : > { %1624 = vmatpush1.bf16.msra.mxu0 %v2526_v61  ;;  %2273 = vmatprep.subr.bf16.mxu1 %v2535_v62 }
  0xc8   : > { %1674 = vmatprep.subr.bf16.mxu0 %v2535_v62 }
  0xc9   : > { %1545 = vmatmul.mubr.bf16.vlgmr.msra.gmra.mrb[0].mxu1 %v2527_v63 }
  0xca   : > { %1626 = vmatmul.mubr.bf16.vlgmr.msra.gmra.mrb[0].mxu0 %v2530_v0  ;;  %2289 = vmatpush1.bf16.msra.mxu1 %v2533_v1 }
  0xcb   : > { %1675 = vmatpush1.bf16.msra.mxu0 %v2533_v1  ;;  %2274 = vmatprep.subr.bf16.mxu1 %v2538_v2 }
  0xcc   : > { %1676 = vmatprep.subr.bf16.mxu0 %v2538_v2  ;;  %1554 = vmatprep.mubr.bf16.mxu1 %v2554_v3 }
  0xcd   : > { %1635 = vmatprep.mubr.bf16.mxu0 %v2556_v4 }
  0xce   : > { %2290 = vmatpush1.bf16.msra.mxu1 %v2536_v5 }
  0xcf   : > { %1677 = vmatpush1.bf16.msra.mxu0 %v2536_v5  ;;  %2275 = vmatprep.subr.bf16.mxu1 %v2541_v6 }
  0xd0   : > { %1678 = vmatprep.subr.bf16.mxu0 %v2541_v6 }
  0xd1   : > { %1555 = vmatmul.mubr.bf16.gmra.mrb[4].mxu1 %v2561_v7 }
  0xd2   : > { %1636 = vmatmul.mubr.bf16.gmra.mrb[4].mxu0 %v2562_v8  ;;  %2291 = vmatpush1.bf16.msra.mxu1 %v2539_v9 }
  0xd3   : > { %1679 = vmatpush1.bf16.msra.mxu0 %v2539_v9  ;;  %2276 = vmatprep.subr.bf16.mxu1 %v2544_v10 }
  0xd4   : > { %1680 = vmatprep.subr.bf16.mxu0 %v2544_v10  ;;  %1564 = vmatprep.mubr.bf16.mxu1 %v2566_v11 }
  0xd5   : > { %1645 = vmatprep.mubr.bf16.mxu0 %v2568_v12 }
  0xd6   : > { %2292 = vmatpush1.bf16.msra.mxu1 %v2542_v13 }
  0xd7   : > { %1681 = vmatpush1.bf16.msra.mxu0 %v2542_v13  ;;  %2277 = vmatprep.subr.bf16.mxu1 %v2547_v14 }
  0xd8   : > { %1682 = vmatprep.subr.bf16.mxu0 %v2547_v14 }
  0xd9   : > { %1565 = vmatmul.mubr.bf16.gmra.mrb[8].mxu1 %v2573_v15 }
  0xda   : > { %1646 = vmatmul.mubr.bf16.gmra.mrb[8].mxu0 %v2574_v16  ;;  %2293 = vmatpush1.bf16.msra.mxu1 %v2545_v17 }
  0xdb   : > { %1683 = vmatpush1.bf16.msra.mxu0 %v2545_v17  ;;  %2278 = vmatprep.subr.bf16.mxu1 %v2550_v18 }
  0xdc   : > { %1684 = vmatprep.subr.bf16.mxu0 %v2550_v18  ;;  %1574 = vmatprep.mubr.bf16.mxu1 %v2578_v19 }
  0xdd   : > { %1655 = vmatprep.mubr.bf16.mxu0 %v2580_v20 }
  0xde   : > { %2294 = vmatpush1.bf16.msra.mxu1 %v2548_v21 }
  0xdf   : > { %1685 = vmatpush1.bf16.msra.mxu0 %v2548_v21  ;;  %2279 = vmatprep.subr.bf16.mxu1 %v2553_v22 }
  0xe0   : > { %1686 = vmatprep.subr.bf16.mxu0 %v2553_v22 }
  0xe1   : > { %1575 = vmatmul.mubr.bf16.gmra.mrb[12].mxu1 %v2585_v23 }
  0xe2   : > { %1656 = vmatmul.mubr.bf16.gmra.mrb[12].mxu0 %v2586_v24  ;;  %2295 = vmatpush1.bf16.msra.mxu1 %v2551_v27 }
  0xe3   : > { %1687 = vmatpush1.bf16.msra.mxu0 %v2551_v27  ;;  %2280 = vmatprep.subr.bf16.mxu1 %v2560_v28 }
  0xe4   : > { %1688 = vmatprep.subr.bf16.mxu0 %v2560_v28  ;;  %1665 = vmatprep.mubr.bf16.mxu0 %v2148_v29 }
  0xe5   : > { %1584 = vmatprep.mubr.bf16.mxu1 %v2146_v30 }
  0xe6   : > { %2296 = vmatpush1.bf16.msra.mxu1 %v2558_v31 }
  0xe7   : > { %1689 = vmatpush1.bf16.msra.mxu0 %v2558_v31  ;;  %2281 = vmatprep.subr.bf16.mxu1 %v2565_v32  ;;  %v750_v31 = vld [vmem:[#allocation2] sm:$0xff] }
  0xe8   : > { %1690 = vmatprep.subr.bf16.mxu0 %v2565_v32 }
  0xe9   : > { %1585 = vmatmul.mubr.bf16.gmra.mrb[16].mxu1 %v2145_v34 }
  0xea   : > { %1666 = vmatmul.mubr.bf16.gmra.mrb[16].mxu0 %v2147_v33  ;;  %2297 = vmatpush1.bf16.msra.mxu1 %v2563_v35  ;;  %v762_v33 = vld [vmem:[#allocation2 + $0x60] sm:$0xff] }
  0xeb   : > { %1691 = vmatpush1.bf16.msra.mxu0 %v2563_v35  ;;  %2282 = vmatprep.subr.bf16.mxu1 %v2572_v36 }
  0xec   : > { %1692 = vmatprep.subr.bf16.mxu0 %v2572_v36  ;;  %1706 = vmatprep.mubr.bf16.mxu0 %v2605_v37  ;;  %v751_v37 = vld [vmem:[#allocation2 + $0x8] sm:$0xff] }
  0xed   : > { %1736 = vmatprep.mubr.bf16.mxu1 %v2608_v38 }
  0xee   : > { %2298 = vmatpush1.bf16.msra.mxu1 %v2570_v39 }
  0xef   : > { %1693 = vmatpush1.bf16.msra.mxu0 %v2570_v39  ;;  %2283 = vmatprep.subr.bf16.mxu1 %v2577_v40  ;;  %v763_v39 = vld [vmem:[#allocation2 + $0x68] sm:$0xff] }
  0xf0   : > { %1694 = vmatprep.subr.bf16.mxu0 %v2577_v40 }
  0xf2   : > { %2299 = vmatpush1.bf16.msra.mxu1 %v2575_v41 }
  0xf3   : > { %1695 = vmatpush1.bf16.msra.mxu0 %v2575_v41  ;;  %2284 = vmatprep.subr.bf16.mxu1 %v2584_v42 }
  0xf4   : > { %1696 = vmatprep.subr.bf16.mxu0 %v2584_v42 }
  0xf6   : > { %2300 = vmatpush1.bf16.msra.mxu1 %v2582_v43 }
  0xf7   : > { %1697 = vmatpush1.bf16.msra.mxu0 %v2582_v43  ;;  %2285 = vmatprep.subr.bf16.mxu1 %v2589_v44  ;;  %v752_v43 = vld [vmem:[#allocation2 + $0x10] sm:$0xff] }
  0xf8   : > { %1698 = vmatprep.subr.bf16.mxu0 %v2589_v44 }
  0xfa   : > { %2301 = vmatpush1.bf16.msra.mxu1 %v2587_v45 }
  0xfb   : > { %1699 = vmatpush1.bf16.msra.mxu0 %v2587_v45  ;;  %2286 = vmatprep.subr.bf16.mxu1 %v2593_v46  ;;  %v764_v45 = vld [vmem:[#allocation2 + $0x70] sm:$0xff] }
  0xfc   : > { %1700 = vmatprep.subr.bf16.mxu0 %v2593_v46 }
  0xfe   : > { %2302 = vmatpush1.bf16.msra.mxu1 %v2591_v47 }
  0xff   : > { %1701 = vmatpush1.bf16.msra.mxu0 %v2591_v47  ;;  %2287 = vmatprep.subr.bf16.mxu1 %v2599_v48 }
 0x100   : > { %1702 = vmatprep.subr.bf16.mxu0 %v2599_v48 }
 0x102   : > { %2303 = vmatpush1.bf16.msra.mxu1 %v2597_v49 }
 0x103   : > { %1703 = vmatpush1.bf16.msra.mxu0 %v2597_v49  ;;  %2288 = vmatprep.subr.bf16.mxu1 %v2602_v50 }
 0x104   : > { %1704 = vmatprep.subr.bf16.mxu0 %v2602_v50 }
 0x106   : > { %2304 = vmatpush1.bf16.msra.mxu1 %v2600_v51 }
 0x107   : > { %1705 = vmatpush1.bf16.msra.mxu0 %v2600_v51  ;;  %v753_v51 = vld [vmem:[#allocation2 + $0x18] sm:$0xff] }
 0x109   : > { %1737 = vmatmul.mubr.bf16.vlgmr.msra.gmra.mrb[20].mxu1 %v2606_v54 }
 0x10a   : > { %1707 = vmatmul.mubr.bf16.vlgmr.msra.gmra.mrb[0].mxu0 %v2603_v53  ;;  %1746 = vmatprep.mubr.bf16.mxu1 %v2150_v56  ;;  %v765_v53 = vld [vmem:[#allocation2 + $0x78] sm:$0xff] }
 0x10b   : > { %1716 = vmatprep.mubr.bf16.mxu0 %v2609_v55 }
 0x111   : > { %1747 = vmatmul.mubr.bf16.gmra.mrb[24].mxu1 %v2149_v58 }
 0x112   : > { %1717 = vmatmul.mubr.bf16.gmra.mrb[4].mxu0 %v2612_v57 }
 0x113   : > { %1726 = vmatprep.mubr.bf16.mxu0 %v2614_v59 }
 0x11a   : > { %1727 = vmatmul.mubr.bf16.gmra.mrb[8].mxu0 %v2616_v60 }
 0x19c   : > { %v1546_v61 = vpop.f32.mrb[0].mxu1 }
 0x19d   : > { %v1548_v62 = vpop.f32.mrb[1].mxu1 }
 0x19e   : > { %v1550_v63 = vpop.f32.mrb[2].mxu1 }
 0x19f   : > { %v1552_v0 = vpop.f32.mrb[3].mxu1 }
 0x1a4   : > { %v3236_v1 = vpop.f32.mrb[4].mxu1 }
 0x1a5   : > { %v3238_v2 = vpop.f32.mrb[5].mxu1 }
 0x1a6   : > { %v3240_v3 = vpop.f32.mrb[6].mxu1 }
 0x1a7   : > { %v3242_v4 = vpop.f32.mrb[7].mxu1 }
 0x1ac   : > { %v3244_v5 = vpop.f32.mrb[8].mxu1 }
 0x1ad   : > { %v3246_v6 = vpop.f32.mrb[9].mxu1 }
 0x1ae   : > { %v3248_v7 = vpop.f32.mrb[10].mxu1 }
 0x1af   : > { %v3250_v8 = vpop.f32.mrb[11].mxu1 }
 0x1b4   : > { %v1576_v9 = vpop.f32.mrb[12].mxu1 }
 0x1b5   : > { %v1657_v10 = vpop.f32.mrb[12].mxu0  ;;  %v1578_v12 = vpop.f32.mrb[13].mxu1 }
 0x1b6   : > { %v1658_v11 = vadd.f32 %v1657_v10, %v1576_v9  ;;  %v1659_v13 = vpop.f32.mrb[13].mxu0  ;;  %v1580_v15 = vpop.f32.mrb[14].mxu1  ;;  %v766_v10 = vld [vmem:[#allocation2 + $0x80] sm:$0xff] }
 0x1b7   : > { %v1660_v14 = vadd.f32 %v1659_v13, %v1578_v12  ;;  %v1661_v16 = vpop.f32.mrb[14].mxu0  ;;  %v1582_v18 = vpop.f32.mrb[15].mxu1  ;;  %v755_v13 = vld [vmem:[#allocation2 + $0x28] sm:$0xff] }
 0x1b8   : > { %v1662_v17 = vadd.f32 %v1661_v16, %v1580_v15  ;;  %v1663_v19 = vpop.f32.mrb[15].mxu0  ;;  %v767_v15 = vld [vmem:[#allocation2 + $0x88] sm:$0xff] }
 0x1b9   : > { %v1664_v20 = vadd.f32 %v1663_v19, %v1582_v18  ;;  %v756_v19 = vld [vmem:[#allocation2 + $0x30] sm:$0xff] }
 0x1bc   : > { %v1586_v22 = vpop.f32.mrb[16].mxu1 }
 0x1bd   : > { %v1667_v21 = vpop.f32.mrb[16].mxu0  ;;  %v1588_v25 = vpop.f32.mrb[17].mxu1 }
 0x1be   : > { %v1669_v23 = vpop.f32.mrb[17].mxu0  ;;  %v1668_v24 = vadd.f32 %v1667_v21, %v1586_v22  ;;  %v1590_v28 = vpop.f32.mrb[18].mxu1 }
 0x1bf   : > { %v1671_v26 = vpop.f32.mrb[18].mxu0  ;;  %v1670_v27 = vadd.f32 %v1669_v23, %v1588_v25  ;;  %v1591_v30 = vpop.f32.mrb[19].mxu1 }
 0x1c0   : > { %v1672_v29 = vpop.f32.mrb[19].mxu0  ;;  %v757_v26 = vld [vmem:[#allocation2 + $0x38] sm:$0xff] }
 0x1dc   : > { %v1738_v34 = vpop.f32.mrb[20].mxu1 }
 0x1dd   : > { %v1708_v32 = vpop.f32.mrb[0].mxu0  ;;  %v1739_v36 = vadd.f32 %v1738_v34, %v1658_v11  ;;  %v1740_v40 = vpop.f32.mrb[21].mxu1 }
 0x1de   : > { %v2305_v35 = vadd.f32 %v1708_v32, %v1546_v61  ;;  %v1710_v38 = vpop.f32.mrb[1].mxu0  ;;  %v1741_v42 = vadd.f32 %v1740_v40, %v1660_v14  ;;  %v1742_v46 = vpop.f32.mrb[22].mxu1 }
 0x1df   : > { %v2306_v41 = vadd.f32 %v1710_v38, %v1548_v62  ;;  %v1712_v44 = vpop.f32.mrb[2].mxu0  ;;  %v1767_v48 = vadd.f32 %v1739_v36, %v762_v33  ;;  %v1743_v50 = vadd.f32 %v1742_v46, %v1662_v17  ;;  %v1744_v54 = vpop.f32.mrb[23].mxu1  ;;  %v760_v36 = vld [vmem:[#allocation2 + $0x50] sm:$0xff] }
 0x1e0   : > { %v1755_v47 = vadd.f32 %v2305_v35, %v750_v31  ;;  %v2307_v49 = vadd.f32 %v1712_v44, %v1550_v63  ;;  %v1714_v52 = vpop.f32.mrb[3].mxu0  ;;  %v1768_v56 = vadd.f32 %v1741_v42, %v763_v39  ;;  %v1745_v58 = vadd.f32 %v1744_v54, %v1664_v20  ;;  %v754_v63 = vld [vmem:[#allocation2 + $0x20] sm:$0xff]  ;;  %v761_v39 = vld [vmem:[#allocation2 + $0x58] sm:$0xff] }
 0x1e1   : > { %v1756_v55 = vadd.f32 %v2306_v41, %v751_v37  ;;  %v2308_v57 = vadd.f32 %v1714_v52, %v1552_v0  ;;  %1785 = vst [vmem:[#allocation2 + $0x60] sm:$0xff] %v1767_v48  ;;  %v1769_v60 = vadd.f32 %v1743_v50, %v764_v45 }
 0x1e2   : > { %1773 = vst [vmem:[#allocation2] sm:$0xff] %v1755_v47  ;;  %v1757_v59 = vadd.f32 %v2307_v49, %v752_v43  ;;  %1786 = vst [vmem:[#allocation2 + $0x68] sm:$0xff] %v1768_v56  ;;  %v1770_v62 = vadd.f32 %v1745_v58, %v765_v53 }
 0x1e3   : > { %1774 = vst [vmem:[#allocation2 + $0x8] sm:$0xff] %v1756_v55  ;;  %v1758_v61 = vadd.f32 %v2308_v57, %v753_v51  ;;  %1787 = vst [vmem:[#allocation2 + $0x70] sm:$0xff] %v1769_v60 }
 0x1e4   : > { %1775 = vst [vmem:[#allocation2 + $0x10] sm:$0xff] %v1757_v59  ;;  %1788 = vst [vmem:[#allocation2 + $0x78] sm:$0xff] %v1770_v62  ;;  %v1748_v11 = vpop.f32.mrb[24].mxu1 }
 0x1e5   : > { %1776 = vst [vmem:[#allocation2 + $0x18] sm:$0xff] %v1758_v61  ;;  %v1718_v9 = vpop.f32.mrb[4].mxu0  ;;  %v1749_v0 = vadd.f32 %v1748_v11, %v1668_v24  ;;  %v1750_v16 = vpop.f32.mrb[25].mxu1 }
 0x1e6   : > { %v2309_v12 = vadd.f32 %v1718_v9, %v3236_v1  ;;  %v1720_v14 = vpop.f32.mrb[5].mxu0  ;;  %v1751_v18 = vadd.f32 %v1750_v16, %v1670_v27  ;;  %v1752_v21 = vpop.f32.mrb[26].mxu1  ;;  %v758_v27 = vld [vmem:[#allocation2 + $0x40] sm:$0xff] }
 0x1e7   : > { %v2310_v17 = vadd.f32 %v1720_v14, %v3238_v2  ;;  %v1722_v20 = vpop.f32.mrb[6].mxu0  ;;  %v1771_v23 = vadd.f32 %v1749_v0, %v766_v10  ;;  %v1753_v29 = vpop.f32.mrb[27].mxu1 }
 0x1e8   : > { %v1759_v22 = vadd.f32 %v2309_v12, %v754_v63  ;;  %v2311_v25 = vadd.f32 %v1722_v20, %v3240_v3  ;;  %v1724_v28 = vpop.f32.mrb[7].mxu0  ;;  %v1772_v1 = vadd.f32 %v1751_v18, %v767_v15  ;;  %v759_v3 = vld [vmem:[#allocation2 + $0x48] sm:$0xff]  ;;  %v1807_v20 = vld [vmem:[#allocation2 + $0x60] sm:$0xff] (!%p2247_p5) }
 0x1e9   : > { %v1760_v30 = vadd.f32 %v2310_v17, %v755_v13  ;;  %v2312_v24 = vadd.f32 %v1724_v28, %v3242_v4  ;;  %1789 = vst [vmem:[#allocation2 + $0x80] sm:$0xff] %v1771_v23  ;;  %v1795_v45 = vld [vmem:[#allocation2] sm:$0xff] (!%p2247_p5)  ;;  %v1808_v21 = vld [vmem:[#allocation2 + $0x68] sm:$0xff] (!%p2247_p5) }
 0x1ea   : > { %1777 = vst [vmem:[#allocation2 + $0x20] sm:$0xff] %v1759_v22  ;;  %v1761_v31 = vadd.f32 %v2311_v25, %v756_v19  ;;  %1790 = vst [vmem:[#allocation2 + $0x88] sm:$0xff] %v1772_v1  ;;  %v1796_v46 = vld [vmem:[#allocation2 + $0x8] sm:$0xff] (!%p2247_p5)  ;;  %v1809_v28 = vld [vmem:[#allocation2 + $0x70] sm:$0xff] (!%p2247_p5) }
 0x1eb   : > { %1778 = vst [vmem:[#allocation2 + $0x28] sm:$0xff] %v1760_v30  ;;  %v1762_v2 = vadd.f32 %v2312_v24, %v757_v26  ;;  %v1797_v48 = vld [vmem:[#allocation2 + $0x10] sm:$0xff] (!%p2247_p5)  ;;  %v1810_v29 = vld [vmem:[#allocation2 + $0x78] sm:$0xff] (!%p2247_p5) }
 0x1ec   : > { %1779 = vst [vmem:[#allocation2 + $0x30] sm:$0xff] %v1761_v31  ;;  %v1798_v49 = vld [vmem:[#allocation2 + $0x18] sm:$0xff] (!%p2247_p5) }
 0x1ed   : > { %1780 = vst [vmem:[#allocation2 + $0x38] sm:$0xff] %v1762_v2  ;;  %v1728_v32 = vpop.f32.mrb[8].mxu0 }
 0x1ee   : > { %v2313_v33 = vadd.f32 %v1728_v32, %v3244_v5  ;;  %v1730_v34 = vpop.f32.mrb[9].mxu0  ;;  %v1815_v5 = vlaneseq (!%p2247_p5) }
 0x1ef   : > { %v2314_v35 = vadd.f32 %v1730_v34, %v3246_v6  ;;  %v1732_v37 = vpop.f32.mrb[10].mxu0  ;;  %1794 = sbr.rel (%p2247_p5) target bundleno = 518 (0x206), region = 101 }
 0x1f0   : > { %v1763_v38 = vadd.f32 %v2313_v33, %v758_v27  ;;  %v2315_v4 = vadd.f32 %v1732_v37, %v3248_v7  ;;  %v1734_v40 = vpop.f32.mrb[11].mxu0  ;;  %v1816_v6 = vshrl.u32 (!%p2247_p5), %v1815_v5, 7  ;;  %v1813_v7 = vld [vmem:[%s724_s5] sm:$0x3] (!%p2247_p5) }
 0x1f1   : > { %v1764_v41 = vadd.f32 %v2314_v35, %v759_v3  ;;  %v2316_v42 = vadd.f32 %v1734_v40, %v3250_v8  ;;  %v1799_v50 = vld [vmem:[#allocation2 + $0x20] sm:$0xff] (!%p2247_p5)  ;;  %v1812_v34 = vld [vmem:[#allocation2 + $0x88] sm:$0xff] (!%p2247_p5) }
 0x1f2   : > { %1781 = vst [vmem:[#allocation2 + $0x40] sm:$0xff] %v1763_v38  ;;  %v1765_v43 = vadd.f32 %v2315_v4, %v760_v36  ;;  %v1817_v8 = vsub.s32 (!%p2247_p5), 0, %v1816_v6  ;;  %v1821_v47 = vsub.s32 (!%p2247_p5), 1, %v1816_v6  ;;  %v1800_v53 = vld [vmem:[#allocation2 + $0x28] sm:$0xff] (!%p2247_p5)  ;;  %v1811_v2 = vld [vmem:[#allocation2 + $0x80] sm:$0xff] (!%p2247_p5) }
 0x1f3   : > { %1782 = vst [vmem:[#allocation2 + $0x48] sm:$0xff] %v1764_v41  ;;  %v1766_v44 = vadd.f32 %v2316_v42, %v761_v39  ;;  %v1801_v54 = vld [vmem:[#allocation2 + $0x30] sm:$0xff] (!%p2247_p5) }
 0x1f4   : > { %1783 = vst [vmem:[#allocation2 + $0x50] sm:$0xff] %v1765_v43  ;;  %v1818_v51 = vrot.slane (!%p2247_p5), %v1813_v7, %v1817_v8  ;;  %v1822_v52 = vrot.slane (!%p2247_p5), %v1813_v7, %v1821_v47  ;;  %v1802_v55 = vld [vmem:[#allocation2 + $0x38] sm:$0xff] (!%p2247_p5) }
 0x1f5   : > { %1784 = vst [vmem:[#allocation2 + $0x58] sm:$0xff] %v1766_v44 }
 0x1f6   : > { %v1825_v56 = vadd.f32 %v1818_v51, %v1795_v45  ;;  %v1826_v57 = vadd.f32 %v1822_v52, %v1796_v46  ;;  %v1827_v58 = vadd.f32 %v1818_v51, %v1797_v48  ;;  %v1828_v59 = vadd.f32 %v1822_v52, %v1798_v49 }
 0x1f7   : > { %v1829_v60 = vadd.f32 %v1818_v51, %v1799_v50  ;;  %v1830_v61 = vadd.f32 %v1822_v52, %v1800_v53  ;;  %v1831_v62 = vadd.f32 %v1818_v51, %v1801_v54  ;;  %v1832_v63 = vadd.f32 %v1822_v52, %v1802_v55 }
 0x1f8   : > { %v1843_v11 = vmax.f32 %v1825_v56, 0.0  ;;  %v1844_v12 = vmax.f32 %v1826_v57, 0.0  ;;  %v1845_v0 = vmax.f32 %v1827_v58, 0.0  ;;  %v1846_v13 = vmax.f32 %v1828_v59, 0.0 }
 0x1f9   : > { %v1803_v9 = vld [vmem:[#allocation2 + $0x40] sm:$0xff]  ;;  %v1847_v16 = vmax.f32 %v1829_v60, 0.0  ;;  %v1848_v17 = vmax.f32 %v1830_v61, 0.0  ;;  %v1849_v18 = vmax.f32 %v1831_v62, 0.0  ;;  %v1850_v19 = vmax.f32 %v1832_v63, 0.0 }
 0x1fa   : > { %v1804_v10 = vld [vmem:[#allocation2 + $0x48] sm:$0xff]  ;;  %v2263_v22 = vpack.c.bf16 %v1844_v12, %v1843_v11  ;;  %v2264_v23 = vpack.c.bf16 %v1846_v13, %v1845_v0  ;;  %v1833_v25 = vadd.f32 %v1818_v51, %v1803_v9  ;;  %v1837_v33 = vadd.f32 %v1818_v51, %v1807_v20 }
 0x1fb   : > { %v1805_v14 = vld [vmem:[#allocation2 + $0x50] sm:$0xff]  ;;  %v1834_v26 = vadd.f32 %v1822_v52, %v1804_v10  ;;  %v2265_v30 = vpack.c.bf16 %v1848_v17, %v1847_v16  ;;  %v2266_v1 = vpack.c.bf16 %v1850_v19, %v1849_v18  ;;  %v1838_v3 = vadd.f32 %v1822_v52, %v1808_v21 }
 0x1fc   : > { %v1806_v15 = vld [vmem:[#allocation2 + $0x58] sm:$0xff]  ;;  %v1835_v24 = vadd.f32 %v1818_v51, %v1805_v14  ;;  %1917 = vst [vmem:[%s3110_s25] sm:$0xff] %v2263_v22  ;;  %1918 = vst [vmem:[%s3110_s25 + $0x8] sm:$0xff] %v2264_v23  ;;  %v1851_v27 = vmax.f32 %v1833_v25, 0.0  ;;  %v1839_v37 = vadd.f32 %v1818_v51, %v1809_v28  ;;  %v1840_v38 = vadd.f32 %v1822_v52, %v1810_v29 }
 0x1fd   : > { %v1836_v31 = vadd.f32 %v1822_v52, %v1806_v15  ;;  %v1852_v32 = vmax.f32 %v1834_v26, 0.0  ;;  %1919 = vst [vmem:[%s3110_s25 + $0x10] sm:$0xff] %v2265_v30  ;;  %1920 = vst [vmem:[%s3110_s25 + $0x18] sm:$0xff] %v2266_v1  ;;  %v1855_v39 = vmax.f32 %v1837_v33, 0.0  ;;  %v1856_v40 = vmax.f32 %v1838_v3, 0.0 }
 0x1fe   : > { %v1853_v35 = vmax.f32 %v1835_v24, 0.0  ;;  %v1841_v41 = vadd.f32 %v1818_v51, %v1811_v2  ;;  %v1857_v43 = vmax.f32 %v1839_v37, 0.0  ;;  %v1858_v44 = vmax.f32 %v1840_v38, 0.0 }
 0x1ff   : > { %v1854_v36 = vmax.f32 %v1836_v31, 0.0  ;;  %v2267_v4 = vpack.c.bf16 %v1852_v32, %v1851_v27  ;;  %v1842_v5 = vadd.f32 %v1822_v52, %v1812_v34  ;;  %v2269_v6 = vpack.c.bf16 %v1856_v40, %v1855_v39 }
 0x200   : > { %v1859_v7 = vmax.f32 %v1841_v41, 0.0  ;;  %v2270_v45 = vpack.c.bf16 %v1858_v44, %v1857_v43 }
 0x201   : > { %v2268_v42 = vpack.c.bf16 %v1854_v36, %v1853_v35  ;;  %1921 = vst [vmem:[%s3110_s25 + $0x20] sm:$0xff] %v2267_v4  ;;  %v1860_v46 = vmax.f32 %v1842_v5, 0.0  ;;  %1923 = vst [vmem:[%s3110_s25 + $0x30] sm:$0xff] %v2269_v6 }
 0x202   : > { %1924 = vst [vmem:[%s3110_s25 + $0x38] sm:$0xff] %v2270_v45 }
 0x203   : > { %1922 = vst [vmem:[%s3110_s25 + $0x28] sm:$0xff] %v2268_v42  ;;  %v2271_v8 = vpack.c.bf16 %v1860_v46, %v1859_v7 }
 0x205   : > { %1925 = vst [vmem:[%s3110_s25 + $0x40] sm:$0xff] %v2271_v8 }
 0x206 PF: > { %1932 = sbr.rel (!%p2820_p12) target bundleno = 526 (0x20e), region = 105  ;;  %s2272_s14 = sshll.u32 (%p2820_p12), %s2691_s19, 3  ;;  %v1982_v47 = vld [vmem:[%s3110_s25] sm:$0xff] (%p2820_p12)  ;;  %v1984_v48 = vld [vmem:[%s3110_s25 + $0x8] sm:$0xff] (%p2820_p12)  ;;  %v1986_v49 = vld [vmem:[%s3110_s25 + $0x10] sm:$0xff] (%p2820_p12) }
 0x207   : > { %s1938_s0 = scalar_lea.vmem (%p2820_p12), %s3326_s3, %s2272_s14  ;;  %v1988_v50 = vld [vmem:[%s3110_s25 + $0x18] sm:$0xff] (%p2820_p12) }
 0x208   : > { %v1990_v51 = vld [vmem:[%s3110_s25 + $0x20] sm:$0xff] (%p2820_p12)  ;;  %1983 = vst [vmem:[%s1938_s0] sm:$0xff] (%p2820_p12), %v1982_v47  ;;  %1985 = vst [vmem:[%s1938_s0 + $0x10] sm:$0xff] (%p2820_p12), %v1984_v48  ;;  %v1994_v53 = vld [vmem:[%s3110_s25 + $0x30] sm:$0xff] (%p2820_p12) }
 0x209   : > { %1987 = vst [vmem:[%s1938_s0 + $0x20] sm:$0xff] (%p2820_p12), %v1986_v49  ;;  %1989 = vst [vmem:[%s1938_s0 + $0x30] sm:$0xff] (%p2820_p12), %v1988_v50  ;;  %v1996_v54 = vld [vmem:[%s3110_s25 + $0x38] sm:$0xff] (%p2820_p12) }
 0x20a   : > { %v1992_v52 = vld [vmem:[%s3110_s25 + $0x28] sm:$0xff] (%p2820_p12)  ;;  %1991 = vst [vmem:[%s1938_s0 + $0x40] sm:$0xff] (%p2820_p12), %v1990_v51  ;;  %1995 = vst [vmem:[%s1938_s0 + $0x60] sm:$0xff] (%p2820_p12), %v1994_v53 }
 0x20b   : > { %1993 = vst [vmem:[%s1938_s0 + $0x50] sm:$0xff] (%p2820_p12), %v1992_v52  ;;  %1997 = vst [vmem:[%s1938_s0 + $0x70] sm:$0xff] (%p2820_p12), %v1996_v54 }
 0x20c   : > { %v1998_v55 = vld [vmem:[%s3110_s25 + $0x40] sm:$0xff] (%p2820_p12) }
 0x20d   : > { %1999 = vst [vmem:[%s1938_s0 + $0x80] sm:$0xff] %v1998_v55 }
 0x20e PF: > { %s13_s22 = sadd.s32 1, %s2703_s22   ;;  %s3336_s10 = sld [smem:[#allocation6_spill]] }
 0x20f   : > { %p10_p6 = scmp.ge.s32.totalorder %s13_s22, 14   ;;  %s3337_s12 = smov %s2667_s13 }
 0x210   : > { %s3338_s13 = smov %s2818_s9  ;;  %s3339_s14 = smov %s2675_s15 }
 0x211   : > { %s3340_s15 = smov %s2815_s8  ;;  %s3341_s16 = smov %s2683_s17 }
 0x212   : > { %s3342_s17 = smov %s2801_s30  ;;  %s3343_s18 = smov %s2695_s20 }
 0x213   : > { %s3344_s19 = smov %s2699_s21  ;;  %s3345_s20 = smov %s3348_s24 }
 0x214   : > { %s3346_s21 = smov %s3336_s10  ;;  %12 = sbr.rel (!%p10_p6) target bundleno = 9 (0x9), region = 185 }

// kernel: facenet_forward.9
= control target key start
LH: loop header
LB: loop body
LE: loop exit
PB: predicated region body
PF: predicated region fallthrough
CT: control target
= control target key end

     0   :  { %vm6358_vm0 = vmmov 0   ;;  %s8361_s1 = inlined_call_operand.vmem [shape: bf16[4608,256], index: 1, kind: input, shape index: {}]   ;;  %s8362_s0 = inlined_call_operand.vmem [shape: bf16[8,4608], index: 0, kind: input, shape index: {}]   ;;  %s8363_s3 = inlined_call_operand.vmem [shape: bf16[256,128], index: 3, kind: input, shape index: {}]   ;;  %s8364_s5 = inlined_call_operand.vmem [shape: bf16[128,128], index: 5, kind: input, shape index: {}]   ;;  %s8365_s2 = inlined_call_operand.vmem [shape: f32[1,256], index: 2, kind: input, shape index: {}]   ;;  %s8366_s4 = inlined_call_operand.vmem [shape: f32[1,128], index: 4, kind: input, shape index: {}]   ;;  %s8367_s6 = inlined_call_operand.vmem [shape: f32[1,128], index: 6, kind: input, shape index: {}]   ;;  %s8368_s7 = inlined_call_operand.vmem [shape: f32[8,128], index: 7, kind: output, shape index: {}]  }
   0x1   :  { %v5433_v0 = vld [vmem:[%s8361_s1 + $0x4] ss:$8 sps:$4 sm:$0xff]   ;;  %v5437_v2 = vld [vmem:[%s8361_s1] ss:$8 sps:$4 sm:$0xff]   ;;  %v5439_v4 = vld [vmem:[%s8361_s1 + $0x14] ss:$8 sps:$4 sm:$0xff]  }
   0x2   :  { %v5435_v1 = vld [vmem:[%s8361_s1 + $0x804] ss:$8 sps:$4 sm:$0xff]   ;;  %3639 = vmatprep.subr.bf16.mxu1 %v5433_v0  ;;  %v5438_v3 = vld [vmem:[%s8361_s1 + $0x800] ss:$8 sps:$4 sm:$0xff]   ;;  %v5441_v5 = vld [vmem:[%s8361_s1 + $0x814] ss:$8 sps:$4 sm:$0xff]  }
   0x3   :  { %3967 = vmatprep.subr.bf16.mxu0 %v5435_v1  ;;  %3640 = vmatpush1.bf16.msra.mxu1 %v5437_v2  ;;  %v5443_v6 = vld [vmem:[%s8361_s1 + $0x10] ss:$8 sps:$4 sm:$0xff]   ;;  %v5445_v8 = vld [vmem:[%s8361_s1 + $0x24] ss:$8 sps:$4 sm:$0xff]   ;;  %v5449_v10 = vld [vmem:[%s8361_s1 + $0x20] ss:$8 sps:$4 sm:$0xff]  }
   0x4   :  { %3968 = vmatpush1.bf16.msra.mxu0 %v5438_v3  ;;  %3641 = vmatprep.subr.bf16.mxu1 %v5439_v4  ;;  %v5444_v7 = vld [vmem:[%s8361_s1 + $0x810] ss:$8 sps:$4 sm:$0xff]   ;;  %v5447_v9 = vld [vmem:[%s8361_s1 + $0x824] ss:$8 sps:$4 sm:$0xff]   ;;  %v5450_v11 = vld [vmem:[%s8361_s1 + $0x820] ss:$8 sps:$4 sm:$0xff]  }
   0x5   :  { %3969 = vmatprep.subr.bf16.mxu0 %v5441_v5  ;;  %v5451_v12 = vld [vmem:[%s8361_s1 + $0x34] ss:$8 sps:$4 sm:$0xff]   ;;  %v5455_v14 = vld [vmem:[%s8361_s1 + $0x30] ss:$8 sps:$4 sm:$0xff]   ;;  %v5457_v16 = vld [vmem:[%s8361_s1 + $0x44] ss:$8 sps:$4 sm:$0xff]  }
   0x6   :  { %v5453_v13 = vld [vmem:[%s8361_s1 + $0x834] ss:$8 sps:$4 sm:$0xff]   ;;  %v5456_v15 = vld [vmem:[%s8361_s1 + $0x830] ss:$8 sps:$4 sm:$0xff]   ;;  %v5459_v17 = vld [vmem:[%s8361_s1 + $0x844] ss:$8 sps:$4 sm:$0xff]  }
   0x7   :  { %3642 = vmatpush1.bf16.msra.mxu1 %v5443_v6  ;;  %v5461_v18 = vld [vmem:[%s8361_s1 + $0x40] ss:$8 sps:$4 sm:$0xff]   ;;  %v5463_v20 = vld [vmem:[%s8361_s1 + $0x54] ss:$8 sps:$4 sm:$0xff]   ;;  %v5467_v22 = vld [vmem:[%s8361_s1 + $0x50] ss:$8 sps:$4 sm:$0xff]  }
   0x8   :  { %3970 = vmatpush1.bf16.msra.mxu0 %v5444_v7  ;;  %3643 = vmatprep.subr.bf16.mxu1 %v5445_v8  ;;  %v5462_v19 = vld [vmem:[%s8361_s1 + $0x840] ss:$8 sps:$4 sm:$0xff]   ;;  %v5465_v21 = vld [vmem:[%s8361_s1 + $0x854] ss:$8 sps:$4 sm:$0xff]   ;;  %v5468_v23 = vld [vmem:[%s8361_s1 + $0x850] ss:$8 sps:$4 sm:$0xff]  }
   0x9   :  { %3971 = vmatprep.subr.bf16.mxu0 %v5447_v9  ;;  %v5469_v24 = vld [vmem:[%s8361_s1 + $0x64] ss:$8 sps:$4 sm:$0xff]   ;;  %v5473_v26 = vld [vmem:[%s8361_s1 + $0x60] ss:$8 sps:$4 sm:$0xff]   ;;  %v5475_v28 = vld [vmem:[%s8361_s1 + $0x74] ss:$8 sps:$4 sm:$0xff]  }
   0xa   :  { %v5471_v25 = vld [vmem:[%s8361_s1 + $0x864] ss:$8 sps:$4 sm:$0xff]   ;;  %v5474_v27 = vld [vmem:[%s8361_s1 + $0x860] ss:$8 sps:$4 sm:$0xff]   ;;  %v5477_v29 = vld [vmem:[%s8361_s1 + $0x874] ss:$8 sps:$4 sm:$0xff]  }
   0xb   :  { %3644 = vmatpush1.bf16.msra.mxu1 %v5449_v10  ;;  %v5479_v30 = vld [vmem:[%s8361_s1 + $0x70] ss:$8 sps:$4 sm:$0xff]   ;;  %v5481_v32 = vld [vmem:[%s8361_s1 + $0x84] ss:$8 sps:$4 sm:$0xff]   ;;  %v5485_v34 = vld [vmem:[%s8361_s1 + $0x80] ss:$8 sps:$4 sm:$0xff]  }
   0xc   :  { %3972 = vmatpush1.bf16.msra.mxu0 %v5450_v11  ;;  %3645 = vmatprep.subr.bf16.mxu1 %v5451_v12  ;;  %v5480_v31 = vld [vmem:[%s8361_s1 + $0x870] ss:$8 sps:$4 sm:$0xff]   ;;  %v5483_v33 = vld [vmem:[%s8361_s1 + $0x884] ss:$8 sps:$4 sm:$0xff]   ;;  %v5486_v35 = vld [vmem:[%s8361_s1 + $0x880] ss:$8 sps:$4 sm:$0xff]  }
   0xd   :  { %3973 = vmatprep.subr.bf16.mxu0 %v5453_v13  ;;  %v5487_v36 = vld [vmem:[%s8361_s1 + $0x94] ss:$8 sps:$4 sm:$0xff]   ;;  %v5491_v38 = vld [vmem:[%s8361_s1 + $0x90] ss:$8 sps:$4 sm:$0xff]   ;;  %v5493_v40 = vld [vmem:[%s8361_s1 + $0xa4] ss:$8 sps:$4 sm:$0xff]  }
   0xe   :  { %v5489_v37 = vld [vmem:[%s8361_s1 + $0x894] ss:$8 sps:$4 sm:$0xff]   ;;  %v5492_v39 = vld [vmem:[%s8361_s1 + $0x890] ss:$8 sps:$4 sm:$0xff]   ;;  %v5495_v41 = vld [vmem:[%s8361_s1 + $0x8a4] ss:$8 sps:$4 sm:$0xff]  }
   0xf   :  { %3646 = vmatpush1.bf16.msra.mxu1 %v5455_v14  ;;  %v5497_v42 = vld [vmem:[%s8361_s1 + $0xa0] ss:$8 sps:$4 sm:$0xff]   ;;  %v5499_v44 = vld [vmem:[%s8361_s1 + $0xb4] ss:$8 sps:$4 sm:$0xff]   ;;  %v5503_v47 = vld [vmem:[%s8361_s1 + $0xb0] ss:$8 sps:$4 sm:$0xff]  }
  0x10   :  { %3974 = vmatpush1.bf16.msra.mxu0 %v5456_v15  ;;  %3647 = vmatprep.subr.bf16.mxu1 %v5457_v16  ;;  %v5498_v43 = vld [vmem:[%s8361_s1 + $0x8a0] ss:$8 sps:$4 sm:$0xff]   ;;  %v5501_v45 = vld [vmem:[%s8361_s1 + $0x8b4] ss:$8 sps:$4 sm:$0xff]   ;;  %v5504_v49 = vld [vmem:[%s8361_s1 + $0x8b0] ss:$8 sps:$4 sm:$0xff]  }
  0x11   :  { %3975 = vmatprep.subr.bf16.mxu0 %v5459_v17  ;;  %v27_v46 = vld [vmem:[%s8362_s0] sm:$0xff]  ;;  %v5511_v56 = vld [vmem:[%s8361_s1 + $0xd4] ss:$8 sps:$4 sm:$0xff]   ;;  %v5515_v58 = vld [vmem:[%s8361_s1 + $0xd0] ss:$8 sps:$4 sm:$0xff]  }
  0x12   :  { %v4675_v48 = vcombine.high %v27_v46, %v27_v46  ;;  %v35_v50 = vld [vmem:[%s8362_s0 + $0x40] sm:$0xff]  ;;  %v5513_v57 = vld [vmem:[%s8361_s1 + $0x8d4] ss:$8 sps:$4 sm:$0xff]   ;;  %v5516_v59 = vld [vmem:[%s8361_s1 + $0x8d0] ss:$8 sps:$4 sm:$0xff]   ;;  %v4674_v6 = vcombine.low %v27_v46, %v27_v46 }
  0x13   :  { %3648 = vmatpush1.bf16.msra.mxu1 %v5461_v18  ;;  %v5505_v51 = vld [vmem:[%s8361_s1 + $0xc4] ss:$8 sps:$4 sm:$0xff]   ;;  %v4691_v53 = vcombine.high %v35_v50, %v35_v50  ;;  %v5509_v54 = vld [vmem:[%s8361_s1 + $0xc0] ss:$8 sps:$4 sm:$0xff]   ;;  %v5523_v0 = vld [vmem:[%s8361_s1 + $0xf4] ss:$8 sps:$4 sm:$0xff]   ;;  %v4690_v7 = vcombine.low %v35_v50, %v35_v50 }
  0x14   :  { %3976 = vmatpush1.bf16.msra.mxu0 %v5462_v19  ;;  %3649 = vmatprep.subr.bf16.mxu1 %v5463_v20  ;;  %v5507_v52 = vld [vmem:[%s8361_s1 + $0x8c4] ss:$8 sps:$4 sm:$0xff]   ;;  %v5510_v55 = vld [vmem:[%s8361_s1 + $0x8c0] ss:$8 sps:$4 sm:$0xff]   ;;  %v5525_v1 = vld [vmem:[%s8361_s1 + $0x8f4] ss:$8 sps:$4 sm:$0xff]  }
  0x15   :  { %3977 = vmatprep.subr.bf16.mxu0 %v5465_v21  ;;  %3671 = vmatprep.mubr.bf16.mxu1 %v4675_v48  ;;  %v5517_v60 = vld [vmem:[%s8361_s1 + $0xe4] ss:$8 sps:$4 sm:$0xff]   ;;  %v5521_v62 = vld [vmem:[%s8361_s1 + $0xe0] ss:$8 sps:$4 sm:$0xff]   ;;  %v5527_v2 = vld [vmem:[%s8361_s1 + $0xf0] ss:$8 sps:$4 sm:$0xff]  }
  0x16   :  { %3999 = vmatprep.mubr.bf16.mxu0 %v4691_v53  ;;  %v5519_v61 = vld [vmem:[%s8361_s1 + $0x8e4] ss:$8 sps:$4 sm:$0xff]   ;;  %v5522_v63 = vld [vmem:[%s8361_s1 + $0x8e0] ss:$8 sps:$4 sm:$0xff]   ;;  %v5528_v3 = vld [vmem:[%s8361_s1 + $0x8f0] ss:$8 sps:$4 sm:$0xff]  }
  0x17   :  { %3650 = vmatpush1.bf16.msra.mxu1 %v5467_v22  ;;  %v5533_v4 = vld [vmem:[%s8361_s1 + $0x104] ss:$8 sps:$4 sm:$0xff]   ;;  %v5531_v8 = vld [vmem:[%s8361_s1 + $0x100] ss:$8 sps:$4 sm:$0xff]   ;;  %v5541_v10 = vld [vmem:[%s8361_s1 + $0x114] ss:$8 sps:$4 sm:$0xff]  }
  0x18   :  { %3978 = vmatpush1.bf16.msra.mxu0 %v5468_v23  ;;  %3651 = vmatprep.subr.bf16.mxu1 %v5469_v24  ;;  %v5538_v5 = vld [vmem:[%s8361_s1 + $0x904] ss:$8 sps:$4 sm:$0xff]   ;;  %v5536_v9 = vld [vmem:[%s8361_s1 + $0x900] ss:$8 sps:$4 sm:$0xff]   ;;  %v5544_v11 = vld [vmem:[%s8361_s1 + $0x914] ss:$8 sps:$4 sm:$0xff]  }
  0x19   :  { %3979 = vmatprep.subr.bf16.mxu0 %v5471_v25  ;;  %v5539_v12 = vld [vmem:[%s8361_s1 + $0x110] ss:$8 sps:$4 sm:$0xff]   ;;  %v5547_v14 = vld [vmem:[%s8361_s1 + $0x124] ss:$8 sps:$4 sm:$0xff]   ;;  %v5545_v16 = vld [vmem:[%s8361_s1 + $0x120] ss:$8 sps:$4 sm:$0xff]  }
  0x1a   :  { %v5542_v13 = vld [vmem:[%s8361_s1 + $0x910] ss:$8 sps:$4 sm:$0xff]   ;;  %v5550_v15 = vld [vmem:[%s8361_s1 + $0x924] ss:$8 sps:$4 sm:$0xff]   ;;  %v5548_v17 = vld [vmem:[%s8361_s1 + $0x920] ss:$8 sps:$4 sm:$0xff]  }
  0x1b   :  { %3652 = vmatpush1.bf16.msra.mxu1 %v5473_v26  ;;  %v5553_v18 = vld [vmem:[%s8361_s1 + $0x134] ss:$8 sps:$4 sm:$0xff]   ;;  %v5551_v20 = vld [vmem:[%s8361_s1 + $0x130] ss:$8 sps:$4 sm:$0xff]   ;;  %v5559_v22 = vld [vmem:[%s8361_s1 + $0x144] ss:$8 sps:$4 sm:$0xff]  }
  0x1c   :  { %3980 = vmatpush1.bf16.msra.mxu0 %v5474_v27  ;;  %3653 = vmatprep.subr.bf16.mxu1 %v5475_v28  ;;  %v5556_v19 = vld [vmem:[%s8361_s1 + $0x934] ss:$8 sps:$4 sm:$0xff]   ;;  %v5554_v21 = vld [vmem:[%s8361_s1 + $0x930] ss:$8 sps:$4 sm:$0xff]   ;;  %v5562_v23 = vld [vmem:[%s8361_s1 + $0x944] ss:$8 sps:$4 sm:$0xff]  }
  0x1d   :  { %3981 = vmatprep.subr.bf16.mxu0 %v5477_v29  ;;  %v5557_v24 = vld [vmem:[%s8361_s1 + $0x140] ss:$8 sps:$4 sm:$0xff]   ;;  %v5565_v26 = vld [vmem:[%s8361_s1 + $0x154] ss:$8 sps:$4 sm:$0xff]   ;;  %v5563_v28 = vld [vmem:[%s8361_s1 + $0x150] ss:$8 sps:$4 sm:$0xff]  }
  0x1e   :  { %v5560_v25 = vld [vmem:[%s8361_s1 + $0x940] ss:$8 sps:$4 sm:$0xff]   ;;  %v5568_v27 = vld [vmem:[%s8361_s1 + $0x954] ss:$8 sps:$4 sm:$0xff]   ;;  %v5566_v29 = vld [vmem:[%s8361_s1 + $0x950] ss:$8 sps:$4 sm:$0xff]  }
  0x1f   :  { %3654 = vmatpush1.bf16.msra.mxu1 %v5479_v30  ;;  %v5571_v30 = vld [vmem:[%s8361_s1 + $0x164] ss:$8 sps:$4 sm:$0xff]   ;;  %v5589_v46 = vld [vmem:[%s8361_s1 + $0x194] ss:$8 sps:$4 sm:$0xff]   ;;  %v5587_v48 = vld [vmem:[%s8361_s1 + $0x190] ss:$8 sps:$4 sm:$0xff]  }
  0x20   :  { %3982 = vmatpush1.bf16.msra.mxu0 %v5480_v31  ;;  %3655 = vmatprep.subr.bf16.mxu1 %v5481_v32  ;;  %v5574_v31 = vld [vmem:[%s8361_s1 + $0x964] ss:$8 sps:$4 sm:$0xff]   ;;  %v5596_v53 = vld [vmem:[%s8361_s1 + $0x9a0] ss:$8 sps:$4 sm:$0xff]  }
  0x21   :  { %3983 = vmatprep.subr.bf16.mxu0 %v5483_v33  ;;  %v6678_v32 = vld [vmem:[%s8362_s0 + $0x8] sm:$0xff] }
  0x22   :  { %v5569_v33 = vld [vmem:[%s8361_s1 + $0x160] ss:$8 sps:$4 sm:$0xff]   ;;  %v5595_v50 = vld [vmem:[%s8361_s1 + $0x1a4] ss:$8 sps:$4 sm:$0xff]  }
  0x23   :  { %3656 = vmatpush1.bf16.msra.mxu1 %v5485_v34  ;;  %v5572_v34 = vld [vmem:[%s8361_s1 + $0x960] ss:$8 sps:$4 sm:$0xff]  }
  0x24   :  { %3984 = vmatpush1.bf16.msra.mxu0 %v5486_v35  ;;  %3657 = vmatprep.subr.bf16.mxu1 %v5487_v36  ;;  %v4677_v35 = vcombine.high %v6678_v32, %v6678_v32  ;;  %v6691_v36 = vld [vmem:[%s8362_s0 + $0x48] sm:$0xff] }
  0x25   :  { %3985 = vmatprep.subr.bf16.mxu0 %v5489_v37  ;;  %v5577_v37 = vld [vmem:[%s8361_s1 + $0x174] ss:$8 sps:$4 sm:$0xff]  }
  0x27   :  { %3658 = vmatpush1.bf16.msra.mxu1 %v5491_v38  ;;  %v4693_v38 = vcombine.high %v6691_v36, %v6691_v36 }
  0x28   :  { %3986 = vmatpush1.bf16.msra.mxu0 %v5492_v39  ;;  %3659 = vmatprep.subr.bf16.mxu1 %v5493_v40  ;;  %v5580_v39 = vld [vmem:[%s8361_s1 + $0x974] ss:$8 sps:$4 sm:$0xff]   ;;  %v5575_v40 = vld [vmem:[%s8361_s1 + $0x170] ss:$8 sps:$4 sm:$0xff]  }
  0x29   :  { %3987 = vmatprep.subr.bf16.mxu0 %v5495_v41  ;;  %v5578_v41 = vld [vmem:[%s8361_s1 + $0x970] ss:$8 sps:$4 sm:$0xff]  }
  0x2b   :  { %3660 = vmatpush1.bf16.msra.mxu1 %v5497_v42  ;;  %v5583_v42 = vld [vmem:[%s8361_s1 + $0x184] ss:$8 sps:$4 sm:$0xff]  }
  0x2c   :  { %3988 = vmatpush1.bf16.msra.mxu0 %v5498_v43  ;;  %3661 = vmatprep.subr.bf16.mxu1 %v5499_v44  ;;  %v5586_v43 = vld [vmem:[%s8361_s1 + $0x984] ss:$8 sps:$4 sm:$0xff]   ;;  %v5581_v44 = vld [vmem:[%s8361_s1 + $0x180] ss:$8 sps:$4 sm:$0xff]  }
  0x2d   :  { %3989 = vmatprep.subr.bf16.mxu0 %v5501_v45  ;;  %v5584_v45 = vld [vmem:[%s8361_s1 + $0x980] ss:$8 sps:$4 sm:$0xff]  }
  0x2f   :  { %3662 = vmatpush1.bf16.msra.mxu1 %v5503_v47  ;;  %v5592_v47 = vld [vmem:[%s8361_s1 + $0x994] ss:$8 sps:$4 sm:$0xff]  }
  0x30   :  { %3990 = vmatpush1.bf16.msra.mxu0 %v5504_v49  ;;  %3663 = vmatprep.subr.bf16.mxu1 %v5505_v51  ;;  %v5590_v49 = vld [vmem:[%s8361_s1 + $0x990] ss:$8 sps:$4 sm:$0xff]   ;;  %v5598_v51 = vld [vmem:[%s8361_s1 + $0x9a4] ss:$8 sps:$4 sm:$0xff]  }
  0x31   :  { %3991 = vmatprep.subr.bf16.mxu0 %v5507_v52  ;;  %v5593_v52 = vld [vmem:[%s8361_s1 + $0x1a0] ss:$8 sps:$4 sm:$0xff]  }
  0x33   :  { %3664 = vmatpush1.bf16.msra.mxu1 %v5509_v54  ;;  %v5601_v54 = vld [vmem:[%s8361_s1 + $0x1b4] ss:$8 sps:$4 sm:$0xff]  }
  0x34   :  { %3992 = vmatpush1.bf16.msra.mxu0 %v5510_v55  ;;  %3665 = vmatprep.subr.bf16.mxu1 %v5511_v56  ;;  %v5604_v55 = vld [vmem:[%s8361_s1 + $0x9b4] ss:$8 sps:$4 sm:$0xff]   ;;  %v5599_v56 = vld [vmem:[%s8361_s1 + $0x1b0] ss:$8 sps:$4 sm:$0xff]  }
  0x35   :  { %3993 = vmatprep.subr.bf16.mxu0 %v5513_v57  ;;  %v5602_v57 = vld [vmem:[%s8361_s1 + $0x9b0] ss:$8 sps:$4 sm:$0xff]  }
  0x37   :  { %3666 = vmatpush1.bf16.msra.mxu1 %v5515_v58  ;;  %v5607_v58 = vld [vmem:[%s8361_s1 + $0x1c4] ss:$8 sps:$4 sm:$0xff]  }
  0x38   :  { %3994 = vmatpush1.bf16.msra.mxu0 %v5516_v59  ;;  %3667 = vmatprep.subr.bf16.mxu1 %v5517_v60  ;;  %v5610_v59 = vld [vmem:[%s8361_s1 + $0x9c4] ss:$8 sps:$4 sm:$0xff]   ;;  %v5605_v60 = vld [vmem:[%s8361_s1 + $0x1c0] ss:$8 sps:$4 sm:$0xff]  }
  0x39   :  { %3995 = vmatprep.subr.bf16.mxu0 %v5519_v61  ;;  %v5608_v61 = vld [vmem:[%s8361_s1 + $0x9c0] ss:$8 sps:$4 sm:$0xff]  }
  0x3b   :  { %3668 = vmatpush1.bf16.msra.mxu1 %v5521_v62  ;;  %v5613_v62 = vld [vmem:[%s8361_s1 + $0x1d4] ss:$8 sps:$4 sm:$0xff]  }
  0x3c   :  { %3996 = vmatpush1.bf16.msra.mxu0 %v5522_v63  ;;  %3669 = vmatprep.subr.bf16.mxu1 %v5523_v0  ;;  %v5616_v63 = vld [vmem:[%s8361_s1 + $0x9d4] ss:$8 sps:$4 sm:$0xff]   ;;  %v5611_v0 = vld [vmem:[%s8361_s1 + $0x1d0] ss:$8 sps:$4 sm:$0xff]  }
  0x3d   :  { %3997 = vmatprep.subr.bf16.mxu0 %v5525_v1  ;;  %v5614_v1 = vld [vmem:[%s8361_s1 + $0x9d0] ss:$8 sps:$4 sm:$0xff]  }
  0x3f   :  { %3670 = vmatpush1.bf16.msra.mxu1 %v5527_v2  ;;  %v5619_v2 = vld [vmem:[%s8361_s1 + $0x1e4] ss:$8 sps:$4 sm:$0xff]  }
  0x40   :  { %3998 = vmatpush1.bf16.msra.mxu0 %v5528_v3  ;;  %3680 = vmatprep.subr.bf16.mxu1 %v5533_v4  ;;  %v5622_v3 = vld [vmem:[%s8361_s1 + $0x9e4] ss:$8 sps:$4 sm:$0xff]   ;;  %v5617_v4 = vld [vmem:[%s8361_s1 + $0x1e0] ss:$8 sps:$4 sm:$0xff]  }
  0x41   :  { %4008 = vmatprep.subr.bf16.mxu0 %v5538_v5  ;;  %v5620_v5 = vld [vmem:[%s8361_s1 + $0x9e0] ss:$8 sps:$4 sm:$0xff]  }
  0x42   :  { %3672 = vmatmul.mubr.bf16.vlgmr.msra.gmra.mrb[0].mxu1 %v4674_v6  ;;  %v5625_v6 = vld [vmem:[%s8361_s1 + $0x1f4] ss:$8 sps:$4 sm:$0xff]  }
  0x43   :  { %4000 = vmatmul.mubr.bf16.vlgmr.msra.gmra.mrb[0].mxu0 %v4690_v7  ;;  %3681 = vmatpush1.bf16.msra.mxu1 %v5531_v8  ;;  %v5628_v7 = vld [vmem:[%s8361_s1 + $0x9f4] ss:$8 sps:$4 sm:$0xff]   ;;  %v5623_v8 = vld [vmem:[%s8361_s1 + $0x1f0] ss:$8 sps:$4 sm:$0xff]  }
  0x44   :  { %4009 = vmatpush1.bf16.msra.mxu0 %v5536_v9  ;;  %3682 = vmatprep.subr.bf16.mxu1 %v5541_v10  ;;  %v5626_v9 = vld [vmem:[%s8361_s1 + $0x9f0] ss:$8 sps:$4 sm:$0xff]   ;;  %v5633_v10 = vld [vmem:[%s8361_s1 + $0x204] ss:$8 sps:$4 sm:$0xff]  }
  0x45   :  { %4010 = vmatprep.subr.bf16.mxu0 %v5544_v11  ;;  %3712 = vmatprep.mubr.bf16.mxu1 %v4677_v35  ;;  %v5638_v11 = vld [vmem:[%s8361_s1 + $0xa04] ss:$8 sps:$4 sm:$0xff]   ;;  %v5660_v35 = vld [vmem:[%s8361_s1 + $0xa40] ss:$8 sps:$4 sm:$0xff]  }
  0x46   :  { %4040 = vmatprep.mubr.bf16.mxu0 %v4693_v38  ;;  %v5663_v38 = vld [vmem:[%s8361_s1 + $0x250] ss:$8 sps:$4 sm:$0xff]  }
  0x47   :  { %3683 = vmatpush1.bf16.msra.mxu1 %v5539_v12  ;;  %v4676_v12 = vcombine.low %v6678_v32, %v6678_v32  ;;  %v5659_v32 = vld [vmem:[%s8361_s1 + $0x244] ss:$8 sps:$4 sm:$0xff]  }
  0x48   :  { %4011 = vmatpush1.bf16.msra.mxu0 %v5542_v13  ;;  %3684 = vmatprep.subr.bf16.mxu1 %v5547_v14  ;;  %v5631_v13 = vld [vmem:[%s8361_s1 + $0x200] ss:$8 sps:$4 sm:$0xff]   ;;  %v4692_v14 = vcombine.low %v6691_v36, %v6691_v36  ;;  %v5665_v36 = vld [vmem:[%s8361_s1 + $0x254] ss:$8 sps:$4 sm:$0xff]  }
  0x49   :  { %4012 = vmatprep.subr.bf16.mxu0 %v5550_v15  ;;  %v5636_v15 = vld [vmem:[%s8361_s1 + $0xa00] ss:$8 sps:$4 sm:$0xff]  }
  0x4b   :  { %3685 = vmatpush1.bf16.msra.mxu1 %v5545_v16  ;;  %v5641_v16 = vld [vmem:[%s8361_s1 + $0x214] ss:$8 sps:$4 sm:$0xff]  }
  0x4c   :  { %4013 = vmatpush1.bf16.msra.mxu0 %v5548_v17  ;;  %3686 = vmatprep.subr.bf16.mxu1 %v5553_v18  ;;  %v5644_v17 = vld [vmem:[%s8361_s1 + $0xa14] ss:$8 sps:$4 sm:$0xff]  }
  0x4d   :  { %4014 = vmatprep.subr.bf16.mxu0 %v5556_v19  ;;  %v6828_v18 = vld [vmem:[%s8362_s0 + $0x10] sm:$0xff] }
  0x4e   :  { %v4679_v19 = vcombine.high %v6828_v18, %v6828_v18 }
  0x4f   :  { %3687 = vmatpush1.bf16.msra.mxu1 %v5551_v20  ;;  %v6835_v20 = vld [vmem:[%s8362_s0 + $0x50] sm:$0xff] }
  0x50   :  { %4015 = vmatpush1.bf16.msra.mxu0 %v5554_v21  ;;  %3688 = vmatprep.subr.bf16.mxu1 %v5559_v22  ;;  %v5639_v21 = vld [vmem:[%s8361_s1 + $0x210] ss:$8 sps:$4 sm:$0xff]  }
  0x51   :  { %4016 = vmatprep.subr.bf16.mxu0 %v5562_v23  ;;  %v5642_v22 = vld [vmem:[%s8361_s1 + $0xa10] ss:$8 sps:$4 sm:$0xff]   ;;  %v4695_v23 = vcombine.high %v6835_v20, %v6835_v20 }
  0x53   :  { %3689 = vmatpush1.bf16.msra.mxu1 %v5557_v24  ;;  %v5647_v24 = vld [vmem:[%s8361_s1 + $0x224] ss:$8 sps:$4 sm:$0xff]  }
  0x54   :  { %4017 = vmatpush1.bf16.msra.mxu0 %v5560_v25  ;;  %3690 = vmatprep.subr.bf16.mxu1 %v5565_v26  ;;  %v5650_v25 = vld [vmem:[%s8361_s1 + $0xa24] ss:$8 sps:$4 sm:$0xff]   ;;  %v5645_v26 = vld [vmem:[%s8361_s1 + $0x220] ss:$8 sps:$4 sm:$0xff]  }
  0x55   :  { %4018 = vmatprep.subr.bf16.mxu0 %v5568_v27  ;;  %v5648_v27 = vld [vmem:[%s8361_s1 + $0xa20] ss:$8 sps:$4 sm:$0xff]  }
  0x57   :  { %3691 = vmatpush1.bf16.msra.mxu1 %v5563_v28  ;;  %v5653_v28 = vld [vmem:[%s8361_s1 + $0x234] ss:$8 sps:$4 sm:$0xff]  }
  0x58   :  { %4019 = vmatpush1.bf16.msra.mxu0 %v5566_v29  ;;  %3692 = vmatprep.subr.bf16.mxu1 %v5571_v30  ;;  %v5656_v29 = vld [vmem:[%s8361_s1 + $0xa34] ss:$8 sps:$4 sm:$0xff]   ;;  %v5651_v30 = vld [vmem:[%s8361_s1 + $0x230] ss:$8 sps:$4 sm:$0xff]  }
  0x59   :  { %4020 = vmatprep.subr.bf16.mxu0 %v5574_v31  ;;  %v5654_v31 = vld [vmem:[%s8361_s1 + $0xa30] ss:$8 sps:$4 sm:$0xff]  }
  0x5b   :  { %3693 = vmatpush1.bf16.msra.mxu1 %v5569_v33  ;;  %v5662_v33 = vld [vmem:[%s8361_s1 + $0xa44] ss:$8 sps:$4 sm:$0xff]  }
  0x5c   :  { %4021 = vmatpush1.bf16.msra.mxu0 %v5572_v34  ;;  %3694 = vmatprep.subr.bf16.mxu1 %v5577_v37  ;;  %v5657_v34 = vld [vmem:[%s8361_s1 + $0x240] ss:$8 sps:$4 sm:$0xff]   ;;  %v5668_v37 = vld [vmem:[%s8361_s1 + $0xa54] ss:$8 sps:$4 sm:$0xff]  }
  0x5d   :  { %4022 = vmatprep.subr.bf16.mxu0 %v5580_v39  ;;  %v5666_v39 = vld [vmem:[%s8361_s1 + $0xa50] ss:$8 sps:$4 sm:$0xff]  }
  0x5f   :  { %3695 = vmatpush1.bf16.msra.mxu1 %v5575_v40  ;;  %v5671_v40 = vld [vmem:[%s8361_s1 + $0x264] ss:$8 sps:$4 sm:$0xff]  }
  0x60   :  { %4023 = vmatpush1.bf16.msra.mxu0 %v5578_v41  ;;  %3696 = vmatprep.subr.bf16.mxu1 %v5583_v42  ;;  %v5674_v41 = vld [vmem:[%s8361_s1 + $0xa64] ss:$8 sps:$4 sm:$0xff]   ;;  %v5669_v42 = vld [vmem:[%s8361_s1 + $0x260] ss:$8 sps:$4 sm:$0xff]  }
  0x61   :  { %4024 = vmatprep.subr.bf16.mxu0 %v5586_v43  ;;  %v5672_v43 = vld [vmem:[%s8361_s1 + $0xa60] ss:$8 sps:$4 sm:$0xff]  }
  0x63   :  { %3697 = vmatpush1.bf16.msra.mxu1 %v5581_v44  ;;  %v5677_v44 = vld [vmem:[%s8361_s1 + $0x274] ss:$8 sps:$4 sm:$0xff]  }
  0x64   :  { %4025 = vmatpush1.bf16.msra.mxu0 %v5584_v45  ;;  %3698 = vmatprep.subr.bf16.mxu1 %v5589_v46  ;;  %v5680_v45 = vld [vmem:[%s8361_s1 + $0xa74] ss:$8 sps:$4 sm:$0xff]   ;;  %v5675_v46 = vld [vmem:[%s8361_s1 + $0x270] ss:$8 sps:$4 sm:$0xff]  }
  0x65   :  { %4026 = vmatprep.subr.bf16.mxu0 %v5592_v47  ;;  %v5678_v47 = vld [vmem:[%s8361_s1 + $0xa70] ss:$8 sps:$4 sm:$0xff]  }
  0x67   :  { %3699 = vmatpush1.bf16.msra.mxu1 %v5587_v48  ;;  %v5683_v48 = vld [vmem:[%s8361_s1 + $0x284] ss:$8 sps:$4 sm:$0xff]  }
  0x68   :  { %4027 = vmatpush1.bf16.msra.mxu0 %v5590_v49  ;;  %3700 = vmatprep.subr.bf16.mxu1 %v5595_v50  ;;  %v5686_v49 = vld [vmem:[%s8361_s1 + $0xa84] ss:$8 sps:$4 sm:$0xff]   ;;  %v5681_v50 = vld [vmem:[%s8361_s1 + $0x280] ss:$8 sps:$4 sm:$0xff]  }
  0x69   :  { %4028 = vmatprep.subr.bf16.mxu0 %v5598_v51  ;;  %v5684_v51 = vld [vmem:[%s8361_s1 + $0xa80] ss:$8 sps:$4 sm:$0xff]  }
  0x6b   :  { %3701 = vmatpush1.bf16.msra.mxu1 %v5593_v52  ;;  %v5689_v52 = vld [vmem:[%s8361_s1 + $0x294] ss:$8 sps:$4 sm:$0xff]  }
  0x6c   :  { %4029 = vmatpush1.bf16.msra.mxu0 %v5596_v53  ;;  %3702 = vmatprep.subr.bf16.mxu1 %v5601_v54  ;;  %v5692_v53 = vld [vmem:[%s8361_s1 + $0xa94] ss:$8 sps:$4 sm:$0xff]   ;;  %v5687_v54 = vld [vmem:[%s8361_s1 + $0x290] ss:$8 sps:$4 sm:$0xff]  }
  0x6d   :  { %4030 = vmatprep.subr.bf16.mxu0 %v5604_v55  ;;  %v5690_v55 = vld [vmem:[%s8361_s1 + $0xa90] ss:$8 sps:$4 sm:$0xff]  }
  0x6f   :  { %3703 = vmatpush1.bf16.msra.mxu1 %v5599_v56  ;;  %v5695_v56 = vld [vmem:[%s8361_s1 + $0x2a4] ss:$8 sps:$4 sm:$0xff]  }
  0x70   :  { %4031 = vmatpush1.bf16.msra.mxu0 %v5602_v57  ;;  %3704 = vmatprep.subr.bf16.mxu1 %v5607_v58  ;;  %v5698_v57 = vld [vmem:[%s8361_s1 + $0xaa4] ss:$8 sps:$4 sm:$0xff]   ;;  %v5693_v58 = vld [vmem:[%s8361_s1 + $0x2a0] ss:$8 sps:$4 sm:$0xff]  }
  0x71   :  { %4032 = vmatprep.subr.bf16.mxu0 %v5610_v59  ;;  %v5696_v59 = vld [vmem:[%s8361_s1 + $0xaa0] ss:$8 sps:$4 sm:$0xff]  }
  0x73   :  { %3705 = vmatpush1.bf16.msra.mxu1 %v5605_v60  ;;  %v5701_v60 = vld [vmem:[%s8361_s1 + $0x2b4] ss:$8 sps:$4 sm:$0xff]  }
  0x74   :  { %4033 = vmatpush1.bf16.msra.mxu0 %v5608_v61  ;;  %3706 = vmatprep.subr.bf16.mxu1 %v5613_v62  ;;  %v5704_v61 = vld [vmem:[%s8361_s1 + $0xab4] ss:$8 sps:$4 sm:$0xff]   ;;  %v5699_v62 = vld [vmem:[%s8361_s1 + $0x2b0] ss:$8 sps:$4 sm:$0xff]  }
  0x75   :  { %4034 = vmatprep.subr.bf16.mxu0 %v5616_v63  ;;  %v5702_v63 = vld [vmem:[%s8361_s1 + $0xab0] ss:$8 sps:$4 sm:$0xff]  }
  0x77   :  { %3707 = vmatpush1.bf16.msra.mxu1 %v5611_v0  ;;  %v5707_v0 = vld [vmem:[%s8361_s1 + $0x2c4] ss:$8 sps:$4 sm:$0xff]  }
  0x78   :  { %4035 = vmatpush1.bf16.msra.mxu0 %v5614_v1  ;;  %3708 = vmatprep.subr.bf16.mxu1 %v5619_v2  ;;  %v5710_v1 = vld [vmem:[%s8361_s1 + $0xac4] ss:$8 sps:$4 sm:$0xff]   ;;  %v5705_v2 = vld [vmem:[%s8361_s1 + $0x2c0] ss:$8 sps:$4 sm:$0xff]  }
  0x79   :  { %4036 = vmatprep.subr.bf16.mxu0 %v5622_v3  ;;  %v5708_v3 = vld [vmem:[%s8361_s1 + $0xac0] ss:$8 sps:$4 sm:$0xff]  }
  0x7b   :  { %3709 = vmatpush1.bf16.msra.mxu1 %v5617_v4  ;;  %v5713_v4 = vld [vmem:[%s8361_s1 + $0x2d4] ss:$8 sps:$4 sm:$0xff]  }
  0x7c   :  { %4037 = vmatpush1.bf16.msra.mxu0 %v5620_v5  ;;  %3710 = vmatprep.subr.bf16.mxu1 %v5625_v6  ;;  %v5716_v5 = vld [vmem:[%s8361_s1 + $0xad4] ss:$8 sps:$4 sm:$0xff]   ;;  %v5711_v6 = vld [vmem:[%s8361_s1 + $0x2d0] ss:$8 sps:$4 sm:$0xff]  }
  0x7d   :  { %4038 = vmatprep.subr.bf16.mxu0 %v5628_v7  ;;  %v5714_v7 = vld [vmem:[%s8361_s1 + $0xad0] ss:$8 sps:$4 sm:$0xff]  }
  0x7f   :  { %3711 = vmatpush1.bf16.msra.mxu1 %v5623_v8  ;;  %v5719_v8 = vld [vmem:[%s8361_s1 + $0x2e4] ss:$8 sps:$4 sm:$0xff]  }
  0x80   :  { %4039 = vmatpush1.bf16.msra.mxu0 %v5626_v9  ;;  %3721 = vmatprep.subr.bf16.mxu1 %v5633_v10  ;;  %v5722_v9 = vld [vmem:[%s8361_s1 + $0xae4] ss:$8 sps:$4 sm:$0xff]   ;;  %v5717_v10 = vld [vmem:[%s8361_s1 + $0x2e0] ss:$8 sps:$4 sm:$0xff]  }
  0x81   :  { %4049 = vmatprep.subr.bf16.mxu0 %v5638_v11  ;;  %v5720_v11 = vld [vmem:[%s8361_s1 + $0xae0] ss:$8 sps:$4 sm:$0xff]  }
  0x82   :  { %3713 = vmatmul.mubr.bf16.vlgmr.msra.gmra.mrb[0].mxu1 %v4676_v12  ;;  %v5725_v12 = vld [vmem:[%s8361_s1 + $0x2f4] ss:$8 sps:$4 sm:$0xff]  }
  0x83   :  { %4041 = vmatmul.mubr.bf16.vlgmr.msra.gmra.mrb[0].mxu0 %v4692_v14  ;;  %3722 = vmatpush1.bf16.msra.mxu1 %v5631_v13  ;;  %v5728_v13 = vld [vmem:[%s8361_s1 + $0xaf4] ss:$8 sps:$4 sm:$0xff]   ;;  %v5723_v14 = vld [vmem:[%s8361_s1 + $0x2f0] ss:$8 sps:$4 sm:$0xff]  }
  0x84   :  { %4050 = vmatpush1.bf16.msra.mxu0 %v5636_v15  ;;  %3723 = vmatprep.subr.bf16.mxu1 %v5641_v16  ;;  %v5726_v15 = vld [vmem:[%s8361_s1 + $0xaf0] ss:$8 sps:$4 sm:$0xff]   ;;  %v5733_v16 = vld [vmem:[%s8361_s1 + $0x304] ss:$8 sps:$4 sm:$0xff]  }
  0x85   :  { %4051 = vmatprep.subr.bf16.mxu0 %v5644_v17  ;;  %3753 = vmatprep.mubr.bf16.mxu1 %v4679_v19  ;;  %v5738_v17 = vld [vmem:[%s8361_s1 + $0xb04] ss:$8 sps:$4 sm:$0xff]   ;;  %v5731_v19 = vld [vmem:[%s8361_s1 + $0x300] ss:$8 sps:$4 sm:$0xff]  }
  0x86   :  { %4081 = vmatprep.mubr.bf16.mxu0 %v4695_v23  ;;  %v4694_v23 = vcombine.low %v6835_v20, %v6835_v20 }
  0x87   :  { %3724 = vmatpush1.bf16.msra.mxu1 %v5639_v21  ;;  %v5736_v21 = vld [vmem:[%s8361_s1 + $0xb00] ss:$8 sps:$4 sm:$0xff]  }
  0x88   :  { %4052 = vmatpush1.bf16.msra.mxu0 %v5642_v22  ;;  %3725 = vmatprep.subr.bf16.mxu1 %v5647_v24  ;;  %v4678_v22 = vcombine.low %v6828_v18, %v6828_v18  ;;  %v7032_v24 = vld [vmem:[%s8362_s0 + $0x18] sm:$0xff] }
  0x89   :  { %4053 = vmatprep.subr.bf16.mxu0 %v5650_v25  ;;  %v7037_v25 = vld [vmem:[%s8362_s0 + $0x58] sm:$0xff]  ;;  %v4681_v20 = vcombine.high %v7032_v24, %v7032_v24 }
  0x8a   :  { %v5744_v18 = vld [vmem:[%s8361_s1 + $0xb14] ss:$8 sps:$4 sm:$0xff]  }
  0x8b   :  { %3726 = vmatpush1.bf16.msra.mxu1 %v5645_v26  ;;  %v5741_v26 = vld [vmem:[%s8361_s1 + $0x314] ss:$8 sps:$4 sm:$0xff]  }
  0x8c   :  { %4054 = vmatpush1.bf16.msra.mxu0 %v5648_v27  ;;  %3727 = vmatprep.subr.bf16.mxu1 %v5653_v28  ;;  %v4697_v27 = vcombine.high %v7037_v25, %v7037_v25  ;;  %v5739_v28 = vld [vmem:[%s8361_s1 + $0x310] ss:$8 sps:$4 sm:$0xff]  }
  0x8d   :  { %4055 = vmatprep.subr.bf16.mxu0 %v5656_v29  ;;  %v5742_v29 = vld [vmem:[%s8361_s1 + $0xb10] ss:$8 sps:$4 sm:$0xff]  }
  0x8f   :  { %3728 = vmatpush1.bf16.msra.mxu1 %v5651_v30  ;;  %v5747_v30 = vld [vmem:[%s8361_s1 + $0x324] ss:$8 sps:$4 sm:$0xff]  }
  0x90   :  { %4056 = vmatpush1.bf16.msra.mxu0 %v5654_v31  ;;  %3729 = vmatprep.subr.bf16.mxu1 %v5659_v32  ;;  %v5750_v31 = vld [vmem:[%s8361_s1 + $0xb24] ss:$8 sps:$4 sm:$0xff]   ;;  %v5745_v32 = vld [vmem:[%s8361_s1 + $0x320] ss:$8 sps:$4 sm:$0xff]  }
  0x91   :  { %4057 = vmatprep.subr.bf16.mxu0 %v5662_v33  ;;  %v5748_v33 = vld [vmem:[%s8361_s1 + $0xb20] ss:$8 sps:$4 sm:$0xff]  }
  0x93   :  { %3730 = vmatpush1.bf16.msra.mxu1 %v5657_v34  ;;  %v5753_v34 = vld [vmem:[%s8361_s1 + $0x334] ss:$8 sps:$4 sm:$0xff]  }
  0x94   :  { %4058 = vmatpush1.bf16.msra.mxu0 %v5660_v35  ;;  %3731 = vmatprep.subr.bf16.mxu1 %v5665_v36  ;;  %v5756_v35 = vld [vmem:[%s8361_s1 + $0xb34] ss:$8 sps:$4 sm:$0xff]   ;;  %v5751_v36 = vld [vmem:[%s8361_s1 + $0x330] ss:$8 sps:$4 sm:$0xff]  }
  0x95   :  { %4059 = vmatprep.subr.bf16.mxu0 %v5668_v37  ;;  %v5754_v37 = vld [vmem:[%s8361_s1 + $0xb30] ss:$8 sps:$4 sm:$0xff]  }
  0x97   :  { %3732 = vmatpush1.bf16.msra.mxu1 %v5663_v38  ;;  %v5759_v38 = vld [vmem:[%s8361_s1 + $0x344] ss:$8 sps:$4 sm:$0xff]  }
  0x98   :  { %4060 = vmatpush1.bf16.msra.mxu0 %v5666_v39  ;;  %3733 = vmatprep.subr.bf16.mxu1 %v5671_v40  ;;  %v5762_v39 = vld [vmem:[%s8361_s1 + $0xb44] ss:$8 sps:$4 sm:$0xff]   ;;  %v5757_v40 = vld [vmem:[%s8361_s1 + $0x340] ss:$8 sps:$4 sm:$0xff]  }
  0x99   :  { %4061 = vmatprep.subr.bf16.mxu0 %v5674_v41  ;;  %v5760_v41 = vld [vmem:[%s8361_s1 + $0xb40] ss:$8 sps:$4 sm:$0xff]  }
  0x9b   :  { %3734 = vmatpush1.bf16.msra.mxu1 %v5669_v42  ;;  %v5765_v42 = vld [vmem:[%s8361_s1 + $0x354] ss:$8 sps:$4 sm:$0xff]  }
  0x9c   :  { %4062 = vmatpush1.bf16.msra.mxu0 %v5672_v43  ;;  %3735 = vmatprep.subr.bf16.mxu1 %v5677_v44  ;;  %v5768_v43 = vld [vmem:[%s8361_s1 + $0xb54] ss:$8 sps:$4 sm:$0xff]   ;;  %v5763_v44 = vld [vmem:[%s8361_s1 + $0x350] ss:$8 sps:$4 sm:$0xff]  }
  0x9d   :  { %4063 = vmatprep.subr.bf16.mxu0 %v5680_v45  ;;  %v5766_v45 = vld [vmem:[%s8361_s1 + $0xb50] ss:$8 sps:$4 sm:$0xff]  }
  0x9f   :  { %3736 = vmatpush1.bf16.msra.mxu1 %v5675_v46  ;;  %v5771_v46 = vld [vmem:[%s8361_s1 + $0x364] ss:$8 sps:$4 sm:$0xff]  }
  0xa0   :  { %4064 = vmatpush1.bf16.msra.mxu0 %v5678_v47  ;;  %3737 = vmatprep.subr.bf16.mxu1 %v5683_v48  ;;  %v5774_v47 = vld [vmem:[%s8361_s1 + $0xb64] ss:$8 sps:$4 sm:$0xff]   ;;  %v5769_v48 = vld [vmem:[%s8361_s1 + $0x360] ss:$8 sps:$4 sm:$0xff]  }
  0xa1   :  { %4065 = vmatprep.subr.bf16.mxu0 %v5686_v49  ;;  %v5772_v49 = vld [vmem:[%s8361_s1 + $0xb60] ss:$8 sps:$4 sm:$0xff]  }
  0xa3   :  { %3738 = vmatpush1.bf16.msra.mxu1 %v5681_v50  ;;  %v5777_v50 = vld [vmem:[%s8361_s1 + $0x374] ss:$8 sps:$4 sm:$0xff]  }
  0xa4   :  { %4066 = vmatpush1.bf16.msra.mxu0 %v5684_v51  ;;  %3739 = vmatprep.subr.bf16.mxu1 %v5689_v52  ;;  %v5780_v51 = vld [vmem:[%s8361_s1 + $0xb74] ss:$8 sps:$4 sm:$0xff]   ;;  %v5775_v52 = vld [vmem:[%s8361_s1 + $0x370] ss:$8 sps:$4 sm:$0xff]  }
  0xa5   :  { %4067 = vmatprep.subr.bf16.mxu0 %v5692_v53  ;;  %v5778_v53 = vld [vmem:[%s8361_s1 + $0xb70] ss:$8 sps:$4 sm:$0xff]  }
  0xa7   :  { %3740 = vmatpush1.bf16.msra.mxu1 %v5687_v54  ;;  %v5783_v54 = vld [vmem:[%s8361_s1 + $0x384] ss:$8 sps:$4 sm:$0xff]  }
  0xa8   :  { %4068 = vmatpush1.bf16.msra.mxu0 %v5690_v55  ;;  %3741 = vmatprep.subr.bf16.mxu1 %v5695_v56  ;;  %v5786_v55 = vld [vmem:[%s8361_s1 + $0xb84] ss:$8 sps:$4 sm:$0xff]   ;;  %v5781_v56 = vld [vmem:[%s8361_s1 + $0x380] ss:$8 sps:$4 sm:$0xff]  }
  0xa9   :  { %4069 = vmatprep.subr.bf16.mxu0 %v5698_v57  ;;  %v5784_v57 = vld [vmem:[%s8361_s1 + $0xb80] ss:$8 sps:$4 sm:$0xff]  }
  0xab   :  { %3742 = vmatpush1.bf16.msra.mxu1 %v5693_v58  ;;  %v5789_v58 = vld [vmem:[%s8361_s1 + $0x394] ss:$8 sps:$4 sm:$0xff]  }
  0xac   :  { %4070 = vmatpush1.bf16.msra.mxu0 %v5696_v59  ;;  %3743 = vmatprep.subr.bf16.mxu1 %v5701_v60  ;;  %v5792_v59 = vld [vmem:[%s8361_s1 + $0xb94] ss:$8 sps:$4 sm:$0xff]   ;;  %v5787_v60 = vld [vmem:[%s8361_s1 + $0x390] ss:$8 sps:$4 sm:$0xff]  }
  0xad   :  { %4071 = vmatprep.subr.bf16.mxu0 %v5704_v61  ;;  %v5790_v61 = vld [vmem:[%s8361_s1 + $0xb90] ss:$8 sps:$4 sm:$0xff]  }
  0xaf   :  { %3744 = vmatpush1.bf16.msra.mxu1 %v5699_v62  ;;  %v5795_v62 = vld [vmem:[%s8361_s1 + $0x3a4] ss:$8 sps:$4 sm:$0xff]  }
  0xb0   :  { %4072 = vmatpush1.bf16.msra.mxu0 %v5702_v63  ;;  %3745 = vmatprep.subr.bf16.mxu1 %v5707_v0  ;;  %v5798_v63 = vld [vmem:[%s8361_s1 + $0xba4] ss:$8 sps:$4 sm:$0xff]   ;;  %v5793_v0 = vld [vmem:[%s8361_s1 + $0x3a0] ss:$8 sps:$4 sm:$0xff]  }
  0xb1   :  { %4073 = vmatprep.subr.bf16.mxu0 %v5710_v1  ;;  %v5796_v1 = vld [vmem:[%s8361_s1 + $0xba0] ss:$8 sps:$4 sm:$0xff]  }
  0xb3   :  { %3746 = vmatpush1.bf16.msra.mxu1 %v5705_v2  ;;  %v5801_v2 = vld [vmem:[%s8361_s1 + $0x3b4] ss:$8 sps:$4 sm:$0xff]  }
  0xb4   :  { %4074 = vmatpush1.bf16.msra.mxu0 %v5708_v3  ;;  %3747 = vmatprep.subr.bf16.mxu1 %v5713_v4  ;;  %v5804_v3 = vld [vmem:[%s8361_s1 + $0xbb4] ss:$8 sps:$4 sm:$0xff]   ;;  %v5799_v4 = vld [vmem:[%s8361_s1 + $0x3b0] ss:$8 sps:$4 sm:$0xff]  }
  0xb5   :  { %4075 = vmatprep.subr.bf16.mxu0 %v5716_v5  ;;  %v5802_v5 = vld [vmem:[%s8361_s1 + $0xbb0] ss:$8 sps:$4 sm:$0xff]  }
  0xb7   :  { %3748 = vmatpush1.bf16.msra.mxu1 %v5711_v6  ;;  %v5807_v6 = vld [vmem:[%s8361_s1 + $0x3c4] ss:$8 sps:$4 sm:$0xff]  }
  0xb8   :  { %4076 = vmatpush1.bf16.msra.mxu0 %v5714_v7  ;;  %3749 = vmatprep.subr.bf16.mxu1 %v5719_v8  ;;  %v5810_v7 = vld [vmem:[%s8361_s1 + $0xbc4] ss:$8 sps:$4 sm:$0xff]   ;;  %v5805_v8 = vld [vmem:[%s8361_s1 + $0x3c0] ss:$8 sps:$4 sm:$0xff]  }
  0xb9   :  { %4077 = vmatprep.subr.bf16.mxu0 %v5722_v9  ;;  %v5808_v9 = vld [vmem:[%s8361_s1 + $0xbc0] ss:$8 sps:$4 sm:$0xff]  }
  0xbb   :  { %3750 = vmatpush1.bf16.msra.mxu1 %v5717_v10  ;;  %v5813_v10 = vld [vmem:[%s8361_s1 + $0x3d4] ss:$8 sps:$4 sm:$0xff]  }
  0xbc   :  { %4078 = vmatpush1.bf16.msra.mxu0 %v5720_v11  ;;  %3751 = vmatprep.subr.bf16.mxu1 %v5725_v12  ;;  %v5816_v11 = vld [vmem:[%s8361_s1 + $0xbd4] ss:$8 sps:$4 sm:$0xff]   ;;  %v5811_v12 = vld [vmem:[%s8361_s1 + $0x3d0] ss:$8 sps:$4 sm:$0xff]  }
  0xbd   :  { %4079 = vmatprep.subr.bf16.mxu0 %v5728_v13  ;;  %v5814_v13 = vld [vmem:[%s8361_s1 + $0xbd0] ss:$8 sps:$4 sm:$0xff]  }
  0xbf   :  { %3752 = vmatpush1.bf16.msra.mxu1 %v5723_v14  ;;  %v5819_v14 = vld [vmem:[%s8361_s1 + $0x3e4] ss:$8 sps:$4 sm:$0xff]  }
  0xc0   :  { %4080 = vmatpush1.bf16.msra.mxu0 %v5726_v15  ;;  %3762 = vmatprep.subr.bf16.mxu1 %v5733_v16  ;;  %v5822_v15 = vld [vmem:[%s8361_s1 + $0xbe4] ss:$8 sps:$4 sm:$0xff]   ;;  %v5817_v16 = vld [vmem:[%s8361_s1 + $0x3e0] ss:$8 sps:$4 sm:$0xff]  }
  0xc1   :  { %4090 = vmatprep.subr.bf16.mxu0 %v5738_v17  ;;  %v5820_v17 = vld [vmem:[%s8361_s1 + $0xbe0] ss:$8 sps:$4 sm:$0xff]  }
  0xc2   :  { %3754 = vmatmul.mubr.bf16.vlgmr.msra.gmra.mrb[0].mxu1 %v4678_v22  ;;  %v5823_v22 = vld [vmem:[%s8361_s1 + $0x3f0] ss:$8 sps:$4 sm:$0xff]  }
  0xc3   :  { %4082 = vmatmul.mubr.bf16.vlgmr.msra.gmra.mrb[0].mxu0 %v4694_v23  ;;  %3763 = vmatpush1.bf16.msra.mxu1 %v5731_v19  ;;  %v5825_v19 = vld [vmem:[%s8361_s1 + $0x3f4] ss:$8 sps:$4 sm:$0xff]   ;;  %v5826_v23 = vld [vmem:[%s8361_s1 + $0xbf0] ss:$8 sps:$4 sm:$0xff]  }
  0xc4   :  { %4091 = vmatpush1.bf16.msra.mxu0 %v5736_v21  ;;  %3764 = vmatprep.subr.bf16.mxu1 %v5741_v26  ;;  %v5828_v21 = vld [vmem:[%s8361_s1 + $0xbf4] ss:$8 sps:$4 sm:$0xff]   ;;  %v5833_v26 = vld [vmem:[%s8361_s1 + $0x404] ss:$8 sps:$4 sm:$0xff]  }
  0xc5   :  { %4092 = vmatprep.subr.bf16.mxu0 %v5744_v18  ;;  %3794 = vmatprep.mubr.bf16.mxu1 %v4681_v20  ;;  %v5838_v18 = vld [vmem:[%s8361_s1 + $0xc04] ss:$8 sps:$4 sm:$0xff]  }
  0xc6   :  { %4122 = vmatprep.mubr.bf16.mxu0 %v4697_v27  ;;  %v7232_v20 = vld [vmem:[%s8362_s0 + $0x20] sm:$0xff]  ;;  %v4680_v27 = vcombine.low %v7032_v24, %v7032_v24  ;;  %v5841_v24 = vld [vmem:[%s8361_s1 + $0x414] ss:$8 sps:$4 sm:$0xff]  }
  0xc7   :  { %3765 = vmatpush1.bf16.msra.mxu1 %v5739_v28  ;;  %v4696_v28 = vcombine.low %v7037_v25, %v7037_v25  ;;  %v5844_v25 = vld [vmem:[%s8361_s1 + $0xc14] ss:$8 sps:$4 sm:$0xff]  }
  0xc8   :  { %4093 = vmatpush1.bf16.msra.mxu0 %v5742_v29  ;;  %3766 = vmatprep.subr.bf16.mxu1 %v5747_v30  ;;  %v7241_v29 = vld [vmem:[%s8362_s0 + $0x60] sm:$0xff] }
  0xc9   :  { %4094 = vmatprep.subr.bf16.mxu0 %v5750_v31  ;;  %v5831_v30 = vld [vmem:[%s8361_s1 + $0x400] ss:$8 sps:$4 sm:$0xff]  }
  0xca   :  { %v5836_v31 = vld [vmem:[%s8361_s1 + $0xc00] ss:$8 sps:$4 sm:$0xff]  }
  0xcb   :  { %3767 = vmatpush1.bf16.msra.mxu1 %v5745_v32  ;;  %v4683_v32 = vcombine.high %v7232_v20, %v7232_v20 }
  0xcc   :  { %4095 = vmatpush1.bf16.msra.mxu0 %v5748_v33  ;;  %3768 = vmatprep.subr.bf16.mxu1 %v5753_v34  ;;  %v4699_v33 = vcombine.high %v7241_v29, %v7241_v29  ;;  %v5839_v34 = vld [vmem:[%s8361_s1 + $0x410] ss:$8 sps:$4 sm:$0xff]  }
  0xcd   :  { %4096 = vmatprep.subr.bf16.mxu0 %v5756_v35  ;;  %v5842_v35 = vld [vmem:[%s8361_s1 + $0xc10] ss:$8 sps:$4 sm:$0xff]  }
  0xcf   :  { %3769 = vmatpush1.bf16.msra.mxu1 %v5751_v36  ;;  %v5847_v36 = vld [vmem:[%s8361_s1 + $0x424] ss:$8 sps:$4 sm:$0xff]  }
  0xd0   :  { %4097 = vmatpush1.bf16.msra.mxu0 %v5754_v37  ;;  %3770 = vmatprep.subr.bf16.mxu1 %v5759_v38  ;;  %v5850_v37 = vld [vmem:[%s8361_s1 + $0xc24] ss:$8 sps:$4 sm:$0xff]   ;;  %v5845_v38 = vld [vmem:[%s8361_s1 + $0x420] ss:$8 sps:$4 sm:$0xff]  }
  0xd1   :  { %4098 = vmatprep.subr.bf16.mxu0 %v5762_v39  ;;  %v5848_v39 = vld [vmem:[%s8361_s1 + $0xc20] ss:$8 sps:$4 sm:$0xff]  }
  0xd3   :  { %3771 = vmatpush1.bf16.msra.mxu1 %v5757_v40  ;;  %v5853_v40 = vld [vmem:[%s8361_s1 + $0x434] ss:$8 sps:$4 sm:$0xff]  }
  0xd4   :  { %4099 = vmatpush1.bf16.msra.mxu0 %v5760_v41  ;;  %3772 = vmatprep.subr.bf16.mxu1 %v5765_v42  ;;  %v5856_v41 = vld [vmem:[%s8361_s1 + $0xc34] ss:$8 sps:$4 sm:$0xff]   ;;  %v5851_v42 = vld [vmem:[%s8361_s1 + $0x430] ss:$8 sps:$4 sm:$0xff]  }
  0xd5   :  { %4100 = vmatprep.subr.bf16.mxu0 %v5768_v43  ;;  %v5854_v43 = vld [vmem:[%s8361_s1 + $0xc30] ss:$8 sps:$4 sm:$0xff]  }
  0xd7   :  { %3773 = vmatpush1.bf16.msra.mxu1 %v5763_v44  ;;  %v5859_v44 = vld [vmem:[%s8361_s1 + $0x444] ss:$8 sps:$4 sm:$0xff]  }
  0xd8   :  { %4101 = vmatpush1.bf16.msra.mxu0 %v5766_v45  ;;  %3774 = vmatprep.subr.bf16.mxu1 %v5771_v46  ;;  %v5862_v45 = vld [vmem:[%s8361_s1 + $0xc44] ss:$8 sps:$4 sm:$0xff]   ;;  %v5857_v46 = vld [vmem:[%s8361_s1 + $0x440] ss:$8 sps:$4 sm:$0xff]  }
  0xd9   :  { %4102 = vmatprep.subr.bf16.mxu0 %v5774_v47  ;;  %v5860_v47 = vld [vmem:[%s8361_s1 + $0xc40] ss:$8 sps:$4 sm:$0xff]  }
  0xdb   :  { %3775 = vmatpush1.bf16.msra.mxu1 %v5769_v48  ;;  %v5865_v48 = vld [vmem:[%s8361_s1 + $0x454] ss:$8 sps:$4 sm:$0xff]  }
  0xdc   :  { %4103 = vmatpush1.bf16.msra.mxu0 %v5772_v49  ;;  %3776 = vmatprep.subr.bf16.mxu1 %v5777_v50  ;;  %v5868_v49 = vld [vmem:[%s8361_s1 + $0xc54] ss:$8 sps:$4 sm:$0xff]   ;;  %v5863_v50 = vld [vmem:[%s8361_s1 + $0x450] ss:$8 sps:$4 sm:$0xff]  }
  0xdd   :  { %4104 = vmatprep.subr.bf16.mxu0 %v5780_v51  ;;  %v5866_v51 = vld [vmem:[%s8361_s1 + $0xc50] ss:$8 sps:$4 sm:$0xff]  }
  0xdf   :  { %3777 = vmatpush1.bf16.msra.mxu1 %v5775_v52  ;;  %v5871_v52 = vld [vmem:[%s8361_s1 + $0x464] ss:$8 sps:$4 sm:$0xff]  }
  0xe0   :  { %4105 = vmatpush1.bf16.msra.mxu0 %v5778_v53  ;;  %3778 = vmatprep.subr.bf16.mxu1 %v5783_v54  ;;  %v5874_v53 = vld [vmem:[%s8361_s1 + $0xc64] ss:$8 sps:$4 sm:$0xff]   ;;  %v5869_v54 = vld [vmem:[%s8361_s1 + $0x460] ss:$8 sps:$4 sm:$0xff]  }
  0xe1   :  { %4106 = vmatprep.subr.bf16.mxu0 %v5786_v55  ;;  %v5872_v55 = vld [vmem:[%s8361_s1 + $0xc60] ss:$8 sps:$4 sm:$0xff]  }
  0xe3   :  { %3779 = vmatpush1.bf16.msra.mxu1 %v5781_v56  ;;  %v5877_v56 = vld [vmem:[%s8361_s1 + $0x474] ss:$8 sps:$4 sm:$0xff]  }
  0xe4   :  { %4107 = vmatpush1.bf16.msra.mxu0 %v5784_v57  ;;  %3780 = vmatprep.subr.bf16.mxu1 %v5789_v58  ;;  %v5880_v57 = vld [vmem:[%s8361_s1 + $0xc74] ss:$8 sps:$4 sm:$0xff]   ;;  %v5875_v58 = vld [vmem:[%s8361_s1 + $0x470] ss:$8 sps:$4 sm:$0xff]  }
  0xe5   :  { %4108 = vmatprep.subr.bf16.mxu0 %v5792_v59  ;;  %v5878_v59 = vld [vmem:[%s8361_s1 + $0xc70] ss:$8 sps:$4 sm:$0xff]  }
  0xe7   :  { %3781 = vmatpush1.bf16.msra.mxu1 %v5787_v60  ;;  %v5883_v60 = vld [vmem:[%s8361_s1 + $0x484] ss:$8 sps:$4 sm:$0xff]  }
  0xe8   :  { %4109 = vmatpush1.bf16.msra.mxu0 %v5790_v61  ;;  %3782 = vmatprep.subr.bf16.mxu1 %v5795_v62  ;;  %v5886_v61 = vld [vmem:[%s8361_s1 + $0xc84] ss:$8 sps:$4 sm:$0xff]   ;;  %v5881_v62 = vld [vmem:[%s8361_s1 + $0x480] ss:$8 sps:$4 sm:$0xff]  }
  0xe9   :  { %4110 = vmatprep.subr.bf16.mxu0 %v5798_v63  ;;  %v5884_v63 = vld [vmem:[%s8361_s1 + $0xc80] ss:$8 sps:$4 sm:$0xff]  }
  0xeb   :  { %3783 = vmatpush1.bf16.msra.mxu1 %v5793_v0  ;;  %v5889_v0 = vld [vmem:[%s8361_s1 + $0x494] ss:$8 sps:$4 sm:$0xff]  }
  0xec   :  { %4111 = vmatpush1.bf16.msra.mxu0 %v5796_v1  ;;  %3784 = vmatprep.subr.bf16.mxu1 %v5801_v2  ;;  %v5892_v1 = vld [vmem:[%s8361_s1 + $0xc94] ss:$8 sps:$4 sm:$0xff]   ;;  %v5887_v2 = vld [vmem:[%s8361_s1 + $0x490] ss:$8 sps:$4 sm:$0xff]  }
  0xed   :  { %4112 = vmatprep.subr.bf16.mxu0 %v5804_v3  ;;  %v5890_v3 = vld [vmem:[%s8361_s1 + $0xc90] ss:$8 sps:$4 sm:$0xff]  }
  0xef   :  { %3785 = vmatpush1.bf16.msra.mxu1 %v5799_v4  ;;  %v5895_v4 = vld [vmem:[%s8361_s1 + $0x4a4] ss:$8 sps:$4 sm:$0xff]  }
  0xf0   :  { %4113 = vmatpush1.bf16.msra.mxu0 %v5802_v5  ;;  %3786 = vmatprep.subr.bf16.mxu1 %v5807_v6  ;;  %v5898_v5 = vld [vmem:[%s8361_s1 + $0xca4] ss:$8 sps:$4 sm:$0xff]   ;;  %v5893_v6 = vld [vmem:[%s8361_s1 + $0x4a0] ss:$8 sps:$4 sm:$0xff]  }
  0xf1   :  { %4114 = vmatprep.subr.bf16.mxu0 %v5810_v7  ;;  %v5896_v7 = vld [vmem:[%s8361_s1 + $0xca0] ss:$8 sps:$4 sm:$0xff]  }
  0xf3   :  { %3787 = vmatpush1.bf16.msra.mxu1 %v5805_v8  ;;  %v5901_v8 = vld [vmem:[%s8361_s1 + $0x4b4] ss:$8 sps:$4 sm:$0xff]  }
  0xf4   :  { %4115 = vmatpush1.bf16.msra.mxu0 %v5808_v9  ;;  %3788 = vmatprep.subr.bf16.mxu1 %v5813_v10  ;;  %v5904_v9 = vld [vmem:[%s8361_s1 + $0xcb4] ss:$8 sps:$4 sm:$0xff]   ;;  %v5899_v10 = vld [vmem:[%s8361_s1 + $0x4b0] ss:$8 sps:$4 sm:$0xff]  }
  0xf5   :  { %4116 = vmatprep.subr.bf16.mxu0 %v5816_v11  ;;  %v5902_v11 = vld [vmem:[%s8361_s1 + $0xcb0] ss:$8 sps:$4 sm:$0xff]  }
  0xf7   :  { %3789 = vmatpush1.bf16.msra.mxu1 %v5811_v12  ;;  %v5907_v12 = vld [vmem:[%s8361_s1 + $0x4c4] ss:$8 sps:$4 sm:$0xff]  }
  0xf8   :  { %4117 = vmatpush1.bf16.msra.mxu0 %v5814_v13  ;;  %3790 = vmatprep.subr.bf16.mxu1 %v5819_v14  ;;  %v5910_v13 = vld [vmem:[%s8361_s1 + $0xcc4] ss:$8 sps:$4 sm:$0xff]   ;;  %v5905_v14 = vld [vmem:[%s8361_s1 + $0x4c0] ss:$8 sps:$4 sm:$0xff]  }
  0xf9   :  { %4118 = vmatprep.subr.bf16.mxu0 %v5822_v15  ;;  %v5908_v15 = vld [vmem:[%s8361_s1 + $0xcc0] ss:$8 sps:$4 sm:$0xff]  }
  0xfb   :  { %3791 = vmatpush1.bf16.msra.mxu1 %v5817_v16  ;;  %v5913_v16 = vld [vmem:[%s8361_s1 + $0x4d4] ss:$8 sps:$4 sm:$0xff]  }
  0xfc   :  { %4119 = vmatpush1.bf16.msra.mxu0 %v5820_v17  ;;  %3792 = vmatprep.subr.bf16.mxu1 %v5825_v19  ;;  %v5916_v17 = vld [vmem:[%s8361_s1 + $0xcd4] ss:$8 sps:$4 sm:$0xff]   ;;  %v5911_v19 = vld [vmem:[%s8361_s1 + $0x4d0] ss:$8 sps:$4 sm:$0xff]  }
  0xfd   :  { %4120 = vmatprep.subr.bf16.mxu0 %v5828_v21  ;;  %v5914_v21 = vld [vmem:[%s8361_s1 + $0xcd0] ss:$8 sps:$4 sm:$0xff]  }
  0xff   :  { %3793 = vmatpush1.bf16.msra.mxu1 %v5823_v22  ;;  %v5919_v22 = vld [vmem:[%s8361_s1 + $0x4e4] ss:$8 sps:$4 sm:$0xff]  }
 0x100   :  { %4121 = vmatpush1.bf16.msra.mxu0 %v5826_v23  ;;  %3803 = vmatprep.subr.bf16.mxu1 %v5833_v26  ;;  %v5922_v23 = vld [vmem:[%s8361_s1 + $0xce4] ss:$8 sps:$4 sm:$0xff]   ;;  %v5917_v26 = vld [vmem:[%s8361_s1 + $0x4e0] ss:$8 sps:$4 sm:$0xff]  }
 0x101   :  { %4131 = vmatprep.subr.bf16.mxu0 %v5838_v18  ;;  %v5920_v18 = vld [vmem:[%s8361_s1 + $0xce0] ss:$8 sps:$4 sm:$0xff]  }
 0x102   :  { %3795 = vmatmul.mubr.bf16.vlgmr.msra.gmra.mrb[0].mxu1 %v4680_v27  ;;  %v5925_v27 = vld [vmem:[%s8361_s1 + $0x4f4] ss:$8 sps:$4 sm:$0xff]  }
 0x103   :  { %4123 = vmatmul.mubr.bf16.vlgmr.msra.gmra.mrb[0].mxu0 %v4696_v28  ;;  %3804 = vmatpush1.bf16.msra.mxu1 %v5831_v30  ;;  %v5928_v28 = vld [vmem:[%s8361_s1 + $0xcf4] ss:$8 sps:$4 sm:$0xff]   ;;  %v5923_v30 = vld [vmem:[%s8361_s1 + $0x4f0] ss:$8 sps:$4 sm:$0xff]  }
 0x104   :  { %4132 = vmatpush1.bf16.msra.mxu0 %v5836_v31  ;;  %3805 = vmatprep.subr.bf16.mxu1 %v5841_v24  ;;  %v5926_v31 = vld [vmem:[%s8361_s1 + $0xcf0] ss:$8 sps:$4 sm:$0xff]   ;;  %v5933_v24 = vld [vmem:[%s8361_s1 + $0x504] ss:$8 sps:$4 sm:$0xff]  }
 0x105   :  { %4133 = vmatprep.subr.bf16.mxu0 %v5844_v25  ;;  %3835 = vmatprep.mubr.bf16.mxu1 %v4683_v32  ;;  %v5938_v25 = vld [vmem:[%s8361_s1 + $0xd04] ss:$8 sps:$4 sm:$0xff]  }
 0x106   :  { %4163 = vmatprep.mubr.bf16.mxu0 %v4699_v33  ;;  %v7442_v32 = vld [vmem:[%s8362_s0 + $0x28] sm:$0xff] }
 0x107   :  { %3806 = vmatpush1.bf16.msra.mxu1 %v5839_v34  ;;  %v7447_v33 = vld [vmem:[%s8362_s0 + $0x68] sm:$0xff]  ;;  %v4682_v34 = vcombine.low %v7232_v20, %v7232_v20  ;;  %v5944_v20 = vld [vmem:[%s8361_s1 + $0xd14] ss:$8 sps:$4 sm:$0xff]  }
 0x108   :  { %4134 = vmatpush1.bf16.msra.mxu0 %v5842_v35  ;;  %3807 = vmatprep.subr.bf16.mxu1 %v5847_v36  ;;  %v4698_v35 = vcombine.low %v7241_v29, %v7241_v29  ;;  %v5931_v36 = vld [vmem:[%s8361_s1 + $0x500] ss:$8 sps:$4 sm:$0xff]   ;;  %v4685_v29 = vcombine.high %v7442_v32, %v7442_v32 }
 0x109   :  { %4135 = vmatprep.subr.bf16.mxu0 %v5850_v37  ;;  %v5936_v37 = vld [vmem:[%s8361_s1 + $0xd00] ss:$8 sps:$4 sm:$0xff]  }
 0x10b   :  { %3808 = vmatpush1.bf16.msra.mxu1 %v5845_v38  ;;  %v5941_v38 = vld [vmem:[%s8361_s1 + $0x514] ss:$8 sps:$4 sm:$0xff]  }
 0x10c   :  { %4136 = vmatpush1.bf16.msra.mxu0 %v5848_v39  ;;  %3809 = vmatprep.subr.bf16.mxu1 %v5853_v40  ;;  %v4701_v39 = vcombine.high %v7447_v33, %v7447_v33  ;;  %v5939_v40 = vld [vmem:[%s8361_s1 + $0x510] ss:$8 sps:$4 sm:$0xff]  }
 0x10d   :  { %4137 = vmatprep.subr.bf16.mxu0 %v5856_v41  ;;  %v5942_v41 = vld [vmem:[%s8361_s1 + $0xd10] ss:$8 sps:$4 sm:$0xff]  }
 0x10f   :  { %3810 = vmatpush1.bf16.msra.mxu1 %v5851_v42  ;;  %v5947_v42 = vld [vmem:[%s8361_s1 + $0x524] ss:$8 sps:$4 sm:$0xff]  }
 0x110   :  { %4138 = vmatpush1.bf16.msra.mxu0 %v5854_v43  ;;  %3811 = vmatprep.subr.bf16.mxu1 %v5859_v44  ;;  %v5950_v43 = vld [vmem:[%s8361_s1 + $0xd24] ss:$8 sps:$4 sm:$0xff]   ;;  %v5945_v44 = vld [vmem:[%s8361_s1 + $0x520] ss:$8 sps:$4 sm:$0xff]  }
 0x111   :  { %4139 = vmatprep.subr.bf16.mxu0 %v5862_v45  ;;  %v5948_v45 = vld [vmem:[%s8361_s1 + $0xd20] ss:$8 sps:$4 sm:$0xff]  }
 0x113   :  { %3812 = vmatpush1.bf16.msra.mxu1 %v5857_v46  ;;  %v5953_v46 = vld [vmem:[%s8361_s1 + $0x534] ss:$8 sps:$4 sm:$0xff]  }
 0x114   :  { %4140 = vmatpush1.bf16.msra.mxu0 %v5860_v47  ;;  %3813 = vmatprep.subr.bf16.mxu1 %v5865_v48  ;;  %v5956_v47 = vld [vmem:[%s8361_s1 + $0xd34] ss:$8 sps:$4 sm:$0xff]   ;;  %v5951_v48 = vld [vmem:[%s8361_s1 + $0x530] ss:$8 sps:$4 sm:$0xff]  }
 0x115   :  { %4141 = vmatprep.subr.bf16.mxu0 %v5868_v49  ;;  %v5954_v49 = vld [vmem:[%s8361_s1 + $0xd30] ss:$8 sps:$4 sm:$0xff]  }
 0x117   :  { %3814 = vmatpush1.bf16.msra.mxu1 %v5863_v50  ;;  %v5959_v50 = vld [vmem:[%s8361_s1 + $0x544] ss:$8 sps:$4 sm:$0xff]  }
 0x118   :  { %4142 = vmatpush1.bf16.msra.mxu0 %v5866_v51  ;;  %3815 = vmatprep.subr.bf16.mxu1 %v5871_v52  ;;  %v5962_v51 = vld [vmem:[%s8361_s1 + $0xd44] ss:$8 sps:$4 sm:$0xff]   ;;  %v5957_v52 = vld [vmem:[%s8361_s1 + $0x540] ss:$8 sps:$4 sm:$0xff]  }
 0x119   :  { %4143 = vmatprep.subr.bf16.mxu0 %v5874_v53  ;;  %v5960_v53 = vld [vmem:[%s8361_s1 + $0xd40] ss:$8 sps:$4 sm:$0xff]  }
 0x11b   :  { %3816 = vmatpush1.bf16.msra.mxu1 %v5869_v54  ;;  %v5965_v54 = vld [vmem:[%s8361_s1 + $0x554] ss:$8 sps:$4 sm:$0xff]  }
 0x11c   :  { %4144 = vmatpush1.bf16.msra.mxu0 %v5872_v55  ;;  %3817 = vmatprep.subr.bf16.mxu1 %v5877_v56  ;;  %v5968_v55 = vld [vmem:[%s8361_s1 + $0xd54] ss:$8 sps:$4 sm:$0xff]   ;;  %v5963_v56 = vld [vmem:[%s8361_s1 + $0x550] ss:$8 sps:$4 sm:$0xff]  }
 0x11d   :  { %4145 = vmatprep.subr.bf16.mxu0 %v5880_v57  ;;  %v5966_v57 = vld [vmem:[%s8361_s1 + $0xd50] ss:$8 sps:$4 sm:$0xff]  }
 0x11f   :  { %3818 = vmatpush1.bf16.msra.mxu1 %v5875_v58  ;;  %v5971_v58 = vld [vmem:[%s8361_s1 + $0x564] ss:$8 sps:$4 sm:$0xff]  }
 0x120   :  { %4146 = vmatpush1.bf16.msra.mxu0 %v5878_v59  ;;  %3819 = vmatprep.subr.bf16.mxu1 %v5883_v60  ;;  %v5974_v59 = vld [vmem:[%s8361_s1 + $0xd64] ss:$8 sps:$4 sm:$0xff]   ;;  %v5969_v60 = vld [vmem:[%s8361_s1 + $0x560] ss:$8 sps:$4 sm:$0xff]  }
 0x121   :  { %4147 = vmatprep.subr.bf16.mxu0 %v5886_v61  ;;  %v5972_v61 = vld [vmem:[%s8361_s1 + $0xd60] ss:$8 sps:$4 sm:$0xff]  }
 0x123   :  { %3820 = vmatpush1.bf16.msra.mxu1 %v5881_v62  ;;  %v5977_v62 = vld [vmem:[%s8361_s1 + $0x574] ss:$8 sps:$4 sm:$0xff]  }
 0x124   :  { %4148 = vmatpush1.bf16.msra.mxu0 %v5884_v63  ;;  %3821 = vmatprep.subr.bf16.mxu1 %v5889_v0  ;;  %v5980_v63 = vld [vmem:[%s8361_s1 + $0xd74] ss:$8 sps:$4 sm:$0xff]   ;;  %v5975_v0 = vld [vmem:[%s8361_s1 + $0x570] ss:$8 sps:$4 sm:$0xff]  }
 0x125   :  { %4149 = vmatprep.subr.bf16.mxu0 %v5892_v1  ;;  %v5978_v1 = vld [vmem:[%s8361_s1 + $0xd70] ss:$8 sps:$4 sm:$0xff]  }
 0x127   :  { %3822 = vmatpush1.bf16.msra.mxu1 %v5887_v2  ;;  %v5983_v2 = vld [vmem:[%s8361_s1 + $0x584] ss:$8 sps:$4 sm:$0xff]  }
 0x128   :  { %4150 = vmatpush1.bf16.msra.mxu0 %v5890_v3  ;;  %3823 = vmatprep.subr.bf16.mxu1 %v5895_v4  ;;  %v5986_v3 = vld [vmem:[%s8361_s1 + $0xd84] ss:$8 sps:$4 sm:$0xff]   ;;  %v5981_v4 = vld [vmem:[%s8361_s1 + $0x580] ss:$8 sps:$4 sm:$0xff]  }
 0x129   :  { %4151 = vmatprep.subr.bf16.mxu0 %v5898_v5  ;;  %v5984_v5 = vld [vmem:[%s8361_s1 + $0xd80] ss:$8 sps:$4 sm:$0xff]  }
 0x12b   :  { %3824 = vmatpush1.bf16.msra.mxu1 %v5893_v6  ;;  %v5989_v6 = vld [vmem:[%s8361_s1 + $0x594] ss:$8 sps:$4 sm:$0xff]  }
 0x12c   :  { %4152 = vmatpush1.bf16.msra.mxu0 %v5896_v7  ;;  %3825 = vmatprep.subr.bf16.mxu1 %v5901_v8  ;;  %v5992_v7 = vld [vmem:[%s8361_s1 + $0xd94] ss:$8 sps:$4 sm:$0xff]   ;;  %v5987_v8 = vld [vmem:[%s8361_s1 + $0x590] ss:$8 sps:$4 sm:$0xff]  }
 0x12d   :  { %4153 = vmatprep.subr.bf16.mxu0 %v5904_v9  ;;  %v5990_v9 = vld [vmem:[%s8361_s1 + $0xd90] ss:$8 sps:$4 sm:$0xff]  }
 0x12f   :  { %3826 = vmatpush1.bf16.msra.mxu1 %v5899_v10  ;;  %v5995_v10 = vld [vmem:[%s8361_s1 + $0x5a4] ss:$8 sps:$4 sm:$0xff]  }
 0x130   :  { %4154 = vmatpush1.bf16.msra.mxu0 %v5902_v11  ;;  %3827 = vmatprep.subr.bf16.mxu1 %v5907_v12  ;;  %v5998_v11 = vld [vmem:[%s8361_s1 + $0xda4] ss:$8 sps:$4 sm:$0xff]   ;;  %v5993_v12 = vld [vmem:[%s8361_s1 + $0x5a0] ss:$8 sps:$4 sm:$0xff]  }
 0x131   :  { %4155 = vmatprep.subr.bf16.mxu0 %v5910_v13  ;;  %v5996_v13 = vld [vmem:[%s8361_s1 + $0xda0] ss:$8 sps:$4 sm:$0xff]  }
 0x133   :  { %3828 = vmatpush1.bf16.msra.mxu1 %v5905_v14  ;;  %v6001_v14 = vld [vmem:[%s8361_s1 + $0x5b4] ss:$8 sps:$4 sm:$0xff]  }
 0x134   :  { %4156 = vmatpush1.bf16.msra.mxu0 %v5908_v15  ;;  %3829 = vmatprep.subr.bf16.mxu1 %v5913_v16  ;;  %v6004_v15 = vld [vmem:[%s8361_s1 + $0xdb4] ss:$8 sps:$4 sm:$0xff]   ;;  %v5999_v16 = vld [vmem:[%s8361_s1 + $0x5b0] ss:$8 sps:$4 sm:$0xff]  }
 0x135   :  { %4157 = vmatprep.subr.bf16.mxu0 %v5916_v17  ;;  %v6002_v17 = vld [vmem:[%s8361_s1 + $0xdb0] ss:$8 sps:$4 sm:$0xff]  }
 0x137   :  { %3830 = vmatpush1.bf16.msra.mxu1 %v5911_v19  ;;  %v6007_v19 = vld [vmem:[%s8361_s1 + $0x5c4] ss:$8 sps:$4 sm:$0xff]  }
 0x138   :  { %4158 = vmatpush1.bf16.msra.mxu0 %v5914_v21  ;;  %3831 = vmatprep.subr.bf16.mxu1 %v5919_v22  ;;  %v6010_v21 = vld [vmem:[%s8361_s1 + $0xdc4] ss:$8 sps:$4 sm:$0xff]   ;;  %v6005_v22 = vld [vmem:[%s8361_s1 + $0x5c0] ss:$8 sps:$4 sm:$0xff]  }
 0x139   :  { %4159 = vmatprep.subr.bf16.mxu0 %v5922_v23  ;;  %v6008_v23 = vld [vmem:[%s8361_s1 + $0xdc0] ss:$8 sps:$4 sm:$0xff]  }
 0x13b   :  { %3832 = vmatpush1.bf16.msra.mxu1 %v5917_v26  ;;  %v6013_v26 = vld [vmem:[%s8361_s1 + $0x5d4] ss:$8 sps:$4 sm:$0xff]  }
 0x13c   :  { %4160 = vmatpush1.bf16.msra.mxu0 %v5920_v18  ;;  %3833 = vmatprep.subr.bf16.mxu1 %v5925_v27  ;;  %v6016_v18 = vld [vmem:[%s8361_s1 + $0xdd4] ss:$8 sps:$4 sm:$0xff]   ;;  %v6011_v27 = vld [vmem:[%s8361_s1 + $0x5d0] ss:$8 sps:$4 sm:$0xff]  }
 0x13d   :  { %4161 = vmatprep.subr.bf16.mxu0 %v5928_v28  ;;  %v6014_v28 = vld [vmem:[%s8361_s1 + $0xdd0] ss:$8 sps:$4 sm:$0xff]  }
 0x13f   :  { %3834 = vmatpush1.bf16.msra.mxu1 %v5923_v30  ;;  %v6019_v30 = vld [vmem:[%s8361_s1 + $0x5e4] ss:$8 sps:$4 sm:$0xff]  }
 0x140   :  { %4162 = vmatpush1.bf16.msra.mxu0 %v5926_v31  ;;  %3844 = vmatprep.subr.bf16.mxu1 %v5933_v24  ;;  %v6022_v31 = vld [vmem:[%s8361_s1 + $0xde4] ss:$8 sps:$4 sm:$0xff]   ;;  %v6017_v24 = vld [vmem:[%s8361_s1 + $0x5e0] ss:$8 sps:$4 sm:$0xff]  }
 0x141   :  { %4172 = vmatprep.subr.bf16.mxu0 %v5938_v25  ;;  %v6020_v25 = vld [vmem:[%s8361_s1 + $0xde0] ss:$8 sps:$4 sm:$0xff]  }
 0x142   :  { %3836 = vmatmul.mubr.bf16.vlgmr.msra.gmra.mrb[0].mxu1 %v4682_v34  ;;  %v6025_v34 = vld [vmem:[%s8361_s1 + $0x5f4] ss:$8 sps:$4 sm:$0xff]  }
 0x143   :  { %4164 = vmatmul.mubr.bf16.vlgmr.msra.gmra.mrb[0].mxu0 %v4698_v35  ;;  %3845 = vmatpush1.bf16.msra.mxu1 %v5931_v36  ;;  %v6028_v35 = vld [vmem:[%s8361_s1 + $0xdf4] ss:$8 sps:$4 sm:$0xff]   ;;  %v6023_v36 = vld [vmem:[%s8361_s1 + $0x5f0] ss:$8 sps:$4 sm:$0xff]  }
 0x144   :  { %4173 = vmatpush1.bf16.msra.mxu0 %v5936_v37  ;;  %3846 = vmatprep.subr.bf16.mxu1 %v5941_v38  ;;  %v6026_v37 = vld [vmem:[%s8361_s1 + $0xdf0] ss:$8 sps:$4 sm:$0xff]   ;;  %v6033_v38 = vld [vmem:[%s8361_s1 + $0x604] ss:$8 sps:$4 sm:$0xff]  }
 0x145   :  { %4174 = vmatprep.subr.bf16.mxu0 %v5944_v20  ;;  %3876 = vmatprep.mubr.bf16.mxu1 %v4685_v29  ;;  %v6038_v20 = vld [vmem:[%s8361_s1 + $0xe04] ss:$8 sps:$4 sm:$0xff]   ;;  %v4684_v29 = vcombine.low %v7442_v32, %v7442_v32  ;;  %v6036_v32 = vld [vmem:[%s8361_s1 + $0xe00] ss:$8 sps:$4 sm:$0xff]  }
 0x146   :  { %4204 = vmatprep.mubr.bf16.mxu0 %v4701_v39  ;;  %v4700_v39 = vcombine.low %v7447_v33, %v7447_v33  ;;  %v6041_v33 = vld [vmem:[%s8361_s1 + $0x614] ss:$8 sps:$4 sm:$0xff]  }
 0x147   :  { %3847 = vmatpush1.bf16.msra.mxu1 %v5939_v40  ;;  %v7656_v40 = vld [vmem:[%s8362_s0 + $0x30] sm:$0xff] }
 0x148   :  { %4175 = vmatpush1.bf16.msra.mxu0 %v5942_v41  ;;  %3848 = vmatprep.subr.bf16.mxu1 %v5947_v42  ;;  %v7661_v41 = vld [vmem:[%s8362_s0 + $0x70] sm:$0xff]  ;;  %v6031_v42 = vld [vmem:[%s8361_s1 + $0x600] ss:$8 sps:$4 sm:$0xff]  }
 0x149   :  { %4176 = vmatprep.subr.bf16.mxu0 %v5950_v43  ;;  %v6044_v43 = vld [vmem:[%s8361_s1 + $0xe14] ss:$8 sps:$4 sm:$0xff]  }
 0x14b   :  { %3849 = vmatpush1.bf16.msra.mxu1 %v5945_v44  ;;  %v4687_v44 = vcombine.high %v7656_v40, %v7656_v40 }
 0x14c   :  { %4177 = vmatpush1.bf16.msra.mxu0 %v5948_v45  ;;  %3850 = vmatprep.subr.bf16.mxu1 %v5953_v46  ;;  %v4703_v45 = vcombine.high %v7661_v41, %v7661_v41  ;;  %v6039_v46 = vld [vmem:[%s8361_s1 + $0x610] ss:$8 sps:$4 sm:$0xff]  }
 0x14d   :  { %4178 = vmatprep.subr.bf16.mxu0 %v5956_v47  ;;  %v6042_v47 = vld [vmem:[%s8361_s1 + $0xe10] ss:$8 sps:$4 sm:$0xff]  }
 0x14f   :  { %3851 = vmatpush1.bf16.msra.mxu1 %v5951_v48  ;;  %v6047_v48 = vld [vmem:[%s8361_s1 + $0x624] ss:$8 sps:$4 sm:$0xff]  }
 0x150   :  { %4179 = vmatpush1.bf16.msra.mxu0 %v5954_v49  ;;  %3852 = vmatprep.subr.bf16.mxu1 %v5959_v50  ;;  %v6050_v49 = vld [vmem:[%s8361_s1 + $0xe24] ss:$8 sps:$4 sm:$0xff]   ;;  %v6045_v50 = vld [vmem:[%s8361_s1 + $0x620] ss:$8 sps:$4 sm:$0xff]  }
 0x151   :  { %4180 = vmatprep.subr.bf16.mxu0 %v5962_v51  ;;  %v6048_v51 = vld [vmem:[%s8361_s1 + $0xe20] ss:$8 sps:$4 sm:$0xff]  }
 0x153   :  { %3853 = vmatpush1.bf16.msra.mxu1 %v5957_v52  ;;  %v6053_v52 = vld [vmem:[%s8361_s1 + $0x634] ss:$8 sps:$4 sm:$0xff]  }
 0x154   :  { %4181 = vmatpush1.bf16.msra.mxu0 %v5960_v53  ;;  %3854 = vmatprep.subr.bf16.mxu1 %v5965_v54  ;;  %v6056_v53 = vld [vmem:[%s8361_s1 + $0xe34] ss:$8 sps:$4 sm:$0xff]   ;;  %v6051_v54 = vld [vmem:[%s8361_s1 + $0x630] ss:$8 sps:$4 sm:$0xff]  }
 0x155   :  { %4182 = vmatprep.subr.bf16.mxu0 %v5968_v55  ;;  %v6054_v55 = vld [vmem:[%s8361_s1 + $0xe30] ss:$8 sps:$4 sm:$0xff]  }
 0x157   :  { %3855 = vmatpush1.bf16.msra.mxu1 %v5963_v56  ;;  %v6059_v56 = vld [vmem:[%s8361_s1 + $0x644] ss:$8 sps:$4 sm:$0xff]  }
 0x158   :  { %4183 = vmatpush1.bf16.msra.mxu0 %v5966_v57  ;;  %3856 = vmatprep.subr.bf16.mxu1 %v5971_v58  ;;  %v6062_v57 = vld [vmem:[%s8361_s1 + $0xe44] ss:$8 sps:$4 sm:$0xff]   ;;  %v6057_v58 = vld [vmem:[%s8361_s1 + $0x640] ss:$8 sps:$4 sm:$0xff]  }
 0x159   :  { %4184 = vmatprep.subr.bf16.mxu0 %v5974_v59  ;;  %v6060_v59 = vld [vmem:[%s8361_s1 + $0xe40] ss:$8 sps:$4 sm:$0xff]  }
 0x15b   :  { %3857 = vmatpush1.bf16.msra.mxu1 %v5969_v60  ;;  %v6065_v60 = vld [vmem:[%s8361_s1 + $0x654] ss:$8 sps:$4 sm:$0xff]  }
 0x15c   :  { %4185 = vmatpush1.bf16.msra.mxu0 %v5972_v61  ;;  %3858 = vmatprep.subr.bf16.mxu1 %v5977_v62  ;;  %v6068_v61 = vld [vmem:[%s8361_s1 + $0xe54] ss:$8 sps:$4 sm:$0xff]   ;;  %v6063_v62 = vld [vmem:[%s8361_s1 + $0x650] ss:$8 sps:$4 sm:$0xff]  }
 0x15d   :  { %4186 = vmatprep.subr.bf16.mxu0 %v5980_v63  ;;  %v6066_v63 = vld [vmem:[%s8361_s1 + $0xe50] ss:$8 sps:$4 sm:$0xff]  }
 0x15f   :  { %3859 = vmatpush1.bf16.msra.mxu1 %v5975_v0  ;;  %v6071_v0 = vld [vmem:[%s8361_s1 + $0x664] ss:$8 sps:$4 sm:$0xff]  }
 0x160   :  { %4187 = vmatpush1.bf16.msra.mxu0 %v5978_v1  ;;  %3860 = vmatprep.subr.bf16.mxu1 %v5983_v2  ;;  %v6074_v1 = vld [vmem:[%s8361_s1 + $0xe64] ss:$8 sps:$4 sm:$0xff]   ;;  %v6069_v2 = vld [vmem:[%s8361_s1 + $0x660] ss:$8 sps:$4 sm:$0xff]  }
 0x161   :  { %4188 = vmatprep.subr.bf16.mxu0 %v5986_v3  ;;  %v6072_v3 = vld [vmem:[%s8361_s1 + $0xe60] ss:$8 sps:$4 sm:$0xff]  }
 0x163   :  { %3861 = vmatpush1.bf16.msra.mxu1 %v5981_v4  ;;  %v6077_v4 = vld [vmem:[%s8361_s1 + $0x674] ss:$8 sps:$4 sm:$0xff]  }
 0x164   :  { %4189 = vmatpush1.bf16.msra.mxu0 %v5984_v5  ;;  %3862 = vmatprep.subr.bf16.mxu1 %v5989_v6  ;;  %v6080_v5 = vld [vmem:[%s8361_s1 + $0xe74] ss:$8 sps:$4 sm:$0xff]   ;;  %v6075_v6 = vld [vmem:[%s8361_s1 + $0x670] ss:$8 sps:$4 sm:$0xff]  }
 0x165   :  { %4190 = vmatprep.subr.bf16.mxu0 %v5992_v7  ;;  %v6078_v7 = vld [vmem:[%s8361_s1 + $0xe70] ss:$8 sps:$4 sm:$0xff]  }
 0x167   :  { %3863 = vmatpush1.bf16.msra.mxu1 %v5987_v8  ;;  %v6083_v8 = vld [vmem:[%s8361_s1 + $0x684] ss:$8 sps:$4 sm:$0xff]  }
 0x168   :  { %4191 = vmatpush1.bf16.msra.mxu0 %v5990_v9  ;;  %3864 = vmatprep.subr.bf16.mxu1 %v5995_v10  ;;  %v6086_v9 = vld [vmem:[%s8361_s1 + $0xe84] ss:$8 sps:$4 sm:$0xff]   ;;  %v6081_v10 = vld [vmem:[%s8361_s1 + $0x680] ss:$8 sps:$4 sm:$0xff]  }
 0x169   :  { %4192 = vmatprep.subr.bf16.mxu0 %v5998_v11  ;;  %v6084_v11 = vld [vmem:[%s8361_s1 + $0xe80] ss:$8 sps:$4 sm:$0xff]  }
 0x16b   :  { %3865 = vmatpush1.bf16.msra.mxu1 %v5993_v12  ;;  %v6089_v12 = vld [vmem:[%s8361_s1 + $0x694] ss:$8 sps:$4 sm:$0xff]  }
 0x16c   :  { %4193 = vmatpush1.bf16.msra.mxu0 %v5996_v13  ;;  %3866 = vmatprep.subr.bf16.mxu1 %v6001_v14  ;;  %v6092_v13 = vld [vmem:[%s8361_s1 + $0xe94] ss:$8 sps:$4 sm:$0xff]   ;;  %v6087_v14 = vld [vmem:[%s8361_s1 + $0x690] ss:$8 sps:$4 sm:$0xff]  }
 0x16d   :  { %4194 = vmatprep.subr.bf16.mxu0 %v6004_v15  ;;  %v6090_v15 = vld [vmem:[%s8361_s1 + $0xe90] ss:$8 sps:$4 sm:$0xff]  }
 0x16f   :  { %3867 = vmatpush1.bf16.msra.mxu1 %v5999_v16  ;;  %v6095_v16 = vld [vmem:[%s8361_s1 + $0x6a4] ss:$8 sps:$4 sm:$0xff]  }
 0x170   :  { %4195 = vmatpush1.bf16.msra.mxu0 %v6002_v17  ;;  %3868 = vmatprep.subr.bf16.mxu1 %v6007_v19  ;;  %v6098_v17 = vld [vmem:[%s8361_s1 + $0xea4] ss:$8 sps:$4 sm:$0xff]   ;;  %v6093_v19 = vld [vmem:[%s8361_s1 + $0x6a0] ss:$8 sps:$4 sm:$0xff]  }
 0x171   :  { %4196 = vmatprep.subr.bf16.mxu0 %v6010_v21  ;;  %v6096_v21 = vld [vmem:[%s8361_s1 + $0xea0] ss:$8 sps:$4 sm:$0xff]  }
 0x173   :  { %3869 = vmatpush1.bf16.msra.mxu1 %v6005_v22  ;;  %v6101_v22 = vld [vmem:[%s8361_s1 + $0x6b4] ss:$8 sps:$4 sm:$0xff]  }
 0x174   :  { %4197 = vmatpush1.bf16.msra.mxu0 %v6008_v23  ;;  %3870 = vmatprep.subr.bf16.mxu1 %v6013_v26  ;;  %v6104_v23 = vld [vmem:[%s8361_s1 + $0xeb4] ss:$8 sps:$4 sm:$0xff]   ;;  %v6099_v26 = vld [vmem:[%s8361_s1 + $0x6b0] ss:$8 sps:$4 sm:$0xff]  }
 0x175   :  { %4198 = vmatprep.subr.bf16.mxu0 %v6016_v18  ;;  %v6102_v18 = vld [vmem:[%s8361_s1 + $0xeb0] ss:$8 sps:$4 sm:$0xff]  }
 0x177   :  { %3871 = vmatpush1.bf16.msra.mxu1 %v6011_v27  ;;  %v6107_v27 = vld [vmem:[%s8361_s1 + $0x6c4] ss:$8 sps:$4 sm:$0xff]  }
 0x178   :  { %4199 = vmatpush1.bf16.msra.mxu0 %v6014_v28  ;;  %3872 = vmatprep.subr.bf16.mxu1 %v6019_v30  ;;  %v6110_v28 = vld [vmem:[%s8361_s1 + $0xec4] ss:$8 sps:$4 sm:$0xff]   ;;  %v6105_v30 = vld [vmem:[%s8361_s1 + $0x6c0] ss:$8 sps:$4 sm:$0xff]  }
 0x179   :  { %4200 = vmatprep.subr.bf16.mxu0 %v6022_v31  ;;  %v6108_v31 = vld [vmem:[%s8361_s1 + $0xec0] ss:$8 sps:$4 sm:$0xff]  }
 0x17b   :  { %3873 = vmatpush1.bf16.msra.mxu1 %v6017_v24  ;;  %v6113_v24 = vld [vmem:[%s8361_s1 + $0x6d4] ss:$8 sps:$4 sm:$0xff]  }
 0x17c   :  { %4201 = vmatpush1.bf16.msra.mxu0 %v6020_v25  ;;  %3874 = vmatprep.subr.bf16.mxu1 %v6025_v34  ;;  %v6116_v25 = vld [vmem:[%s8361_s1 + $0xed4] ss:$8 sps:$4 sm:$0xff]   ;;  %v6111_v34 = vld [vmem:[%s8361_s1 + $0x6d0] ss:$8 sps:$4 sm:$0xff]  }
 0x17d   :  { %4202 = vmatprep.subr.bf16.mxu0 %v6028_v35  ;;  %v6114_v35 = vld [vmem:[%s8361_s1 + $0xed0] ss:$8 sps:$4 sm:$0xff]  }
 0x17f   :  { %3875 = vmatpush1.bf16.msra.mxu1 %v6023_v36  ;;  %v6119_v36 = vld [vmem:[%s8361_s1 + $0x6e4] ss:$8 sps:$4 sm:$0xff]  }
 0x180   :  { %4203 = vmatpush1.bf16.msra.mxu0 %v6026_v37  ;;  %3885 = vmatprep.subr.bf16.mxu1 %v6033_v38  ;;  %v6122_v37 = vld [vmem:[%s8361_s1 + $0xee4] ss:$8 sps:$4 sm:$0xff]   ;;  %v6117_v38 = vld [vmem:[%s8361_s1 + $0x6e0] ss:$8 sps:$4 sm:$0xff]  }
 0x181   :  { %4213 = vmatprep.subr.bf16.mxu0 %v6038_v20  ;;  %v6120_v20 = vld [vmem:[%s8361_s1 + $0xee0] ss:$8 sps:$4 sm:$0xff]  }
 0x182   :  { %3877 = vmatmul.mubr.bf16.vlgmr.msra.gmra.mrb[0].mxu1 %v4684_v29  ;;  %v6125_v29 = vld [vmem:[%s8361_s1 + $0x6f4] ss:$8 sps:$4 sm:$0xff]  }
 0x183   :  { %4205 = vmatmul.mubr.bf16.vlgmr.msra.gmra.mrb[0].mxu0 %v4700_v39  ;;  %3886 = vmatpush1.bf16.msra.mxu1 %v6031_v42  ;;  %v6128_v39 = vld [vmem:[%s8361_s1 + $0xef4] ss:$8 sps:$4 sm:$0xff]   ;;  %v6123_v42 = vld [vmem:[%s8361_s1 + $0x6f0] ss:$8 sps:$4 sm:$0xff]  }
 0x184   :  { %4214 = vmatpush1.bf16.msra.mxu0 %v6036_v32  ;;  %3887 = vmatprep.subr.bf16.mxu1 %v6041_v33  ;;  %v6126_v32 = vld [vmem:[%s8361_s1 + $0xef0] ss:$8 sps:$4 sm:$0xff]   ;;  %v6133_v33 = vld [vmem:[%s8361_s1 + $0x704] ss:$8 sps:$4 sm:$0xff]  }
 0x185   :  { %4215 = vmatprep.subr.bf16.mxu0 %v6044_v43  ;;  %3917 = vmatprep.mubr.bf16.mxu1 %v4687_v44  ;;  %v6138_v43 = vld [vmem:[%s8361_s1 + $0xf04] ss:$8 sps:$4 sm:$0xff]   ;;  %v4686_v44 = vcombine.low %v7656_v40, %v7656_v40  ;;  %v6136_v40 = vld [vmem:[%s8361_s1 + $0xf00] ss:$8 sps:$4 sm:$0xff]  }
 0x186   :  { %4245 = vmatprep.mubr.bf16.mxu0 %v4703_v45  ;;  %v4702_v45 = vcombine.low %v7661_v41, %v7661_v41  ;;  %v6141_v41 = vld [vmem:[%s8361_s1 + $0x714] ss:$8 sps:$4 sm:$0xff]  }
 0x187   :  { %3888 = vmatpush1.bf16.msra.mxu1 %v6039_v46  ;;  %v7866_v46 = vld [vmem:[%s8362_s0 + $0x38] sm:$0xff] }
 0x188   :  { %4216 = vmatpush1.bf16.msra.mxu0 %v6042_v47  ;;  %3889 = vmatprep.subr.bf16.mxu1 %v6047_v48  ;;  %v7871_v47 = vld [vmem:[%s8362_s0 + $0x78] sm:$0xff]  ;;  %v6131_v48 = vld [vmem:[%s8361_s1 + $0x700] ss:$8 sps:$4 sm:$0xff]  }
 0x189   :  { %4217 = vmatprep.subr.bf16.mxu0 %v6050_v49  ;;  %v6144_v49 = vld [vmem:[%s8361_s1 + $0xf14] ss:$8 sps:$4 sm:$0xff]  }
 0x18b   :  { %3890 = vmatpush1.bf16.msra.mxu1 %v6045_v50  ;;  %v4689_v50 = vcombine.high %v7866_v46, %v7866_v46 }
 0x18c   :  { %4218 = vmatpush1.bf16.msra.mxu0 %v6048_v51  ;;  %3891 = vmatprep.subr.bf16.mxu1 %v6053_v52  ;;  %v4705_v51 = vcombine.high %v7871_v47, %v7871_v47  ;;  %v6139_v52 = vld [vmem:[%s8361_s1 + $0x710] ss:$8 sps:$4 sm:$0xff]  }
 0x18d   :  { %4219 = vmatprep.subr.bf16.mxu0 %v6056_v53  ;;  %v6142_v53 = vld [vmem:[%s8361_s1 + $0xf10] ss:$8 sps:$4 sm:$0xff]  }
 0x18f   :  { %3892 = vmatpush1.bf16.msra.mxu1 %v6051_v54  ;;  %v6147_v54 = vld [vmem:[%s8361_s1 + $0x724] ss:$8 sps:$4 sm:$0xff]  }
 0x190   :  { %4220 = vmatpush1.bf16.msra.mxu0 %v6054_v55  ;;  %3893 = vmatprep.subr.bf16.mxu1 %v6059_v56  ;;  %v6150_v55 = vld [vmem:[%s8361_s1 + $0xf24] ss:$8 sps:$4 sm:$0xff]   ;;  %v6145_v56 = vld [vmem:[%s8361_s1 + $0x720] ss:$8 sps:$4 sm:$0xff]  }
 0x191   :  { %4221 = vmatprep.subr.bf16.mxu0 %v6062_v57  ;;  %v6148_v57 = vld [vmem:[%s8361_s1 + $0xf20] ss:$8 sps:$4 sm:$0xff]  }
 0x193   :  { %3894 = vmatpush1.bf16.msra.mxu1 %v6057_v58  ;;  %v6153_v58 = vld [vmem:[%s8361_s1 + $0x734] ss:$8 sps:$4 sm:$0xff]  }
 0x194   :  { %4222 = vmatpush1.bf16.msra.mxu0 %v6060_v59  ;;  %3895 = vmatprep.subr.bf16.mxu1 %v6065_v60  ;;  %v6156_v59 = vld [vmem:[%s8361_s1 + $0xf34] ss:$8 sps:$4 sm:$0xff]   ;;  %v6151_v60 = vld [vmem:[%s8361_s1 + $0x730] ss:$8 sps:$4 sm:$0xff]  }
 0x195   :  { %4223 = vmatprep.subr.bf16.mxu0 %v6068_v61  ;;  %v6154_v61 = vld [vmem:[%s8361_s1 + $0xf30] ss:$8 sps:$4 sm:$0xff]  }
 0x197   :  { %3896 = vmatpush1.bf16.msra.mxu1 %v6063_v62  ;;  %v6159_v62 = vld [vmem:[%s8361_s1 + $0x744] ss:$8 sps:$4 sm:$0xff]  }
 0x198   :  { %4224 = vmatpush1.bf16.msra.mxu0 %v6066_v63  ;;  %3897 = vmatprep.subr.bf16.mxu1 %v6071_v0  ;;  %v6162_v63 = vld [vmem:[%s8361_s1 + $0xf44] ss:$8 sps:$4 sm:$0xff]   ;;  %v6157_v0 = vld [vmem:[%s8361_s1 + $0x740] ss:$8 sps:$4 sm:$0xff]  }
 0x199   :  { %4225 = vmatprep.subr.bf16.mxu0 %v6074_v1  ;;  %v6160_v1 = vld [vmem:[%s8361_s1 + $0xf40] ss:$8 sps:$4 sm:$0xff]  }
 0x19b   :  { %3898 = vmatpush1.bf16.msra.mxu1 %v6069_v2  ;;  %v6165_v2 = vld [vmem:[%s8361_s1 + $0x754] ss:$8 sps:$4 sm:$0xff]  }
 0x19c   :  { %4226 = vmatpush1.bf16.msra.mxu0 %v6072_v3  ;;  %3899 = vmatprep.subr.bf16.mxu1 %v6077_v4  ;;  %v6168_v3 = vld [vmem:[%s8361_s1 + $0xf54] ss:$8 sps:$4 sm:$0xff]   ;;  %v6163_v4 = vld [vmem:[%s8361_s1 + $0x750] ss:$8 sps:$4 sm:$0xff]  }
 0x19d   :  { %4227 = vmatprep.subr.bf16.mxu0 %v6080_v5  ;;  %v6166_v5 = vld [vmem:[%s8361_s1 + $0xf50] ss:$8 sps:$4 sm:$0xff]  }
 0x19f   :  { %3900 = vmatpush1.bf16.msra.mxu1 %v6075_v6  ;;  %v6171_v6 = vld [vmem:[%s8361_s1 + $0x764] ss:$8 sps:$4 sm:$0xff]  }
 0x1a0   :  { %4228 = vmatpush1.bf16.msra.mxu0 %v6078_v7  ;;  %3901 = vmatprep.subr.bf16.mxu1 %v6083_v8  ;;  %v6174_v7 = vld [vmem:[%s8361_s1 + $0xf64] ss:$8 sps:$4 sm:$0xff]   ;;  %v6169_v8 = vld [vmem:[%s8361_s1 + $0x760] ss:$8 sps:$4 sm:$0xff]  }
 0x1a1   :  { %4229 = vmatprep.subr.bf16.mxu0 %v6086_v9  ;;  %v6172_v9 = vld [vmem:[%s8361_s1 + $0xf60] ss:$8 sps:$4 sm:$0xff]  }
 0x1a3   :  { %3902 = vmatpush1.bf16.msra.mxu1 %v6081_v10  ;;  %v6177_v10 = vld [vmem:[%s8361_s1 + $0x774] ss:$8 sps:$4 sm:$0xff]  }
 0x1a4   :  { %4230 = vmatpush1.bf16.msra.mxu0 %v6084_v11  ;;  %3903 = vmatprep.subr.bf16.mxu1 %v6089_v12  ;;  %v6180_v11 = vld [vmem:[%s8361_s1 + $0xf74] ss:$8 sps:$4 sm:$0xff]   ;;  %v6175_v12 = vld [vmem:[%s8361_s1 + $0x770] ss:$8 sps:$4 sm:$0xff]  }
 0x1a5   :  { %4231 = vmatprep.subr.bf16.mxu0 %v6092_v13  ;;  %v6178_v13 = vld [vmem:[%s8361_s1 + $0xf70] ss:$8 sps:$4 sm:$0xff]  }
 0x1a7   :  { %3904 = vmatpush1.bf16.msra.mxu1 %v6087_v14  ;;  %v6183_v14 = vld [vmem:[%s8361_s1 + $0x784] ss:$8 sps:$4 sm:$0xff]  }
 0x1a8   :  { %4232 = vmatpush1.bf16.msra.mxu0 %v6090_v15  ;;  %3905 = vmatprep.subr.bf16.mxu1 %v6095_v16  ;;  %v6186_v15 = vld [vmem:[%s8361_s1 + $0xf84] ss:$8 sps:$4 sm:$0xff]   ;;  %v6181_v16 = vld [vmem:[%s8361_s1 + $0x780] ss:$8 sps:$4 sm:$0xff]  }
 0x1a9   :  { %4233 = vmatprep.subr.bf16.mxu0 %v6098_v17  ;;  %v6184_v17 = vld [vmem:[%s8361_s1 + $0xf80] ss:$8 sps:$4 sm:$0xff]  }
 0x1ab   :  { %3906 = vmatpush1.bf16.msra.mxu1 %v6093_v19  ;;  %v6189_v19 = vld [vmem:[%s8361_s1 + $0x794] ss:$8 sps:$4 sm:$0xff]  }
 0x1ac   :  { %4234 = vmatpush1.bf16.msra.mxu0 %v6096_v21  ;;  %3907 = vmatprep.subr.bf16.mxu1 %v6101_v22  ;;  %v6192_v21 = vld [vmem:[%s8361_s1 + $0xf94] ss:$8 sps:$4 sm:$0xff]   ;;  %v6187_v22 = vld [vmem:[%s8361_s1 + $0x790] ss:$8 sps:$4 sm:$0xff]  }
 0x1ad   :  { %4235 = vmatprep.subr.bf16.mxu0 %v6104_v23  ;;  %v6190_v23 = vld [vmem:[%s8361_s1 + $0xf90] ss:$8 sps:$4 sm:$0xff]  }
 0x1af   :  { %3908 = vmatpush1.bf16.msra.mxu1 %v6099_v26  ;;  %v6195_v26 = vld [vmem:[%s8361_s1 + $0x7a4] ss:$8 sps:$4 sm:$0xff]  }
 0x1b0   :  { %4236 = vmatpush1.bf16.msra.mxu0 %v6102_v18  ;;  %3909 = vmatprep.subr.bf16.mxu1 %v6107_v27  ;;  %v6198_v18 = vld [vmem:[%s8361_s1 + $0xfa4] ss:$8 sps:$4 sm:$0xff]   ;;  %v6193_v27 = vld [vmem:[%s8361_s1 + $0x7a0] ss:$8 sps:$4 sm:$0xff]  }
 0x1b1   :  { %4237 = vmatprep.subr.bf16.mxu0 %v6110_v28  ;;  %v6196_v28 = vld [vmem:[%s8361_s1 + $0xfa0] ss:$8 sps:$4 sm:$0xff]  }
 0x1b3   :  { %3910 = vmatpush1.bf16.msra.mxu1 %v6105_v30  ;;  %v6201_v30 = vld [vmem:[%s8361_s1 + $0x7b4] ss:$8 sps:$4 sm:$0xff]  }
 0x1b4   :  { %4238 = vmatpush1.bf16.msra.mxu0 %v6108_v31  ;;  %3911 = vmatprep.subr.bf16.mxu1 %v6113_v24  ;;  %v6204_v31 = vld [vmem:[%s8361_s1 + $0xfb4] ss:$8 sps:$4 sm:$0xff]   ;;  %v6199_v24 = vld [vmem:[%s8361_s1 + $0x7b0] ss:$8 sps:$4 sm:$0xff]  }
 0x1b5   :  { %4239 = vmatprep.subr.bf16.mxu0 %v6116_v25  ;;  %v6202_v25 = vld [vmem:[%s8361_s1 + $0xfb0] ss:$8 sps:$4 sm:$0xff]  }
 0x1b7   :  { %3912 = vmatpush1.bf16.msra.mxu1 %v6111_v34  ;;  %v6207_v34 = vld [vmem:[%s8361_s1 + $0x7c4] ss:$8 sps:$4 sm:$0xff]  }
 0x1b8   :  { %4240 = vmatpush1.bf16.msra.mxu0 %v6114_v35  ;;  %3913 = vmatprep.subr.bf16.mxu1 %v6119_v36  ;;  %v6210_v35 = vld [vmem:[%s8361_s1 + $0xfc4] ss:$8 sps:$4 sm:$0xff]   ;;  %v6205_v36 = vld [vmem:[%s8361_s1 + $0x7c0] ss:$8 sps:$4 sm:$0xff]  }
 0x1b9   :  { %4241 = vmatprep.subr.bf16.mxu0 %v6122_v37  ;;  %v6208_v37 = vld [vmem:[%s8361_s1 + $0xfc0] ss:$8 sps:$4 sm:$0xff]  }
 0x1bb   :  { %3914 = vmatpush1.bf16.msra.mxu1 %v6117_v38  ;;  %v6213_v38 = vld [vmem:[%s8361_s1 + $0x7d4] ss:$8 sps:$4 sm:$0xff]  }
 0x1bc   :  { %4242 = vmatpush1.bf16.msra.mxu0 %v6120_v20  ;;  %3915 = vmatprep.subr.bf16.mxu1 %v6125_v29  ;;  %v6216_v20 = vld [vmem:[%s8361_s1 + $0xfd4] ss:$8 sps:$4 sm:$0xff]   ;;  %v6211_v29 = vld [vmem:[%s8361_s1 + $0x7d0] ss:$8 sps:$4 sm:$0xff]  }
 0x1bd   :  { %4243 = vmatprep.subr.bf16.mxu0 %v6128_v39  ;;  %v6214_v39 = vld [vmem:[%s8361_s1 + $0xfd0] ss:$8 sps:$4 sm:$0xff]  }
 0x1bf   :  { %3916 = vmatpush1.bf16.msra.mxu1 %v6123_v42  ;;  %v6219_v42 = vld [vmem:[%s8361_s1 + $0x7e4] ss:$8 sps:$4 sm:$0xff]  }
 0x1c0   :  { %4244 = vmatpush1.bf16.msra.mxu0 %v6126_v32  ;;  %3926 = vmatprep.subr.bf16.mxu1 %v6133_v33  ;;  %v6222_v32 = vld [vmem:[%s8361_s1 + $0xfe4] ss:$8 sps:$4 sm:$0xff]   ;;  %v6217_v33 = vld [vmem:[%s8361_s1 + $0x7e0] ss:$8 sps:$4 sm:$0xff]  }
 0x1c1   :  { %4254 = vmatprep.subr.bf16.mxu0 %v6138_v43  ;;  %v6220_v43 = vld [vmem:[%s8361_s1 + $0xfe0] ss:$8 sps:$4 sm:$0xff]  }
 0x1c2   :  { %3918 = vmatmul.mubr.bf16.vlgmr.msra.gmra.mrb[0].mxu1 %v4686_v44  ;;  %v6225_v44 = vld [vmem:[%s8361_s1 + $0x7f4] ss:$8 sps:$4 sm:$0xff]  }
 0x1c3   :  { %4246 = vmatmul.mubr.bf16.vlgmr.msra.gmra.mrb[0].mxu0 %v4702_v45  ;;  %3927 = vmatpush1.bf16.msra.mxu1 %v6131_v48  ;;  %v6228_v45 = vld [vmem:[%s8361_s1 + $0xff4] ss:$8 sps:$4 sm:$0xff]   ;;  %v6223_v48 = vld [vmem:[%s8361_s1 + $0x7f0] ss:$8 sps:$4 sm:$0xff]  }
 0x1c4   :  { %4255 = vmatpush1.bf16.msra.mxu0 %v6136_v40  ;;  %3928 = vmatprep.subr.bf16.mxu1 %v6141_v41  ;;  %v6226_v40 = vld [vmem:[%s8361_s1 + $0xff0] ss:$8 sps:$4 sm:$0xff]   ;;  %v6235_v41 = vld [vmem:[%s8361_s1 + $0x1004] ss:$8 sps:$4 sm:$0xff]  }
 0x1c5   :  { %4256 = vmatprep.subr.bf16.mxu0 %v6144_v49  ;;  %3958 = vmatprep.mubr.bf16.mxu1 %v4689_v50  ;;  %v8069_v49 = vld [vmem:[%s8362_s0 + $0x80] sm:$0xff]  ;;  %v4688_v50 = vcombine.low %v7866_v46, %v7866_v46  ;;  %v6236_v46 = vld [vmem:[%s8361_s1 + $0x1010] ss:$8 sps:$4 sm:$0xff]  }
 0x1c6   :  { %4286 = vmatprep.mubr.bf16.mxu0 %v4705_v51  ;;  %v4704_v51 = vcombine.low %v7871_v47, %v7871_v47  ;;  %v6241_v47 = vld [vmem:[%s8361_s1 + $0x1024] ss:$8 sps:$4 sm:$0xff]  }
 0x1c7   :  { %3929 = vmatpush1.bf16.msra.mxu1 %v6139_v52  ;;  %v6233_v52 = vld [vmem:[%s8361_s1 + $0x1000] ss:$8 sps:$4 sm:$0xff]  }
 0x1c8   :  { %4257 = vmatpush1.bf16.msra.mxu0 %v6142_v53  ;;  %3930 = vmatprep.subr.bf16.mxu1 %v6147_v54  ;;  %v4707_v53 = vcombine.high %v8069_v49, %v8069_v49  ;;  %v6238_v54 = vld [vmem:[%s8361_s1 + $0x1014] ss:$8 sps:$4 sm:$0xff]  }
 0x1c9   :  { %4258 = vmatprep.subr.bf16.mxu0 %v6150_v55  ;;  %v6239_v55 = vld [vmem:[%s8361_s1 + $0x1020] ss:$8 sps:$4 sm:$0xff]  }
 0x1cb   :  { %3931 = vmatpush1.bf16.msra.mxu1 %v6145_v56  ;;  %v6244_v56 = vld [vmem:[%s8361_s1 + $0x1034] ss:$8 sps:$4 sm:$0xff]  }
 0x1cc   :  { %4259 = vmatpush1.bf16.msra.mxu0 %v6148_v57  ;;  %3932 = vmatprep.subr.bf16.mxu1 %v6153_v58  ;;  %v6242_v57 = vld [vmem:[%s8361_s1 + $0x1030] ss:$8 sps:$4 sm:$0xff]   ;;  %v6247_v58 = vld [vmem:[%s8361_s1 + $0x1044] ss:$8 sps:$4 sm:$0xff]  }
 0x1cd   :  { %4260 = vmatprep.subr.bf16.mxu0 %v6156_v59  ;;  %v6245_v59 = vld [vmem:[%s8361_s1 + $0x1040] ss:$8 sps:$4 sm:$0xff]  }
 0x1cf   :  { %3933 = vmatpush1.bf16.msra.mxu1 %v6151_v60  ;;  %v6250_v60 = vld [vmem:[%s8361_s1 + $0x1054] ss:$8 sps:$4 sm:$0xff]  }
 0x1d0   :  { %4261 = vmatpush1.bf16.msra.mxu0 %v6154_v61  ;;  %3934 = vmatprep.subr.bf16.mxu1 %v6159_v62  ;;  %v6248_v61 = vld [vmem:[%s8361_s1 + $0x1050] ss:$8 sps:$4 sm:$0xff]   ;;  %v6253_v62 = vld [vmem:[%s8361_s1 + $0x1064] ss:$8 sps:$4 sm:$0xff]  }
 0x1d1   :  { %4262 = vmatprep.subr.bf16.mxu0 %v6162_v63  ;;  %v6251_v63 = vld [vmem:[%s8361_s1 + $0x1060] ss:$8 sps:$4 sm:$0xff]  }
 0x1d3   :  { %3935 = vmatpush1.bf16.msra.mxu1 %v6157_v0  ;;  %v6256_v0 = vld [vmem:[%s8361_s1 + $0x1074] ss:$8 sps:$4 sm:$0xff]  }
 0x1d4   :  { %4263 = vmatpush1.bf16.msra.mxu0 %v6160_v1  ;;  %3936 = vmatprep.subr.bf16.mxu1 %v6165_v2  ;;  %v6254_v1 = vld [vmem:[%s8361_s1 + $0x1070] ss:$8 sps:$4 sm:$0xff]   ;;  %v6259_v2 = vld [vmem:[%s8361_s1 + $0x1084] ss:$8 sps:$4 sm:$0xff]  }
 0x1d5   :  { %4264 = vmatprep.subr.bf16.mxu0 %v6168_v3  ;;  %v6257_v3 = vld [vmem:[%s8361_s1 + $0x1080] ss:$8 sps:$4 sm:$0xff]  }
 0x1d7   :  { %3937 = vmatpush1.bf16.msra.mxu1 %v6163_v4  ;;  %v6262_v4 = vld [vmem:[%s8361_s1 + $0x1094] ss:$8 sps:$4 sm:$0xff]  }
 0x1d8   :  { %4265 = vmatpush1.bf16.msra.mxu0 %v6166_v5  ;;  %3938 = vmatprep.subr.bf16.mxu1 %v6171_v6  ;;  %v6260_v5 = vld [vmem:[%s8361_s1 + $0x1090] ss:$8 sps:$4 sm:$0xff]   ;;  %v6265_v6 = vld [vmem:[%s8361_s1 + $0x10a4] ss:$8 sps:$4 sm:$0xff]  }
 0x1d9   :  { %4266 = vmatprep.subr.bf16.mxu0 %v6174_v7  ;;  %v6263_v7 = vld [vmem:[%s8361_s1 + $0x10a0] ss:$8 sps:$4 sm:$0xff]  }
 0x1db   :  { %3939 = vmatpush1.bf16.msra.mxu1 %v6169_v8  ;;  %v6268_v8 = vld [vmem:[%s8361_s1 + $0x10b4] ss:$8 sps:$4 sm:$0xff]  }
 0x1dc   :  { %4267 = vmatpush1.bf16.msra.mxu0 %v6172_v9  ;;  %3940 = vmatprep.subr.bf16.mxu1 %v6177_v10  ;;  %v6266_v9 = vld [vmem:[%s8361_s1 + $0x10b0] ss:$8 sps:$4 sm:$0xff]   ;;  %v6271_v10 = vld [vmem:[%s8361_s1 + $0x10c4] ss:$8 sps:$4 sm:$0xff]  }
 0x1dd   :  { %4268 = vmatprep.subr.bf16.mxu0 %v6180_v11  ;;  %v6269_v11 = vld [vmem:[%s8361_s1 + $0x10c0] ss:$8 sps:$4 sm:$0xff]  }
 0x1df   :  { %3941 = vmatpush1.bf16.msra.mxu1 %v6175_v12  ;;  %v6274_v12 = vld [vmem:[%s8361_s1 + $0x10d4] ss:$8 sps:$4 sm:$0xff]  }
 0x1e0   :  { %4269 = vmatpush1.bf16.msra.mxu0 %v6178_v13  ;;  %3942 = vmatprep.subr.bf16.mxu1 %v6183_v14  ;;  %v6272_v13 = vld [vmem:[%s8361_s1 + $0x10d0] ss:$8 sps:$4 sm:$0xff]   ;;  %v6277_v14 = vld [vmem:[%s8361_s1 + $0x10e4] ss:$8 sps:$4 sm:$0xff]  }
 0x1e1   :  { %4270 = vmatprep.subr.bf16.mxu0 %v6186_v15  ;;  %v6275_v15 = vld [vmem:[%s8361_s1 + $0x10e0] ss:$8 sps:$4 sm:$0xff]  }
 0x1e3   :  { %3943 = vmatpush1.bf16.msra.mxu1 %v6181_v16  ;;  %v6280_v16 = vld [vmem:[%s8361_s1 + $0x10f4] ss:$8 sps:$4 sm:$0xff]  }
 0x1e4   :  { %4271 = vmatpush1.bf16.msra.mxu0 %v6184_v17  ;;  %3944 = vmatprep.subr.bf16.mxu1 %v6189_v19  ;;  %v6278_v17 = vld [vmem:[%s8361_s1 + $0x10f0] ss:$8 sps:$4 sm:$0xff]   ;;  %v6285_v19 = vld [vmem:[%s8361_s1 + $0x1104] ss:$8 sps:$4 sm:$0xff]  }
 0x1e5   :  { %4272 = vmatprep.subr.bf16.mxu0 %v6192_v21  ;;  %v8176_v21 = vld [vmem:[%s8362_s0 + $0x88] sm:$0xff] }
 0x1e7   :  { %3945 = vmatpush1.bf16.msra.mxu1 %v6187_v22  ;;  %v4706_v22 = vcombine.low %v8069_v49, %v8069_v49  ;;  %v6339_v49 = vld [vmem:[%s8363_s3 + $0x58] sm:$0xff]  }
 0x1e8   :  { %4273 = vmatpush1.bf16.msra.mxu0 %v6190_v23  ;;  %3946 = vmatprep.subr.bf16.mxu1 %v6195_v26  ;;  %v6283_v23 = vld [vmem:[%s8361_s1 + $0x1100] ss:$8 sps:$4 sm:$0xff]   ;;  %v4709_v26 = vcombine.high %v8176_v21, %v8176_v21 }
 0x1e9   :  { %4274 = vmatprep.subr.bf16.mxu0 %v6198_v18  ;;  %v6288_v18 = vld [vmem:[%s8361_s1 + $0x1114] ss:$8 sps:$4 sm:$0xff]  }
 0x1eb   :  { %3947 = vmatpush1.bf16.msra.mxu1 %v6193_v27  ;;  %v6286_v27 = vld [vmem:[%s8361_s1 + $0x1110] ss:$8 sps:$4 sm:$0xff]  }
 0x1ec   :  { %4275 = vmatpush1.bf16.msra.mxu0 %v6196_v28  ;;  %3948 = vmatprep.subr.bf16.mxu1 %v6201_v30  ;;  %v6291_v28 = vld [vmem:[%s8361_s1 + $0x1124] ss:$8 sps:$4 sm:$0xff]   ;;  %v6289_v30 = vld [vmem:[%s8361_s1 + $0x1120] ss:$8 sps:$4 sm:$0xff]  }
 0x1ed   :  { %4276 = vmatprep.subr.bf16.mxu0 %v6204_v31  ;;  %v6294_v31 = vld [vmem:[%s8361_s1 + $0x1134] ss:$8 sps:$4 sm:$0xff]  }
 0x1ef   :  { %3949 = vmatpush1.bf16.msra.mxu1 %v6199_v24  ;;  %v6292_v24 = vld [vmem:[%s8361_s1 + $0x1130] ss:$8 sps:$4 sm:$0xff]  }
 0x1f0   :  { %4277 = vmatpush1.bf16.msra.mxu0 %v6202_v25  ;;  %3950 = vmatprep.subr.bf16.mxu1 %v6207_v34  ;;  %v6297_v25 = vld [vmem:[%s8361_s1 + $0x1144] ss:$8 sps:$4 sm:$0xff]   ;;  %v6295_v34 = vld [vmem:[%s8361_s1 + $0x1140] ss:$8 sps:$4 sm:$0xff]  }
 0x1f1   :  { %4278 = vmatprep.subr.bf16.mxu0 %v6210_v35  ;;  %v6300_v35 = vld [vmem:[%s8361_s1 + $0x1154] ss:$8 sps:$4 sm:$0xff]  }
 0x1f3   :  { %3951 = vmatpush1.bf16.msra.mxu1 %v6205_v36  ;;  %v6298_v36 = vld [vmem:[%s8361_s1 + $0x1150] ss:$8 sps:$4 sm:$0xff]  }
 0x1f4   :  { %4279 = vmatpush1.bf16.msra.mxu0 %v6208_v37  ;;  %3952 = vmatprep.subr.bf16.mxu1 %v6213_v38  ;;  %v6303_v37 = vld [vmem:[%s8361_s1 + $0x1164] ss:$8 sps:$4 sm:$0xff]   ;;  %v6301_v38 = vld [vmem:[%s8361_s1 + $0x1160] ss:$8 sps:$4 sm:$0xff]  }
 0x1f5   :  { %4280 = vmatprep.subr.bf16.mxu0 %v6216_v20  ;;  %v6306_v20 = vld [vmem:[%s8361_s1 + $0x1174] ss:$8 sps:$4 sm:$0xff]  }
 0x1f7   :  { %3953 = vmatpush1.bf16.msra.mxu1 %v6211_v29  ;;  %v6304_v29 = vld [vmem:[%s8361_s1 + $0x1170] ss:$8 sps:$4 sm:$0xff]  }
 0x1f8   :  { %4281 = vmatpush1.bf16.msra.mxu0 %v6214_v39  ;;  %3954 = vmatprep.subr.bf16.mxu1 %v6219_v42  ;;  %v6333_v39 = vld [vmem:[%s8363_s3 + $0x40] sm:$0xff]  }
 0x1f9   :  { %4282 = vmatprep.subr.bf16.mxu0 %v6222_v32  ;;  %v6309_v42 = vld [vmem:[%s8361_s1 + $0x1184] ss:$8 sps:$4 sm:$0xff]  }
 0x1fa   :  { %v6334_v32 = vld [vmem:[%s8363_s3] sm:$0xff]  }
 0x1fb   :  { %3955 = vmatpush1.bf16.msra.mxu1 %v6217_v33  ;;  %v6335_v33 = vld [vmem:[%s8363_s3 + $0x48] sm:$0xff]  }
 0x1fc   :  { %4283 = vmatpush1.bf16.msra.mxu0 %v6220_v43  ;;  %3956 = vmatprep.subr.bf16.mxu1 %v6225_v44  ;;  %v6336_v43 = vld [vmem:[%s8363_s3 + $0x8] sm:$0xff]   ;;  %v6337_v44 = vld [vmem:[%s8363_s3 + $0x50] sm:$0xff]  }
 0x1fd   :  { %4284 = vmatprep.subr.bf16.mxu0 %v6228_v45  ;;  %v6307_v45 = vld [vmem:[%s8361_s1 + $0x1180] ss:$8 sps:$4 sm:$0xff]  }
 0x1ff   :  { %3957 = vmatpush1.bf16.msra.mxu1 %v6223_v48  ;;  %v6312_v48 = vld [vmem:[%s8361_s1 + $0x1194] ss:$8 sps:$4 sm:$0xff]  }
 0x200   :  { %4285 = vmatpush1.bf16.msra.mxu0 %v6226_v40  ;;  %5312 = vmatprep.subr.bf16.mxu1 %v6333_v39  ;;  %v6338_v40 = vld [vmem:[%s8363_s3 + $0x10] sm:$0xff]   ;;  %v6356_v39 = vld [vmem:[%s8364_s5 + $0x38] sm:$0xff]  }
 0x201   :  { %4295 = vmatprep.subr.bf16.mxu0 %v6235_v41  ;;  %v6310_v41 = vld [vmem:[%s8361_s1 + $0x1190] ss:$8 sps:$4 sm:$0xff]  }
 0x202   :  { %3959 = vmatmul.mubr.bf16.vlgmr.msra.gmra.mrb[0].mxu1 %v4688_v50  ;;  %v6315_v50 = vld [vmem:[%s8361_s1 + $0x11a4] ss:$8 sps:$4 sm:$0xff]  }
 0x203   :  { %4287 = vmatmul.mubr.bf16.vlgmr.msra.gmra.mrb[0].mxu0 %v4704_v51  ;;  %5313 = vmatpush3.bf16.msra.mxu1 %v6334_v32  ;;  %v6340_v51 = vld [vmem:[%s8363_s3 + $0x18] sm:$0xff]   ;;  %v5286_v32 = vld [vmem:[%s8366_s4] ss:$0 sm:$0xff] }
 0x204   :  { %4296 = vmatpush1.bf16.msra.mxu0 %v6233_v52  ;;  %4327 = vmatprep.mubr.bf16.mxu0 %v4707_v53  ;;  %v6341_v52 = vld [vmem:[%s8363_s3 + $0x60] sm:$0xff]  }
 0x205   :  { %4297 = vmatprep.subr.bf16.mxu0 %v6238_v54  ;;  %5314 = vmatprep.subr.bf16.mxu1 %v6335_v33  ;;  %v6313_v53 = vld [vmem:[%s8361_s1 + $0x11a0] ss:$8 sps:$4 sm:$0xff]   ;;  %v6318_v54 = vld [vmem:[%s8361_s1 + $0x11b4] ss:$8 sps:$4 sm:$0xff]  }
 0x207   :  { %5315 = vmatpush3.bf16.msra.mxu1 %v6336_v43 }
 0x208   :  { %4298 = vmatpush1.bf16.msra.mxu0 %v6236_v46  ;;  %5316 = vmatprep.subr.bf16.mxu1 %v6337_v44  ;;  %v6342_v46 = vld [vmem:[%s8363_s3 + $0x20] sm:$0xff]  }
 0x209   :  { %4299 = vmatprep.subr.bf16.mxu0 %v6241_v47  ;;  %v6343_v47 = vld [vmem:[%s8363_s3 + $0x68] sm:$0xff]  }
 0x20b   :  { %5317 = vmatpush3.bf16.msra.mxu1 %v6338_v40 }
 0x20c   :  { %4300 = vmatpush1.bf16.msra.mxu0 %v6239_v55  ;;  %5318 = vmatprep.subr.bf16.mxu1 %v6339_v49  ;;  %v6316_v55 = vld [vmem:[%s8361_s1 + $0x11b0] ss:$8 sps:$4 sm:$0xff]   ;;  %v5303_v49 = vld [vmem:[%s8367_s6] ss:$0 sm:$0xff] }
 0x20d   :  { %4301 = vmatprep.subr.bf16.mxu0 %v6244_v56  ;;  %v6321_v56 = vld [vmem:[%s8361_s1 + $0x11c4] ss:$8 sps:$4 sm:$0xff]  }
 0x20f   :  { %5319 = vmatpush3.bf16.msra.mxu1 %v6340_v51 }
 0x210   :  { %4302 = vmatpush1.bf16.msra.mxu0 %v6242_v57  ;;  %5320 = vmatprep.subr.bf16.mxu1 %v6341_v52  ;;  %v6344_v57 = vld [vmem:[%s8363_s3 + $0x28] sm:$0xff]  }
 0x211   :  { %4303 = vmatprep.subr.bf16.mxu0 %v6247_v58  ;;  %v6319_v58 = vld [vmem:[%s8361_s1 + $0x11c0] ss:$8 sps:$4 sm:$0xff]  }
 0x213   :  { %5321 = vmatpush3.bf16.msra.mxu1 %v6342_v46 }
 0x214   :  { %4304 = vmatpush1.bf16.msra.mxu0 %v6245_v59  ;;  %5322 = vmatprep.subr.bf16.mxu1 %v6343_v47  ;;  %v6324_v59 = vld [vmem:[%s8361_s1 + $0x11d4] ss:$8 sps:$4 sm:$0xff]  }
 0x215   :  { %4305 = vmatprep.subr.bf16.mxu0 %v6250_v60  ;;  %v6322_v60 = vld [vmem:[%s8361_s1 + $0x11d0] ss:$8 sps:$4 sm:$0xff]  }
 0x217   :  { %5323 = vmatpush3.bf16.msra.mxu1 %v6344_v57 }
 0x218   :  { %4306 = vmatpush1.bf16.msra.mxu0 %v6248_v61  ;;  %v6327_v61 = vld [vmem:[%s8361_s1 + $0x11e4] ss:$8 sps:$4 sm:$0xff]  }
 0x219   :  { %4307 = vmatprep.subr.bf16.mxu0 %v6253_v62  ;;  %v6325_v62 = vld [vmem:[%s8361_s1 + $0x11e0] ss:$8 sps:$4 sm:$0xff]  }
 0x21c   :  { %4308 = vmatpush1.bf16.msra.mxu0 %v6251_v63  ;;  %v6330_v63 = vld [vmem:[%s8361_s1 + $0x11f4] ss:$8 sps:$4 sm:$0xff]  }
 0x21d   :  { %4309 = vmatprep.subr.bf16.mxu0 %v6256_v0  ;;  %v6328_v0 = vld [vmem:[%s8361_s1 + $0x11f0] ss:$8 sps:$4 sm:$0xff]  }
 0x220   :  { %4310 = vmatpush1.bf16.msra.mxu0 %v6254_v1  ;;  %v4708_v1 = vcombine.low %v8176_v21, %v8176_v21 }
 0x221   :  { %4311 = vmatprep.subr.bf16.mxu0 %v6259_v2  ;;  %v6345_v2 = vld [vmem:[%s8363_s3 + $0x70] sm:$0xff]  }
 0x222   :  { %5324 = vmatprep.subr.bf16.mxu1 %v6345_v2 }
 0x224   :  { %4312 = vmatpush1.bf16.msra.mxu0 %v6257_v3 }
 0x225   :  { %4313 = vmatprep.subr.bf16.mxu0 %v6262_v4  ;;  %v6346_v4 = vld [vmem:[%s8363_s3 + $0x30] sm:$0xff]  }
 0x226   :  { %5325 = vmatpush3.bf16.msra.mxu1 %v6346_v4 }
 0x228   :  { %4314 = vmatpush1.bf16.msra.mxu0 %v6260_v5 }
 0x229   :  { %4315 = vmatprep.subr.bf16.mxu0 %v6265_v6 }
 0x22c   :  { %4316 = vmatpush1.bf16.msra.mxu0 %v6263_v7 }
 0x22d   :  { %4317 = vmatprep.subr.bf16.mxu0 %v6268_v8  ;;  %v6347_v8 = vld [vmem:[%s8363_s3 + $0x78] sm:$0xff]  }
 0x22e   :  { %5326 = vmatprep.subr.bf16.mxu1 %v6347_v8 }
 0x230   :  { %4318 = vmatpush1.bf16.msra.mxu0 %v6266_v9  ;;  %v6348_v9 = vld [vmem:[%s8363_s3 + $0x38] sm:$0xff]  }
 0x231   :  { %4319 = vmatprep.subr.bf16.mxu0 %v6271_v10  ;;  %5327 = vmatpush3.bf16.msra.mxu1 %v6348_v9  ;;  %v6357_v10 = vmov 0.0  }
 0x232   :  { %5343 = vmatprep.subr.bf16.mxu1 %v6357_v10 }
 0x234   :  { %4320 = vmatpush1.bf16.msra.mxu0 %v6269_v11  ;;  %v623_v11 = vlaneseq }
 0x235   :  { %4321 = vmatprep.subr.bf16.mxu0 %v6274_v12 }
 0x236   :  { %v624_v12 = vshrl.u32 %v623_v11, 7 }
 0x238   :  { %4322 = vmatpush1.bf16.msra.mxu0 %v6272_v13  ;;  %v625_v13 = vsub.s32 0, %v624_v12 }
 0x239   :  { %4323 = vmatprep.subr.bf16.mxu0 %v6277_v14  ;;  %v621_v14 = vld [vmem:[%s8365_s2] sm:$0x3] }
 0x23c   :  { %4324 = vmatpush1.bf16.msra.mxu0 %v6275_v15  ;;  %v629_v15 = vsub.s32 1, %v624_v12 }
 0x23d   :  { %4325 = vmatprep.subr.bf16.mxu0 %v6280_v16  ;;  %v626_v16 = vrot.slane %v621_v14, %v625_v13 }
 0x240   :  { %4326 = vmatpush1.bf16.msra.mxu0 %v6278_v17  ;;  %v630_v17 = vrot.slane %v621_v14, %v629_v15 }
 0x241   :  { %4336 = vmatprep.subr.bf16.mxu0 %v6285_v19 }
 0x243   :  { %4328 = vmatmul.mubr.bf16.vlgmr.msra.gmra.mrb[0].mxu0 %v4706_v22 }
 0x244   :  { %4337 = vmatpush1.bf16.msra.mxu0 %v6283_v23  ;;  %4368 = vmatprep.mubr.bf16.mxu0 %v4709_v26 }
 0x245   :  { %4338 = vmatprep.subr.bf16.mxu0 %v6288_v18 }
 0x248   :  { %4339 = vmatpush1.bf16.msra.mxu0 %v6286_v27 }
 0x249   :  { %4340 = vmatprep.subr.bf16.mxu0 %v6291_v28 }
 0x24c   :  { %4341 = vmatpush1.bf16.msra.mxu0 %v6289_v30 }
 0x24d   :  { %4342 = vmatprep.subr.bf16.mxu0 %v6294_v31 }
 0x250   :  { %4343 = vmatpush1.bf16.msra.mxu0 %v6292_v24 }
 0x251   :  { %4344 = vmatprep.subr.bf16.mxu0 %v6297_v25  ;;  %v6349_v25 = vld [vmem:[%s8364_s5] sm:$0xff]  }
 0x254   :  { %4345 = vmatpush1.bf16.msra.mxu0 %v6295_v34 }
 0x255   :  { %4346 = vmatprep.subr.bf16.mxu0 %v6300_v35  ;;  %v6350_v35 = vld [vmem:[%s8364_s5 + $0x8] sm:$0xff]  }
 0x258   :  { %4347 = vmatpush1.bf16.msra.mxu0 %v6298_v36  ;;  %v6351_v36 = vld [vmem:[%s8364_s5 + $0x10] sm:$0xff]  }
 0x259   :  { %4348 = vmatprep.subr.bf16.mxu0 %v6303_v37  ;;  %v6352_v37 = vld [vmem:[%s8364_s5 + $0x18] sm:$0xff]  }
 0x25c   :  { %4349 = vmatpush1.bf16.msra.mxu0 %v6301_v38  ;;  %v6353_v38 = vld [vmem:[%s8364_s5 + $0x20] sm:$0xff]  }
 0x25d   :  { %4350 = vmatprep.subr.bf16.mxu0 %v6306_v20  ;;  %v6354_v20 = vld [vmem:[%s8364_s5 + $0x28] sm:$0xff]  }
 0x260   :  { %4351 = vmatpush1.bf16.msra.mxu0 %v6304_v29  ;;  %v6355_v29 = vld [vmem:[%s8364_s5 + $0x30] sm:$0xff]  }
 0x261   :  { %4352 = vmatprep.subr.bf16.mxu0 %v6309_v42 }
 0x264   :  { %4353 = vmatpush1.bf16.msra.mxu0 %v6307_v45 }
 0x265   :  { %4354 = vmatprep.subr.bf16.mxu0 %v6312_v48 }
 0x268   :  { %4355 = vmatpush1.bf16.msra.mxu0 %v6310_v41 }
 0x269   :  { %4356 = vmatprep.subr.bf16.mxu0 %v6315_v50 }
 0x26c   :  { %4357 = vmatpush1.bf16.msra.mxu0 %v6313_v53 }
 0x26d   :  { %4358 = vmatprep.subr.bf16.mxu0 %v6318_v54 }
 0x270   :  { %4359 = vmatpush1.bf16.msra.mxu0 %v6316_v55 }
 0x271   :  { %4360 = vmatprep.subr.bf16.mxu0 %v6321_v56 }
 0x274   :  { %4361 = vmatpush1.bf16.msra.mxu0 %v6319_v58 }
 0x275   :  { %4362 = vmatprep.subr.bf16.mxu0 %v6324_v59 }
 0x278   :  { %4363 = vmatpush1.bf16.msra.mxu0 %v6322_v60 }
 0x279   :  { %4364 = vmatprep.subr.bf16.mxu0 %v6327_v61 }
 0x27c   :  { %4365 = vmatpush1.bf16.msra.mxu0 %v6325_v62 }
 0x27d   :  { %4366 = vmatprep.subr.bf16.mxu0 %v6330_v63 }
 0x280   :  { %4367 = vmatpush1.bf16.msra.mxu0 %v6328_v0 }
 0x283   :  { %4369 = vmatmul.mubr.bf16.vlgmr.msra.gmra.mrb[0].mxu0 %v4708_v1 }
 0x2d5   :  { %v3960_v3 = vpop.f32.mrb[0].mxu1 }
 0x2d6   :  { %v3962_v5 = vpop.f32.mrb[1].mxu1  ;;  %v5363_v19 = vadd.f32 %v3960_v3, %v626_v16 }
 0x2d7   :  { %v3964_v6 = vpop.f32.mrb[2].mxu1  ;;  %v5365_v21 = vadd.f32 %v3962_v5, %v630_v17 }
 0x2d8   :  { %v3965_v7 = vpop.f32.mrb[3].mxu1 }
 0x356   :  { %v4370_v22 = vpop.f32.mrb[0].mxu0 }
 0x357   :  { %v5364_v23 = vadd.f32 %v5363_v19, %v4370_v22  ;;  %v4372_v26 = vpop.f32.mrb[1].mxu0 }
 0x358   :  { %v5366_v18 = vadd.f32 %v5365_v21, %v4372_v26  ;;  %v4374_v27 = vpop.f32.mrb[2].mxu0 }
 0x359   :  { %v4377_v28 = vmax.f32 %v5364_v23, 0.0  ;;  %v4375_v30 = vpop.f32.mrb[3].mxu0 }
 0x35a   :  { %v4378_v31 = vmax.f32 %v5366_v18, 0.0 }
 0x35b   :  { %v4379_v34 = vpack.c.bf16 %v4377_v28, %v4377_v28 }
 0x35c   :  { %v4380_v24 = vpack.c.bf16 %v4378_v31, %v4378_v31 }
 0x35e   :  { %4548 = vmatprep.mubr.bf16.mxu1 %v4380_v24 }
 0x35f   :  { %4549 = vmatmul.mubr.bf16.vlgmr.msra.gmra.mrb[4].mxu1 %v4379_v34 }
 0x360   :  { %5344 = vmatpush3.bf16.msra.mxu1 %v6349_v25  ;;  %5359 = vmatprep.mubr.msk.bf16.mxu1 %vm6358_vm0, %v6357_v10 }
 0x361   :  { %5345 = vmatprep.subr.bf16.mxu1 %v6357_v10 }
 0x364   :  { %5346 = vmatpush3.bf16.msra.mxu1 %v6350_v35 }
 0x365   :  { %5347 = vmatprep.subr.bf16.mxu1 %v6357_v10 }
 0x368   :  { %5348 = vmatpush3.bf16.msra.mxu1 %v6351_v36 }
 0x369   :  { %5349 = vmatprep.subr.bf16.mxu1 %v6357_v10 }
 0x36c   :  { %5350 = vmatpush3.bf16.msra.mxu1 %v6352_v37 }
 0x36d   :  { %5351 = vmatprep.subr.bf16.mxu1 %v6357_v10 }
 0x370   :  { %5352 = vmatpush3.bf16.msra.mxu1 %v6353_v38 }
 0x371   :  { %5353 = vmatprep.subr.bf16.mxu1 %v6357_v10 }
 0x374   :  { %5354 = vmatpush3.bf16.msra.mxu1 %v6354_v20 }
 0x375   :  { %5355 = vmatprep.subr.bf16.mxu1 %v6357_v10 }
 0x378   :  { %5356 = vmatpush3.bf16.msra.mxu1 %v6355_v29 }
 0x379   :  { %5357 = vmatprep.subr.bf16.mxu1 %v6357_v10 }
 0x37c   :  { %5358 = vmatpush3.bf16.msra.mxu1 %v6356_v39 }
 0x432   :  { %v5328_v42 = vpop.f32.mrb[4].mxu1 }
 0x433   :  { %v5329_v33 = vpop.f32.mrb[5].mxu1 }
 0x434   :  { %v5330_v43 = vadd.f32 %v5329_v33, %v5328_v42  ;;  %v5331_v44 = vpop.f32.mrb[6].mxu1 }
 0x435   :  { %v5332_v45 = vpop.f32.mrb[7].mxu1 }
 0x436   :  { %v4551_v48 = vadd.f32 %v5330_v43, %v5286_v32 }
 0x438   :  { %v4556_v40 = vmax.f32 %v4551_v48, 0.0 }
 0x43a   :  { %v4557_v41 = vpack.c.bf16 %v4556_v40, %v4556_v40 }
 0x43c   :  { %5360 = vmatmul.mubr.bf16.vlgmr.msra.gmra.mrb[8].mxu1 %v4557_v41 }
 0x50f   :  { %v4663_v50 = vpop.f32.mrb[8].mxu1 }
 0x510   :  { %v4664_v51 = vadd.f32 %v5303_v49, %v4663_v50  ;;  %v5361_v52 = vpop.f32.mrb[9].mxu1 }
 0x511   :  { %v4666_v53 = vpop.f32.mrb[10].mxu1 }
 0x512   :  { %4669 = vst [vmem:[%s8368_s7] sm:$0xff] %v4664_v51  ;;  %v5362_v54 = vpop.f32.mrb[11].mxu1 }

</bundles_post_ra>
